<compile_context>
chip_gen: v6e
topology: v6e:2x2x1
jax: 0.10.0
libtpu: 0.0.40
codegen_flags: <defaults>
</compile_context>

<pallas_src>
import jax
import jax.numpy as jnp
from jax import lax
from jax.experimental import pallas as pl
from jax.experimental.pallas import tpu as pltpu


def _phase_conv_params(K: int):
    """Polyphase bookkeeping for nearest-2x upsample followed by a KxK 'same' conv (odd K)."""
    assert K % 2 == 1, "only odd kernel sizes are supported"
    p = K // 2
    R = (K + 1) // 2                                 # taps per phase per spatial dim
    rmin = [(a - p) // 2 for a in (0, 1)]            # min original-res offset, per phase
    rmax = [(a + K - 1 - p) // 2 for a in (0, 1)]    # max original-res offset, per phase
    for a in (0, 1):
        assert rmax[a] - rmin[a] + 1 == R
    pad_lo = -min(rmin)
    pad_hi = max(rmax)
    base = [rmin[a] + pad_lo for a in (0, 1)]        # window start in the padded scratch
    return p, R, pad_lo, pad_hi, rmin, base


def _make_upconv_kernel(Cin, Cout, H, W, R, pad_lo, base):
    Kc = R * R * Cin
    W2 = 2 * W
    PE = pad_lo

    def kernel(x_ref, wp_ref, e_ref, o_ref, xpad_ref, col_ref, acc_ref):
        # x_ref:  (Cin, H, W)            original-resolution NCHW slab for one image
        # wp_ref: (2, 2, Cout, Kc)       polyphase-collapsed weights
        # e_ref:  (2, W, 2W)             constant column pixel-shuffle scatter matrices
        # o_ref:  (Cout, 2H, 2W)         NCHW output slab (lane axis = 2W, dense)
        # xpad_ref: (H+pads, Cin, W+pads) zero-padded, row-major-relayout input (VMEM)
        # col_ref:  (H, Kc, W)           im2col slab (VMEM)
        # acc_ref:  (H, Cout, 2W)        f32 accumulator (VMEM)

        # Zero halo + relayout copy NCHW -> (row, Cin, col), padded.  Cheap VMEM-only work;
        # replaces the old wrapper-side jnp.repeat/jnp.pad HBM blow-up.
        xpad_ref[...] = jnp.zeros(xpad_ref.shape, xpad_ref.dtype)
        for ci in range(Cin):
            xpad_ref[PE:PE + H, ci, PE:PE + W] = x_ref[ci].astype(xpad_ref.dtype)

        for a in (0, 1):                      # output row phase (rows 2*h + a)
            for b in (0, 1):                  # output column phase (cols 2*w + b)
                # Build the im2col slab for this phase: contraction depth R*R*Cin.
                for rr in range(R):
                    for ss in range(R):
                        t = rr * R + ss
                        col_ref[:, t * Cin:(t + 1) * Cin, :] = xpad_ref[
                            base[a] + rr: base[a] + rr + H, :,
                            base[b] + ss: base[b] + ss + W]

                # One fat batched matmul over rows: (H, Cout, Kc) x (H, Kc, W) -> (H, Cout, W)
                wb = jnp.broadcast_to(wp_ref[a, b], (H, Cout, Kc))
                pab = jnp.einsum('hck,hkw->hcw', wb, col_ref[...],
                                 preferred_element_type=jnp.float32)

                # Column pixel-shuffle via a constant scatter matmul (keeps the store path dense).
                contrib = jnp.dot(pab.reshape(H * Cout, W), e_ref[b],
                                  preferred_element_type=jnp.float32)
                contrib = contrib.reshape(H, Cout, W2)
                if b == 0:
                    acc_ref[...] = contrib
                else:
                    acc_ref[...] += contrib

            # Write interleaved output rows 2*h + a as full-width lane-dense rows.
            for h in range(H):
                o_ref[:, 2 * h + a, :] = acc_ref[h].astype(o_ref.dtype)

    return kernel


def upconv_pallas(x_nchw: jax.Array, weight_oihw: jax.Array) -> jax.Array:
    """Equivalent of UpConv.forward: F.interpolate(x, scale_factor=2) -> conv(k, s=1, p=k//2).

    x_nchw:      (N, Cin, H, W)    float32
    weight_oihw: (Cout, Cin, K, K) float32 (PyTorch nn.Conv2d weight layout, no bias)
    returns:     (N, Cout, 2H, 2W) float32
    """
    N, Cin, H, W = x_nchw.shape
    Cout, Cin_w, K, K2 = weight_oihw.shape
    assert Cin_w == Cin and K == K2
    p, R, pad_lo, pad_hi, rmin, base = _phase_conv_params(K)
    Kc = R * R * Cin
    H2, W2 = 2 * H, 2 * W
    Hp = H + pad_lo + pad_hi
    Wp = W + pad_lo + pad_hi

    w = weight_oihw.astype(jnp.float32)

    # Polyphase-collapsed weights: (2, 2, Cout, R*R*Cin).  Tap ordering matches the kernel's
    # im2col fill: k-index = (rr*R + ss)*Cin + ci.
    wphase = jnp.zeros((2, 2, Cout, Kc), jnp.float32)
    for a in (0, 1):
        for b in (0, 1):
            for dh in range(K):
                rr = (a + dh - p) // 2 - rmin[a]
                for dw in range(K):
                    ss = (b + dw - p) // 2 - rmin[b]
                    t = rr * R + ss
                    wphase = wphase.at[a, b, :, t * Cin:(t + 1) * Cin].add(w[:, :, dh, dw])

    # Constant column-interleave scatter matrices E_b[w, 2*w + b] = 1: (2, W, 2W).
    cols = jnp.arange(W, dtype=jnp.int32)[:, None]
    outc = jnp.arange(W2, dtype=jnp.int32)[None, :]
    emat = jnp.stack([(outc == 2 * cols + b) for b in (0, 1)], axis=0).astype(jnp.float32)

    kernel = _make_upconv_kernel(Cin, Cout, H, W, R, pad_lo, base)

    out = pl.pallas_call(
        kernel,
        out_shape=jax.ShapeDtypeStruct((N, Cout, H2, W2), x_nchw.dtype),
        grid_spec=pltpu.PrefetchScalarGridSpec(
            num_scalar_prefetch=0,
            grid=(N,),
            in_specs=[
                pl.BlockSpec((None, Cin, H, W), lambda n: (n, 0, 0, 0)),
                pl.BlockSpec((2, 2, Cout, Kc), lambda n: (0, 0, 0, 0)),
                pl.BlockSpec((2, W, W2), lambda n: (0, 0, 0)),
            ],
            out_specs=pl.BlockSpec((None, Cout, H2, W2), lambda n: (n, 0, 0, 0)),
            scratch_shapes=[
                pltpu.VMEM((Hp, Cin, Wp), jnp.float32),   # zero-padded, relayouted input
                pltpu.VMEM((H, Kc, W), jnp.float32),      # im2col slab
                pltpu.VMEM((H, Cout, W2), jnp.float32),   # f32 accumulator
            ],
        ),
        compiler_params=pltpu.CompilerParams(
            dimension_semantics=("parallel",),
            vmem_limit_bytes=32 * 1024 * 1024,
        ),
    )(x_nchw.astype(jnp.float32), wphase, emat)

    return out


def upconv_reference(x_nchw: jax.Array, weight_oihw: jax.Array) -> jax.Array:
    """Pure-JAX reference (nearest 2x upsample + conv) for validation."""
    K = weight_oihw.shape[-1]
    pad = K // 2
    x = jnp.repeat(x_nchw, 2, axis=2)
    x = jnp.repeat(x, 2, axis=3)
    return lax.conv_general_dilated(
        x, weight_oihw,
        window_strides=(1, 1),
        padding=((pad, pad), (pad, pad)),
        dimension_numbers=("NCHW", "OIHW", "NCHW"),
    )


if __name__ == "__main__":
    # Small shapes consistent with the module: UpConv(inp=4, oup=8, k=3)
    N, Cin, H, W = 2, 4, 16, 16
    Cout, K = 8, 3

    key = jax.random.PRNGKey(0)
    kx, kw = jax.random.split(key)
    x = jax.random.normal(kx, (N, Cin, H, W), dtype=jnp.float32)
    weight = jax.random.normal(kw, (Cout, Cin, K, K), dtype=jnp.float32) * 0.1

    out = upconv_pallas(x, weight)
    out = jax.block_until_ready(out)

    ref = jax.block_until_ready(upconv_reference(x, weight))
    assert out.shape == (N, Cout, 2 * H, 2 * W), out.shape
    assert jnp.allclose(out, ref, atol=1e-3, rtol=1e-3), "mismatch vs reference conv"

    print("KERNEL_OK")
</pallas_src>

<mosaic_0001>
module attributes {stable_mosaic.version = 11 : i64} {
  func.func @kernel(%arg0: i32, %arg1: memref<1x4x16x16xf32, #tpu.memory_space<vmem>>, %arg2: memref<2x2x8x16xf32, #tpu.memory_space<vmem>>, %arg3: memref<2x16x32xf32, #tpu.memory_space<vmem>>, %arg4: memref<1x8x32x32xf32, #tpu.memory_space<vmem>>, %arg5: memref<18x4x18xf32, #tpu.memory_space<vmem>>, %arg6: memref<16x16x16xf32, #tpu.memory_space<vmem>>, %arg7: memref<16x8x32xf32, #tpu.memory_space<vmem>>) attributes {dimension_semantics = [#tpu.dimension_semantics<parallel>], iteration_bounds = array<i64: 2>, scalar_prefetch = 0 : i64, scratch_operands = 3 : i64, tpu.core_type = #tpu.core_type<tc>, window_params = [{transform_indices = @transform_0, window_bounds = array<i64: 1, 4, 16, 16>}, {pipeline_mode = #tpu.pipeline_mode<synchronous>, transform_indices = @transform_1, window_bounds = array<i64: 2, 2, 8, 16>}, {pipeline_mode = #tpu.pipeline_mode<synchronous>, transform_indices = @transform_2, window_bounds = array<i64: 2, 16, 32>}, {transform_indices = @transform_3, window_bounds = array<i64: 1, 8, 32, 32>}]} {
    %cst = arith.constant 0.000000e+00 : f32
    %0 = vector.broadcast %cst : f32 to vector<18x4x18xf32>
    %c0 = arith.constant 0 : index
    %c0_0 = arith.constant 0 : index
    %c0_1 = arith.constant 0 : index
    %1 = vector.load %arg5[%c0, %c0_0, %c0_1] : memref<18x4x18xf32, #tpu.memory_space<vmem>>, vector<18x4x18xf32>
    tpu.vector_store %arg5[%c0, %c0_0, %c0_1], %0 {strides = array<i32>} : memref<18x4x18xf32, #tpu.memory_space<vmem>>, vector<18x4x18xf32>,
    %c0_2 = arith.constant 0 : index
    %c0_3 = arith.constant 0 : index
    %c0_4 = arith.constant 0 : index
    %c0_5 = arith.constant 0 : index
    %2 = vector.load %arg1[%c0_2, %c0_3, %c0_4, %c0_5] : memref<1x4x16x16xf32, #tpu.memory_space<vmem>>, vector<1x1x16x16xf32>
    %3 = vector.shape_cast %2 : vector<1x1x16x16xf32> to vector<16x16xf32>
    %c1 = arith.constant 1 : index
    %c0_6 = arith.constant 0 : index
    %c1_7 = arith.constant 1 : index
    %4 = vector.load %arg5[%c1, %c0_6, %c1_7] : memref<18x4x18xf32, #tpu.memory_space<vmem>>, vector<16x1x16xf32>
    %5 = vector.shape_cast %4 : vector<16x1x16xf32> to vector<16x16xf32>
    %6 = vector.shape_cast %3 : vector<16x16xf32> to vector<16x1x16xf32>
    tpu.vector_store %arg5[%c1, %c0_6, %c1_7], %6 {strides = array<i32>} : memref<18x4x18xf32, #tpu.memory_space<vmem>>, vector<16x1x16xf32>,
    %c0_8 = arith.constant 0 : index
    %c1_9 = arith.constant 1 : index
    %c0_10 = arith.constant 0 : index
    %c0_11 = arith.constant 0 : index
    %7 = vector.load %arg1[%c0_8, %c1_9, %c0_10, %c0_11] : memref<1x4x16x16xf32, #tpu.memory_space<vmem>>, vector<1x1x16x16xf32>
    %8 = vector.shape_cast %7 : vector<1x1x16x16xf32> to vector<16x16xf32>
    %c1_12 = arith.constant 1 : index
    %c1_13 = arith.constant 1 : index
    %c1_14 = arith.constant 1 : index
    %9 = vector.load %arg5[%c1_12, %c1_13, %c1_14] : memref<18x4x18xf32, #tpu.memory_space<vmem>>, vector<16x1x16xf32>
    %10 = vector.shape_cast %9 : vector<16x1x16xf32> to vector<16x16xf32>
    %11 = vector.shape_cast %8 : vector<16x16xf32> to vector<16x1x16xf32>
    tpu.vector_store %arg5[%c1_12, %c1_13, %c1_14], %11 {strides = array<i32>} : memref<18x4x18xf32, #tpu.memory_space<vmem>>, vector<16x1x16xf32>,
    %c0_15 = arith.constant 0 : index
    %c2 = arith.constant 2 : index
    %c0_16 = arith.constant 0 : index
    %c0_17 = arith.constant 0 : index
    %12 = vector.load %arg1[%c0_15, %c2, %c0_16, %c0_17] : memref<1x4x16x16xf32, #tpu.memory_space<vmem>>, vector<1x1x16x16xf32>
    %13 = vector.shape_cast %12 : vector<1x1x16x16xf32> to vector<16x16xf32>
    %c1_18 = arith.constant 1 : index
    %c2_19 = arith.constant 2 : index
    %c1_20 = arith.constant 1 : index
    %14 = vector.load %arg5[%c1_18, %c2_19, %c1_20] : memref<18x4x18xf32, #tpu.memory_space<vmem>>, vector<16x1x16xf32>
    %15 = vector.shape_cast %14 : vector<16x1x16xf32> to vector<16x16xf32>
    %16 = vector.shape_cast %13 : vector<16x16xf32> to vector<16x1x16xf32>
    tpu.vector_store %arg5[%c1_18, %c2_19, %c1_20], %16 {strides = array<i32>} : memref<18x4x18xf32, #tpu.memory_space<vmem>>, vector<16x1x16xf32>,
    %c0_21 = arith.constant 0 : index
    %c3 = arith.constant 3 : index
    %c0_22 = arith.constant 0 : index
    %c0_23 = arith.constant 0 : index
    %17 = vector.load %arg1[%c0_21, %c3, %c0_22, %c0_23] : memref<1x4x16x16xf32, #tpu.memory_space<vmem>>, vector<1x1x16x16xf32>
    %18 = vector.shape_cast %17 : vector<1x1x16x16xf32> to vector<16x16xf32>
    %c1_24 = arith.constant 1 : index
    %c3_25 = arith.constant 3 : index
    %c1_26 = arith.constant 1 : index
    %19 = vector.load %arg5[%c1_24, %c3_25, %c1_26] : memref<18x4x18xf32, #tpu.memory_space<vmem>>, vector<16x1x16xf32>
    %20 = vector.shape_cast %19 : vector<16x1x16xf32> to vector<16x16xf32>
    %21 = vector.shape_cast %18 : vector<16x16xf32> to vector<16x1x16xf32>
    tpu.vector_store %arg5[%c1_24, %c3_25, %c1_26], %21 {strides = array<i32>} : memref<18x4x18xf32, #tpu.memory_space<vmem>>, vector<16x1x16xf32>,
    %c0_27 = arith.constant 0 : index
    %c0_28 = arith.constant 0 : index
    %c0_29 = arith.constant 0 : index
    %22 = vector.load %arg5[%c0_27, %c0_28, %c0_29] : memref<18x4x18xf32, #tpu.memory_space<vmem>>, vector<16x4x16xf32>
    %c0_30 = arith.constant 0 : index
    %c0_31 = arith.constant 0 : index
    %c0_32 = arith.constant 0 : index
    %23 = vector.load %arg6[%c0_30, %c0_31, %c0_32] : memref<16x16x16xf32, #tpu.memory_space<vmem>>, vector<16x4x16xf32>
    tpu.vector_store %arg6[%c0_30, %c0_31, %c0_32], %22 {strides = array<i32>} : memref<16x16x16xf32, #tpu.memory_space<vmem>>, vector<16x4x16xf32>,
    %c0_33 = arith.constant 0 : index
    %c0_34 = arith.constant 0 : index
    %c1_35 = arith.constant 1 : index
    %24 = vector.load %arg5[%c0_33, %c0_34, %c1_35] : memref<18x4x18xf32, #tpu.memory_space<vmem>>, vector<16x4x16xf32>
    %c0_36 = arith.constant 0 : index
    %c4 = arith.constant 4 : index
    %c0_37 = arith.constant 0 : index
    %25 = vector.load %arg6[%c0_36, %c4, %c0_37] : memref<16x16x16xf32, #tpu.memory_space<vmem>>, vector<16x4x16xf32>
    tpu.vector_store %arg6[%c0_36, %c4, %c0_37], %24 {strides = array<i32>} : memref<16x16x16xf32, #tpu.memory_space<vmem>>, vector<16x4x16xf32>,
    %c1_38 = arith.constant 1 : index
    %c0_39 = arith.constant 0 : index
    %c0_40 = arith.constant 0 : index
    %26 = vector.load %arg5[%c1_38, %c0_39, %c0_40] : memref<18x4x18xf32, #tpu.memory_space<vmem>>, vector<16x4x16xf32>
    %c0_41 = arith.constant 0 : index
    %c8 = arith.constant 8 : index
    %c0_42 = arith.constant 0 : index
    %27 = vector.load %arg6[%c0_41, %c8, %c0_42] : memref<16x16x16xf32, #tpu.memory_space<vmem>>, vector<16x4x16xf32>
    tpu.vector_store %arg6[%c0_41, %c8, %c0_42], %26 {strides = array<i32>} : memref<16x16x16xf32, #tpu.memory_space<vmem>>, vector<16x4x16xf32>,
    %c1_43 = arith.constant 1 : index
    %c0_44 = arith.constant 0 : index
    %c1_45 = arith.constant 1 : index
    %28 = vector.load %arg5[%c1_43, %c0_44, %c1_45] : memref<18x4x18xf32, #tpu.memory_space<vmem>>, vector<16x4x16xf32>
    %c0_46 = arith.constant 0 : index
    %c12 = arith.constant 12 : index
    %c0_47 = arith.constant 0 : index
    %29 = vector.load %arg6[%c0_46, %c12, %c0_47] : memref<16x16x16xf32, #tpu.memory_space<vmem>>, vector<16x4x16xf32>
    tpu.vector_store %arg6[%c0_46, %c12, %c0_47], %28 {strides = array<i32>} : memref<16x16x16xf32, #tpu.memory_space<vmem>>, vector<16x4x16xf32>,
    %c0_48 = arith.constant 0 : index
    %c0_49 = arith.constant 0 : index
    %c0_50 = arith.constant 0 : index
    %c0_51 = arith.constant 0 : index
    %30 = vector.load %arg2[%c0_48, %c0_49, %c0_50, %c0_51] : memref<2x2x8x16xf32, #tpu.memory_space<vmem>>, vector<1x1x8x16xf32>
    %31 = vector.shape_cast %30 : vector<1x1x8x16xf32> to vector<8x16xf32>
    %32 = vector.shape_cast %31 : vector<8x16xf32> to vector<1x8x16xf32>
    %33 = vector.broadcast %32 : vector<1x8x16xf32> to vector<16x8x16xf32>
    %c0_52 = arith.constant 0 : index
    %c0_53 = arith.constant 0 : index
    %c0_54 = arith.constant 0 : index
    %34 = vector.load %arg6[%c0_52, %c0_53, %c0_54] : memref<16x16x16xf32, #tpu.memory_space<vmem>>, vector<16x16x16xf32>
    "tpu.trace_start"() <{level = 10 : i32, message = "hck,hkw->hcw"}> : () -> ()
    %cst_55 = arith.constant dense<0.000000e+00> : vector<16x8x16xf32>
    %35 = tpu.matmul %33, %34, %cst_55 {dimension_numbers = #tpu.dot_dimension_numbers<[2], [1], [1], [2], [0, 0, 0, 1, 1, 2], [0], [0]>} : vector<16x8x16xf32>, vector<16x16x16xf32>, vector<16x8x16xf32> -> vector<16x8x16xf32>
    "tpu.trace_stop"() : () -> ()
    %36 = vector.shape_cast %35 : vector<16x8x16xf32> to vector<128x16xf32>
    %c0_56 = arith.constant 0 : index
    %c0_57 = arith.constant 0 : index
    %c0_58 = arith.constant 0 : index
    %37 = vector.load %arg3[%c0_56, %c0_57, %c0_58] : memref<2x16x32xf32, #tpu.memory_space<vmem>>, vector<1x16x32xf32>
    %38 = vector.shape_cast %37 : vector<1x16x32xf32> to vector<16x32xf32>
    %cst_59 = arith.constant dense<0.000000e+00> : vector<128x32xf32>
    %39 = tpu.matmul %36, %38, %cst_59 {dimension_numbers = #tpu.dot_dimension_numbers<[1], [0], [0], [1], [0, 0, 1, 1], [], []>} : vector<128x16xf32>, vector<16x32xf32>, vector<128x32xf32> -> vector<128x32xf32>
    %40 = vector.shape_cast %39 : vector<128x32xf32> to vector<16x8x32xf32>
    %c0_60 = arith.constant 0 : index
    %c0_61 = arith.constant 0 : index
    %c0_62 = arith.constant 0 : index
    %41 = vector.load %arg7[%c0_60, %c0_61, %c0_62] : memref<16x8x32xf32, #tpu.memory_space<vmem>>, vector<16x8x32xf32>
    tpu.vector_store %arg7[%c0_60, %c0_61, %c0_62], %40 {strides = array<i32>} : memref<16x8x32xf32, #tpu.memory_space<vmem>>, vector<16x8x32xf32>,
    %c0_63 = arith.constant 0 : index
    %c0_64 = arith.constant 0 : index
    %c1_65 = arith.constant 1 : index
    %42 = vector.load %arg5[%c0_63, %c0_64, %c1_65] : memref<18x4x18xf32, #tpu.memory_space<vmem>>, vector<16x4x16xf32>
    %c0_66 = arith.constant 0 : index
    %c0_67 = arith.constant 0 : index
    %c0_68 = arith.constant 0 : index
    %43 = vector.load %arg6[%c0_66, %c0_67, %c0_68] : memref<16x16x16xf32, #tpu.memory_space<vmem>>, vector<16x4x16xf32>
    tpu.vector_store %arg6[%c0_66, %c0_67, %c0_68], %42 {strides = array<i32>} : memref<16x16x16xf32, #tpu.memory_space<vmem>>, vector<16x4x16xf32>,
    %c0_69 = arith.constant 0 : index
    %c0_70 = arith.constant 0 : index
    %c2_71 = arith.constant 2 : index
    %44 = vector.load %arg5[%c0_69, %c0_70, %c2_71] : memref<18x4x18xf32, #tpu.memory_space<vmem>>, vector<16x4x16xf32>
    %c0_72 = arith.constant 0 : index
    %c4_73 = arith.constant 4 : index
    %c0_74 = arith.constant 0 : index
    %45 = vector.load %arg6[%c0_72, %c4_73, %c0_74] : memref<16x16x16xf32, #tpu.memory_space<vmem>>, vector<16x4x16xf32>
    tpu.vector_store %arg6[%c0_72, %c4_73, %c0_74], %44 {strides = array<i32>} : memref<16x16x16xf32, #tpu.memory_space<vmem>>, vector<16x4x16xf32>,
    %c1_75 = arith.constant 1 : index
    %c0_76 = arith.constant 0 : index
    %c1_77 = arith.constant 1 : index
    %46 = vector.load %arg5[%c1_75, %c0_76, %c1_77] : memref<18x4x18xf32, #tpu.memory_space<vmem>>, vector<16x4x16xf32>
    %c0_78 = arith.constant 0 : index
    %c8_79 = arith.constant 8 : index
    %c0_80 = arith.constant 0 : index
    %47 = vector.load %arg6[%c0_78, %c8_79, %c0_80] : memref<16x16x16xf32, #tpu.memory_space<vmem>>, vector<16x4x16xf32>
    tpu.vector_store %arg6[%c0_78, %c8_79, %c0_80], %46 {strides = array<i32>} : memref<16x16x16xf32, #tpu.memory_space<vmem>>, vector<16x4x16xf32>,
    %c1_81 = arith.constant 1 : index
    %c0_82 = arith.constant 0 : index
    %c2_83 = arith.constant 2 : index
    %48 = vector.load %arg5[%c1_81, %c0_82, %c2_83] : memref<18x4x18xf32, #tpu.memory_space<vmem>>, vector<16x4x16xf32>
    %c0_84 = arith.constant 0 : index
    %c12_85 = arith.constant 12 : index
    %c0_86 = arith.constant 0 : index
    %49 = vector.load %arg6[%c0_84, %c12_85, %c0_86] : memref<16x16x16xf32, #tpu.memory_space<vmem>>, vector<16x4x16xf32>
    tpu.vector_store %arg6[%c0_84, %c12_85, %c0_86], %48 {strides = array<i32>} : memref<16x16x16xf32, #tpu.memory_space<vmem>>, vector<16x4x16xf32>,
    %c0_87 = arith.constant 0 : index
    %c1_88 = arith.constant 1 : index
    %c0_89 = arith.constant 0 : index
    %c0_90 = arith.constant 0 : index
    %50 = vector.load %arg2[%c0_87, %c1_88, %c0_89, %c0_90] : memref<2x2x8x16xf32, #tpu.memory_space<vmem>>, vector<1x1x8x16xf32>
    %51 = vector.shape_cast %50 : vector<1x1x8x16xf32> to vector<8x16xf32>
    %52 = vector.shape_cast %51 : vector<8x16xf32> to vector<1x8x16xf32>
    %53 = vector.broadcast %52 : vector<1x8x16xf32> to vector<16x8x16xf32>
    %c0_91 = arith.constant 0 : index
    %c0_92 = arith.constant 0 : index
    %c0_93 = arith.constant 0 : index
    %54 = vector.load %arg6[%c0_91, %c0_92, %c0_93] : memref<16x16x16xf32, #tpu.memory_space<vmem>>, vector<16x16x16xf32>
    "tpu.trace_start"() <{level = 10 : i32, message = "hck,hkw->hcw"}> : () -> ()
    %cst_94 = arith.constant dense<0.000000e+00> : vector<16x8x16xf32>
    %55 = tpu.matmul %53, %54, %cst_94 {dimension_numbers = #tpu.dot_dimension_numbers<[2], [1], [1], [2], [0, 0, 0, 1, 1, 2], [0], [0]>} : vector<16x8x16xf32>, vector<16x16x16xf32>, vector<16x8x16xf32> -> vector<16x8x16xf32>
    "tpu.trace_stop"() : () -> ()
    %56 = vector.shape_cast %55 : vector<16x8x16xf32> to vector<128x16xf32>
    %c1_95 = arith.constant 1 : index
    %c0_96 = arith.constant 0 : index
    %c0_97 = arith.constant 0 : index
    %57 = vector.load %arg3[%c1_95, %c0_96, %c0_97] : memref<2x16x32xf32, #tpu.memory_space<vmem>>, vector<1x16x32xf32>
    %58 = vector.shape_cast %57 : vector<1x16x32xf32> to vector<16x32xf32>
    %cst_98 = arith.constant dense<0.000000e+00> : vector<128x32xf32>
    %59 = tpu.matmul %56, %58, %cst_98 {dimension_numbers = #tpu.dot_dimension_numbers<[1], [0], [0], [1], [0, 0, 1, 1], [], []>} : vector<128x16xf32>, vector<16x32xf32>, vector<128x32xf32> -> vector<128x32xf32>
    %60 = vector.shape_cast %59 : vector<128x32xf32> to vector<16x8x32xf32>
    %c0_99 = arith.constant 0 : index
    %c0_100 = arith.constant 0 : index
    %c0_101 = arith.constant 0 : index
    %61 = vector.load %arg7[%c0_99, %c0_100, %c0_101] : memref<16x8x32xf32, #tpu.memory_space<vmem>>, vector<16x8x32xf32>
    %62 = arith.addf %61, %60 : vector<16x8x32xf32>
    %c0_102 = arith.constant 0 : index
    %c0_103 = arith.constant 0 : index
    %c0_104 = arith.constant 0 : index
    %63 = vector.load %arg7[%c0_102, %c0_103, %c0_104] : memref<16x8x32xf32, #tpu.memory_space<vmem>>, vector<16x8x32xf32>
    tpu.vector_store %arg7[%c0_102, %c0_103, %c0_104], %62 {strides = array<i32>} : memref<16x8x32xf32, #tpu.memory_space<vmem>>, vector<16x8x32xf32>,
    %c0_105 = arith.constant 0 : index
    %c0_106 = arith.constant 0 : index
    %c0_107 = arith.constant 0 : index
    %64 = vector.load %arg7[%c0_105, %c0_106, %c0_107] : memref<16x8x32xf32, #tpu.memory_space<vmem>>, vector<1x8x32xf32>
    %65 = vector.shape_cast %64 : vector<1x8x32xf32> to vector<8x32xf32>
    %c0_108 = arith.constant 0 : index
    %c0_109 = arith.constant 0 : index
    %c0_110 = arith.constant 0 : index
    %c0_111 = arith.constant 0 : index
    %66 = vector.load %arg4[%c0_108, %c0_109, %c0_110, %c0_111] : memref<1x8x32x32xf32, #tpu.memory_space<vmem>>, vector<1x8x1x32xf32>
    %67 = vector.shape_cast %66 : vector<1x8x1x32xf32> to vector<8x32xf32>
    %68 = vector.shape_cast %65 : vector<8x32xf32> to vector<1x8x1x32xf32>
    tpu.vector_store %arg4[%c0_108, %c0_109, %c0_110, %c0_111], %68 {strides = array<i32>} : memref<1x8x32x32xf32, #tpu.memory_space<vmem>>, vector<1x8x1x32xf32>,
    %c1_112 = arith.constant 1 : index
    %c0_113 = arith.constant 0 : index
    %c0_114 = arith.constant 0 : index
    %69 = vector.load %arg7[%c1_112, %c0_113, %c0_114] : memref<16x8x32xf32, #tpu.memory_space<vmem>>, vector<1x8x32xf32>
    %70 = vector.shape_cast %69 : vector<1x8x32xf32> to vector<8x32xf32>
    %c0_115 = arith.constant 0 : index
    %c0_116 = arith.constant 0 : index
    %c2_117 = arith.constant 2 : index
    %c0_118 = arith.constant 0 : index
    %71 = vector.load %arg4[%c0_115, %c0_116, %c2_117, %c0_118] : memref<1x8x32x32xf32, #tpu.memory_space<vmem>>, vector<1x8x1x32xf32>
    %72 = vector.shape_cast %71 : vector<1x8x1x32xf32> to vector<8x32xf32>
    %73 = vector.shape_cast %70 : vector<8x32xf32> to vector<1x8x1x32xf32>
    tpu.vector_store %arg4[%c0_115, %c0_116, %c2_117, %c0_118], %73 {strides = array<i32>} : memref<1x8x32x32xf32, #tpu.memory_space<vmem>>, vector<1x8x1x32xf32>,
    %c2_119 = arith.constant 2 : index
    %c0_120 = arith.constant 0 : index
    %c0_121 = arith.constant 0 : index
    %74 = vector.load %arg7[%c2_119, %c0_120, %c0_121] : memref<16x8x32xf32, #tpu.memory_space<vmem>>, vector<1x8x32xf32>
    %75 = vector.shape_cast %74 : vector<1x8x32xf32> to vector<8x32xf32>
    %c0_122 = arith.constant 0 : index
    %c0_123 = arith.constant 0 : index
    %c4_124 = arith.constant 4 : index
    %c0_125 = arith.constant 0 : index
    %76 = vector.load %arg4[%c0_122, %c0_123, %c4_124, %c0_125] : memref<1x8x32x32xf32, #tpu.memory_space<vmem>>, vector<1x8x1x32xf32>
    %77 = vector.shape_cast %76 : vector<1x8x1x32xf32> to vector<8x32xf32>
    %78 = vector.shape_cast %75 : vector<8x32xf32> to vector<1x8x1x32xf32>
    tpu.vector_store %arg4[%c0_122, %c0_123, %c4_124, %c0_125], %78 {strides = array<i32>} : memref<1x8x32x32xf32, #tpu.memory_space<vmem>>, vector<1x8x1x32xf32>,
    %c3_126 = arith.constant 3 : index
    %c0_127 = arith.constant 0 : index
    %c0_128 = arith.constant 0 : index
    %79 = vector.load %arg7[%c3_126, %c0_127, %c0_128] : memref<16x8x32xf32, #tpu.memory_space<vmem>>, vector<1x8x32xf32>
    %80 = vector.shape_cast %79 : vector<1x8x32xf32> to vector<8x32xf32>
    %c0_129 = arith.constant 0 : index
    %c0_130 = arith.constant 0 : index
    %c6 = arith.constant 6 : index
    %c0_131 = arith.constant 0 : index
    %81 = vector.load %arg4[%c0_129, %c0_130, %c6, %c0_131] : memref<1x8x32x32xf32, #tpu.memory_space<vmem>>, vector<1x8x1x32xf32>
    %82 = vector.shape_cast %81 : vector<1x8x1x32xf32> to vector<8x32xf32>
    %83 = vector.shape_cast %80 : vector<8x32xf32> to vector<1x8x1x32xf32>
    tpu.vector_store %arg4[%c0_129, %c0_130, %c6, %c0_131], %83 {strides = array<i32>} : memref<1x8x32x32xf32, #tpu.memory_space<vmem>>, vector<1x8x1x32xf32>,
    %c4_132 = arith.constant 4 : index
    %c0_133 = arith.constant 0 : index
    %c0_134 = arith.constant 0 : index
    %84 = vector.load %arg7[%c4_132, %c0_133, %c0_134] : memref<16x8x32xf32, #tpu.memory_space<vmem>>, vector<1x8x32xf32>
    %85 = vector.shape_cast %84 : vector<1x8x32xf32> to vector<8x32xf32>
    %c0_135 = arith.constant 0 : index
    %c0_136 = arith.constant 0 : index
    %c8_137 = arith.constant 8 : index
    %c0_138 = arith.constant 0 : index
    %86 = vector.load %arg4[%c0_135, %c0_136, %c8_137, %c0_138] : memref<1x8x32x32xf32, #tpu.memory_space<vmem>>, vector<1x8x1x32xf32>
    %87 = vector.shape_cast %86 : vector<1x8x1x32xf32> to vector<8x32xf32>
    %88 = vector.shape_cast %85 : vector<8x32xf32> to vector<1x8x1x32xf32>
    tpu.vector_store %arg4[%c0_135, %c0_136, %c8_137, %c0_138], %88 {strides = array<i32>} : memref<1x8x32x32xf32, #tpu.memory_space<vmem>>, vector<1x8x1x32xf32>,
    %c5 = arith.constant 5 : index
    %c0_139 = arith.constant 0 : index
    %c0_140 = arith.constant 0 : index
    %89 = vector.load %arg7[%c5, %c0_139, %c0_140] : memref<16x8x32xf32, #tpu.memory_space<vmem>>, vector<1x8x32xf32>
    %90 = vector.shape_cast %89 : vector<1x8x32xf32> to vector<8x32xf32>
    %c0_141 = arith.constant 0 : index
    %c0_142 = arith.constant 0 : index
    %c10 = arith.constant 10 : index
    %c0_143 = arith.constant 0 : index
    %91 = vector.load %arg4[%c0_141, %c0_142, %c10, %c0_143] : memref<1x8x32x32xf32, #tpu.memory_space<vmem>>, vector<1x8x1x32xf32>
    %92 = vector.shape_cast %91 : vector<1x8x1x32xf32> to vector<8x32xf32>
    %93 = vector.shape_cast %90 : vector<8x32xf32> to vector<1x8x1x32xf32>
    tpu.vector_store %arg4[%c0_141, %c0_142, %c10, %c0_143], %93 {strides = array<i32>} : memref<1x8x32x32xf32, #tpu.memory_space<vmem>>, vector<1x8x1x32xf32>,
    %c6_144 = arith.constant 6 : index
    %c0_145 = arith.constant 0 : index
    %c0_146 = arith.constant 0 : index
    %94 = vector.load %arg7[%c6_144, %c0_145, %c0_146] : memref<16x8x32xf32, #tpu.memory_space<vmem>>, vector<1x8x32xf32>
    %95 = vector.shape_cast %94 : vector<1x8x32xf32> to vector<8x32xf32>
    %c0_147 = arith.constant 0 : index
    %c0_148 = arith.constant 0 : index
    %c12_149 = arith.constant 12 : index
    %c0_150 = arith.constant 0 : index
    %96 = vector.load %arg4[%c0_147, %c0_148, %c12_149, %c0_150] : memref<1x8x32x32xf32, #tpu.memory_space<vmem>>, vector<1x8x1x32xf32>
    %97 = vector.shape_cast %96 : vector<1x8x1x32xf32> to vector<8x32xf32>
    %98 = vector.shape_cast %95 : vector<8x32xf32> to vector<1x8x1x32xf32>
    tpu.vector_store %arg4[%c0_147, %c0_148, %c12_149, %c0_150], %98 {strides = array<i32>} : memref<1x8x32x32xf32, #tpu.memory_space<vmem>>, vector<1x8x1x32xf32>,
    %c7 = arith.constant 7 : index
    %c0_151 = arith.constant 0 : index
    %c0_152 = arith.constant 0 : index
    %99 = vector.load %arg7[%c7, %c0_151, %c0_152] : memref<16x8x32xf32, #tpu.memory_space<vmem>>, vector<1x8x32xf32>
    %100 = vector.shape_cast %99 : vector<1x8x32xf32> to vector<8x32xf32>
    %c0_153 = arith.constant 0 : index
    %c0_154 = arith.constant 0 : index
    %c14 = arith.constant 14 : index
    %c0_155 = arith.constant 0 : index
    %101 = vector.load %arg4[%c0_153, %c0_154, %c14, %c0_155] : memref<1x8x32x32xf32, #tpu.memory_space<vmem>>, vector<1x8x1x32xf32>
    %102 = vector.shape_cast %101 : vector<1x8x1x32xf32> to vector<8x32xf32>
    %103 = vector.shape_cast %100 : vector<8x32xf32> to vector<1x8x1x32xf32>
    tpu.vector_store %arg4[%c0_153, %c0_154, %c14, %c0_155], %103 {strides = array<i32>} : memref<1x8x32x32xf32, #tpu.memory_space<vmem>>, vector<1x8x1x32xf32>,
    %c8_156 = arith.constant 8 : index
    %c0_157 = arith.constant 0 : index
    %c0_158 = arith.constant 0 : index
    %104 = vector.load %arg7[%c8_156, %c0_157, %c0_158] : memref<16x8x32xf32, #tpu.memory_space<vmem>>, vector<1x8x32xf32>
    %105 = vector.shape_cast %104 : vector<1x8x32xf32> to vector<8x32xf32>
    %c0_159 = arith.constant 0 : index
    %c0_160 = arith.constant 0 : index
    %c16 = arith.constant 16 : index
    %c0_161 = arith.constant 0 : index
    %106 = vector.load %arg4[%c0_159, %c0_160, %c16, %c0_161] : memref<1x8x32x32xf32, #tpu.memory_space<vmem>>, vector<1x8x1x32xf32>
    %107 = vector.shape_cast %106 : vector<1x8x1x32xf32> to vector<8x32xf32>
    %108 = vector.shape_cast %105 : vector<8x32xf32> to vector<1x8x1x32xf32>
    tpu.vector_store %arg4[%c0_159, %c0_160, %c16, %c0_161], %108 {strides = array<i32>} : memref<1x8x32x32xf32, #tpu.memory_space<vmem>>, vector<1x8x1x32xf32>,
    %c9 = arith.constant 9 : index
    %c0_162 = arith.constant 0 : index
    %c0_163 = arith.constant 0 : index
    %109 = vector.load %arg7[%c9, %c0_162, %c0_163] : memref<16x8x32xf32, #tpu.memory_space<vmem>>, vector<1x8x32xf32>
    %110 = vector.shape_cast %109 : vector<1x8x32xf32> to vector<8x32xf32>
    %c0_164 = arith.constant 0 : index
    %c0_165 = arith.constant 0 : index
    %c18 = arith.constant 18 : index
    %c0_166 = arith.constant 0 : index
    %111 = vector.load %arg4[%c0_164, %c0_165, %c18, %c0_166] : memref<1x8x32x32xf32, #tpu.memory_space<vmem>>, vector<1x8x1x32xf32>
    %112 = vector.shape_cast %111 : vector<1x8x1x32xf32> to vector<8x32xf32>
    %113 = vector.shape_cast %110 : vector<8x32xf32> to vector<1x8x1x32xf32>
    tpu.vector_store %arg4[%c0_164, %c0_165, %c18, %c0_166], %113 {strides = array<i32>} : memref<1x8x32x32xf32, #tpu.memory_space<vmem>>, vector<1x8x1x32xf32>,
    %c10_167 = arith.constant 10 : index
    %c0_168 = arith.constant 0 : index
    %c0_169 = arith.constant 0 : index
    %114 = vector.load %arg7[%c10_167, %c0_168, %c0_169] : memref<16x8x32xf32, #tpu.memory_space<vmem>>, vector<1x8x32xf32>
    %115 = vector.shape_cast %114 : vector<1x8x32xf32> to vector<8x32xf32>
    %c0_170 = arith.constant 0 : index
    %c0_171 = arith.constant 0 : index
    %c20 = arith.constant 20 : index
    %c0_172 = arith.constant 0 : index
    %116 = vector.load %arg4[%c0_170, %c0_171, %c20, %c0_172] : memref<1x8x32x32xf32, #tpu.memory_space<vmem>>, vector<1x8x1x32xf32>
    %117 = vector.shape_cast %116 : vector<1x8x1x32xf32> to vector<8x32xf32>
    %118 = vector.shape_cast %115 : vector<8x32xf32> to vector<1x8x1x32xf32>
    tpu.vector_store %arg4[%c0_170, %c0_171, %c20, %c0_172], %118 {strides = array<i32>} : memref<1x8x32x32xf32, #tpu.memory_space<vmem>>, vector<1x8x1x32xf32>,
    %c11 = arith.constant 11 : index
    %c0_173 = arith.constant 0 : index
    %c0_174 = arith.constant 0 : index
    %119 = vector.load %arg7[%c11, %c0_173, %c0_174] : memref<16x8x32xf32, #tpu.memory_space<vmem>>, vector<1x8x32xf32>
    %120 = vector.shape_cast %119 : vector<1x8x32xf32> to vector<8x32xf32>
    %c0_175 = arith.constant 0 : index
    %c0_176 = arith.constant 0 : index
    %c22 = arith.constant 22 : index
    %c0_177 = arith.constant 0 : index
    %121 = vector.load %arg4[%c0_175, %c0_176, %c22, %c0_177] : memref<1x8x32x32xf32, #tpu.memory_space<vmem>>, vector<1x8x1x32xf32>
    %122 = vector.shape_cast %121 : vector<1x8x1x32xf32> to vector<8x32xf32>
    %123 = vector.shape_cast %120 : vector<8x32xf32> to vector<1x8x1x32xf32>
    tpu.vector_store %arg4[%c0_175, %c0_176, %c22, %c0_177], %123 {strides = array<i32>} : memref<1x8x32x32xf32, #tpu.memory_space<vmem>>, vector<1x8x1x32xf32>,
    %c12_178 = arith.constant 12 : index
    %c0_179 = arith.constant 0 : index
    %c0_180 = arith.constant 0 : index
    %124 = vector.load %arg7[%c12_178, %c0_179, %c0_180] : memref<16x8x32xf32, #tpu.memory_space<vmem>>, vector<1x8x32xf32>
    %125 = vector.shape_cast %124 : vector<1x8x32xf32> to vector<8x32xf32>
    %c0_181 = arith.constant 0 : index
    %c0_182 = arith.constant 0 : index
    %c24 = arith.constant 24 : index
    %c0_183 = arith.constant 0 : index
    %126 = vector.load %arg4[%c0_181, %c0_182, %c24, %c0_183] : memref<1x8x32x32xf32, #tpu.memory_space<vmem>>, vector<1x8x1x32xf32>
    %127 = vector.shape_cast %126 : vector<1x8x1x32xf32> to vector<8x32xf32>
    %128 = vector.shape_cast %125 : vector<8x32xf32> to vector<1x8x1x32xf32>
    tpu.vector_store %arg4[%c0_181, %c0_182, %c24, %c0_183], %128 {strides = array<i32>} : memref<1x8x32x32xf32, #tpu.memory_space<vmem>>, vector<1x8x1x32xf32>,
    %c13 = arith.constant 13 : index
    %c0_184 = arith.constant 0 : index
    %c0_185 = arith.constant 0 : index
    %129 = vector.load %arg7[%c13, %c0_184, %c0_185] : memref<16x8x32xf32, #tpu.memory_space<vmem>>, vector<1x8x32xf32>
    %130 = vector.shape_cast %129 : vector<1x8x32xf32> to vector<8x32xf32>
    %c0_186 = arith.constant 0 : index
    %c0_187 = arith.constant 0 : index
    %c26 = arith.constant 26 : index
    %c0_188 = arith.constant 0 : index
    %131 = vector.load %arg4[%c0_186, %c0_187, %c26, %c0_188] : memref<1x8x32x32xf32, #tpu.memory_space<vmem>>, vector<1x8x1x32xf32>
    %132 = vector.shape_cast %131 : vector<1x8x1x32xf32> to vector<8x32xf32>
    %133 = vector.shape_cast %130 : vector<8x32xf32> to vector<1x8x1x32xf32>
    tpu.vector_store %arg4[%c0_186, %c0_187, %c26, %c0_188], %133 {strides = array<i32>} : memref<1x8x32x32xf32, #tpu.memory_space<vmem>>, vector<1x8x1x32xf32>,
    %c14_189 = arith.constant 14 : index
    %c0_190 = arith.constant 0 : index
    %c0_191 = arith.constant 0 : index
    %134 = vector.load %arg7[%c14_189, %c0_190, %c0_191] : memref<16x8x32xf32, #tpu.memory_space<vmem>>, vector<1x8x32xf32>
    %135 = vector.shape_cast %134 : vector<1x8x32xf32> to vector<8x32xf32>
    %c0_192 = arith.constant 0 : index
    %c0_193 = arith.constant 0 : index
    %c28 = arith.constant 28 : index
    %c0_194 = arith.constant 0 : index
    %136 = vector.load %arg4[%c0_192, %c0_193, %c28, %c0_194] : memref<1x8x32x32xf32, #tpu.memory_space<vmem>>, vector<1x8x1x32xf32>
    %137 = vector.shape_cast %136 : vector<1x8x1x32xf32> to vector<8x32xf32>
    %138 = vector.shape_cast %135 : vector<8x32xf32> to vector<1x8x1x32xf32>
    tpu.vector_store %arg4[%c0_192, %c0_193, %c28, %c0_194], %138 {strides = array<i32>} : memref<1x8x32x32xf32, #tpu.memory_space<vmem>>, vector<1x8x1x32xf32>,
    %c15 = arith.constant 15 : index
    %c0_195 = arith.constant 0 : index
    %c0_196 = arith.constant 0 : index
    %139 = vector.load %arg7[%c15, %c0_195, %c0_196] : memref<16x8x32xf32, #tpu.memory_space<vmem>>, vector<1x8x32xf32>
    %140 = vector.shape_cast %139 : vector<1x8x32xf32> to vector<8x32xf32>
    %c0_197 = arith.constant 0 : index
    %c0_198 = arith.constant 0 : index
    %c30 = arith.constant 30 : index
    %c0_199 = arith.constant 0 : index
    %141 = vector.load %arg4[%c0_197, %c0_198, %c30, %c0_199] : memref<1x8x32x32xf32, #tpu.memory_space<vmem>>, vector<1x8x1x32xf32>
    %142 = vector.shape_cast %141 : vector<1x8x1x32xf32> to vector<8x32xf32>
    %143 = vector.shape_cast %140 : vector<8x32xf32> to vector<1x8x1x32xf32>
    tpu.vector_store %arg4[%c0_197, %c0_198, %c30, %c0_199], %143 {strides = array<i32>} : memref<1x8x32x32xf32, #tpu.memory_space<vmem>>, vector<1x8x1x32xf32>,
    %c1_200 = arith.constant 1 : index
    %c0_201 = arith.constant 0 : index
    %c0_202 = arith.constant 0 : index
    %144 = vector.load %arg5[%c1_200, %c0_201, %c0_202] : memref<18x4x18xf32, #tpu.memory_space<vmem>>, vector<16x4x16xf32>
    %c0_203 = arith.constant 0 : index
    %c0_204 = arith.constant 0 : index
    %c0_205 = arith.constant 0 : index
    %145 = vector.load %arg6[%c0_203, %c0_204, %c0_205] : memref<16x16x16xf32, #tpu.memory_space<vmem>>, vector<16x4x16xf32>
    tpu.vector_store %arg6[%c0_203, %c0_204, %c0_205], %144 {strides = array<i32>} : memref<16x16x16xf32, #tpu.memory_space<vmem>>, vector<16x4x16xf32>,
    %c1_206 = arith.constant 1 : index
    %c0_207 = arith.constant 0 : index
    %c1_208 = arith.constant 1 : index
    %146 = vector.load %arg5[%c1_206, %c0_207, %c1_208] : memref<18x4x18xf32, #tpu.memory_space<vmem>>, vector<16x4x16xf32>
    %c0_209 = arith.constant 0 : index
    %c4_210 = arith.constant 4 : index
    %c0_211 = arith.constant 0 : index
    %147 = vector.load %arg6[%c0_209, %c4_210, %c0_211] : memref<16x16x16xf32, #tpu.memory_space<vmem>>, vector<16x4x16xf32>
    tpu.vector_store %arg6[%c0_209, %c4_210, %c0_211], %146 {strides = array<i32>} : memref<16x16x16xf32, #tpu.memory_space<vmem>>, vector<16x4x16xf32>,
    %c2_212 = arith.constant 2 : index
    %c0_213 = arith.constant 0 : index
    %c0_214 = arith.constant 0 : index
    %148 = vector.load %arg5[%c2_212, %c0_213, %c0_214] : memref<18x4x18xf32, #tpu.memory_space<vmem>>, vector<16x4x16xf32>
    %c0_215 = arith.constant 0 : index
    %c8_216 = arith.constant 8 : index
    %c0_217 = arith.constant 0 : index
    %149 = vector.load %arg6[%c0_215, %c8_216, %c0_217] : memref<16x16x16xf32, #tpu.memory_space<vmem>>, vector<16x4x16xf32>
    tpu.vector_store %arg6[%c0_215, %c8_216, %c0_217], %148 {strides = array<i32>} : memref<16x16x16xf32, #tpu.memory_space<vmem>>, vector<16x4x16xf32>,
    %c2_218 = arith.constant 2 : index
    %c0_219 = arith.constant 0 : index
    %c1_220 = arith.constant 1 : index
    %150 = vector.load %arg5[%c2_218, %c0_219, %c1_220] : memref<18x4x18xf32, #tpu.memory_space<vmem>>, vector<16x4x16xf32>
    %c0_221 = arith.constant 0 : index
    %c12_222 = arith.constant 12 : index
    %c0_223 = arith.constant 0 : index
    %151 = vector.load %arg6[%c0_221, %c12_222, %c0_223] : memref<16x16x16xf32, #tpu.memory_space<vmem>>, vector<16x4x16xf32>
    tpu.vector_store %arg6[%c0_221, %c12_222, %c0_223], %150 {strides = array<i32>} : memref<16x16x16xf32, #tpu.memory_space<vmem>>, vector<16x4x16xf32>,
    %c1_224 = arith.constant 1 : index
    %c0_225 = arith.constant 0 : index
    %c0_226 = arith.constant 0 : index
    %c0_227 = arith.constant 0 : index
    %152 = vector.load %arg2[%c1_224, %c0_225, %c0_226, %c0_227] : memref<2x2x8x16xf32, #tpu.memory_space<vmem>>, vector<1x1x8x16xf32>
    %153 = vector.shape_cast %152 : vector<1x1x8x16xf32> to vector<8x16xf32>
    %154 = vector.shape_cast %153 : vector<8x16xf32> to vector<1x8x16xf32>
    %155 = vector.broadcast %154 : vector<1x8x16xf32> to vector<16x8x16xf32>
    %c0_228 = arith.constant 0 : index
    %c0_229 = arith.constant 0 : index
    %c0_230 = arith.constant 0 : index
    %156 = vector.load %arg6[%c0_228, %c0_229, %c0_230] : memref<16x16x16xf32, #tpu.memory_space<vmem>>, vector<16x16x16xf32>
    "tpu.trace_start"() <{level = 10 : i32, message = "hck,hkw->hcw"}> : () -> ()
    %cst_231 = arith.constant dense<0.000000e+00> : vector<16x8x16xf32>
    %157 = tpu.matmul %155, %156, %cst_231 {dimension_numbers = #tpu.dot_dimension_numbers<[2], [1], [1], [2], [0, 0, 0, 1, 1, 2], [0], [0]>} : vector<16x8x16xf32>, vector<16x16x16xf32>, vector<16x8x16xf32> -> vector<16x8x16xf32>
    "tpu.trace_stop"() : () -> ()
    %158 = vector.shape_cast %157 : vector<16x8x16xf32> to vector<128x16xf32>
    %c0_232 = arith.constant 0 : index
    %c0_233 = arith.constant 0 : index
    %c0_234 = arith.constant 0 : index
    %159 = vector.load %arg3[%c0_232, %c0_233, %c0_234] : memref<2x16x32xf32, #tpu.memory_space<vmem>>, vector<1x16x32xf32>
    %160 = vector.shape_cast %159 : vector<1x16x32xf32> to vector<16x32xf32>
    %cst_235 = arith.constant dense<0.000000e+00> : vector<128x32xf32>
    %161 = tpu.matmul %158, %160, %cst_235 {dimension_numbers = #tpu.dot_dimension_numbers<[1], [0], [0], [1], [0, 0, 1, 1], [], []>} : vector<128x16xf32>, vector<16x32xf32>, vector<128x32xf32> -> vector<128x32xf32>
    %162 = vector.shape_cast %161 : vector<128x32xf32> to vector<16x8x32xf32>
    %c0_236 = arith.constant 0 : index
    %c0_237 = arith.constant 0 : index
    %c0_238 = arith.constant 0 : index
    %163 = vector.load %arg7[%c0_236, %c0_237, %c0_238] : memref<16x8x32xf32, #tpu.memory_space<vmem>>, vector<16x8x32xf32>
    tpu.vector_store %arg7[%c0_236, %c0_237, %c0_238], %162 {strides = array<i32>} : memref<16x8x32xf32, #tpu.memory_space<vmem>>, vector<16x8x32xf32>,
    %c1_239 = arith.constant 1 : index
    %c0_240 = arith.constant 0 : index
    %c1_241 = arith.constant 1 : index
    %164 = vector.load %arg5[%c1_239, %c0_240, %c1_241] : memref<18x4x18xf32, #tpu.memory_space<vmem>>, vector<16x4x16xf32>
    %c0_242 = arith.constant 0 : index
    %c0_243 = arith.constant 0 : index
    %c0_244 = arith.constant 0 : index
    %165 = vector.load %arg6[%c0_242, %c0_243, %c0_244] : memref<16x16x16xf32, #tpu.memory_space<vmem>>, vector<16x4x16xf32>
    tpu.vector_store %arg6[%c0_242, %c0_243, %c0_244], %164 {strides = array<i32>} : memref<16x16x16xf32, #tpu.memory_space<vmem>>, vector<16x4x16xf32>,
    %c1_245 = arith.constant 1 : index
    %c0_246 = arith.constant 0 : index
    %c2_247 = arith.constant 2 : index
    %166 = vector.load %arg5[%c1_245, %c0_246, %c2_247] : memref<18x4x18xf32, #tpu.memory_space<vmem>>, vector<16x4x16xf32>
    %c0_248 = arith.constant 0 : index
    %c4_249 = arith.constant 4 : index
    %c0_250 = arith.constant 0 : index
    %167 = vector.load %arg6[%c0_248, %c4_249, %c0_250] : memref<16x16x16xf32, #tpu.memory_space<vmem>>, vector<16x4x16xf32>
    tpu.vector_store %arg6[%c0_248, %c4_249, %c0_250], %166 {strides = array<i32>} : memref<16x16x16xf32, #tpu.memory_space<vmem>>, vector<16x4x16xf32>,
    %c2_251 = arith.constant 2 : index
    %c0_252 = arith.constant 0 : index
    %c1_253 = arith.constant 1 : index
    %168 = vector.load %arg5[%c2_251, %c0_252, %c1_253] : memref<18x4x18xf32, #tpu.memory_space<vmem>>, vector<16x4x16xf32>
    %c0_254 = arith.constant 0 : index
    %c8_255 = arith.constant 8 : index
    %c0_256 = arith.constant 0 : index
    %169 = vector.load %arg6[%c0_254, %c8_255, %c0_256] : memref<16x16x16xf32, #tpu.memory_space<vmem>>, vector<16x4x16xf32>
    tpu.vector_store %arg6[%c0_254, %c8_255, %c0_256], %168 {strides = array<i32>} : memref<16x16x16xf32, #tpu.memory_space<vmem>>, vector<16x4x16xf32>,
    %c2_257 = arith.constant 2 : index
    %c0_258 = arith.constant 0 : index
    %c2_259 = arith.constant 2 : index
    %170 = vector.load %arg5[%c2_257, %c0_258, %c2_259] : memref<18x4x18xf32, #tpu.memory_space<vmem>>, vector<16x4x16xf32>
    %c0_260 = arith.constant 0 : index
    %c12_261 = arith.constant 12 : index
    %c0_262 = arith.constant 0 : index
    %171 = vector.load %arg6[%c0_260, %c12_261, %c0_262] : memref<16x16x16xf32, #tpu.memory_space<vmem>>, vector<16x4x16xf32>
    tpu.vector_store %arg6[%c0_260, %c12_261, %c0_262], %170 {strides = array<i32>} : memref<16x16x16xf32, #tpu.memory_space<vmem>>, vector<16x4x16xf32>,
    %c1_263 = arith.constant 1 : index
    %c1_264 = arith.constant 1 : index
    %c0_265 = arith.constant 0 : index
    %c0_266 = arith.constant 0 : index
    %172 = vector.load %arg2[%c1_263, %c1_264, %c0_265, %c0_266] : memref<2x2x8x16xf32, #tpu.memory_space<vmem>>, vector<1x1x8x16xf32>
    %173 = vector.shape_cast %172 : vector<1x1x8x16xf32> to vector<8x16xf32>
    %174 = vector.shape_cast %173 : vector<8x16xf32> to vector<1x8x16xf32>
    %175 = vector.broadcast %174 : vector<1x8x16xf32> to vector<16x8x16xf32>
    %c0_267 = arith.constant 0 : index
    %c0_268 = arith.constant 0 : index
    %c0_269 = arith.constant 0 : index
    %176 = vector.load %arg6[%c0_267, %c0_268, %c0_269] : memref<16x16x16xf32, #tpu.memory_space<vmem>>, vector<16x16x16xf32>
    "tpu.trace_start"() <{level = 10 : i32, message = "hck,hkw->hcw"}> : () -> ()
    %cst_270 = arith.constant dense<0.000000e+00> : vector<16x8x16xf32>
    %177 = tpu.matmul %175, %176, %cst_270 {dimension_numbers = #tpu.dot_dimension_numbers<[2], [1], [1], [2], [0, 0, 0, 1, 1, 2], [0], [0]>} : vector<16x8x16xf32>, vector<16x16x16xf32>, vector<16x8x16xf32> -> vector<16x8x16xf32>
    "tpu.trace_stop"() : () -> ()
    %178 = vector.shape_cast %177 : vector<16x8x16xf32> to vector<128x16xf32>
    %c1_271 = arith.constant 1 : index
    %c0_272 = arith.constant 0 : index
    %c0_273 = arith.constant 0 : index
    %179 = vector.load %arg3[%c1_271, %c0_272, %c0_273] : memref<2x16x32xf32, #tpu.memory_space<vmem>>, vector<1x16x32xf32>
    %180 = vector.shape_cast %179 : vector<1x16x32xf32> to vector<16x32xf32>
    %cst_274 = arith.constant dense<0.000000e+00> : vector<128x32xf32>
    %181 = tpu.matmul %178, %180, %cst_274 {dimension_numbers = #tpu.dot_dimension_numbers<[1], [0], [0], [1], [0, 0, 1, 1], [], []>} : vector<128x16xf32>, vector<16x32xf32>, vector<128x32xf32> -> vector<128x32xf32>
    %182 = vector.shape_cast %181 : vector<128x32xf32> to vector<16x8x32xf32>
    %c0_275 = arith.constant 0 : index
    %c0_276 = arith.constant 0 : index
    %c0_277 = arith.constant 0 : index
    %183 = vector.load %arg7[%c0_275, %c0_276, %c0_277] : memref<16x8x32xf32, #tpu.memory_space<vmem>>, vector<16x8x32xf32>
    %184 = arith.addf %183, %182 : vector<16x8x32xf32>
    %c0_278 = arith.constant 0 : index
    %c0_279 = arith.constant 0 : index
    %c0_280 = arith.constant 0 : index
    %185 = vector.load %arg7[%c0_278, %c0_279, %c0_280] : memref<16x8x32xf32, #tpu.memory_space<vmem>>, vector<16x8x32xf32>
    tpu.vector_store %arg7[%c0_278, %c0_279, %c0_280], %184 {strides = array<i32>} : memref<16x8x32xf32, #tpu.memory_space<vmem>>, vector<16x8x32xf32>,
    %c0_281 = arith.constant 0 : index
    %c0_282 = arith.constant 0 : index
    %c0_283 = arith.constant 0 : index
    %186 = vector.load %arg7[%c0_281, %c0_282, %c0_283] : memref<16x8x32xf32, #tpu.memory_space<vmem>>, vector<1x8x32xf32>
    %187 = vector.shape_cast %186 : vector<1x8x32xf32> to vector<8x32xf32>
    %c0_284 = arith.constant 0 : index
    %c0_285 = arith.constant 0 : index
    %c1_286 = arith.constant 1 : index
    %c0_287 = arith.constant 0 : index
    %188 = vector.load %arg4[%c0_284, %c0_285, %c1_286, %c0_287] : memref<1x8x32x32xf32, #tpu.memory_space<vmem>>, vector<1x8x1x32xf32>
    %189 = vector.shape_cast %188 : vector<1x8x1x32xf32> to vector<8x32xf32>
    %190 = vector.shape_cast %187 : vector<8x32xf32> to vector<1x8x1x32xf32>
    tpu.vector_store %arg4[%c0_284, %c0_285, %c1_286, %c0_287], %190 {strides = array<i32>} : memref<1x8x32x32xf32, #tpu.memory_space<vmem>>, vector<1x8x1x32xf32>,
    %c1_288 = arith.constant 1 : index
    %c0_289 = arith.constant 0 : index
    %c0_290 = arith.constant 0 : index
    %191 = vector.load %arg7[%c1_288, %c0_289, %c0_290] : memref<16x8x32xf32, #tpu.memory_space<vmem>>, vector<1x8x32xf32>
    %192 = vector.shape_cast %191 : vector<1x8x32xf32> to vector<8x32xf32>
    %c0_291 = arith.constant 0 : index
    %c0_292 = arith.constant 0 : index
    %c3_293 = arith.constant 3 : index
    %c0_294 = arith.constant 0 : index
    %193 = vector.load %arg4[%c0_291, %c0_292, %c3_293, %c0_294] : memref<1x8x32x32xf32, #tpu.memory_space<vmem>>, vector<1x8x1x32xf32>
    %194 = vector.shape_cast %193 : vector<1x8x1x32xf32> to vector<8x32xf32>
    %195 = vector.shape_cast %192 : vector<8x32xf32> to vector<1x8x1x32xf32>
    tpu.vector_store %arg4[%c0_291, %c0_292, %c3_293, %c0_294], %195 {strides = array<i32>} : memref<1x8x32x32xf32, #tpu.memory_space<vmem>>, vector<1x8x1x32xf32>,
    %c2_295 = arith.constant 2 : index
    %c0_296 = arith.constant 0 : index
    %c0_297 = arith.constant 0 : index
    %196 = vector.load %arg7[%c2_295, %c0_296, %c0_297] : memref<16x8x32xf32, #tpu.memory_space<vmem>>, vector<1x8x32xf32>
    %197 = vector.shape_cast %196 : vector<1x8x32xf32> to vector<8x32xf32>
    %c0_298 = arith.constant 0 : index
    %c0_299 = arith.constant 0 : index
    %c5_300 = arith.constant 5 : index
    %c0_301 = arith.constant 0 : index
    %198 = vector.load %arg4[%c0_298, %c0_299, %c5_300, %c0_301] : memref<1x8x32x32xf32, #tpu.memory_space<vmem>>, vector<1x8x1x32xf32>
    %199 = vector.shape_cast %198 : vector<1x8x1x32xf32> to vector<8x32xf32>
    %200 = vector.shape_cast %197 : vector<8x32xf32> to vector<1x8x1x32xf32>
    tpu.vector_store %arg4[%c0_298, %c0_299, %c5_300, %c0_301], %200 {strides = array<i32>} : memref<1x8x32x32xf32, #tpu.memory_space<vmem>>, vector<1x8x1x32xf32>,
    %c3_302 = arith.constant 3 : index
    %c0_303 = arith.constant 0 : index
    %c0_304 = arith.constant 0 : index
    %201 = vector.load %arg7[%c3_302, %c0_303, %c0_304] : memref<16x8x32xf32, #tpu.memory_space<vmem>>, vector<1x8x32xf32>
    %202 = vector.shape_cast %201 : vector<1x8x32xf32> to vector<8x32xf32>
    %c0_305 = arith.constant 0 : index
    %c0_306 = arith.constant 0 : index
    %c7_307 = arith.constant 7 : index
    %c0_308 = arith.constant 0 : index
    %203 = vector.load %arg4[%c0_305, %c0_306, %c7_307, %c0_308] : memref<1x8x32x32xf32, #tpu.memory_space<vmem>>, vector<1x8x1x32xf32>
    %204 = vector.shape_cast %203 : vector<1x8x1x32xf32> to vector<8x32xf32>
    %205 = vector.shape_cast %202 : vector<8x32xf32> to vector<1x8x1x32xf32>
    tpu.vector_store %arg4[%c0_305, %c0_306, %c7_307, %c0_308], %205 {strides = array<i32>} : memref<1x8x32x32xf32, #tpu.memory_space<vmem>>, vector<1x8x1x32xf32>,
    %c4_309 = arith.constant 4 : index
    %c0_310 = arith.constant 0 : index
    %c0_311 = arith.constant 0 : index
    %206 = vector.load %arg7[%c4_309, %c0_310, %c0_311] : memref<16x8x32xf32, #tpu.memory_space<vmem>>, vector<1x8x32xf32>
    %207 = vector.shape_cast %206 : vector<1x8x32xf32> to vector<8x32xf32>
    %c0_312 = arith.constant 0 : index
    %c0_313 = arith.constant 0 : index
    %c9_314 = arith.constant 9 : index
    %c0_315 = arith.constant 0 : index
    %208 = vector.load %arg4[%c0_312, %c0_313, %c9_314, %c0_315] : memref<1x8x32x32xf32, #tpu.memory_space<vmem>>, vector<1x8x1x32xf32>
    %209 = vector.shape_cast %208 : vector<1x8x1x32xf32> to vector<8x32xf32>
    %210 = vector.shape_cast %207 : vector<8x32xf32> to vector<1x8x1x32xf32>
    tpu.vector_store %arg4[%c0_312, %c0_313, %c9_314, %c0_315], %210 {strides = array<i32>} : memref<1x8x32x32xf32, #tpu.memory_space<vmem>>, vector<1x8x1x32xf32>,
    %c5_316 = arith.constant 5 : index
    %c0_317 = arith.constant 0 : index
    %c0_318 = arith.constant 0 : index
    %211 = vector.load %arg7[%c5_316, %c0_317, %c0_318] : memref<16x8x32xf32, #tpu.memory_space<vmem>>, vector<1x8x32xf32>
    %212 = vector.shape_cast %211 : vector<1x8x32xf32> to vector<8x32xf32>
    %c0_319 = arith.constant 0 : index
    %c0_320 = arith.constant 0 : index
    %c11_321 = arith.constant 11 : index
    %c0_322 = arith.constant 0 : index
    %213 = vector.load %arg4[%c0_319, %c0_320, %c11_321, %c0_322] : memref<1x8x32x32xf32, #tpu.memory_space<vmem>>, vector<1x8x1x32xf32>
    %214 = vector.shape_cast %213 : vector<1x8x1x32xf32> to vector<8x32xf32>
    %215 = vector.shape_cast %212 : vector<8x32xf32> to vector<1x8x1x32xf32>
    tpu.vector_store %arg4[%c0_319, %c0_320, %c11_321, %c0_322], %215 {strides = array<i32>} : memref<1x8x32x32xf32, #tpu.memory_space<vmem>>, vector<1x8x1x32xf32>,
    %c6_323 = arith.constant 6 : index
    %c0_324 = arith.constant 0 : index
    %c0_325 = arith.constant 0 : index
    %216 = vector.load %arg7[%c6_323, %c0_324, %c0_325] : memref<16x8x32xf32, #tpu.memory_space<vmem>>, vector<1x8x32xf32>
    %217 = vector.shape_cast %216 : vector<1x8x32xf32> to vector<8x32xf32>
    %c0_326 = arith.constant 0 : index
    %c0_327 = arith.constant 0 : index
    %c13_328 = arith.constant 13 : index
    %c0_329 = arith.constant 0 : index
    %218 = vector.load %arg4[%c0_326, %c0_327, %c13_328, %c0_329] : memref<1x8x32x32xf32, #tpu.memory_space<vmem>>, vector<1x8x1x32xf32>
    %219 = vector.shape_cast %218 : vector<1x8x1x32xf32> to vector<8x32xf32>
    %220 = vector.shape_cast %217 : vector<8x32xf32> to vector<1x8x1x32xf32>
    tpu.vector_store %arg4[%c0_326, %c0_327, %c13_328, %c0_329], %220 {strides = array<i32>} : memref<1x8x32x32xf32, #tpu.memory_space<vmem>>, vector<1x8x1x32xf32>,
    %c7_330 = arith.constant 7 : index
    %c0_331 = arith.constant 0 : index
    %c0_332 = arith.constant 0 : index
    %221 = vector.load %arg7[%c7_330, %c0_331, %c0_332] : memref<16x8x32xf32, #tpu.memory_space<vmem>>, vector<1x8x32xf32>
    %222 = vector.shape_cast %221 : vector<1x8x32xf32> to vector<8x32xf32>
    %c0_333 = arith.constant 0 : index
    %c0_334 = arith.constant 0 : index
    %c15_335 = arith.constant 15 : index
    %c0_336 = arith.constant 0 : index
    %223 = vector.load %arg4[%c0_333, %c0_334, %c15_335, %c0_336] : memref<1x8x32x32xf32, #tpu.memory_space<vmem>>, vector<1x8x1x32xf32>
    %224 = vector.shape_cast %223 : vector<1x8x1x32xf32> to vector<8x32xf32>
    %225 = vector.shape_cast %222 : vector<8x32xf32> to vector<1x8x1x32xf32>
    tpu.vector_store %arg4[%c0_333, %c0_334, %c15_335, %c0_336], %225 {strides = array<i32>} : memref<1x8x32x32xf32, #tpu.memory_space<vmem>>, vector<1x8x1x32xf32>,
    %c8_337 = arith.constant 8 : index
    %c0_338 = arith.constant 0 : index
    %c0_339 = arith.constant 0 : index
    %226 = vector.load %arg7[%c8_337, %c0_338, %c0_339] : memref<16x8x32xf32, #tpu.memory_space<vmem>>, vector<1x8x32xf32>
    %227 = vector.shape_cast %226 : vector<1x8x32xf32> to vector<8x32xf32>
    %c0_340 = arith.constant 0 : index
    %c0_341 = arith.constant 0 : index
    %c17 = arith.constant 17 : index
    %c0_342 = arith.constant 0 : index
    %228 = vector.load %arg4[%c0_340, %c0_341, %c17, %c0_342] : memref<1x8x32x32xf32, #tpu.memory_space<vmem>>, vector<1x8x1x32xf32>
    %229 = vector.shape_cast %228 : vector<1x8x1x32xf32> to vector<8x32xf32>
    %230 = vector.shape_cast %227 : vector<8x32xf32> to vector<1x8x1x32xf32>
    tpu.vector_store %arg4[%c0_340, %c0_341, %c17, %c0_342], %230 {strides = array<i32>} : memref<1x8x32x32xf32, #tpu.memory_space<vmem>>, vector<1x8x1x32xf32>,
    %c9_343 = arith.constant 9 : index
    %c0_344 = arith.constant 0 : index
    %c0_345 = arith.constant 0 : index
    %231 = vector.load %arg7[%c9_343, %c0_344, %c0_345] : memref<16x8x32xf32, #tpu.memory_space<vmem>>, vector<1x8x32xf32>
    %232 = vector.shape_cast %231 : vector<1x8x32xf32> to vector<8x32xf32>
    %c0_346 = arith.constant 0 : index
    %c0_347 = arith.constant 0 : index
    %c19 = arith.constant 19 : index
    %c0_348 = arith.constant 0 : index
    %233 = vector.load %arg4[%c0_346, %c0_347, %c19, %c0_348] : memref<1x8x32x32xf32, #tpu.memory_space<vmem>>, vector<1x8x1x32xf32>
    %234 = vector.shape_cast %233 : vector<1x8x1x32xf32> to vector<8x32xf32>
    %235 = vector.shape_cast %232 : vector<8x32xf32> to vector<1x8x1x32xf32>
    tpu.vector_store %arg4[%c0_346, %c0_347, %c19, %c0_348], %235 {strides = array<i32>} : memref<1x8x32x32xf32, #tpu.memory_space<vmem>>, vector<1x8x1x32xf32>,
    %c10_349 = arith.constant 10 : index
    %c0_350 = arith.constant 0 : index
    %c0_351 = arith.constant 0 : index
    %236 = vector.load %arg7[%c10_349, %c0_350, %c0_351] : memref<16x8x32xf32, #tpu.memory_space<vmem>>, vector<1x8x32xf32>
    %237 = vector.shape_cast %236 : vector<1x8x32xf32> to vector<8x32xf32>
    %c0_352 = arith.constant 0 : index
    %c0_353 = arith.constant 0 : index
    %c21 = arith.constant 21 : index
    %c0_354 = arith.constant 0 : index
    %238 = vector.load %arg4[%c0_352, %c0_353, %c21, %c0_354] : memref<1x8x32x32xf32, #tpu.memory_space<vmem>>, vector<1x8x1x32xf32>
    %239 = vector.shape_cast %238 : vector<1x8x1x32xf32> to vector<8x32xf32>
    %240 = vector.shape_cast %237 : vector<8x32xf32> to vector<1x8x1x32xf32>
    tpu.vector_store %arg4[%c0_352, %c0_353, %c21, %c0_354], %240 {strides = array<i32>} : memref<1x8x32x32xf32, #tpu.memory_space<vmem>>, vector<1x8x1x32xf32>,
    %c11_355 = arith.constant 11 : index
    %c0_356 = arith.constant 0 : index
    %c0_357 = arith.constant 0 : index
    %241 = vector.load %arg7[%c11_355, %c0_356, %c0_357] : memref<16x8x32xf32, #tpu.memory_space<vmem>>, vector<1x8x32xf32>
    %242 = vector.shape_cast %241 : vector<1x8x32xf32> to vector<8x32xf32>
    %c0_358 = arith.constant 0 : index
    %c0_359 = arith.constant 0 : index
    %c23 = arith.constant 23 : index
    %c0_360 = arith.constant 0 : index
    %243 = vector.load %arg4[%c0_358, %c0_359, %c23, %c0_360] : memref<1x8x32x32xf32, #tpu.memory_space<vmem>>, vector<1x8x1x32xf32>
    %244 = vector.shape_cast %243 : vector<1x8x1x32xf32> to vector<8x32xf32>
    %245 = vector.shape_cast %242 : vector<8x32xf32> to vector<1x8x1x32xf32>
    tpu.vector_store %arg4[%c0_358, %c0_359, %c23, %c0_360], %245 {strides = array<i32>} : memref<1x8x32x32xf32, #tpu.memory_space<vmem>>, vector<1x8x1x32xf32>,
    %c12_361 = arith.constant 12 : index
    %c0_362 = arith.constant 0 : index
    %c0_363 = arith.constant 0 : index
    %246 = vector.load %arg7[%c12_361, %c0_362, %c0_363] : memref<16x8x32xf32, #tpu.memory_space<vmem>>, vector<1x8x32xf32>
    %247 = vector.shape_cast %246 : vector<1x8x32xf32> to vector<8x32xf32>
    %c0_364 = arith.constant 0 : index
    %c0_365 = arith.constant 0 : index
    %c25 = arith.constant 25 : index
    %c0_366 = arith.constant 0 : index
    %248 = vector.load %arg4[%c0_364, %c0_365, %c25, %c0_366] : memref<1x8x32x32xf32, #tpu.memory_space<vmem>>, vector<1x8x1x32xf32>
    %249 = vector.shape_cast %248 : vector<1x8x1x32xf32> to vector<8x32xf32>
    %250 = vector.shape_cast %247 : vector<8x32xf32> to vector<1x8x1x32xf32>
    tpu.vector_store %arg4[%c0_364, %c0_365, %c25, %c0_366], %250 {strides = array<i32>} : memref<1x8x32x32xf32, #tpu.memory_space<vmem>>, vector<1x8x1x32xf32>,
    %c13_367 = arith.constant 13 : index
    %c0_368 = arith.constant 0 : index
    %c0_369 = arith.constant 0 : index
    %251 = vector.load %arg7[%c13_367, %c0_368, %c0_369] : memref<16x8x32xf32, #tpu.memory_space<vmem>>, vector<1x8x32xf32>
    %252 = vector.shape_cast %251 : vector<1x8x32xf32> to vector<8x32xf32>
    %c0_370 = arith.constant 0 : index
    %c0_371 = arith.constant 0 : index
    %c27 = arith.constant 27 : index
    %c0_372 = arith.constant 0 : index
    %253 = vector.load %arg4[%c0_370, %c0_371, %c27, %c0_372] : memref<1x8x32x32xf32, #tpu.memory_space<vmem>>, vector<1x8x1x32xf32>
    %254 = vector.shape_cast %253 : vector<1x8x1x32xf32> to vector<8x32xf32>
    %255 = vector.shape_cast %252 : vector<8x32xf32> to vector<1x8x1x32xf32>
    tpu.vector_store %arg4[%c0_370, %c0_371, %c27, %c0_372], %255 {strides = array<i32>} : memref<1x8x32x32xf32, #tpu.memory_space<vmem>>, vector<1x8x1x32xf32>,
    %c14_373 = arith.constant 14 : index
    %c0_374 = arith.constant 0 : index
    %c0_375 = arith.constant 0 : index
    %256 = vector.load %arg7[%c14_373, %c0_374, %c0_375] : memref<16x8x32xf32, #tpu.memory_space<vmem>>, vector<1x8x32xf32>
    %257 = vector.shape_cast %256 : vector<1x8x32xf32> to vector<8x32xf32>
    %c0_376 = arith.constant 0 : index
    %c0_377 = arith.constant 0 : index
    %c29 = arith.constant 29 : index
    %c0_378 = arith.constant 0 : index
    %258 = vector.load %arg4[%c0_376, %c0_377, %c29, %c0_378] : memref<1x8x32x32xf32, #tpu.memory_space<vmem>>, vector<1x8x1x32xf32>
    %259 = vector.shape_cast %258 : vector<1x8x1x32xf32> to vector<8x32xf32>
    %260 = vector.shape_cast %257 : vector<8x32xf32> to vector<1x8x1x32xf32>
    tpu.vector_store %arg4[%c0_376, %c0_377, %c29, %c0_378], %260 {strides = array<i32>} : memref<1x8x32x32xf32, #tpu.memory_space<vmem>>, vector<1x8x1x32xf32>,
    %c15_379 = arith.constant 15 : index
    %c0_380 = arith.constant 0 : index
    %c0_381 = arith.constant 0 : index
    %261 = vector.load %arg7[%c15_379, %c0_380, %c0_381] : memref<16x8x32xf32, #tpu.memory_space<vmem>>, vector<1x8x32xf32>
    %262 = vector.shape_cast %261 : vector<1x8x32xf32> to vector<8x32xf32>
    %c0_382 = arith.constant 0 : index
    %c0_383 = arith.constant 0 : index
    %c31 = arith.constant 31 : index
    %c0_384 = arith.constant 0 : index
    %263 = vector.load %arg4[%c0_382, %c0_383, %c31, %c0_384] : memref<1x8x32x32xf32, #tpu.memory_space<vmem>>, vector<1x8x1x32xf32>
    %264 = vector.shape_cast %263 : vector<1x8x1x32xf32> to vector<8x32xf32>
    %265 = vector.shape_cast %262 : vector<8x32xf32> to vector<1x8x1x32xf32>
    tpu.vector_store %arg4[%c0_382, %c0_383, %c31, %c0_384], %265 {strides = array<i32>} : memref<1x8x32x32xf32, #tpu.memory_space<vmem>>, vector<1x8x1x32xf32>,
    return
  }
  func.func @transform_0(%arg0: i32) -> (i32, i32, i32, i32) {
    %c0_i32 = arith.constant 0 : i32
    %c0_i32_0 = arith.constant 0 : i32
    %c0_i32_1 = arith.constant 0 : i32
    %c0_i32_2 = arith.constant 0 : i32
    return %arg0, %c0_i32, %c0_i32_0, %c0_i32_1 : i32, i32, i32, i32
  }
  func.func @transform_1(%arg0: i32) -> (i32, i32, i32, i32) {
    %c0_i32 = arith.constant 0 : i32
    %c0_i32_0 = arith.constant 0 : i32
    %c0_i32_1 = arith.constant 0 : i32
    %c0_i32_2 = arith.constant 0 : i32
    %c0_i32_3 = arith.constant 0 : i32
    return %c0_i32, %c0_i32_0, %c0_i32_1, %c0_i32_2 : i32, i32, i32, i32
  }
  func.func @transform_2(%arg0: i32) -> (i32, i32, i32) {
    %c0_i32 = arith.constant 0 : i32
    %c0_i32_0 = arith.constant 0 : i32
    %c0_i32_1 = arith.constant 0 : i32
    %c0_i32_2 = arith.constant 0 : i32
    return %c0_i32, %c0_i32_0, %c0_i32_1 : i32, i32, i32
  }
  func.func @transform_3(%arg0: i32) -> (i32, i32, i32, i32) {
    %c0_i32 = arith.constant 0 : i32
    %c0_i32_0 = arith.constant 0 : i32
    %c0_i32_1 = arith.constant 0 : i32
    %c0_i32_2 = arith.constant 0 : i32
    return %arg0, %c0_i32, %c0_i32_0, %c0_i32_1 : i32, i32, i32, i32
  }
}

</mosaic_0001>

<bundles_post_ra>
// kernel: tpu_custom_call.1
= control target key start
LH: loop header
LB: loop body
LE: loop exit
PB: predicated region body
PF: predicated region fallthrough
CT: control target
= control target key end

     0   :  { %8 = vsyncpa [#allocation6], 0  ;;  %s13939_s0 = inlined_call_operand.hbm [shape: f32[2,4,16,16], index: 0, kind: input, shape index: {}]   ;;  %s13940_s1 = inlined_call_operand.hbm [shape: f32[2,2,8,16], index: 1, kind: input, shape index: {}]   ;;  %s13941_s2 = inlined_call_operand.hbm [shape: f32[2,16,32], index: 2, kind: input, shape index: {}]   ;;  %s13942_s3 = inlined_call_operand.hbm [shape: f32[2,8,32,32], index: 3, kind: output, shape index: {}]  }
   0x1   :  { %10 = vsyncpa [#allocation6 + $0x1], 0 }
   0x2   :  { %11 = vsyncpa [#allocation9], 0 }
   0x3   :  { %12 = vsyncpa [#allocation7], 0 }
   0x4   :  { %14 = vsyncpa [#allocation7 + $0x1], 0  ;;  %s11534_s12 = smov 0   ;;  %s11536_s13 = smov 0  }
   0x5   :  { %s11538_s14 = smov 0   ;;  %s11540_s15 = smov 0  }
   0x6 LB: > { %s11555_s16 = sadd.s32 4294967295, %s11498_s15   ;;  %s10248_s17 = sadd.s32 4294967294, %s11498_s15   ;;  %s11498_s15 = sphi %s11540_s15, %s13963_s15   ;;  %s11494_s14 = sphi %s11538_s14, %s13962_s14   ;;  %s11490_s13 = sphi %s11536_s13, %s13961_s13   ;;  %s11486_s12 = sphi %s11534_s12, %s13960_s12  }
   0x7   : > { %p40_p0 = scmp.ne.s32.totalorder %s11490_s13, %s11486_s12  ;;  %p13943_p1 = scmp.eq.s32.totalorder %s11555_s16, 0 }
   0x8   : > { %p106_p2 = scmp.eq.s32.totalorder %s11555_s16, 1  ;;  %p112_p3 = scmp.eq.s32.totalorder %s10248_s17, 1 }
   0x9   : > { %p11564_p4 = por %p13943_p1, %p40_p0  ;;  %p10249_p5 = scmp.ge.s32.totalorder %s11498_s15, 1 }
   0xa   : > { %p11569_p6 = por %p112_p3, %p40_p0  ;;  %p119_p7 = scmp.lt.s32.totalorder %s11498_s15, 3 }
   0xb   : > { %s13947_s18 = scalar_select %p11564_p4, 1, 0 }
   0xc   : > { %s13948_s19 = scalar_select %p11569_p6, 1, 0 }
   0xd   : > { %p11574_p8 = pnand %p10249_p5, %p119_p7  ;;  %s11500_s21 = smov [#allocation8]  }
   0xe   : > { %s131_s22 = sshll.u32 %s11500_s21, 4  ;;  %s11501_s24 = smov [#allocation10]   ;;  %s132_s22 = int_to_ptr.vmem [resolvable:$true] %s131_s22 }
   0xf   : > { %s13949_s20 = scalar_select %p11574_p8, 1, 0 }
  0x10   : > { %p11242_p9 = pneg %p11574_p8  ;;  %s144_s25 = sshll.u32 %s11501_s24, 4  ;;  %s145_s25 = int_to_ptr.vmem [resolvable:$true] %s144_s25 }
  0x11   : > { %s11361_s26 = scalar_lea.vmem %s132_s22, 512  ;;  %p11369_p5 = scmp.lt.s32.totalorder %s132_s22, %s132_s22 }
  0x12   : > { %p11583_p11 = pnand %p11242_p9, %p13943_p1  ;;  %p11362_p13 = scmp.ne.s32.totalorder %s132_s22, %s11361_s26 }
  0x13   : > { %p11370_p7 = scmp.lt.s32.totalorder %s11361_s26, %s11361_s26 }
  0x14   : > { %p11352_p12 = pneg %p11583_p11 }
  0x15   : > { %p11371_p10 = por %p11370_p7, %p11369_p5 }
  0x16   : > { %p11364_p0 = pnand %p11362_p13, %p11352_p12 }
  0x18   : > { %p11365_p3 = pneg %p11364_p0 }
  0x1a   : > { %p11372_p9 = pnand %p11371_p10, %p11365_p3 }
  0x1c   : > { %11375 = shalt.err (!%p11372_p9)
}
  0x1d   : > { %s11502_s27 = smov 128   ;;  %s11503_s28 = smov 8  }
  0x1e   : > { %11245 = dma.hbm_to_vmem [thread:$0]  (!%p11583_p11), %s13940_s1, 512, %s132_s22, [#allocation9], %s11502_s27, %s11502_s27, %s11503_s28  }
  0x1f   : > { %s11387_s4 = scalar_lea.vmem %s145_s25, 512  ;;  %p11395_p10 = scmp.lt.s32.totalorder %s145_s25, %s145_s25 }
  0x20   : > { %p11388_p13 = scmp.ne.s32.totalorder %s145_s25, %s11387_s4  ;;  %p11396_p3 = scmp.lt.s32.totalorder %s11387_s4, %s11387_s4 }
  0x22   : > { %p11390_p0 = pnand %p11388_p13, %p11352_p12  ;;  %p11397_p7 = por %p11396_p3, %p11395_p10 }
  0x24   : > { %p11391_p5 = pneg %p11390_p0 }
  0x26   : > { %p11398_p9 = pnand %p11397_p7, %p11391_p5 }
  0x28   : > { %11401 = shalt.err (!%p11398_p9)
}
  0x29   : > { %11248 = dma.hbm_to_vmem [thread:$0]  (!%p11583_p11), %s13941_s2, 512, %s145_s25, [#allocation9], %s11502_s27, %s11502_s27, %s11503_s28  }
  0x2a   : > { %s11612_s7 = sadd.s32 1, %s11498_s15   ;;  %s27_s8 = sadd.s32 1, %s11494_s14 }
  0x2b   : > { %s24_s9 = ssub.s32 %s11498_s15, %s11612_s7  ;;  %p34_p12 = scmp.ne.s32.totalorder %s11494_s14, %s11490_s13 }
  0x2c   : > { %p25_p13 = scmp.eq.s32.totalorder %s24_s9, 0  ;;  %p35_p0 = scmp.eq.s32.totalorder %s11498_s15, 0 }
  0x2d   : > { %p11622_p5 = por %p106_p2, %p34_p12  ;;  %p11259_p10 = scmp.lt.s32.totalorder %s11498_s15, 2 }
  0x2e   : > { %s11628_s11 = scalar_select %p25_p13, %s11494_s14, %s27_s8  }
  0x2f   : > { %s13951_s10 = scalar_select %p11622_p5, 1, 0 }
  0x30   : > { %p36_p3 = por %p35_p0, %p34_p12  ;;  %s158_s17 = sand.u32 1, %s11494_s14  }
  0x31   : > { %s10253_s21 = sshll.u32 %s158_s17, 6  ;;  %s10400_s22 = sshll.u32 %s11498_s15, 10 }
  0x32   : > { %s11635_s25 = scalar_lea.hbm %s13939_s0, %s10400_s22  ;;  %s162_s26 = scalar_lea.vmem [#allocation5], %s10253_s21 }
  0x33   : > { %s169_s29 = sshll.u32 %s162_s26, 4  ;;  %p11639_p2 = pnand %p11259_p10, %p36_p3  ;;  %s11637_s29 = int_to_ptr.vmem [resolvable:$true] %s169_s29 }
  0x34   : > { %s11643_s4 = scalar_lea.sflag [#allocation6], %s158_s17  ;;  %s11402_s5 = scalar_lea.hbm %s11635_s25, 1024 }
  0x35   : > { %p11403_p11 = scmp.ne.s32.totalorder %s11635_s25, %s11402_s5  ;;  %p11404_p7 = pneg %p11639_p2 }
  0x36   : > { %s11407_s9 = scalar_lea.hbm %s13939_s0, 2048  ;;  %p11408_p13 = scmp.lt.s32.totalorder %s11635_s25, %s13939_s0 }
  0x37   : > { %p11405_p9 = pnand %p11404_p7, %p11403_p11  ;;  %p11409_p0 = scmp.lt.s32.totalorder %s11407_s9, %s11402_s5 }
  0x39   : > { %p11406_p12 = pneg %p11405_p9  ;;  %p11410_p10 = por %p11409_p0, %p11408_p13 }
  0x3b   : > { %p11411_p3 = pnand %p11410_p10, %p11406_p12 }
  0x3d   : > { %11414 = shalt.err (!%p11411_p3)
}
  0x3e   : > { %s11415_s17 = scalar_lea.vmem %s11637_s29, 1024  ;;  %s11504_s23 = smov [#allocation5]  }
  0x3f   : > { %p11416_p1 = scmp.ne.s32.totalorder %s11637_s29, %s11415_s17  ;;  %s11420_s24 = sshll.u32 %s11504_s23, 4  ;;  %s11421_s24 = int_to_ptr.vmem [resolvable:$false] %s11420_s24 }
  0x40   : > { %s11422_s26 = scalar_lea.vmem %s11421_s24, 2048  ;;  %p11423_p9 = scmp.lt.s32.totalorder %s11637_s29, %s11421_s24 }
  0x41   : > { %p11418_p6 = pnand %p11416_p1, %p11404_p7  ;;  %p11424_p5 = scmp.lt.s32.totalorder %s11422_s26, %s11415_s17 }
  0x43   : > { %p11419_p11 = pneg %p11418_p6  ;;  %p11425_p4 = por %p11424_p5, %p11423_p9 }
  0x45   : > { %p11426_p8 = pnand %p11425_p4, %p11419_p11 }
  0x47   : > { %11429 = shalt.err (!%p11426_p8)
}
  0x48   : > { %11252 = dma.hbm_to_vmem [thread:$0]  (!%p11639_p2), %s11635_s25, 1024, %s11637_s29, %s11643_s4, %s11502_s27, %s11502_s27, %s11503_s28  }
  0x49   : > { %p13953_p1 = scmp.ne.s32.totalorder %s13949_s20, 0 }
  0x4a   : > { %s11670_s5 = sand.u32 (!%p13953_p1), 1, %s11490_s13   ;;  %p13954_p4 = scmp.ne.s32.totalorder (!%p13953_p1), %s13947_s18, 0 }
  0x4b   : > { %181 = sbr.rel (%p13953_p1) target bundleno = 1581 (0x62d), region = 32  ;;  %s10257_s6 = sshll.u32 (!%p13953_p1), %s11670_s5, 6 }
  0x4c   : > { %s184_s8 = scalar_lea.sflag (!%p13953_p1), [#allocation6], %s11670_s5  ;;  %s11674_s9 = scalar_lea.vmem (!%p13953_p1), [#allocation5], %s10257_s6 }
  0x50   : > { %11473 = dma.done.wait (%p13954_p4), %s184_s8, 1024  }
  0x51   : > { %11475 = vsyncadd (%p13954_p4), %s184_s8, 4294966272  ;;  %p13955_p6 = scmp.eq.s32.totalorder %s11555_s16, 0 }
  0x53   : > { %11477 = dma.done.wait (%p13955_p6), [#allocation9], 1024   ;;  %p13956_p8 = pmov %p13955_p6 }
  0x54   : > { %v245_v0 = vlaneseq  ;;  %vm218_vm0 = vcmask 142336   ;;  %v11505_v1 = vmov 1966171168   ;;  %v11506_v4 = vmov 0.0   ;;  %v11725_v7 = vld [vmem:[%s11674_s9 + $0x20] sm:$0xff]  ;;  %v11729_v9 = vld [vmem:[%s11674_s9 + $0x30] sm:$0xff] }
  0x55   : > { %11479 = vsyncadd (%p13956_p8), [#allocation9], 4294966272  ;;  %v243_v2 = vunpack.c.l.s4 %v11505_v1  ;;  %220 = vst.msk [vmem:[#allocation2 + $0x4] sm:$0xf] %vm218_vm0, %v11506_v4  ;;  %10666 = vmatprep.subr.mxu0 %v11506_v4  ;;  %10673 = vmatprep.subr.mxu1 %v11506_v4  ;;  %v237_v8 = vld [vmem:[%s11674_s9] sm:$0xff]  ;;  %v10261_v13 = vld [vmem:[%s11674_s9 + $0x10] sm:$0xff]  ;;  %v705_v48 = vcombine.high %v11725_v7, %v11725_v7  ;;  %v936_v52 = vcombine.high %v11729_v9, %v11729_v9 }
  0x56   : > { %v246_v3 = vshrl.u32 %v245_v0, 7  ;;  %219 = vst.msk [vmem:[#allocation2] sm:$0xf] %vm218_vm0, %v11506_v4  ;;  %221 = vst.msk [vmem:[#allocation2 + $0x8] sm:$0xf] %vm218_vm0, %v11506_v4  ;;  %s11507_s18 = smov 1   ;;  %v241_v42 = vcombine.high %v237_v8, %v237_v8  ;;  %v474_v44 = vcombine.high %v10261_v13, %v10261_v13 }
  0x57   : > { %222 = vst.msk [vmem:[#allocation2 + $0xc] sm:$0xf] %vm218_vm0, %v11506_v4  ;;  %223 = vst.msk [vmem:[#allocation2 + $0x10] sm:$0xf] %vm218_vm0, %v11506_v4  ;;  %v244_v5 = vunpack.c.0.s8 %v243_v2  ;;  %vm452_vm1 = vcmask 131080   ;;  %vm1178_vm2 = vcmask 125952  }
  0x58   : > { %224 = vst.msk [vmem:[#allocation2 + $0x14] sm:$0xf] %vm218_vm0, %v11506_v4  ;;  %225 = vst.msk [vmem:[#allocation2 + $0x18] sm:$0xf] %vm218_vm0, %v11506_v4  ;;  %v11731_v10 = vsub.s32 0, %v246_v3  ;;  %s11508_s20 = smov 127  }
  0x59   : > { %226 = vst.msk [vmem:[#allocation2 + $0x1c] sm:$0xf] %vm218_vm0, %v11506_v4  ;;  %227 = vst.msk [vmem:[#allocation2 + $0x20] sm:$0xf] %vm218_vm0, %v11506_v4  ;;  %v11722_v6 = vsub.s32 %v244_v5, %v246_v3  ;;  %vm11509_vm3 = vmmov 0   ;;  %s11510_s27 = smov 126  }
  0x5a   : > { %228 = vst.msk [vmem:[#allocation2 + $0x24] sm:$0xf] %vm218_vm0, %v11506_v4  ;;  %229 = vst.msk [vmem:[#allocation2 + $0x28] sm:$0xf] %vm218_vm0, %v11506_v4  ;;  %10670 = vmatprep.mubr.msk.f32.mxu0 %vm11509_vm3, %v11506_v4  ;;  %10677 = vmatprep.mubr.msk.f32.mxu1 %vm11509_vm3, %v11506_v4  ;;  %vm1452_vm4 = vcmask 130048   ;;  %vm2771_vm5 = vcmask 261120  }
  0x5b   : > { %230 = vst.msk [vmem:[#allocation2 + $0x2c] sm:$0xf] %vm218_vm0, %v11506_v4  ;;  %231 = vst.msk [vmem:[#allocation2 + $0x30] sm:$0xf] %vm218_vm0, %v11506_v4  ;;  %v712_v11 = vrot.slane %v11725_v7, %v11722_v6  ;;  %v248_v12 = vrot.slane %v237_v8, %v11722_v6  ;;  %v943_v14 = vrot.slane %v11729_v9, %v11722_v6  ;;  %s10260_s28 = sshll.u32 %s11670_s5, 8  ;;  %vm4632_vm6 = vcmask 253952  }
  0x5c   : > { %232 = vst.msk [vmem:[#allocation2 + $0x34] sm:$0xf] %vm218_vm0, %v11506_v4  ;;  %233 = vst.msk [vmem:[#allocation2 + $0x38] sm:$0xf] %vm218_vm0, %v11506_v4  ;;  %v481_v15 = vrot.slane %v10261_v13, %v11722_v6  ;;  %v488_v51 = vrot.slane %v474_v44, %v11722_v6  ;;  %v255_v55 = vrot.slane %v241_v42, %v11722_v6  ;;  %s13086_s25 = scalar_lea.vmem [#allocation11], %s10260_s28  ;;  %s10401_s29 = sshll.u32 %s11555_s16, 12 }
  0x5d   : > { %234 = vst.msk [vmem:[#allocation2 + $0x3c] sm:$0xf] %vm218_vm0, %v11506_v4  ;;  %235 = vst.msk [vmem:[#allocation2 + $0x40] sm:$0xf] %vm218_vm0, %v11506_v4  ;;  %v728_v16 = vrot.slane %v712_v11, %v11722_v6  ;;  %v264_v17 = vrot.slane %v248_v12, %v11722_v6  ;;  %v256_v18 = vcombine.high %v248_v12, %v248_v12  ;;  %s10156_s30 = sshll.u32 %s13086_s25, 4  ;;  %s13886_s22 = scalar_lea.hbm %s13942_s3, %s10401_s29  ;;  %s13888_s30 = int_to_ptr.vmem [resolvable:$true] %s10156_s30 }
  0x5e   : > { %236 = vst.msk [vmem:[#allocation2 + $0x44] sm:$0xf] %vm218_vm0, %v11506_v4  ;;  %v959_v19 = vrot.slane %v943_v14, %v11722_v6  ;;  %v497_v20 = vrot.slane %v481_v15, %v11722_v6  ;;  %v489_v21 = vcombine.high %v481_v15, %v481_v15  ;;  %v720_v24 = vcombine.high %v712_v11, %v712_v11  ;;  %s10143_s16 = scalar_lea.sflag [#allocation7], %s11670_s5  ;;  %s11430_s17 = scalar_lea.vmem %s13888_s30, 4096 }
  0x5f   : > { %v806_v22 = vrot.slane %v728_v16, %v11731_v10  ;;  %v342_v23 = vrot.slane %v264_v17, %v11731_v10  ;;  %v951_v26 = vcombine.high %v943_v14, %v943_v14  ;;  %v278_v29 = vrot.slane %v256_v18, %v11722_v6  ;;  %p11431_p5 = scmp.ne.s32.totalorder %s13888_s30, %s11430_s17  ;;  %p13957_p2 = scmp.ne.s32.totalorder %s13951_s10, 0 }
  0x60   : > { %v1037_v25 = vrot.slane %v959_v19, %v11731_v10  ;;  %v575_v27 = vrot.slane %v497_v20, %v11731_v10  ;;  %v511_v28 = vrot.slane %v489_v21, %v11722_v6  ;;  %v742_v33 = vrot.slane %v720_v24, %v11722_v6  ;;  %s11511_s23 = smov [#allocation11]  }
  0x61   : > { %867 = vrot.lane.b32.xlu1 %v806_v22, %s11507_s18  ;;  %403 = vrot.lane.b32.xlu0 %v342_v23, %s11507_s18  ;;  %v973_v30 = vrot.slane %v951_v26, %v11722_v6  ;;  %v346_v32 = vrot.slane %v278_v29, %v11731_v10  ;;  %v286_v34 = vcombine.high %v264_v17, %v264_v17  ;;  %p11432_p7 = pnand %p11431_p5, %p13957_p2  ;;  %s11434_s24 = sshll.u32 %s11511_s23, 4  ;;  %s11435_s24 = int_to_ptr.vmem [resolvable:$false] %s11434_s24 }
  0x62   : > { %v579_v31 = vrot.slane %v511_v28, %v11731_v10  ;;  %v810_v36 = vrot.slane %v742_v33, %v11731_v10  ;;  %v519_v37 = vcombine.high %v497_v20, %v497_v20  ;;  %v750_v38 = vcombine.high %v728_v16, %v728_v16  ;;  %s11436_s26 = scalar_lea.vmem %s11435_s24, 8192  ;;  %p11437_p13 = scmp.lt.s32.totalorder %s13888_s30, %s11435_s24 }
  0x63   : > { %v1041_v35 = vrot.slane %v973_v30, %v11731_v10  ;;  %v350_v40 = vrot.slane %v286_v34, %v11731_v10  ;;  %v981_v41 = vcombine.high %v959_v19, %v959_v19  ;;  %v521_v46 = vcombine.high %v511_v28, %v511_v28  ;;  %p11433_p12 = pneg %p11432_p7  ;;  %p11438_p0 = scmp.lt.s32.totalorder %s11436_s26, %s11430_s17 }
  0x64   : > { %v583_v39 = vrot.slane %v519_v37, %v11731_v10  ;;  %v814_v43 = vrot.slane %v750_v38, %v11731_v10  ;;  %v288_v47 = vcombine.high %v278_v29, %v278_v29  ;;  %v983_v49 = vcombine.high %v973_v30, %v973_v30  ;;  %v11819_v29 = vld [vmem:[%s11674_s9 + $0x18] sm:$0xff]  ;;  %v11822_v30 = vld [vmem:[%s11674_s9 + $0x8] sm:$0xff] }
  0x65   : > { %1098 = vrot.lane.b32.xlu1 %v1037_v25, %s11507_s18  ;;  %636 = vrot.lane.b32.xlu0 %v575_v27, %s11507_s18  ;;  %v1045_v45 = vrot.slane %v981_v41, %v11731_v10  ;;  %v752_v50 = vcombine.high %v742_v33, %v742_v33  ;;  %v587_v53 = vrot.slane %v521_v46, %v11731_v10  ;;  %v11833_v37 = vld [vmem:[%s11674_s9 + $0x38] sm:$0xff]  ;;  %v11836_v38 = vld [vmem:[%s11674_s9 + $0x28] sm:$0xff]  ;;  %p11439_p10 = por %p11438_p0, %p11437_p13 }
  0x66   : > { %v354_v54 = vrot.slane %v288_v47, %v11731_v10  ;;  %v1049_v56 = vrot.slane %v983_v49, %v11731_v10  ;;  %v950_v58 = vrot.slane %v936_v52, %v11722_v6  ;;  %v504_v59 = vrot.slane %v488_v51, %v11722_v6 }
  0x67   : > { %v818_v57 = vrot.slane %v752_v50, %v11731_v10  ;;  %v271_v60 = vrot.slane %v255_v55, %v11722_v6  ;;  %v719_v61 = vrot.slane %v705_v48, %v11722_v6  ;;  %v490_v63 = vcombine.high %v488_v51, %v488_v51  ;;  %p11440_p3 = pnand %p11439_p10, %p11433_p12 }
  0x68   : > { %v966_v62 = vrot.slane %v950_v58, %v11722_v6  ;;  %v257_v0 = vcombine.high %v255_v55, %v255_v55  ;;  %v591_v1 = vrot.slane %v504_v59, %v11731_v10  ;;  %v952_v8 = vcombine.high %v950_v58, %v950_v58 }
  0x69   : > { %638 = vrot.lane.b32.xlu1 %v579_v31, %s11507_s18  ;;  %405 = vrot.lane.b32.xlu0 %v346_v32, %s11507_s18  ;;  %v358_v2 = vrot.slane %v271_v60, %v11731_v10  ;;  %v735_v3 = vrot.slane %v719_v61, %v11722_v6  ;;  %v518_v7 = vrot.slane %v490_v63, %v11722_v6 }
  0x6a   : > { %v1053_v5 = vrot.slane %v966_v62, %v11731_v10  ;;  %v285_v11 = vrot.slane %v257_v0, %v11722_v6  ;;  %v721_v12 = vcombine.high %v719_v61, %v719_v61  ;;  %v980_v13 = vrot.slane %v952_v8, %v11722_v6 }
  0x6b   : > { %v822_v9 = vrot.slane %v735_v3, %v11731_v10  ;;  %v595_v14 = vrot.slane %v518_v7, %v11731_v10  ;;  %v520_v17 = vcombine.high %v504_v59, %v504_v59  ;;  %v287_v20 = vcombine.high %v271_v60, %v271_v60 }
  0x6c   : > { %v362_v15 = vrot.slane %v285_v11, %v11731_v10  ;;  %v749_v16 = vrot.slane %v721_v12, %v11722_v6  ;;  %v1057_v18 = vrot.slane %v980_v13, %v11731_v10  ;;  %v982_v21 = vcombine.high %v966_v62, %v966_v62 }
  0x6d   : > { %1100 = vrot.lane.b32.xlu1 %v1041_v35, %s11507_s18  ;;  %869 = vrot.lane.b32.xlu0 %v810_v36, %s11507_s18  ;;  %v599_v22 = vrot.slane %v520_v17, %v11731_v10  ;;  %v366_v23 = vrot.slane %v287_v20, %v11731_v10  ;;  %v751_v24 = vcombine.high %v735_v3, %v735_v3 }
  0x6e   : > { %v826_v19 = vrot.slane %v749_v16, %v11731_v10  ;;  %v1061_v25 = vrot.slane %v982_v21, %v11731_v10  ;;  %v522_v27 = vcombine.high %v518_v7, %v518_v7  ;;  %v289_v28 = vcombine.high %v285_v11, %v285_v11 }
  0x6f   : > { %v830_v26 = vrot.slane %v751_v24, %v11731_v10  ;;  %v984_v31 = vcombine.high %v980_v13, %v980_v13  ;;  %v753_v32 = vcombine.high %v749_v16, %v749_v16  ;;  %v530_v33 = vrot.slane %v11819_v29, %v11722_v6 }
  0x70   : > { %v603_v34 = vrot.slane %v522_v27, %v11731_v10  ;;  %v370_v35 = vrot.slane %v289_v28, %v11731_v10  ;;  %v297_v36 = vrot.slane %v11822_v30, %v11722_v6  ;;  %v761_v44 = vrot.slane %v11836_v38, %v11722_v6 }
  0x71   : > { %640 = vrot.lane.b32.xlu1 %v583_v39, %s11507_s18  ;;  %407 = vrot.lane.b32.xlu0 %v350_v40, %s11507_s18  ;;  %v1065_v39 = vrot.slane %v984_v31, %v11731_v10  ;;  %v834_v40 = vrot.slane %v753_v32, %v11731_v10  ;;  %v546_v41 = vrot.slane %v530_v33, %v11722_v6 }
  0x72   : > { %v313_v42 = vrot.slane %v297_v36, %v11722_v6  ;;  %v538_v46 = vcombine.high %v530_v33, %v530_v33  ;;  %v305_v47 = vcombine.high %v297_v36, %v297_v36  ;;  %v777_v50 = vrot.slane %v761_v44, %v11722_v6 }
  0x73   : > { %v568_v61 = vcombine.high %v546_v41, %v546_v41  ;;  %v290_v13 = vcombine.high %v11822_v30, %v11822_v30  ;;  %v754_v21 = vcombine.high %v11836_v38, %v11836_v38 }
  0x74   : > { %v374_v48 = vrot.slane %v313_v42, %v11731_v10  ;;  %v560_v51 = vrot.slane %v538_v46, %v11722_v6  ;;  %v327_v52 = vrot.slane %v305_v47, %v11722_v6  ;;  %v838_v55 = vrot.slane %v777_v50, %v11731_v10 }
  0x75   : > { %1102 = vrot.lane.b32.xlu1 %v1045_v45, %s11507_s18  ;;  %871 = vrot.lane.b32.xlu0 %v814_v43, %s11507_s18  ;;  %v992_v43 = vrot.slane %v11833_v37, %v11722_v6  ;;  %v607_v45 = vrot.slane %v546_v41, %v11731_v10  ;;  %v335_v0 = vcombine.high %v313_v42, %v313_v42 }
  0x76   : > { %v378_v58 = vrot.slane %v327_v52, %v11731_v10  ;;  %v570_v7 = vcombine.high %v560_v51, %v560_v51  ;;  %v337_v8 = vcombine.high %v327_v52, %v327_v52  ;;  %v304_v20 = vrot.slane %v290_v13, %v11722_v6 }
  0x77   : > { %v1008_v49 = vrot.slane %v992_v43, %v11722_v6  ;;  %v768_v27 = vrot.slane %v754_v21, %v11722_v6 }
  0x78   : > { %v306_v33 = vcombine.high %v304_v20, %v304_v20 }
  0x79   : > { %642 = vrot.lane.b32.xlu1 %v587_v53, %s11507_s18  ;;  %409 = vrot.lane.b32.xlu0 %v354_v54, %s11507_s18  ;;  %v1000_v53 = vcombine.high %v992_v43, %v992_v43  ;;  %v1069_v54 = vrot.slane %v1008_v49, %v11731_v10  ;;  %v1030_v3 = vcombine.high %v1008_v49, %v1008_v49 }
  0x7a   : > { %v784_v32 = vrot.slane %v768_v27, %v11722_v6  ;;  %v770_v36 = vcombine.high %v768_v27, %v768_v27 }
  0x7b   : > { %v1022_v59 = vrot.slane %v1000_v53, %v11722_v6  ;;  %v1077_v11 = vrot.slane %v1030_v3, %v11731_v10 }
  0x7c   : > { %v854_v38 = vrot.slane %v784_v32, %v11731_v10  ;;  %v798_v43 = vrot.slane %v770_v36, %v11722_v6 }
  0x7d   : > { %1104 = vrot.lane.b32.xlu1 %v1049_v56, %s11507_s18  ;;  %873 = vrot.lane.b32.xlu0 %v818_v57, %s11507_s18  ;;  %v769_v56 = vcombine.high %v761_v44, %v761_v44  ;;  %v611_v57 = vrot.slane %v560_v51, %v11731_v10  ;;  %v1073_v62 = vrot.slane %v1022_v59, %v11731_v10 }
  0x7e   : > { %v1032_v16 = vcombine.high %v1022_v59, %v1022_v59  ;;  %v858_v46 = vrot.slane %v798_v43, %v11731_v10  ;;  %v800_v51 = vcombine.high %v784_v32, %v784_v32 }
  0x7f   : > { %v791_v60 = vrot.slane %v769_v56, %v11722_v6 }
  0x81   : > { %644 = vrot.lane.b32.xlu1 %v591_v1, %s11507_s18  ;;  %411 = vrot.lane.b32.xlu0 %v358_v2, %s11507_s18  ;;  %v842_v63 = vrot.slane %v791_v60, %v11731_v10  ;;  %v615_v1 = vrot.slane %v568_v61, %v11731_v10  ;;  %v382_v2 = vrot.slane %v335_v0, %v11731_v10 }
  0x82   : > { %v802_v61 = vcombine.high %v798_v43, %v798_v43 }
  0x85   : > { %1106 = vrot.lane.b32.xlu1 %v1053_v5, %s11507_s18  ;;  %875 = vrot.lane.b32.xlu0 %v822_v9, %s11507_s18  ;;  %v799_v5 = vcombine.high %v777_v50, %v777_v50  ;;  %v523_v9 = vcombine.high %v11819_v29, %v11819_v29 }
  0x87   : > { %v846_v12 = vrot.slane %v799_v5, %v11731_v10  ;;  %v537_v17 = vrot.slane %v523_v9, %v11722_v6  ;;  %v1162_v5 = vld [vmem:[#allocation2] sm:$0xf] }
  0x88   : > { %1179 = vst.msk [vmem:[#allocation3] sm:$0xf] %vm1178_vm2, %v1162_v5 }
  0x89   : > { %646 = vrot.lane.b32.xlu1 %v595_v14, %s11507_s18  ;;  %413 = vrot.lane.b32.xlu0 %v362_v15, %s11507_s18  ;;  %v619_v14 = vrot.slane %v570_v7, %v11731_v10  ;;  %v386_v15 = vrot.slane %v337_v8, %v11731_v10  ;;  %v539_v30 = vcombine.high %v537_v17, %v537_v17  ;;  %v1195_v7 = vld [vmem:[#allocation2] sm:$0xf] }
  0x8d   : > { %1108 = vrot.lane.b32.xlu1 %v1057_v18, %s11507_s18  ;;  %877 = vrot.lane.b32.xlu0 %v826_v19, %s11507_s18  ;;  %v985_v18 = vcombine.high %v11833_v37, %v11833_v37  ;;  %v801_v19 = vcombine.high %v791_v60, %v791_v60 }
  0x8f   : > { %v999_v24 = vrot.slane %v985_v18, %v11722_v6 }
  0x91   : > { %648 = vrot.lane.b32.xlu1 %v599_v22, %s11507_s18  ;;  %415 = vrot.lane.b32.xlu0 %v366_v23, %s11507_s18  ;;  %v1081_v22 = vrot.slane %v1032_v16, %v11731_v10  ;;  %v553_v23 = vrot.slane %v537_v17, %v11722_v6  ;;  %v1015_v29 = vrot.slane %v999_v24, %v11722_v6 }
  0x93   : > { %v623_v28 = vrot.slane %v553_v23, %v11731_v10  ;;  %v1085_v37 = vrot.slane %v1015_v29, %v11731_v10  ;;  %v569_v44 = vcombine.high %v553_v23, %v553_v23  ;;  %v1031_v50 = vcombine.high %v1015_v29, %v1015_v29 }
  0x95   : > { %1110 = vrot.lane.b32.xlu1 %v1061_v25, %s11507_s18  ;;  %879 = vrot.lane.b32.xlu0 %v830_v26, %s11507_s18  ;;  %v850_v25 = vrot.slane %v801_v19, %v11731_v10  ;;  %v320_v26 = vrot.slane %v304_v20, %v11722_v6  ;;  %v1093_v53 = vrot.slane %v1031_v50, %v11731_v10 }
  0x97   : > { %v390_v31 = vrot.slane %v320_v26, %v11731_v10  ;;  %v336_v47 = vcombine.high %v320_v26, %v320_v26 }
  0x99   : > { %650 = vrot.lane.b32.xlu1 %v603_v34, %s11507_s18  ;;  %417 = vrot.lane.b32.xlu0 %v370_v35, %s11507_s18  ;;  %v567_v34 = vrot.slane %v539_v30, %v11722_v6  ;;  %v1001_v35 = vcombine.high %v999_v24, %v999_v24  ;;  %v398_v49 = vrot.slane %v336_v47, %v11731_v10 }
  0x9b   : > { %v1029_v42 = vrot.slane %v1001_v35, %v11722_v6  ;;  %v571_v52 = vcombine.high %v567_v34, %v567_v34 }
  0x9d   : > { %1112 = vrot.lane.b32.xlu1 %v1065_v39, %s11507_s18  ;;  %881 = vrot.lane.b32.xlu0 %v834_v40, %s11507_s18  ;;  %v334_v39 = vrot.slane %v306_v33, %v11722_v6  ;;  %v627_v40 = vrot.slane %v567_v34, %v11731_v10  ;;  %v1033_v60 = vcombine.high %v1029_v42, %v1029_v42 }
  0x9f   : > { %v394_v41 = vrot.slane %v334_v39, %v11731_v10  ;;  %v1097_v0 = vrot.slane %v1033_v60, %v11731_v10 }
  0xa1   : > { %652 = vrot.lane.b32.xlu1 %v607_v45, %s11507_s18  ;;  %419 = vrot.lane.b32.xlu0 %v374_v48, %s11507_s18  ;;  %v1089_v45 = vrot.slane %v1029_v42, %v11731_v10  ;;  %v631_v48 = vrot.slane %v569_v44, %v11731_v10 }
  0xa5   : > { %1114 = vrot.lane.b32.xlu1 %v1069_v54, %s11507_s18  ;;  %883 = vrot.lane.b32.xlu0 %v838_v55, %s11507_s18  ;;  %v862_v54 = vrot.slane %v800_v51, %v11731_v10  ;;  %v338_v55 = vcombine.high %v334_v39, %v334_v39 }
  0xa7   : > { %v402_v59 = vrot.slane %v338_v55, %v11731_v10 }
  0xa9   : > { %654 = vrot.lane.b32.xlu1 %v611_v57, %s11507_s18  ;;  %421 = vrot.lane.b32.xlu0 %v378_v58, %s11507_s18  ;;  %v635_v58 = vrot.slane %v571_v52, %v11731_v10 }
  0xad   : > { %1116 = vrot.lane.b32.xlu1 %v1073_v62, %s11507_s18  ;;  %885 = vrot.lane.b32.xlu0 %v842_v63, %s11507_s18 }
  0xb1   : > { %656 = vrot.lane.b32.xlu1 %v615_v1, %s11507_s18  ;;  %423 = vrot.lane.b32.xlu0 %v382_v2, %s11507_s18  ;;  %v866_v1 = vrot.slane %v802_v61, %v11731_v10 }
  0xb5   : > { %1118 = vrot.lane.b32.xlu1 %v1077_v11, %s11507_s18  ;;  %887 = vrot.lane.b32.xlu0 %v846_v12, %s11507_s18 }
  0xb9   : > { %658 = vrot.lane.b32.xlu1 %v619_v14, %s11507_s18  ;;  %425 = vrot.lane.b32.xlu0 %v386_v15, %s11507_s18 }
  0xbd   : > { %1120 = vrot.lane.b32.xlu1 %v1081_v22, %s11507_s18  ;;  %889 = vrot.lane.b32.xlu0 %v850_v25, %s11507_s18 }
  0xc1   : > { %660 = vrot.lane.b32.xlu1 %v623_v28, %s11507_s18  ;;  %427 = vrot.lane.b32.xlu0 %v390_v31, %s11507_s18 }
  0xc5   : > { %1122 = vrot.lane.b32.xlu1 %v1085_v37, %s11507_s18  ;;  %891 = vrot.lane.b32.xlu0 %v854_v38, %s11507_s18 }
  0xc9   : > { %662 = vrot.lane.b32.xlu1 %v627_v40, %s11507_s18  ;;  %429 = vrot.lane.b32.xlu0 %v394_v41, %s11507_s18 }
  0xcd   : > { %1124 = vrot.lane.b32.xlu1 %v1089_v45, %s11507_s18  ;;  %893 = vrot.lane.b32.xlu0 %v858_v46, %s11507_s18 }
  0xd1   : > { %664 = vrot.lane.b32.xlu1 %v631_v48, %s11507_s18  ;;  %431 = vrot.lane.b32.xlu0 %v398_v49, %s11507_s18 }
  0xd3   : > { %v868_v56 = vpop.permute.xlu1 %867  ;;  %v404_v57 = vpop.permute.xlu0 %403 }
  0xd4   : > { %915 = vst.msk [vmem:[#allocation2 + $0x6] sm:$0x1] %vm452_vm1, %v868_v56  ;;  %453 = vst.msk [vmem:[#allocation2 + $0x4] sm:$0x1] %vm452_vm1, %v404_v57 }
  0xd5   : > { %1126 = vrot.lane.b32.xlu1 %v1093_v53, %s11507_s18  ;;  %895 = vrot.lane.b32.xlu0 %v862_v54, %s11507_s18 }
  0xd7   : > { %v1099_v62 = vpop.permute.xlu1 %1098  ;;  %v637_v63 = vpop.permute.xlu0 %636 }
  0xd8   : > { %1146 = vst.msk [vmem:[#allocation2 + $0x7] sm:$0x1] %vm452_vm1, %v1099_v62  ;;  %684 = vst.msk [vmem:[#allocation2 + $0x5] sm:$0x1] %vm452_vm1, %v637_v63 }
  0xd9   : > { %666 = vrot.lane.b32.xlu1 %v635_v58, %s11507_s18  ;;  %433 = vrot.lane.b32.xlu0 %v402_v59, %s11507_s18 }
  0xdb   : > { %v639_v2 = vpop.permute.xlu1 %638  ;;  %v406_v3 = vpop.permute.xlu0 %405 }
  0xdc   : > { %685 = vst.msk [vmem:[#allocation2 + $0x9] sm:$0x1] %vm452_vm1, %v639_v2  ;;  %454 = vst.msk [vmem:[#allocation2 + $0x8] sm:$0x1] %vm452_vm1, %v406_v3 }
  0xdd   : > { %1128 = vrot.lane.b32.xlu1 %v1097_v0, %s11507_s18  ;;  %897 = vrot.lane.b32.xlu0 %v866_v1, %s11507_s18 }
  0xdf   : > { %v1163_v8 = vld [vmem:[#allocation2 + $0x4] sm:$0xf]  ;;  %v1101_v11 = vpop.permute.xlu1 %1100  ;;  %v870_v12 = vpop.permute.xlu0 %869 }
  0xe0   : > { %v1291_v9 = vld [vmem:[#allocation2 + $0x4] sm:$0xf]  ;;  %1180 = vst.msk [vmem:[#allocation3 + $0x10] sm:$0xf] %vm1178_vm2, %v1163_v8 }
  0xe1   : > { %v1196_v10 = vld [vmem:[#allocation2 + $0x4] sm:$0xf]  ;;  %1307 = vst.msk [vmem:[#allocation3 + $0x8] sm:$0xf] %vm1178_vm2, %v1291_v9  ;;  %1227 = vrot.lane.b32.xlu0 %v1195_v7, %s11508_s20 }
  0xe2   : > { %1147 = vst.msk [vmem:[#allocation2 + $0xb] sm:$0x1] %vm452_vm1, %v1101_v11  ;;  %916 = vst.msk [vmem:[#allocation2 + $0xa] sm:$0x1] %vm452_vm1, %v870_v12  ;;  %1229 = vrot.lane.b32.xlu1 %v1196_v10, %s11508_s20  ;;  %v1323_v15 = vld [vmem:[#allocation2 + $0x4] sm:$0xf] }
  0xe3   : > { %v641_v13 = vpop.permute.xlu1 %640  ;;  %v408_v14 = vpop.permute.xlu0 %407 }
  0xe4   : > { %686 = vst.msk [vmem:[#allocation2 + $0xd] sm:$0x1] %vm452_vm1, %v641_v13  ;;  %455 = vst.msk [vmem:[#allocation2 + $0xc] sm:$0x1] %vm452_vm1, %v408_v14 }
  0xe5   : > { %1355 = vrot.lane.b32.xlu0 %v1323_v15, %s11508_s20 }
  0xe7   : > { %v1103_v18 = vpop.permute.xlu1 %1102  ;;  %v872_v19 = vpop.permute.xlu0 %871 }
  0xe8   : > { %1148 = vst.msk [vmem:[#allocation2 + $0xf] sm:$0x1] %vm452_vm1, %v1103_v18  ;;  %917 = vst.msk [vmem:[#allocation2 + $0xe] sm:$0x1] %vm452_vm1, %v872_v19 }
  0xe9   : > { %v1164_v16 = vld [vmem:[#allocation2 + $0x8] sm:$0xf] }
  0xea   : > { %v1292_v17 = vld [vmem:[#allocation2 + $0x8] sm:$0xf]  ;;  %1181 = vst.msk [vmem:[#allocation3 + $0x20] sm:$0xf] %vm1178_vm2, %v1164_v16 }
  0xeb   : > { %v1324_v20 = vld [vmem:[#allocation2 + $0x8] sm:$0xf]  ;;  %1308 = vst.msk [vmem:[#allocation3 + $0x18] sm:$0xf] %vm1178_vm2, %v1292_v17  ;;  %v643_v21 = vpop.permute.xlu1 %642  ;;  %v410_v22 = vpop.permute.xlu0 %409 }
  0xec   : > { %1357 = vrot.lane.b32.xlu1 %v1324_v20, %s11508_s20  ;;  %687 = vst.msk [vmem:[#allocation2 + $0x11] sm:$0x1] %vm452_vm1, %v643_v21  ;;  %456 = vst.msk [vmem:[#allocation2 + $0x10] sm:$0x1] %vm452_vm1, %v410_v22  ;;  %v1197_v31 = vld [vmem:[#allocation2 + $0x8] sm:$0xf] }
  0xef   : > { %v1165_v23 = vld [vmem:[#allocation2 + $0xc] sm:$0xf]  ;;  %v1105_v25 = vpop.permute.xlu1 %1104  ;;  %v874_v26 = vpop.permute.xlu0 %873 }
  0xf0   : > { %v1293_v24 = vld [vmem:[#allocation2 + $0xc] sm:$0xf]  ;;  %1182 = vst.msk [vmem:[#allocation3 + $0x30] sm:$0xf] %vm1178_vm2, %v1165_v23 }
  0xf1   : > { %v1198_v27 = vld [vmem:[#allocation2 + $0xc] sm:$0xf]  ;;  %1309 = vst.msk [vmem:[#allocation3 + $0x28] sm:$0xf] %vm1178_vm2, %v1293_v24 }
  0xf2   : > { %1149 = vst.msk [vmem:[#allocation2 + $0x13] sm:$0x1] %vm452_vm1, %v1105_v25  ;;  %918 = vst.msk [vmem:[#allocation2 + $0x12] sm:$0x1] %vm452_vm1, %v874_v26  ;;  %1233 = vrot.lane.b32.xlu1 %v1198_v27, %s11508_s20  ;;  %v1325_v28 = vld [vmem:[#allocation2 + $0xc] sm:$0xf] }
  0xf3   : > { %1359 = vrot.lane.b32.xlu0 %v1325_v28, %s11508_s20  ;;  %v645_v29 = vpop.permute.xlu1 %644  ;;  %v412_v30 = vpop.permute.xlu0 %411 }
  0xf4   : > { %688 = vst.msk [vmem:[#allocation2 + $0x15] sm:$0x1] %vm452_vm1, %v645_v29  ;;  %457 = vst.msk [vmem:[#allocation2 + $0x14] sm:$0x1] %vm452_vm1, %v412_v30 }
  0xf7   : > { %1231 = vrot.lane.b32.xlu0 %v1197_v31, %s11508_s20  ;;  %v1107_v34 = vpop.permute.xlu1 %1106  ;;  %v876_v35 = vpop.permute.xlu0 %875 }
  0xf8   : > { %1150 = vst.msk [vmem:[#allocation2 + $0x17] sm:$0x1] %vm452_vm1, %v1107_v34  ;;  %919 = vst.msk [vmem:[#allocation2 + $0x16] sm:$0x1] %vm452_vm1, %v876_v35 }
  0xf9   : > { %v1166_v32 = vld [vmem:[#allocation2 + $0x10] sm:$0xf] }
  0xfa   : > { %v1294_v33 = vld [vmem:[#allocation2 + $0x10] sm:$0xf]  ;;  %1183 = vst.msk [vmem:[#allocation3 + $0x40] sm:$0xf] %vm1178_vm2, %v1166_v32 }
  0xfb   : > { %v1326_v36 = vld [vmem:[#allocation2 + $0x10] sm:$0xf]  ;;  %1310 = vst.msk [vmem:[#allocation3 + $0x38] sm:$0xf] %vm1178_vm2, %v1294_v33  ;;  %v647_v37 = vpop.permute.xlu1 %646  ;;  %v414_v38 = vpop.permute.xlu0 %413 }
  0xfc   : > { %1361 = vrot.lane.b32.xlu1 %v1326_v36, %s11508_s20  ;;  %689 = vst.msk [vmem:[#allocation2 + $0x19] sm:$0x1] %vm452_vm1, %v647_v37  ;;  %458 = vst.msk [vmem:[#allocation2 + $0x18] sm:$0x1] %vm452_vm1, %v414_v38  ;;  %v1199_v46 = vld [vmem:[#allocation2 + $0x10] sm:$0xf] }
  0xff   : > { %v1167_v39 = vld [vmem:[#allocation2 + $0x14] sm:$0xf]  ;;  %v1109_v41 = vpop.permute.xlu1 %1108  ;;  %v878_v42 = vpop.permute.xlu0 %877 }
 0x100   : > { %v1295_v40 = vld [vmem:[#allocation2 + $0x14] sm:$0xf]  ;;  %1184 = vst.msk [vmem:[#allocation3 + $0x50] sm:$0xf] %vm1178_vm2, %v1167_v39 }
 0x101   : > { %v1327_v43 = vld [vmem:[#allocation2 + $0x14] sm:$0xf]  ;;  %1311 = vst.msk [vmem:[#allocation3 + $0x48] sm:$0xf] %vm1178_vm2, %v1295_v40 }
 0x102   : > { %1151 = vst.msk [vmem:[#allocation2 + $0x1b] sm:$0x1] %vm452_vm1, %v1109_v41  ;;  %920 = vst.msk [vmem:[#allocation2 + $0x1a] sm:$0x1] %vm452_vm1, %v878_v42  ;;  %1363 = vrot.lane.b32.xlu0 %v1327_v43, %s11508_s20  ;;  %v1200_v54 = vld [vmem:[#allocation2 + $0x14] sm:$0xf] }
 0x103   : > { %v649_v44 = vpop.permute.xlu1 %648  ;;  %v416_v45 = vpop.permute.xlu0 %415 }
 0x104   : > { %690 = vst.msk [vmem:[#allocation2 + $0x1d] sm:$0x1] %vm452_vm1, %v649_v44  ;;  %459 = vst.msk [vmem:[#allocation2 + $0x1c] sm:$0x1] %vm452_vm1, %v416_v45 }
 0x106   : > { %1235 = vrot.lane.b32.xlu0 %v1199_v46, %s11508_s20 }
 0x107   : > { %v1111_v49 = vpop.permute.xlu1 %1110  ;;  %v880_v50 = vpop.permute.xlu0 %879 }
 0x108   : > { %1152 = vst.msk [vmem:[#allocation2 + $0x1f] sm:$0x1] %vm452_vm1, %v1111_v49  ;;  %921 = vst.msk [vmem:[#allocation2 + $0x1e] sm:$0x1] %vm452_vm1, %v880_v50 }
 0x109   : > { %v1168_v47 = vld [vmem:[#allocation2 + $0x18] sm:$0xf] }
 0x10a   : > { %v1296_v48 = vld [vmem:[#allocation2 + $0x18] sm:$0xf]  ;;  %1185 = vst.msk [vmem:[#allocation3 + $0x60] sm:$0xf] %vm1178_vm2, %v1168_v47 }
 0x10b   : > { %v1328_v51 = vld [vmem:[#allocation2 + $0x18] sm:$0xf]  ;;  %1312 = vst.msk [vmem:[#allocation3 + $0x58] sm:$0xf] %vm1178_vm2, %v1296_v48  ;;  %v651_v52 = vpop.permute.xlu1 %650  ;;  %v418_v53 = vpop.permute.xlu0 %417 }
 0x10c   : > { %1365 = vrot.lane.b32.xlu1 %v1328_v51, %s11508_s20  ;;  %691 = vst.msk [vmem:[#allocation2 + $0x21] sm:$0x1] %vm452_vm1, %v651_v52  ;;  %460 = vst.msk [vmem:[#allocation2 + $0x20] sm:$0x1] %vm452_vm1, %v418_v53  ;;  %v1201_v62 = vld [vmem:[#allocation2 + $0x18] sm:$0xf] }
 0x10f   : > { %v1169_v55 = vld [vmem:[#allocation2 + $0x1c] sm:$0xf]  ;;  %v1113_v57 = vpop.permute.xlu1 %1112  ;;  %v882_v58 = vpop.permute.xlu0 %881 }
 0x110   : > { %1237 = vrot.lane.b32.xlu1 %v1200_v54, %s11508_s20  ;;  %v1297_v56 = vld [vmem:[#allocation2 + $0x1c] sm:$0xf]  ;;  %1186 = vst.msk [vmem:[#allocation3 + $0x70] sm:$0xf] %vm1178_vm2, %v1169_v55 }
 0x111   : > { %v1329_v59 = vld [vmem:[#allocation2 + $0x1c] sm:$0xf]  ;;  %1313 = vst.msk [vmem:[#allocation3 + $0x68] sm:$0xf] %vm1178_vm2, %v1297_v56 }
 0x112   : > { %1153 = vst.msk [vmem:[#allocation2 + $0x23] sm:$0x1] %vm452_vm1, %v1113_v57  ;;  %922 = vst.msk [vmem:[#allocation2 + $0x22] sm:$0x1] %vm452_vm1, %v882_v58  ;;  %1367 = vrot.lane.b32.xlu0 %v1329_v59, %s11508_s20  ;;  %v1202_v8 = vld [vmem:[#allocation2 + $0x1c] sm:$0xf] }
 0x113   : > { %v653_v60 = vpop.permute.xlu1 %652  ;;  %v420_v61 = vpop.permute.xlu0 %419 }
 0x114   : > { %692 = vst.msk [vmem:[#allocation2 + $0x25] sm:$0x1] %vm452_vm1, %v653_v60  ;;  %461 = vst.msk [vmem:[#allocation2 + $0x24] sm:$0x1] %vm452_vm1, %v420_v61 }
 0x116   : > { %1239 = vrot.lane.b32.xlu0 %v1201_v62, %s11508_s20 }
 0x117   : > { %v1115_v1 = vpop.permute.xlu1 %1114  ;;  %v884_v2 = vpop.permute.xlu0 %883 }
 0x118   : > { %1154 = vst.msk [vmem:[#allocation2 + $0x27] sm:$0x1] %vm452_vm1, %v1115_v1  ;;  %923 = vst.msk [vmem:[#allocation2 + $0x26] sm:$0x1] %vm452_vm1, %v884_v2 }
 0x119   : > { %v1170_v63 = vld [vmem:[#allocation2 + $0x20] sm:$0xf] }
 0x11a   : > { %v1298_v0 = vld [vmem:[#allocation2 + $0x20] sm:$0xf]  ;;  %1187 = vst.msk [vmem:[#allocation3 + $0x80] sm:$0xf] %vm1178_vm2, %v1170_v63 }
 0x11b   : > { %v1330_v3 = vld [vmem:[#allocation2 + $0x20] sm:$0xf]  ;;  %1314 = vst.msk [vmem:[#allocation3 + $0x78] sm:$0xf] %vm1178_vm2, %v1298_v0  ;;  %v655_v5 = vpop.permute.xlu1 %654  ;;  %v422_v7 = vpop.permute.xlu0 %421 }
 0x11c   : > { %1369 = vrot.lane.b32.xlu1 %v1330_v3, %s11508_s20  ;;  %693 = vst.msk [vmem:[#allocation2 + $0x29] sm:$0x1] %vm452_vm1, %v655_v5  ;;  %462 = vst.msk [vmem:[#allocation2 + $0x28] sm:$0x1] %vm452_vm1, %v422_v7  ;;  %v1203_v16 = vld [vmem:[#allocation2 + $0x20] sm:$0xf] }
 0x11d   : > { %v2980_v5 = vld [vmem:[#allocation2 + $0x4] sm:$0xf]  ;;  %v2788_v7 = vld [vmem:[#allocation2] sm:$0xf] }
 0x11f   : > { %v1171_v9 = vld [vmem:[#allocation2 + $0x24] sm:$0xf]  ;;  %v1117_v12 = vpop.permute.xlu1 %1116  ;;  %v886_v10 = vpop.permute.xlu0 %885 }
 0x120   : > { %1241 = vrot.lane.b32.xlu1 %v1202_v8, %s11508_s20  ;;  %v1299_v11 = vld [vmem:[#allocation2 + $0x24] sm:$0xf]  ;;  %1188 = vst.msk [vmem:[#allocation3 + $0x90] sm:$0xf] %vm1178_vm2, %v1171_v9 }
 0x121   : > { %v1331_v13 = vld [vmem:[#allocation2 + $0x24] sm:$0xf]  ;;  %1315 = vst.msk [vmem:[#allocation3 + $0x88] sm:$0xf] %vm1178_vm2, %v1299_v11 }
 0x122   : > { %1155 = vst.msk [vmem:[#allocation2 + $0x2b] sm:$0x1] %vm452_vm1, %v1117_v12  ;;  %924 = vst.msk [vmem:[#allocation2 + $0x2a] sm:$0x1] %vm452_vm1, %v886_v10  ;;  %1371 = vrot.lane.b32.xlu0 %v1331_v13, %s11508_s20  ;;  %v1204_v24 = vld [vmem:[#allocation2 + $0x24] sm:$0xf] }
 0x123   : > { %v657_v14 = vpop.permute.xlu1 %656  ;;  %v424_v15 = vpop.permute.xlu0 %423  ;;  %v3076_v11 = vld [vmem:[#allocation2 + $0x4] sm:$0xf]  ;;  %v2981_v12 = vld [vmem:[#allocation2 + $0x8] sm:$0xf] }
 0x124   : > { %694 = vst.msk [vmem:[#allocation2 + $0x2d] sm:$0x1] %vm452_vm1, %v657_v14  ;;  %463 = vst.msk [vmem:[#allocation2 + $0x2c] sm:$0x1] %vm452_vm1, %v424_v15  ;;  %v2884_v14 = vld [vmem:[#allocation2] sm:$0xf] }
 0x126   : > { %1243 = vrot.lane.b32.xlu0 %v1203_v16, %s11508_s20 }
 0x127   : > { %v1119_v19 = vpop.permute.xlu1 %1118  ;;  %v888_v20 = vpop.permute.xlu0 %887 }
 0x128   : > { %1156 = vst.msk [vmem:[#allocation2 + $0x2f] sm:$0x1] %vm452_vm1, %v1119_v19  ;;  %925 = vst.msk [vmem:[#allocation2 + $0x2e] sm:$0x1] %vm452_vm1, %v888_v20  ;;  %v2789_v19 = vld [vmem:[#allocation2 + $0x4] sm:$0xf] }
 0x129   : > { %v1172_v17 = vld [vmem:[#allocation2 + $0x28] sm:$0xf] }
 0x12a   : > { %v1300_v18 = vld [vmem:[#allocation2 + $0x28] sm:$0xf]  ;;  %1189 = vst.msk [vmem:[#allocation3 + $0xa0] sm:$0xf] %vm1178_vm2, %v1172_v17 }
 0x12b   : > { %v1332_v21 = vld [vmem:[#allocation2 + $0x28] sm:$0xf]  ;;  %1316 = vst.msk [vmem:[#allocation3 + $0x98] sm:$0xf] %vm1178_vm2, %v1300_v18  ;;  %v659_v22 = vpop.permute.xlu1 %658  ;;  %v426_v23 = vpop.permute.xlu0 %425 }
 0x12c   : > { %1373 = vrot.lane.b32.xlu1 %v1332_v21, %s11508_s20  ;;  %695 = vst.msk [vmem:[#allocation2 + $0x31] sm:$0x1] %vm452_vm1, %v659_v22  ;;  %464 = vst.msk [vmem:[#allocation2 + $0x30] sm:$0x1] %vm452_vm1, %v426_v23  ;;  %v1205_v32 = vld [vmem:[#allocation2 + $0x28] sm:$0xf] }
 0x12d   : > { %v12081_v17 = vld [vmem:[#allocation8] sm:$0xff] }
 0x12e   : > { %v3077_v22 = vld [vmem:[#allocation2 + $0x8] sm:$0xf]  ;;  %v2982_v23 = vld [vmem:[#allocation2 + $0xc] sm:$0xf] }
 0x12f   : > { %v1173_v25 = vld [vmem:[#allocation2 + $0x2c] sm:$0xf]  ;;  %v1121_v27 = vpop.permute.xlu1 %1120  ;;  %v890_v28 = vpop.permute.xlu0 %889 }
 0x130   : > { %1245 = vrot.lane.b32.xlu1 %v1204_v24, %s11508_s20  ;;  %v1301_v26 = vld [vmem:[#allocation2 + $0x2c] sm:$0xf]  ;;  %1190 = vst.msk [vmem:[#allocation3 + $0xb0] sm:$0xf] %vm1178_vm2, %v1173_v25 }
 0x131   : > { %v1333_v29 = vld [vmem:[#allocation2 + $0x2c] sm:$0xf]  ;;  %1317 = vst.msk [vmem:[#allocation3 + $0xa8] sm:$0xf] %vm1178_vm2, %v1301_v26  ;;  %v2885_v26 = vld [vmem:[#allocation2 + $0x4] sm:$0xf] }
 0x132   : > { %1157 = vst.msk [vmem:[#allocation2 + $0x33] sm:$0x1] %vm452_vm1, %v1121_v27  ;;  %926 = vst.msk [vmem:[#allocation2 + $0x32] sm:$0x1] %vm452_vm1, %v890_v28  ;;  %1375 = vrot.lane.b32.xlu0 %v1333_v29, %s11508_s20  ;;  %v1206_v40 = vld [vmem:[#allocation2 + $0x2c] sm:$0xf] }
 0x133   : > { %v661_v30 = vpop.permute.xlu1 %660  ;;  %v428_v31 = vpop.permute.xlu0 %427  ;;  %v2790_v27 = vld [vmem:[#allocation2 + $0x8] sm:$0xf]  ;;  %v3078_v29 = vld [vmem:[#allocation2 + $0xc] sm:$0xf] }
 0x134   : > { %696 = vst.msk [vmem:[#allocation2 + $0x35] sm:$0x1] %vm452_vm1, %v661_v30  ;;  %465 = vst.msk [vmem:[#allocation2 + $0x34] sm:$0x1] %vm452_vm1, %v428_v31  ;;  %v2983_v30 = vld [vmem:[#allocation2 + $0x10] sm:$0xf] }
 0x136   : > { %1247 = vrot.lane.b32.xlu0 %v1205_v32, %s11508_s20 }
 0x137   : > { %v1123_v35 = vpop.permute.xlu1 %1122  ;;  %v892_v36 = vpop.permute.xlu0 %891 }
 0x138   : > { %1158 = vst.msk [vmem:[#allocation2 + $0x37] sm:$0x1] %vm452_vm1, %v1123_v35  ;;  %927 = vst.msk [vmem:[#allocation2 + $0x36] sm:$0x1] %vm452_vm1, %v892_v36 }
 0x139   : > { %v1174_v33 = vld [vmem:[#allocation2 + $0x30] sm:$0xf] }
 0x13a   : > { %v1302_v34 = vld [vmem:[#allocation2 + $0x30] sm:$0xf]  ;;  %1191 = vst.msk [vmem:[#allocation3 + $0xc0] sm:$0xf] %vm1178_vm2, %v1174_v33  ;;  %v2886_v33 = vld [vmem:[#allocation2 + $0x8] sm:$0xf] }
 0x13b   : > { %v1334_v37 = vld [vmem:[#allocation2 + $0x30] sm:$0xf]  ;;  %1318 = vst.msk [vmem:[#allocation3 + $0xb8] sm:$0xf] %vm1178_vm2, %v1302_v34  ;;  %v663_v38 = vpop.permute.xlu1 %662  ;;  %v430_v39 = vpop.permute.xlu0 %429  ;;  %v2791_v34 = vld [vmem:[#allocation2 + $0xc] sm:$0xf] }
 0x13c   : > { %1377 = vrot.lane.b32.xlu1 %v1334_v37, %s11508_s20  ;;  %697 = vst.msk [vmem:[#allocation2 + $0x39] sm:$0x1] %vm452_vm1, %v663_v38  ;;  %466 = vst.msk [vmem:[#allocation2 + $0x38] sm:$0x1] %vm452_vm1, %v430_v39  ;;  %v1207_v48 = vld [vmem:[#allocation2 + $0x30] sm:$0xf] }
 0x13d   : > { %v3079_v37 = vld [vmem:[#allocation2 + $0x10] sm:$0xf]  ;;  %v2984_v38 = vld [vmem:[#allocation2 + $0x14] sm:$0xf] }
 0x13f   : > { %v1175_v41 = vld [vmem:[#allocation2 + $0x34] sm:$0xf]  ;;  %v1125_v43 = vpop.permute.xlu1 %1124  ;;  %v894_v44 = vpop.permute.xlu0 %893 }
 0x140   : > { %1249 = vrot.lane.b32.xlu1 %v1206_v40, %s11508_s20  ;;  %v1303_v42 = vld [vmem:[#allocation2 + $0x34] sm:$0xf]  ;;  %1192 = vst.msk [vmem:[#allocation3 + $0xd0] sm:$0xf] %vm1178_vm2, %v1175_v41  ;;  %v2887_v41 = vld [vmem:[#allocation2 + $0xc] sm:$0xf] }
 0x141   : > { %v1335_v45 = vld [vmem:[#allocation2 + $0x34] sm:$0xf]  ;;  %1319 = vst.msk [vmem:[#allocation3 + $0xc8] sm:$0xf] %vm1178_vm2, %v1303_v42  ;;  %v2792_v42 = vld [vmem:[#allocation2 + $0x10] sm:$0xf] }
 0x142   : > { %1159 = vst.msk [vmem:[#allocation2 + $0x3b] sm:$0x1] %vm452_vm1, %v1125_v43  ;;  %928 = vst.msk [vmem:[#allocation2 + $0x3a] sm:$0x1] %vm452_vm1, %v894_v44  ;;  %1379 = vrot.lane.b32.xlu0 %v1335_v45, %s11508_s20  ;;  %v1208_v56 = vld [vmem:[#allocation2 + $0x34] sm:$0xf] }
 0x143   : > { %v665_v46 = vpop.permute.xlu1 %664  ;;  %v432_v47 = vpop.permute.xlu0 %431  ;;  %v3080_v45 = vld [vmem:[#allocation2 + $0x14] sm:$0xf] }
 0x144   : > { %698 = vst.msk [vmem:[#allocation2 + $0x3d] sm:$0x1] %vm452_vm1, %v665_v46  ;;  %467 = vst.msk [vmem:[#allocation2 + $0x3c] sm:$0x1] %vm452_vm1, %v432_v47  ;;  %v2985_v46 = vld [vmem:[#allocation2 + $0x18] sm:$0xf] }
 0x146   : > { %1251 = vrot.lane.b32.xlu0 %v1207_v48, %s11508_s20 }
 0x147   : > { %v1127_v51 = vpop.permute.xlu1 %1126  ;;  %v896_v52 = vpop.permute.xlu0 %895 }
 0x148   : > { %1160 = vst.msk [vmem:[#allocation2 + $0x3f] sm:$0x1] %vm452_vm1, %v1127_v51  ;;  %929 = vst.msk [vmem:[#allocation2 + $0x3e] sm:$0x1] %vm452_vm1, %v896_v52 }
 0x149   : > { %v1176_v49 = vld [vmem:[#allocation2 + $0x38] sm:$0xf] }
 0x14a   : > { %v1304_v50 = vld [vmem:[#allocation2 + $0x38] sm:$0xf]  ;;  %1193 = vst.msk [vmem:[#allocation3 + $0xe0] sm:$0xf] %vm1178_vm2, %v1176_v49  ;;  %v2888_v49 = vld [vmem:[#allocation2 + $0x10] sm:$0xf] }
 0x14b   : > { %v1336_v53 = vld [vmem:[#allocation2 + $0x38] sm:$0xf]  ;;  %1320 = vst.msk [vmem:[#allocation3 + $0xd8] sm:$0xf] %vm1178_vm2, %v1304_v50  ;;  %v667_v54 = vpop.permute.xlu1 %666  ;;  %v434_v55 = vpop.permute.xlu0 %433  ;;  %v2793_v50 = vld [vmem:[#allocation2 + $0x14] sm:$0xf] }
 0x14c   : > { %1381 = vrot.lane.b32.xlu1 %v1336_v53, %s11508_s20  ;;  %699 = vst.msk [vmem:[#allocation2 + $0x41] sm:$0x1] %vm452_vm1, %v667_v54  ;;  %468 = vst.msk [vmem:[#allocation2 + $0x40] sm:$0x1] %vm452_vm1, %v434_v55  ;;  %v1209_v0 = vld [vmem:[#allocation2 + $0x38] sm:$0xf] }
 0x14d   : > { %v3081_v53 = vld [vmem:[#allocation2 + $0x18] sm:$0xf]  ;;  %v2986_v54 = vld [vmem:[#allocation2 + $0x1c] sm:$0xf] }
 0x14f   : > { %v1177_v57 = vld [vmem:[#allocation2 + $0x3c] sm:$0xf]  ;;  %v1129_v59 = vpop.permute.xlu1 %1128  ;;  %v898_v60 = vpop.permute.xlu0 %897 }
 0x150   : > { %1253 = vrot.lane.b32.xlu1 %v1208_v56, %s11508_s20  ;;  %v1305_v58 = vld [vmem:[#allocation2 + $0x3c] sm:$0xf]  ;;  %1194 = vst.msk [vmem:[#allocation3 + $0xf0] sm:$0xf] %vm1178_vm2, %v1177_v57  ;;  %v2889_v57 = vld [vmem:[#allocation2 + $0x14] sm:$0xf] }
 0x151   : > { %v1337_v61 = vld [vmem:[#allocation2 + $0x3c] sm:$0xf]  ;;  %1321 = vst.msk [vmem:[#allocation3 + $0xe8] sm:$0xf] %vm1178_vm2, %v1305_v58  ;;  %v2794_v58 = vld [vmem:[#allocation2 + $0x18] sm:$0xf] }
 0x152   : > { %1161 = vst.msk [vmem:[#allocation2 + $0x43] sm:$0x1] %vm452_vm1, %v1129_v59  ;;  %930 = vst.msk [vmem:[#allocation2 + $0x42] sm:$0x1] %vm452_vm1, %v898_v60  ;;  %1383 = vrot.lane.b32.xlu0 %v1337_v61, %s11508_s20  ;;  %v1210_v9 = vld [vmem:[#allocation2 + $0x3c] sm:$0xf] }
 0x153   : > { %v1228_v63 = vpop.permute.xlu0 %1227  ;;  %v3082_v61 = vld [vmem:[#allocation2 + $0x1c] sm:$0xf] }
 0x154   : > { %v1230_v62 = vpop.permute.xlu1 %1229  ;;  %1275 = vst.msk [vmem:[#allocation3 + $0x4] sm:$0xf] %vm1178_vm2, %v1228_v63 }
 0x155   : > { %1276 = vst.msk [vmem:[#allocation3 + $0x14] sm:$0xf] %vm1178_vm2, %v1230_v62  ;;  %v2987_v62 = vld [vmem:[#allocation2 + $0x20] sm:$0xf] }
 0x156   : > { %1255 = vrot.lane.b32.xlu0 %v1209_v0, %s11508_s20 }
 0x157   : > { %v1356_v2 = vpop.permute.xlu0 %1355 }
 0x158   : > { %1403 = vst.msk [vmem:[#allocation3 + $0xc] sm:$0xf] %vm1178_vm2, %v1356_v2  ;;  %v2795_v2 = vld [vmem:[#allocation2 + $0x1c] sm:$0xf] }
 0x159   : > { %v1306_v1 = vld [vmem:[#allocation2 + $0x40] sm:$0xf] }
 0x15a   : > { %v1338_v3 = vld [vmem:[#allocation2 + $0x40] sm:$0xf]  ;;  %1322 = vst.msk [vmem:[#allocation3 + $0xf8] sm:$0xf] %vm1178_vm2, %v1306_v1  ;;  %3012 = vrot.lane.b32.xlu0 %v2980_v5, %s11508_s20  ;;  %v2890_v1 = vld [vmem:[#allocation2 + $0x18] sm:$0xf] }
 0x15b   : > { %1385 = vrot.lane.b32.xlu1 %v1338_v3, %s11508_s20  ;;  %v1420_v13 = vld [vmem:[#allocation3] sm:$0xff] }
 0x15c   : > { %v1422_v20 = vld [vmem:[#allocation3 + $0x10] sm:$0xff] }
 0x15e   : > { %v1358_v8 = vpop.permute.xlu1 %1357  ;;  %2820 = vrot.lane.b32.xlu0 %v2788_v7, %s11508_s20  ;;  %v3083_v7 = vld [vmem:[#allocation2 + $0x20] sm:$0xf] }
 0x15f   : > { %1404 = vst.msk [vmem:[#allocation3 + $0x1c] sm:$0xf] %vm1178_vm2, %v1358_v8  ;;  %1257 = vrot.lane.b32.xlu1 %v1210_v9, %s11508_s20  ;;  %v1421_v10 = vld [vmem:[#allocation3 + $0x8] sm:$0xff]  ;;  %v2988_v8 = vld [vmem:[#allocation2 + $0x24] sm:$0xf] }
 0x160   : > { %10667 = vmatpush3.msra.mxu0 %v1421_v10  ;;  %v2989_v10 = vld [vmem:[#allocation2 + $0x28] sm:$0xf] }
 0x161   : > { %10668 = vmatprep.subr.mxu0 %v11506_v4 }
 0x162   : > { %3014 = vrot.lane.b32.xlu0 %v2981_v12, %s11508_s20  ;;  %10669 = vmatpush3.msra.mxu0 %v1420_v13  ;;  %v2891_v12 = vld [vmem:[#allocation2 + $0x1c] sm:$0xf] }
 0x163   : > { %3108 = vrot.lane.b32.xlu1 %v3076_v11, %s11510_s27  ;;  %10671 = vmatmul.mubr.msk.f32.vlgmr.msra.gmra.mxu0 %vm1452_vm4, %v12081_v17 }
 0x164   : > { %v1234_v15 = vpop.permute.xlu1 %1233  ;;  %10680 = vmatprep.subr.mxu0 %v11506_v4  ;;  %10684 = vmatprep.mubr.msk.f32.mxu0 %vm11509_vm3, %v11506_v4 }
 0x165   : > { %1278 = vst.msk [vmem:[#allocation3 + $0x34] sm:$0xf] %vm1178_vm2, %v1234_v15  ;;  %v1360_v18 = vpop.permute.xlu0 %1359  ;;  %v3084_v15 = vld [vmem:[#allocation2 + $0x24] sm:$0xf] }
 0x166   : > { %v1423_v16 = vld [vmem:[#allocation3 + $0x18] sm:$0xff]  ;;  %1405 = vst.msk [vmem:[#allocation3 + $0x2c] sm:$0xf] %vm1178_vm2, %v1360_v18  ;;  %2822 = vrot.lane.b32.xlu0 %v2789_v19, %s11508_s20 }
 0x167   : > { %10674 = vmatpush3.msra.mxu1 %v1423_v16  ;;  %2916 = vrot.lane.b32.xlu1 %v2884_v14, %s11510_s27  ;;  %v2796_v16 = vld [vmem:[#allocation2 + $0x20] sm:$0xf] }
 0x168   : > { %10675 = vmatprep.subr.mxu1 %v11506_v4 }
 0x169   : > { %10676 = vmatpush3.msra.mxu1 %v1422_v20  ;;  %v1232_v21 = vpop.permute.xlu0 %1231  ;;  %v3085_v20 = vld [vmem:[#allocation2 + $0x28] sm:$0xf] }
 0x16a   : > { %10678 = vmatmul.mubr.msk.f32.vlgmr.msra.gmra.mxu1 %vm1452_vm4, %v12081_v17  ;;  %10687 = vmatprep.subr.mxu1 %v11506_v4  ;;  %1277 = vst.msk [vmem:[#allocation3 + $0x24] sm:$0xf] %vm1178_vm2, %v1232_v21  ;;  %v2797_v21 = vld [vmem:[#allocation2 + $0x24] sm:$0xf] }
 0x16b   : > { %3110 = vrot.lane.b32.xlu1 %v3077_v22, %s11510_s27  ;;  %3016 = vrot.lane.b32.xlu0 %v2982_v23, %s11508_s20 }
 0x16c   : > { %10691 = vmatprep.mubr.msk.f32.mxu1 %vm11509_vm3, %v11506_v4  ;;  %v1426_v35 = vld [vmem:[#allocation3 + $0x30] sm:$0xff] }
 0x16d   : > { %v1425_v25 = vld [vmem:[#allocation3 + $0x28] sm:$0xff] }
 0x16e   : > { %v1362_v24 = vpop.permute.xlu1 %1361  ;;  %10681 = vmatpush3.msra.mxu0 %v1425_v25  ;;  %v2990_v25 = vld [vmem:[#allocation2 + $0x2c] sm:$0xf] }
 0x16f   : > { %1406 = vst.msk [vmem:[#allocation3 + $0x3c] sm:$0xf] %vm1178_vm2, %v1362_v24  ;;  %2918 = vrot.lane.b32.xlu1 %v2885_v26, %s11510_s27  ;;  %2824 = vrot.lane.b32.xlu0 %v2790_v27, %s11508_s20  ;;  %v2892_v24 = vld [vmem:[#allocation2 + $0x20] sm:$0xf] }
 0x170   : > { %10682 = vmatprep.subr.mxu0 %v11506_v4 }
 0x171   : > { %v1424_v28 = vld [vmem:[#allocation3 + $0x20] sm:$0xff] }
 0x172   : > { %10683 = vmatpush3.msra.mxu0 %v1424_v28  ;;  %v2893_v28 = vld [vmem:[#allocation2 + $0x24] sm:$0xf] }
 0x173   : > { %3112 = vrot.lane.b32.xlu1 %v3078_v29, %s11510_s27  ;;  %3018 = vrot.lane.b32.xlu0 %v2983_v30, %s11508_s20  ;;  %v2991_v29 = vld [vmem:[#allocation2 + $0x30] sm:$0xf] }
 0x174   : > { %10694 = vmatprep.subr.mxu0 %v11506_v4  ;;  %v1364_v31 = vpop.permute.xlu0 %1363  ;;  %10685 = vmatmul.mubr.msk.f32.vlgmr.msra.gmra.mxu0 %vm1452_vm4, %v12081_v17 }
 0x175   : > { %1407 = vst.msk [vmem:[#allocation3 + $0x4c] sm:$0xf] %vm1178_vm2, %v1364_v31  ;;  %10698 = vmatprep.mubr.msk.f32.mxu0 %vm11509_vm3, %v11506_v4 }
 0x176   : > { %v1427_v32 = vld [vmem:[#allocation3 + $0x38] sm:$0xff] }
 0x177   : > { %10688 = vmatpush3.msra.mxu1 %v1427_v32  ;;  %2920 = vrot.lane.b32.xlu1 %v2886_v33, %s11510_s27  ;;  %v3086_v32 = vld [vmem:[#allocation2 + $0x2c] sm:$0xf]  ;;  %v2798_v33 = vld [vmem:[#allocation2 + $0x28] sm:$0xf] }
 0x178   : > { %10689 = vmatprep.subr.mxu1 %v11506_v4  ;;  %2826 = vrot.lane.b32.xlu0 %v2791_v34, %s11508_s20  ;;  %v1236_v36 = vpop.permute.xlu0 %1235 }
 0x179   : > { %10690 = vmatpush3.msra.mxu1 %v1426_v35  ;;  %1279 = vst.msk [vmem:[#allocation3 + $0x44] sm:$0xf] %vm1178_vm2, %v1236_v36  ;;  %v3087_v36 = vld [vmem:[#allocation2 + $0x30] sm:$0xf] }
 0x17a   : > { %10701 = vmatprep.subr.mxu1 %v11506_v4  ;;  %10692 = vmatmul.mubr.msk.f32.vlgmr.msra.gmra.mxu1 %vm1452_vm4, %v12081_v17 }
 0x17b   : > { %10705 = vmatprep.mubr.msk.f32.mxu1 %vm11509_vm3, %v11506_v4  ;;  %3114 = vrot.lane.b32.xlu1 %v3079_v37, %s11510_s27  ;;  %v2799_v37 = vld [vmem:[#allocation2 + $0x2c] sm:$0xf] }
 0x17c   : > { %3020 = vrot.lane.b32.xlu0 %v2984_v38, %s11508_s20  ;;  %v1429_v40 = vld [vmem:[#allocation3 + $0x48] sm:$0xff] }
 0x17d   : > { %10695 = vmatpush3.msra.mxu0 %v1429_v40  ;;  %v2894_v40 = vld [vmem:[#allocation2 + $0x28] sm:$0xf] }
 0x17e   : > { %v1366_v39 = vpop.permute.xlu1 %1365  ;;  %10696 = vmatprep.subr.mxu0 %v11506_v4 }
 0x17f   : > { %1408 = vst.msk [vmem:[#allocation3 + $0x5c] sm:$0xf] %vm1178_vm2, %v1366_v39  ;;  %2922 = vrot.lane.b32.xlu1 %v2887_v41, %s11510_s27  ;;  %v2992_v41 = vld [vmem:[#allocation2 + $0x34] sm:$0xf] }
 0x180   : > { %2828 = vrot.lane.b32.xlu0 %v2792_v42, %s11508_s20  ;;  %v1428_v44 = vld [vmem:[#allocation3 + $0x40] sm:$0xff] }
 0x181   : > { %10697 = vmatpush3.msra.mxu0 %v1428_v44  ;;  %v2895_v44 = vld [vmem:[#allocation2 + $0x2c] sm:$0xf] }
 0x182   : > { %v1238_v43 = vpop.permute.xlu1 %1237  ;;  %10708 = vmatprep.subr.mxu0 %v11506_v4  ;;  %10699 = vmatmul.mubr.msk.f32.vlgmr.msra.gmra.mxu0 %vm1452_vm4, %v12081_v17 }
 0x183   : > { %1280 = vst.msk [vmem:[#allocation3 + $0x54] sm:$0xf] %vm1178_vm2, %v1238_v43  ;;  %3116 = vrot.lane.b32.xlu1 %v3080_v45, %s11510_s27  ;;  %10712 = vmatprep.mubr.msk.f32.mxu0 %vm11509_vm3, %v11506_v4  ;;  %v2993_v45 = vld [vmem:[#allocation2 + $0x38] sm:$0xf] }
 0x184   : > { %3022 = vrot.lane.b32.xlu0 %v2985_v46, %s11508_s20  ;;  %v1368_v47 = vpop.permute.xlu0 %1367 }
 0x185   : > { %1409 = vst.msk [vmem:[#allocation3 + $0x6c] sm:$0xf] %vm1178_vm2, %v1368_v47 }
 0x186   : > { %v1431_v48 = vld [vmem:[#allocation3 + $0x58] sm:$0xff] }
 0x187   : > { %10702 = vmatpush3.msra.mxu1 %v1431_v48  ;;  %2924 = vrot.lane.b32.xlu1 %v2888_v49, %s11510_s27  ;;  %v3088_v48 = vld [vmem:[#allocation2 + $0x34] sm:$0xf]  ;;  %v2800_v49 = vld [vmem:[#allocation2 + $0x30] sm:$0xf] }
 0x188   : > { %10703 = vmatprep.subr.mxu1 %v11506_v4  ;;  %2830 = vrot.lane.b32.xlu0 %v2793_v50, %s11508_s20  ;;  %v1240_v51 = vpop.permute.xlu0 %1239 }
 0x189   : > { %1281 = vst.msk [vmem:[#allocation3 + $0x64] sm:$0xf] %vm1178_vm2, %v1240_v51 }
 0x18a   : > { %v1430_v52 = vld [vmem:[#allocation3 + $0x50] sm:$0xff] }
 0x18b   : > { %10704 = vmatpush3.msra.mxu1 %v1430_v52  ;;  %3118 = vrot.lane.b32.xlu1 %v3081_v53, %s11510_s27  ;;  %v3089_v52 = vld [vmem:[#allocation2 + $0x38] sm:$0xf]  ;;  %v2801_v53 = vld [vmem:[#allocation2 + $0x34] sm:$0xf] }
 0x18c   : > { %10715 = vmatprep.subr.mxu1 %v11506_v4  ;;  %3024 = vrot.lane.b32.xlu0 %v2986_v54, %s11508_s20  ;;  %v1433_v56 = vld [vmem:[#allocation3 + $0x68] sm:$0xff] }
 0x18d   : > { %10706 = vmatmul.mubr.msk.f32.vlgmr.msra.gmra.mxu1 %vm1452_vm4, %v12081_v17  ;;  %10709 = vmatpush3.msra.mxu0 %v1433_v56  ;;  %v2896_v56 = vld [vmem:[#allocation2 + $0x30] sm:$0xf] }
 0x18e   : > { %v1370_v55 = vpop.permute.xlu1 %1369  ;;  %10719 = vmatprep.mubr.msk.f32.mxu1 %vm11509_vm3, %v11506_v4  ;;  %10710 = vmatprep.subr.mxu0 %v11506_v4 }
 0x18f   : > { %1410 = vst.msk [vmem:[#allocation3 + $0x7c] sm:$0xf] %vm1178_vm2, %v1370_v55  ;;  %2926 = vrot.lane.b32.xlu1 %v2889_v57, %s11510_s27  ;;  %v2994_v57 = vld [vmem:[#allocation2 + $0x3c] sm:$0xf] }
 0x190   : > { %2832 = vrot.lane.b32.xlu0 %v2794_v58, %s11508_s20  ;;  %v1432_v60 = vld [vmem:[#allocation3 + $0x60] sm:$0xff] }
 0x191   : > { %10711 = vmatpush3.msra.mxu0 %v1432_v60 }
 0x192   : > { %v1242_v59 = vpop.permute.xlu1 %1241  ;;  %10713 = vmatmul.mubr.msk.f32.vlgmr.msra.gmra.mxu0 %vm1452_vm4, %v12081_v17  ;;  %10722 = vmatprep.subr.mxu0 %v11506_v4 }
 0x193   : > { %1282 = vst.msk [vmem:[#allocation3 + $0x74] sm:$0xf] %vm1178_vm2, %v1242_v59  ;;  %3120 = vrot.lane.b32.xlu1 %v3082_v61, %s11510_s27  ;;  %10726 = vmatprep.mubr.msk.f32.mxu0 %vm11509_vm3, %v11506_v4  ;;  %v2897_v61 = vld [vmem:[#allocation2 + $0x34] sm:$0xf] }
 0x194   : > { %3026 = vrot.lane.b32.xlu0 %v2987_v62, %s11508_s20  ;;  %v1372_v63 = vpop.permute.xlu0 %1371  ;;  %v2995_v62 = vld [vmem:[#allocation2 + $0x40] sm:$0xf] }
 0x195   : > { %1411 = vst.msk [vmem:[#allocation3 + $0x8c] sm:$0xf] %vm1178_vm2, %v1372_v63 }
 0x196   : > { %v1435_v0 = vld [vmem:[#allocation3 + $0x78] sm:$0xff] }
 0x197   : > { %10716 = vmatpush3.msra.mxu1 %v1435_v0  ;;  %2928 = vrot.lane.b32.xlu1 %v2890_v1, %s11510_s27 }
 0x198   : > { %10717 = vmatprep.subr.mxu1 %v11506_v4  ;;  %2834 = vrot.lane.b32.xlu0 %v2795_v2, %s11508_s20  ;;  %v1244_v3 = vpop.permute.xlu0 %1243  ;;  %v2577_v2 = vld [vmem:[#allocation10 + $0x8] sm:$0xff] }
 0x199   : > { %1283 = vst.msk [vmem:[#allocation3 + $0x84] sm:$0xf] %vm1178_vm2, %v1244_v3  ;;  %v3090_v3 = vld [vmem:[#allocation2 + $0x3c] sm:$0xf] }
 0x19a   : > { %v1434_v5 = vld [vmem:[#allocation3 + $0x70] sm:$0xff] }
 0x19b   : > { %10718 = vmatpush3.msra.mxu1 %v1434_v5  ;;  %3122 = vrot.lane.b32.xlu1 %v3083_v7, %s11510_s27  ;;  %v2802_v5 = vld [vmem:[#allocation2 + $0x38] sm:$0xf]  ;;  %v2576_v7 = vld [vmem:[#allocation10] sm:$0xff] }
 0x19c   : > { %10720 = vmatmul.mubr.msk.f32.vlgmr.msra.gmra.mxu1 %vm1452_vm4, %v12081_v17  ;;  %3028 = vrot.lane.b32.xlu0 %v2988_v8, %s11508_s20  ;;  %v1437_v11 = vld [vmem:[#allocation3 + $0x88] sm:$0xff] }
 0x19d   : > { %10729 = vmatprep.subr.mxu1 %v11506_v4  ;;  %10733 = vmatprep.mubr.msk.f32.mxu1 %vm11509_vm3, %v11506_v4 }
 0x19e   : > { %v1374_v9 = vpop.permute.xlu1 %1373  ;;  %10723 = vmatpush3.msra.mxu0 %v1437_v11 }
 0x19f   : > { %1412 = vst.msk [vmem:[#allocation3 + $0x9c] sm:$0xf] %vm1178_vm2, %v1374_v9  ;;  %2930 = vrot.lane.b32.xlu1 %v2891_v12, %s11510_s27  ;;  %10724 = vmatprep.subr.mxu0 %v11506_v4  ;;  %v3091_v12 = vld [vmem:[#allocation2 + $0x40] sm:$0xf] }
 0x1a0   : > { %3030 = vrot.lane.b32.xlu0 %v2989_v10, %s11508_s20  ;;  %v1436_v14 = vld [vmem:[#allocation3 + $0x80] sm:$0xff]  ;;  %v2803_v10 = vld [vmem:[#allocation2 + $0x3c] sm:$0xf] }
 0x1a1   : > { %10725 = vmatpush3.msra.mxu0 %v1436_v14 }
 0x1a2   : > { %v1246_v13 = vpop.permute.xlu1 %1245  ;;  %10727 = vmatmul.mubr.msk.f32.vlgmr.msra.gmra.mxu0 %vm1452_vm4, %v12081_v17  ;;  %10736 = vmatprep.subr.mxu0 %v11506_v4 }
 0x1a3   : > { %1284 = vst.msk [vmem:[#allocation3 + $0x94] sm:$0xf] %vm1178_vm2, %v1246_v13  ;;  %3124 = vrot.lane.b32.xlu1 %v3084_v15, %s11510_s27  ;;  %10740 = vmatprep.mubr.msk.f32.mxu0 %vm11509_vm3, %v11506_v4 }
 0x1a4   : > { %2836 = vrot.lane.b32.xlu0 %v2796_v16, %s11508_s20  ;;  %v1376_v18 = vpop.permute.xlu0 %1375  ;;  %v2898_v16 = vld [vmem:[#allocation2 + $0x38] sm:$0xf] }
 0x1a5   : > { %1413 = vst.msk [vmem:[#allocation3 + $0xac] sm:$0xf] %vm1178_vm2, %v1376_v18  ;;  %v5822_v18 = vld [vmem:[#allocation2 + $0x8] sm:$0xf] }
 0x1a6   : > { %v1439_v19 = vld [vmem:[#allocation3 + $0x98] sm:$0xff] }
 0x1a7   : > { %10730 = vmatpush3.msra.mxu1 %v1439_v19  ;;  %3126 = vrot.lane.b32.xlu1 %v3085_v20, %s11510_s27 }
 0x1a8   : > { %10731 = vmatprep.subr.mxu1 %v11506_v4  ;;  %2838 = vrot.lane.b32.xlu0 %v2797_v21, %s11508_s20  ;;  %v1248_v22 = vpop.permute.xlu0 %1247  ;;  %v5790_v21 = vld [vmem:[#allocation2 + $0x8] sm:$0xf] }
 0x1a9   : > { %1285 = vst.msk [vmem:[#allocation3 + $0xa4] sm:$0xf] %vm1178_vm2, %v1248_v22 }
 0x1aa   : > { %v1438_v23 = vld [vmem:[#allocation3 + $0x90] sm:$0xff] }
 0x1ab   : > { %10732 = vmatpush3.msra.mxu1 %v1438_v23  ;;  %2932 = vrot.lane.b32.xlu1 %v2892_v24, %s11510_s27  ;;  %v2899_v23 = vld [vmem:[#allocation2 + $0x3c] sm:$0xf] }
 0x1ac   : > { %10734 = vmatmul.mubr.msk.f32.vlgmr.msra.gmra.mxu1 %vm1452_vm4, %v12081_v17  ;;  %3032 = vrot.lane.b32.xlu0 %v2990_v25, %s11508_s20  ;;  %v1441_v27 = vld [vmem:[#allocation3 + $0xa8] sm:$0xff] }
 0x1ad   : > { %10743 = vmatprep.subr.mxu1 %v11506_v4  ;;  %10747 = vmatprep.mubr.msk.f32.mxu1 %vm11509_vm3, %v11506_v4 }
 0x1ae   : > { %v1378_v26 = vpop.permute.xlu1 %1377  ;;  %10737 = vmatpush3.msra.mxu0 %v1441_v27 }
 0x1af   : > { %1414 = vst.msk [vmem:[#allocation3 + $0xbc] sm:$0xf] %vm1178_vm2, %v1378_v26  ;;  %2934 = vrot.lane.b32.xlu1 %v2893_v28, %s11510_s27  ;;  %10738 = vmatprep.subr.mxu0 %v11506_v4  ;;  %v5661_v26 = vld [vmem:[#allocation2 + $0x4] sm:$0xf] }
 0x1b0   : > { %3034 = vrot.lane.b32.xlu0 %v2991_v29, %s11508_s20  ;;  %v1440_v31 = vld [vmem:[#allocation3 + $0xa0] sm:$0xff]  ;;  %v5693_v28 = vld [vmem:[#allocation2 + $0x4] sm:$0xf]  ;;  %v5824_v29 = vld [vmem:[#allocation2 + $0x10] sm:$0xf] }
 0x1b1   : > { %10739 = vmatpush3.msra.mxu0 %v1440_v31 }
 0x1b2   : > { %v1250_v30 = vpop.permute.xlu1 %1249  ;;  %10750 = vmatprep.subr.mxu0 %v11506_v4  ;;  %10741 = vmatmul.mubr.msk.f32.vlgmr.msra.gmra.mxu0 %vm1452_vm4, %v12081_v17 }
 0x1b3   : > { %1286 = vst.msk [vmem:[#allocation3 + $0xb4] sm:$0xf] %vm1178_vm2, %v1250_v30  ;;  %3128 = vrot.lane.b32.xlu1 %v3086_v32, %s11510_s27  ;;  %10754 = vmatprep.mubr.msk.f32.mxu0 %vm11509_vm3, %v11506_v4  ;;  %v5791_v32 = vld [vmem:[#allocation2 + $0xc] sm:$0xf] }
 0x1b4   : > { %2840 = vrot.lane.b32.xlu0 %v2798_v33, %s11508_s20  ;;  %v1380_v34 = vpop.permute.xlu0 %1379 }
 0x1b5   : > { %1415 = vst.msk [vmem:[#allocation3 + $0xcc] sm:$0xf] %vm1178_vm2, %v1380_v34  ;;  %v5694_v34 = vld [vmem:[#allocation2 + $0x8] sm:$0xf] }
 0x1b6   : > { %v1443_v35 = vld [vmem:[#allocation3 + $0xb8] sm:$0xff] }
 0x1b7   : > { %10744 = vmatpush3.msra.mxu1 %v1443_v35  ;;  %3130 = vrot.lane.b32.xlu1 %v3087_v36, %s11510_s27  ;;  %v5825_v35 = vld [vmem:[#allocation2 + $0x14] sm:$0xf] }
 0x1b8   : > { %10745 = vmatprep.subr.mxu1 %v11506_v4  ;;  %2842 = vrot.lane.b32.xlu0 %v2799_v37, %s11508_s20  ;;  %v1252_v38 = vpop.permute.xlu0 %1251 }
 0x1b9   : > { %1287 = vst.msk [vmem:[#allocation3 + $0xc4] sm:$0xf] %vm1178_vm2, %v1252_v38  ;;  %v5662_v38 = vld [vmem:[#allocation2 + $0x8] sm:$0xf] }
 0x1ba   : > { %v1442_v39 = vld [vmem:[#allocation3 + $0xb0] sm:$0xff] }
 0x1bb   : > { %10746 = vmatpush3.msra.mxu1 %v1442_v39  ;;  %2936 = vrot.lane.b32.xlu1 %v2894_v40, %s11510_s27  ;;  %v5695_v40 = vld [vmem:[#allocation2 + $0xc] sm:$0xf] }
 0x1bc   : > { %10757 = vmatprep.subr.mxu1 %v11506_v4  ;;  %3036 = vrot.lane.b32.xlu0 %v2992_v41, %s11508_s20  ;;  %v1445_v43 = vld [vmem:[#allocation3 + $0xc8] sm:$0xff]  ;;  %v5826_v41 = vld [vmem:[#allocation2 + $0x18] sm:$0xf] }
 0x1bd   : > { %10748 = vmatmul.mubr.msk.f32.vlgmr.msra.gmra.mxu1 %vm1452_vm4, %v12081_v17  ;;  %10751 = vmatpush3.msra.mxu0 %v1445_v43 }
 0x1be   : > { %v1382_v42 = vpop.permute.xlu1 %1381  ;;  %10761 = vmatprep.mubr.msk.f32.mxu1 %vm11509_vm3, %v11506_v4  ;;  %10752 = vmatprep.subr.mxu0 %v11506_v4 }
 0x1bf   : > { %1416 = vst.msk [vmem:[#allocation3 + $0xdc] sm:$0xf] %vm1178_vm2, %v1382_v42  ;;  %2938 = vrot.lane.b32.xlu1 %v2895_v44, %s11510_s27  ;;  %v5792_v44 = vld [vmem:[#allocation2 + $0x10] sm:$0xf] }
 0x1c0   : > { %3038 = vrot.lane.b32.xlu0 %v2993_v45, %s11508_s20  ;;  %v1444_v47 = vld [vmem:[#allocation3 + $0xc0] sm:$0xff] }
 0x1c1   : > { %10753 = vmatpush3.msra.mxu0 %v1444_v47  ;;  %v5827_v47 = vld [vmem:[#allocation2 + $0x1c] sm:$0xf] }
 0x1c2   : > { %v1254_v46 = vpop.permute.xlu1 %1253  ;;  %10764 = vmatprep.subr.mxu0 %v11506_v4  ;;  %10755 = vmatmul.mubr.msk.f32.vlgmr.msra.gmra.mxu0 %vm1452_vm4, %v12081_v17 }
 0x1c3   : > { %1288 = vst.msk [vmem:[#allocation3 + $0xd4] sm:$0xf] %vm1178_vm2, %v1254_v46  ;;  %3132 = vrot.lane.b32.xlu1 %v3088_v48, %s11510_s27  ;;  %10768 = vmatprep.mubr.msk.f32.mxu0 %vm11509_vm3, %v11506_v4  ;;  %v5696_v46 = vld [vmem:[#allocation2 + $0x10] sm:$0xf] }
 0x1c4   : > { %2844 = vrot.lane.b32.xlu0 %v2800_v49, %s11508_s20  ;;  %v1384_v50 = vpop.permute.xlu0 %1383 }
 0x1c5   : > { %1417 = vst.msk [vmem:[#allocation3 + $0xec] sm:$0xf] %vm1178_vm2, %v1384_v50  ;;  %v5663_v50 = vld [vmem:[#allocation2 + $0xc] sm:$0xf] }
 0x1c6   : > { %v1447_v51 = vld [vmem:[#allocation3 + $0xd8] sm:$0xff] }
 0x1c7   : > { %10758 = vmatpush3.msra.mxu1 %v1447_v51  ;;  %3134 = vrot.lane.b32.xlu1 %v3089_v52, %s11510_s27  ;;  %v5697_v52 = vld [vmem:[#allocation2 + $0x14] sm:$0xf] }
 0x1c8   : > { %10759 = vmatprep.subr.mxu1 %v11506_v4  ;;  %2846 = vrot.lane.b32.xlu0 %v2801_v53, %s11508_s20  ;;  %v1256_v54 = vpop.permute.xlu0 %1255  ;;  %v5828_v53 = vld [vmem:[#allocation2 + $0x20] sm:$0xf] }
 0x1c9   : > { %1289 = vst.msk [vmem:[#allocation3 + $0xe4] sm:$0xf] %vm1178_vm2, %v1256_v54 }
 0x1ca   : > { %v1446_v55 = vld [vmem:[#allocation3 + $0xd0] sm:$0xff] }
 0x1cb   : > { %10760 = vmatpush3.msra.mxu1 %v1446_v55  ;;  %2940 = vrot.lane.b32.xlu1 %v2896_v56, %s11510_s27  ;;  %v5793_v56 = vld [vmem:[#allocation2 + $0x14] sm:$0xf] }
 0x1cc   : > { %10771 = vmatprep.subr.mxu1 %v11506_v4  ;;  %3040 = vrot.lane.b32.xlu0 %v2994_v57, %s11508_s20  ;;  %v3013_v59 = vpop.permute.xlu0 %3012  ;;  %v1449_v60 = vld [vmem:[#allocation3 + $0xe8] sm:$0xff] }
 0x1cd   : > { %10762 = vmatmul.mubr.msk.f32.vlgmr.msra.gmra.mxu1 %vm1452_vm4, %v12081_v17  ;;  %v1386_v58 = vpop.permute.xlu1 %1385  ;;  %3060 = vst.msk [vmem:[#allocation3 + $0x8] sm:$0xf] %vm1178_vm2, %v3013_v59  ;;  %10765 = vmatpush3.msra.mxu0 %v1449_v60  ;;  %v5829_v59 = vld [vmem:[#allocation2 + $0x24] sm:$0xf] }
 0x1ce   : > { %10775 = vmatprep.mubr.msk.f32.mxu1 %vm11509_vm3, %v11506_v4  ;;  %1418 = vst.msk [vmem:[#allocation3 + $0xfc] sm:$0xf] %vm1178_vm2, %v1386_v58  ;;  %10766 = vmatprep.subr.mxu0 %v11506_v4  ;;  %v5698_v58 = vld [vmem:[#allocation2 + $0x18] sm:$0xf] }
 0x1cf   : > { %2942 = vrot.lane.b32.xlu1 %v2897_v61, %s11510_s27 }
 0x1d0   : > { %3042 = vrot.lane.b32.xlu0 %v2995_v62, %s11508_s20  ;;  %v2821_v0 = vpop.permute.xlu0 %2820  ;;  %v1448_v1 = vld [vmem:[#allocation3 + $0xe0] sm:$0xff]  ;;  %v5664_v62 = vld [vmem:[#allocation2 + $0x10] sm:$0xf] }
 0x1d1   : > { %v1258_v63 = vpop.permute.xlu1 %1257  ;;  %2868 = vst.msk [vmem:[#allocation3] sm:$0xf] %vm1178_vm2, %v2821_v0  ;;  %10767 = vmatpush3.msra.mxu0 %v1448_v1  ;;  %v5699_v0 = vld [vmem:[#allocation2 + $0x1c] sm:$0xf]  ;;  %v5830_v1 = vld [vmem:[#allocation2 + $0x28] sm:$0xf] }
 0x1d2   : > { %1290 = vst.msk [vmem:[#allocation3 + $0xf4] sm:$0xf] %vm1178_vm2, %v1258_v63  ;;  %10769 = vmatmul.mubr.msk.f32.vlgmr.msra.gmra.mxu0 %vm1452_vm4, %v12081_v17  ;;  %10778 = vmatprep.subr.mxu0 %v2577_v2 }
 0x1d3   : > { %3136 = vrot.lane.b32.xlu1 %v3090_v3, %s11510_s27  ;;  %10779 = vmatpush3.msra.mxu0 %v2577_v2 }
 0x1d4   : > { %2848 = vrot.lane.b32.xlu0 %v2802_v5, %s11508_s20  ;;  %v3015_v9 = vpop.permute.xlu0 %3014  ;;  %10780 = vmatprep.subr.mxu0 %v2576_v7  ;;  %v5794_v5 = vld [vmem:[#allocation2 + $0x18] sm:$0xf] }
 0x1d5   : > { %v3109_v8 = vpop.permute.xlu1 %3108  ;;  %v1451_v11 = vld [vmem:[#allocation3 + $0xf8] sm:$0xff]  ;;  %3061 = vst.msk [vmem:[#allocation3 + $0x18] sm:$0xf] %vm1178_vm2, %v3015_v9  ;;  %10781 = vmatpush3.msra.mxu0 %v2576_v7 }
 0x1d6   : > { %3156 = vst.msk [vmem:[#allocation3 + $0xc] sm:$0xf] %vm1178_vm2, %v3109_v8  ;;  %10772 = vmatpush3.msra.mxu1 %v1451_v11  ;;  %10862 = vmatprep.subr.mxu0 %v11506_v4  ;;  %v5700_v8 = vld [vmem:[#allocation2 + $0x20] sm:$0xf]  ;;  %v5701_v9 = vld [vmem:[#allocation2 + $0x24] sm:$0xf] }
 0x1d7   : > { %3138 = vrot.lane.b32.xlu1 %v3091_v12, %s11510_s27  ;;  %10773 = vmatprep.subr.mxu1 %v11506_v4 }
 0x1d8   : > { %2850 = vrot.lane.b32.xlu0 %v2803_v10, %s11508_s20  ;;  %v2823_v15 = vpop.permute.xlu0 %2822  ;;  %v5665_v10 = vld [vmem:[#allocation2 + $0x14] sm:$0xf] }
 0x1d9   : > { %v2917_v13 = vpop.permute.xlu1 %2916  ;;  %v1450_v14 = vld [vmem:[#allocation3 + $0xf0] sm:$0xff]  ;;  %2869 = vst.msk [vmem:[#allocation3 + $0x10] sm:$0xf] %vm1178_vm2, %v2823_v15  ;;  %v5832_v15 = vld [vmem:[#allocation2 + $0x30] sm:$0xf] }
 0x1da   : > { %2964 = vst.msk [vmem:[#allocation3 + $0x4] sm:$0xf] %vm1178_vm2, %v2917_v13  ;;  %10774 = vmatpush3.msra.mxu1 %v1450_v14  ;;  %v5831_v14 = vld [vmem:[#allocation2 + $0x2c] sm:$0xf] }
 0x1db   : > { %10776 = vmatmul.mubr.msk.f32.vlgmr.msra.gmra.mxu1 %vm1452_vm4, %v12081_v17  ;;  %2944 = vrot.lane.b32.xlu1 %v2898_v16, %s11510_s27  ;;  %v5823_v17 = vld [vmem:[#allocation2 + $0xc] sm:$0xf] }
 0x1dc   : > { %5854 = vrot.lane.b32.xlu0 %v5822_v18, %s11508_s20  ;;  %11226 = vmatprep.subr.mxu1 %v2577_v2 }
 0x1dd   : > { %v3111_v19 = vpop.permute.xlu1 %3110  ;;  %11228 = vmatpush3.msra.mxu1 %v2577_v2  ;;  %v12267_v20 = vld [vmem:[#allocation3 + $0x8] sm:$0xff]  ;;  %v3017_v22 = vpop.permute.xlu0 %3016 }
 0x1de   : > { %3157 = vst.msk [vmem:[#allocation3 + $0x1c] sm:$0xf] %vm1178_vm2, %v3111_v19  ;;  %11227 = vmatprep.subr.mxu1 %v2576_v7  ;;  %5806 = vst.msk [vmem:[#allocation3 + $0x8] sm:$0xf] %vm1178_vm2, %v5790_v21  ;;  %v5795_v19 = vld [vmem:[#allocation2 + $0x1c] sm:$0xf] }
 0x1df   : > { %3062 = vst.msk [vmem:[#allocation3 + $0x28] sm:$0xf] %vm1178_vm2, %v3017_v22  ;;  %2946 = vrot.lane.b32.xlu1 %v2899_v23, %s11510_s27  ;;  %11229 = vmatpush3.msra.mxu1 %v2576_v7  ;;  %v5702_v22 = vld [vmem:[#allocation2 + $0x28] sm:$0xf]  ;;  %v5703_v23 = vld [vmem:[#allocation2 + $0x2c] sm:$0xf] }
 0x1e0   : > { %5856 = vrot.lane.b32.xlu0 %v5823_v17, %s11508_s20  ;;  %10806 = vmatprep.subr.mxu1 %v11506_v4 }
 0x1e1   : > { %v2919_v24 = vpop.permute.xlu1 %2918  ;;  %v12275_v25 = vld [vmem:[#allocation3] sm:$0xff]  ;;  %v2825_v27 = vpop.permute.xlu0 %2824 }
 0x1e2   : > { %2965 = vst.msk [vmem:[#allocation3 + $0x14] sm:$0xf] %vm1178_vm2, %v2919_v24  ;;  %5677 = vst.msk [vmem:[#allocation3] sm:$0xf] %vm1178_vm2, %v5661_v26  ;;  %v5666_v26 = vld [vmem:[#allocation2 + $0x18] sm:$0xf] }
 0x1e3   : > { %2870 = vst.msk [vmem:[#allocation3 + $0x20] sm:$0xf] %vm1178_vm2, %v2825_v27  ;;  %5725 = vrot.lane.b32.xlu1 %v5693_v28, %s11508_s20  ;;  %v5833_v28 = vld [vmem:[#allocation2 + $0x34] sm:$0xf] }
 0x1e4   : > { %5858 = vrot.lane.b32.xlu0 %v5824_v29, %s11508_s20  ;;  %v5834_v29 = vld [vmem:[#allocation2 + $0x38] sm:$0xf] }
 0x1e5   : > { %v3113_v30 = vpop.permute.xlu1 %3112  ;;  %v12282_v31 = vld [vmem:[#allocation3 + $0x18] sm:$0xff]  ;;  %v3019_v33 = vpop.permute.xlu0 %3018 }
 0x1e6   : > { %3158 = vst.msk [vmem:[#allocation3 + $0x2c] sm:$0xf] %vm1178_vm2, %v3113_v30  ;;  %5807 = vst.msk [vmem:[#allocation3 + $0x18] sm:$0xf] %vm1178_vm2, %v5791_v32 }
 0x1e7   : > { %3063 = vst.msk [vmem:[#allocation3 + $0x38] sm:$0xf] %vm1178_vm2, %v3019_v33  ;;  %5727 = vrot.lane.b32.xlu1 %v5694_v34, %s11508_s20  ;;  %v5796_v33 = vld [vmem:[#allocation2 + $0x20] sm:$0xf] }
 0x1e8   : > { %5860 = vrot.lane.b32.xlu0 %v5825_v35, %s11508_s20  ;;  %v5704_v35 = vld [vmem:[#allocation2 + $0x30] sm:$0xf] }
 0x1e9   : > { %v2921_v36 = vpop.permute.xlu1 %2920  ;;  %v12289_v37 = vld [vmem:[#allocation3 + $0x10] sm:$0xff] }
 0x1ea   : > { %2966 = vst.msk [vmem:[#allocation3 + $0x24] sm:$0xf] %vm1178_vm2, %v2921_v36  ;;  %v2827_v39 = vpop.permute.xlu0 %2826  ;;  %5678 = vst.msk [vmem:[#allocation3 + $0x10] sm:$0xf] %vm1178_vm2, %v5662_v38  ;;  %v5705_v36 = vld [vmem:[#allocation2 + $0x34] sm:$0xf] }
 0x1eb   : > { %2871 = vst.msk [vmem:[#allocation3 + $0x30] sm:$0xf] %vm1178_vm2, %v2827_v39  ;;  %5729 = vrot.lane.b32.xlu1 %v5695_v40, %s11508_s20  ;;  %v5667_v40 = vld [vmem:[#allocation2 + $0x1c] sm:$0xf] }
 0x1ec   : > { %5862 = vrot.lane.b32.xlu0 %v5826_v41, %s11508_s20 }
 0x1ed   : > { %v3115_v42 = vpop.permute.xlu1 %3114  ;;  %v12296_v43 = vld [vmem:[#allocation3 + $0x28] sm:$0xff] }
 0x1ee   : > { %3159 = vst.msk [vmem:[#allocation3 + $0x3c] sm:$0xf] %vm1178_vm2, %v3115_v42  ;;  %v3021_v45 = vpop.permute.xlu0 %3020  ;;  %5808 = vst.msk [vmem:[#allocation3 + $0x28] sm:$0xf] %vm1178_vm2, %v5792_v44  ;;  %v5835_v42 = vld [vmem:[#allocation2 + $0x3c] sm:$0xf] }
 0x1ef   : > { %3064 = vst.msk [vmem:[#allocation3 + $0x48] sm:$0xf] %vm1178_vm2, %v3021_v45  ;;  %5731 = vrot.lane.b32.xlu1 %v5696_v46, %s11508_s20  ;;  %v5836_v44 = vld [vmem:[#allocation2 + $0x40] sm:$0xf] }
 0x1f0   : > { %5864 = vrot.lane.b32.xlu0 %v5827_v47, %s11508_s20  ;;  %v5797_v47 = vld [vmem:[#allocation2 + $0x24] sm:$0xf] }
 0x1f1   : > { %v2923_v48 = vpop.permute.xlu1 %2922  ;;  %v12303_v49 = vld [vmem:[#allocation3 + $0x20] sm:$0xff] }
 0x1f2   : > { %2967 = vst.msk [vmem:[#allocation3 + $0x34] sm:$0xf] %vm1178_vm2, %v2923_v48  ;;  %v2829_v51 = vpop.permute.xlu0 %2828  ;;  %5679 = vst.msk [vmem:[#allocation3 + $0x20] sm:$0xf] %vm1178_vm2, %v5663_v50  ;;  %v5706_v50 = vld [vmem:[#allocation2 + $0x38] sm:$0xf] }
 0x1f3   : > { %2872 = vst.msk [vmem:[#allocation3 + $0x40] sm:$0xf] %vm1178_vm2, %v2829_v51  ;;  %5733 = vrot.lane.b32.xlu1 %v5697_v52, %s11508_s20  ;;  %v5707_v51 = vld [vmem:[#allocation2 + $0x3c] sm:$0xf]  ;;  %v5837_v52 = vld [vmem:[#allocation2 + $0x44] sm:$0xf] }
 0x1f4   : > { %5866 = vrot.lane.b32.xlu0 %v5828_v53, %s11508_s20 }
 0x1f5   : > { %v3117_v54 = vpop.permute.xlu1 %3116  ;;  %v12310_v55 = vld [vmem:[#allocation3 + $0x38] sm:$0xff] }
 0x1f6   : > { %3160 = vst.msk [vmem:[#allocation3 + $0x4c] sm:$0xf] %vm1178_vm2, %v3117_v54  ;;  %v3023_v57 = vpop.permute.xlu0 %3022  ;;  %5809 = vst.msk [vmem:[#allocation3 + $0x38] sm:$0xf] %vm1178_vm2, %v5793_v56  ;;  %v5668_v56 = vld [vmem:[#allocation2 + $0x20] sm:$0xf] }
 0x1f7   : > { %3065 = vst.msk [vmem:[#allocation3 + $0x58] sm:$0xf] %vm1178_vm2, %v3023_v57  ;;  %5735 = vrot.lane.b32.xlu1 %v5698_v58, %s11508_s20  ;;  %v7478_v58 = vld [vmem:[#allocation2 + $0x8] sm:$0xf] }
 0x1f8   : > { %5868 = vrot.lane.b32.xlu0 %v5829_v59, %s11508_s20 }
 0x1f9   : > { %v2925_v60 = vpop.permute.xlu1 %2924  ;;  %v12317_v61 = vld [vmem:[#allocation3 + $0x30] sm:$0xff] }
 0x1fa   : > { %2968 = vst.msk [vmem:[#allocation3 + $0x44] sm:$0xf] %vm1178_vm2, %v2925_v60  ;;  %v2831_v63 = vpop.permute.xlu0 %2830  ;;  %5680 = vst.msk [vmem:[#allocation3 + $0x30] sm:$0xf] %vm1178_vm2, %v5664_v62  ;;  %v5798_v62 = vld [vmem:[#allocation2 + $0x28] sm:$0xf] }
 0x1fb   : > { %2873 = vst.msk [vmem:[#allocation3 + $0x50] sm:$0xf] %vm1178_vm2, %v2831_v63  ;;  %5737 = vrot.lane.b32.xlu1 %v5699_v0, %s11508_s20  ;;  %v5708_v0 = vld [vmem:[#allocation2 + $0x40] sm:$0xf] }
 0x1fc   : > { %5870 = vrot.lane.b32.xlu0 %v5830_v1, %s11508_s20  ;;  %v7286_v1 = vld [vmem:[#allocation2 + $0x4] sm:$0xf] }
 0x1fd   : > { %v3119_v2 = vpop.permute.xlu1 %3118  ;;  %v12324_v3 = vld [vmem:[#allocation3 + $0x48] sm:$0xff] }
 0x1fe   : > { %3161 = vst.msk [vmem:[#allocation3 + $0x5c] sm:$0xf] %vm1178_vm2, %v3119_v2  ;;  %v3025_v7 = vpop.permute.xlu0 %3024  ;;  %5810 = vst.msk [vmem:[#allocation3 + $0x48] sm:$0xf] %vm1178_vm2, %v5794_v5 }
 0x1ff   : > { %3066 = vst.msk [vmem:[#allocation3 + $0x68] sm:$0xf] %vm1178_vm2, %v3025_v7  ;;  %5739 = vrot.lane.b32.xlu1 %v5700_v8, %s11508_s20  ;;  %v5799_v7 = vld [vmem:[#allocation2 + $0x2c] sm:$0xf] }
 0x200   : > { %5741 = vrot.lane.b32.xlu0 %v5701_v9, %s11508_s20  ;;  %v7574_v9 = vld [vmem:[#allocation2 + $0x8] sm:$0xf] }
 0x201   : > { %v2927_v11 = vpop.permute.xlu1 %2926  ;;  %v12331_v12 = vld [vmem:[#allocation3 + $0x40] sm:$0xff] }
 0x202   : > { %2969 = vst.msk [vmem:[#allocation3 + $0x54] sm:$0xf] %vm1178_vm2, %v2927_v11  ;;  %v2833_v13 = vpop.permute.xlu0 %2832  ;;  %5681 = vst.msk [vmem:[#allocation3 + $0x40] sm:$0xf] %vm1178_vm2, %v5665_v10  ;;  %v7479_v11 = vld [vmem:[#allocation2 + $0xc] sm:$0xf] }
 0x203   : > { %2874 = vst.msk [vmem:[#allocation3 + $0x60] sm:$0xf] %vm1178_vm2, %v2833_v13  ;;  %5872 = vrot.lane.b32.xlu1 %v5831_v14, %s11508_s20  ;;  %v5669_v14 = vld [vmem:[#allocation2 + $0x24] sm:$0xf] }
 0x204   : > { %5874 = vrot.lane.b32.xlu0 %v5832_v15, %s11508_s20 }
 0x205   : > { %v3121_v16 = vpop.permute.xlu1 %3120  ;;  %v12338_v18 = vld [vmem:[#allocation3 + $0x58] sm:$0xff] }
 0x206   : > { %3162 = vst.msk [vmem:[#allocation3 + $0x6c] sm:$0xf] %vm1178_vm2, %v3121_v16  ;;  %v3027_v21 = vpop.permute.xlu0 %3026  ;;  %5811 = vst.msk [vmem:[#allocation3 + $0x58] sm:$0xf] %vm1178_vm2, %v5795_v19  ;;  %v7382_v16 = vld [vmem:[#allocation2 + $0x4] sm:$0xf] }
 0x207   : > { %3067 = vst.msk [vmem:[#allocation3 + $0x78] sm:$0xf] %vm1178_vm2, %v3027_v21  ;;  %5743 = vrot.lane.b32.xlu1 %v5702_v22, %s11508_s20  ;;  %v7287_v19 = vld [vmem:[#allocation2 + $0x8] sm:$0xf] }
 0x208   : > { %5745 = vrot.lane.b32.xlu0 %v5703_v23, %s11508_s20 }
 0x209   : > { %v2929_v17 = vpop.permute.xlu1 %2928  ;;  %v12345_v24 = vld [vmem:[#allocation3 + $0x50] sm:$0xff] }
 0x20a   : > { %2970 = vst.msk [vmem:[#allocation3 + $0x64] sm:$0xf] %vm1178_vm2, %v2929_v17  ;;  %v2835_v27 = vpop.permute.xlu0 %2834  ;;  %5682 = vst.msk [vmem:[#allocation3 + $0x50] sm:$0xf] %vm1178_vm2, %v5666_v26  ;;  %v5670_v17 = vld [vmem:[#allocation2 + $0x28] sm:$0xf] }
 0x20b   : > { %2875 = vst.msk [vmem:[#allocation3 + $0x70] sm:$0xf] %vm1178_vm2, %v2835_v27  ;;  %5876 = vrot.lane.b32.xlu1 %v5833_v28, %s11508_s20  ;;  %v7575_v28 = vld [vmem:[#allocation2 + $0xc] sm:$0xf] }
 0x20c   : > { %5878 = vrot.lane.b32.xlu0 %v5834_v29, %s11508_s20  ;;  %v7480_v29 = vld [vmem:[#allocation2 + $0x10] sm:$0xf] }
 0x20d   : > { %v3123_v30 = vpop.permute.xlu1 %3122  ;;  %v12352_v32 = vld [vmem:[#allocation3 + $0x68] sm:$0xff] }
 0x20e   : > { %3163 = vst.msk [vmem:[#allocation3 + $0x7c] sm:$0xf] %vm1178_vm2, %v3123_v30  ;;  %v3029_v34 = vpop.permute.xlu0 %3028  ;;  %5812 = vst.msk [vmem:[#allocation3 + $0x68] sm:$0xf] %vm1178_vm2, %v5796_v33 }
 0x20f   : > { %3068 = vst.msk [vmem:[#allocation3 + $0x88] sm:$0xf] %vm1178_vm2, %v3029_v34  ;;  %5747 = vrot.lane.b32.xlu1 %v5704_v35, %s11508_s20 }
 0x210   : > { %5749 = vrot.lane.b32.xlu0 %v5705_v36, %s11508_s20  ;;  %v5800_v36 = vld [vmem:[#allocation2 + $0x30] sm:$0xf] }
 0x211   : > { %v2931_v38 = vpop.permute.xlu1 %2930  ;;  %v12359_v39 = vld [vmem:[#allocation3 + $0x60] sm:$0xff] }
 0x212   : > { %2971 = vst.msk [vmem:[#allocation3 + $0x74] sm:$0xf] %vm1178_vm2, %v2931_v38  ;;  %v3031_v41 = vpop.permute.xlu0 %3030  ;;  %5683 = vst.msk [vmem:[#allocation3 + $0x60] sm:$0xf] %vm1178_vm2, %v5667_v40  ;;  %v7383_v40 = vld [vmem:[#allocation2 + $0x8] sm:$0xf] }
 0x213   : > { %3069 = vst.msk [vmem:[#allocation3 + $0x98] sm:$0xf] %vm1178_vm2, %v3031_v41  ;;  %5880 = vrot.lane.b32.xlu1 %v5835_v42, %s11508_s20  ;;  %v7288_v41 = vld [vmem:[#allocation2 + $0xc] sm:$0xf] }
 0x214   : > { %5882 = vrot.lane.b32.xlu0 %v5836_v44, %s11508_s20 }
 0x215   : > { %v3125_v45 = vpop.permute.xlu1 %3124  ;;  %v12366_v46 = vld [vmem:[#allocation3 + $0x78] sm:$0xff] }
 0x216   : > { %3164 = vst.msk [vmem:[#allocation3 + $0x8c] sm:$0xf] %vm1178_vm2, %v3125_v45  ;;  %v2837_v48 = vpop.permute.xlu0 %2836  ;;  %5813 = vst.msk [vmem:[#allocation3 + $0x78] sm:$0xf] %vm1178_vm2, %v5797_v47  ;;  %v5801_v45 = vld [vmem:[#allocation2 + $0x34] sm:$0xf] }
 0x217   : > { %2876 = vst.msk [vmem:[#allocation3 + $0x80] sm:$0xf] %vm1178_vm2, %v2837_v48  ;;  %5751 = vrot.lane.b32.xlu1 %v5706_v50, %s11508_s20  ;;  %v7576_v48 = vld [vmem:[#allocation2 + $0x10] sm:$0xf]  ;;  %v7481_v50 = vld [vmem:[#allocation2 + $0x14] sm:$0xf] }
 0x218   : > { %5753 = vrot.lane.b32.xlu0 %v5707_v51, %s11508_s20 }
 0x219   : > { %v3127_v53 = vpop.permute.xlu1 %3126  ;;  %v12373_v54 = vld [vmem:[#allocation3 + $0x70] sm:$0xff] }
 0x21a   : > { %3165 = vst.msk [vmem:[#allocation3 + $0x9c] sm:$0xf] %vm1178_vm2, %v3127_v53  ;;  %v2839_v57 = vpop.permute.xlu0 %2838  ;;  %5684 = vst.msk [vmem:[#allocation3 + $0x70] sm:$0xf] %vm1178_vm2, %v5668_v56  ;;  %v5671_v56 = vld [vmem:[#allocation2 + $0x2c] sm:$0xf] }
 0x21b   : > { %2877 = vst.msk [vmem:[#allocation3 + $0x90] sm:$0xf] %vm1178_vm2, %v2839_v57  ;;  %5884 = vrot.lane.b32.xlu1 %v5837_v52, %s11508_s20 }
 0x21c   : > { %7510 = vrot.lane.b32.xlu0 %v7478_v58, %s11508_s20  ;;  %v7384_v58 = vld [vmem:[#allocation2 + $0xc] sm:$0xf] }
 0x21d   : > { %v2933_v59 = vpop.permute.xlu1 %2932  ;;  %v3191_v60 = vld [vmem:[#allocation3 + $0x88] sm:$0xff] }
 0x21e   : > { %2972 = vst.msk [vmem:[#allocation3 + $0x84] sm:$0xf] %vm1178_vm2, %v2933_v59  ;;  %v3033_v63 = vpop.permute.xlu0 %3032  ;;  %5814 = vst.msk [vmem:[#allocation3 + $0x88] sm:$0xf] %vm1178_vm2, %v5798_v62  ;;  %v7289_v59 = vld [vmem:[#allocation2 + $0x10] sm:$0xf] }
 0x21f   : > { %3070 = vst.msk [vmem:[#allocation3 + $0xa8] sm:$0xf] %vm1178_vm2, %v3033_v63  ;;  %5755 = vrot.lane.b32.xlu1 %v5708_v0, %s11508_s20 }
 0x220   : > { %7318 = vrot.lane.b32.xlu0 %v7286_v1, %s11508_s20  ;;  %v5672_v1 = vld [vmem:[#allocation2 + $0x30] sm:$0xf] }
 0x221   : > { %v2935_v2 = vpop.permute.xlu1 %2934  ;;  %v12385_v5 = vld [vmem:[#allocation3 + $0x98] sm:$0xff] }
 0x222   : > { %2973 = vst.msk [vmem:[#allocation3 + $0x94] sm:$0xf] %vm1178_vm2, %v2935_v2  ;;  %v3035_v8 = vpop.permute.xlu0 %3034  ;;  %5815 = vst.msk [vmem:[#allocation3 + $0x98] sm:$0xf] %vm1178_vm2, %v5799_v7  ;;  %v7577_v7 = vld [vmem:[#allocation2 + $0x14] sm:$0xf] }
 0x223   : > { %3071 = vst.msk [vmem:[#allocation3 + $0xb8] sm:$0xf] %vm1178_vm2, %v3035_v8  ;;  %7606 = vrot.lane.b32.xlu1 %v7574_v9, %s11510_s27  ;;  %v1522_v21 = vpop.f32.mrf.mxu0  ;;  %v7482_v8 = vld [vmem:[#allocation2 + $0x18] sm:$0xf] }
 0x224   : > { %7512 = vrot.lane.b32.xlu0 %v7479_v11, %s11508_s20  ;;  %10782 = vmatprep.mubr.msk.f32.mxu0 %vm1452_vm4, %v1522_v21 }
 0x225   : > { %v3129_v10 = vpop.permute.xlu1 %3128  ;;  %v3190_v13 = vld [vmem:[#allocation3 + $0x80] sm:$0xff]  ;;  %v10672_v30 = vpop.f32.mrf.mxu0 }
 0x226   : > { %3166 = vst.msk [vmem:[#allocation3 + $0xac] sm:$0xf] %vm1178_vm2, %v3129_v10  ;;  %v2841_v15 = vpop.permute.xlu0 %2840  ;;  %5685 = vst.msk [vmem:[#allocation3 + $0x80] sm:$0xf] %vm1178_vm2, %v5669_v14 }
 0x227   : > { %2878 = vst.msk [vmem:[#allocation3 + $0xa0] sm:$0xf] %vm1178_vm2, %v2841_v15  ;;  %7414 = vrot.lane.b32.xlu1 %v7382_v16, %s11510_s27  ;;  %v7385_v15 = vld [vmem:[#allocation2 + $0x10] sm:$0xf]  ;;  %v7290_v16 = vld [vmem:[#allocation2 + $0x14] sm:$0xf] }
 0x228   : > { %7320 = vrot.lane.b32.xlu0 %v7287_v19, %s11508_s20 }
 0x229   : > { %v3131_v22 = vpop.permute.xlu1 %3130  ;;  %v12398_v23 = vld [vmem:[#allocation3 + $0x90] sm:$0xff] }
 0x22a   : > { %v1592_v26 = vpop.f32.mrf.mxu1  ;;  %3167 = vst.msk [vmem:[#allocation3 + $0xbc] sm:$0xf] %vm1178_vm2, %v3131_v22  ;;  %v2843_v27 = vpop.permute.xlu0 %2842  ;;  %5686 = vst.msk [vmem:[#allocation3 + $0x90] sm:$0xf] %vm1178_vm2, %v5670_v17  ;;  %v5803_v22 = vld [vmem:[#allocation2 + $0x3c] sm:$0xf] }
 0x22b   : > { %2879 = vst.msk [vmem:[#allocation3 + $0xb0] sm:$0xf] %vm1178_vm2, %v2843_v27  ;;  %10783 = vmatmul.mubr.msk.f32.vlgmr.msra.gmra.mxu0 %vm1452_vm4, %v1592_v26  ;;  %7608 = vrot.lane.b32.xlu1 %v7575_v28, %s11510_s27  ;;  %v7578_v26 = vld [vmem:[#allocation2 + $0x18] sm:$0xf]  ;;  %v7483_v27 = vld [vmem:[#allocation2 + $0x1c] sm:$0xf] }
 0x22c   : > { %10863 = vmatpush3.msra.mxu0 %v3191_v60  ;;  %7514 = vrot.lane.b32.xlu0 %v7480_v29, %s11508_s20  ;;  %v10679_v33 = vpop.f32.mrf.mxu1 }
 0x22d   : > { %10864 = vmatprep.subr.mxu0 %v11506_v4  ;;  %v2937_v34 = vpop.permute.xlu1 %2936  ;;  %v12407_v35 = vld [vmem:[#allocation3 + $0xa8] sm:$0xff] }
 0x22e   : > { %10865 = vmatpush3.msra.mxu0 %v3190_v13  ;;  %2974 = vst.msk [vmem:[#allocation3 + $0xa4] sm:$0xf] %vm1178_vm2, %v2937_v34  ;;  %v3037_v38 = vpop.permute.xlu0 %3036  ;;  %5816 = vst.msk [vmem:[#allocation3 + $0xa8] sm:$0xf] %vm1178_vm2, %v5800_v36  ;;  %v5802_v13 = vld [vmem:[#allocation2 + $0x38] sm:$0xf] }
 0x22f   : > { %3072 = vst.msk [vmem:[#allocation3 + $0xc8] sm:$0xf] %vm1178_vm2, %v3037_v38  ;;  %7416 = vrot.lane.b32.xlu1 %v7383_v40, %s11510_s27  ;;  %10876 = vmatprep.subr.mxu0 %v11506_v4  ;;  %v5673_v33 = vld [vmem:[#allocation2 + $0x34] sm:$0xf]  ;;  %v7291_v40 = vld [vmem:[#allocation2 + $0x18] sm:$0xf] }
 0x230   : > { %7322 = vrot.lane.b32.xlu0 %v7288_v41, %s11508_s20  ;;  %v7386_v36 = vld [vmem:[#allocation2 + $0x14] sm:$0xf] }
 0x231   : > { %v2939_v42 = vpop.permute.xlu1 %2938  ;;  %v12415_v44 = vld [vmem:[#allocation3 + $0xb8] sm:$0xff] }
 0x232   : > { %2975 = vst.msk [vmem:[#allocation3 + $0xb4] sm:$0xf] %vm1178_vm2, %v2939_v42  ;;  %v3039_v47 = vpop.permute.xlu0 %3038  ;;  %5817 = vst.msk [vmem:[#allocation3 + $0xb8] sm:$0xf] %vm1178_vm2, %v5801_v45  ;;  %v5674_v45 = vld [vmem:[#allocation2 + $0x38] sm:$0xf] }
 0x233   : > { %3073 = vst.msk [vmem:[#allocation3 + $0xd8] sm:$0xf] %vm1178_vm2, %v3039_v47  ;;  %7610 = vrot.lane.b32.xlu1 %v7576_v48, %s11510_s27  ;;  %v7579_v48 = vld [vmem:[#allocation2 + $0x1c] sm:$0xf] }
 0x234   : > { %7516 = vrot.lane.b32.xlu0 %v7481_v50, %s11508_s20  ;;  %v1662_v52 = vpop.f32.mrf.mxu0  ;;  %v7484_v50 = vld [vmem:[#allocation2 + $0x20] sm:$0xf] }
 0x235   : > { %v3133_v51 = vpop.permute.xlu1 %3132  ;;  %v12422_v53 = vld [vmem:[#allocation3 + $0xa0] sm:$0xff]  ;;  %10785 = vmatprep.mubr.msk.f32.mxu0 %vm1452_vm4, %v1662_v52 }
 0x236   : > { %3168 = vst.msk [vmem:[#allocation3 + $0xcc] sm:$0xf] %vm1178_vm2, %v3133_v51  ;;  %v2845_v57 = vpop.permute.xlu0 %2844  ;;  %5687 = vst.msk [vmem:[#allocation3 + $0xa0] sm:$0xf] %vm1178_vm2, %v5671_v56  ;;  %v10686_v60 = vpop.f32.mrf.mxu0 }
 0x237   : > { %2880 = vst.msk [vmem:[#allocation3 + $0xc0] sm:$0xf] %vm1178_vm2, %v2845_v57  ;;  %7418 = vrot.lane.b32.xlu1 %v7384_v58, %s11510_s27  ;;  %v5804_v57 = vld [vmem:[#allocation2 + $0x40] sm:$0xf] }
 0x238   : > { %7324 = vrot.lane.b32.xlu0 %v7289_v59, %s11508_s20  ;;  %v7387_v59 = vld [vmem:[#allocation2 + $0x18] sm:$0xf] }
 0x239   : > { %v3135_v62 = vpop.permute.xlu1 %3134  ;;  %v12430_v0 = vld [vmem:[#allocation3 + $0xb0] sm:$0xff] }
 0x23a   : > { %v1732_v63 = vpop.f32.mrf.mxu1  ;;  %3169 = vst.msk [vmem:[#allocation3 + $0xdc] sm:$0xf] %vm1178_vm2, %v3135_v62  ;;  %v2847_v2 = vpop.permute.xlu0 %2846  ;;  %5688 = vst.msk [vmem:[#allocation3 + $0xb0] sm:$0xf] %vm1178_vm2, %v5672_v1  ;;  %v7292_v62 = vld [vmem:[#allocation2 + $0x1c] sm:$0xf] }
 0x23b   : > { %10786 = vmatmul.mubr.msk.f32.gmra.mxu0 %vm1452_vm4, %v1732_v63  ;;  %2881 = vst.msk [vmem:[#allocation3 + $0xd0] sm:$0xf] %vm1178_vm2, %v2847_v2  ;;  %7612 = vrot.lane.b32.xlu1 %v7577_v7, %s11510_s27  ;;  %v5805_v63 = vld [vmem:[#allocation2 + $0x44] sm:$0xf] }
 0x23c   : > { %v10693_v9 = vpop.f32.mrf.mxu1  ;;  %7518 = vrot.lane.b32.xlu0 %v7482_v8, %s11508_s20  ;;  %v7580_v8 = vld [vmem:[#allocation2 + $0x20] sm:$0xf] }
 0x23d   : > { %v2941_v11 = vpop.permute.xlu1 %2940  ;;  %v12438_v10 = vld [vmem:[#allocation3 + $0xc8] sm:$0xff]  ;;  %v7485_v9 = vld [vmem:[#allocation2 + $0x24] sm:$0xf] }
 0x23e   : > { %2976 = vst.msk [vmem:[#allocation3 + $0xc4] sm:$0xf] %vm1178_vm2, %v2941_v11  ;;  %v3041_v14 = vpop.permute.xlu0 %3040  ;;  %5818 = vst.msk [vmem:[#allocation3 + $0xc8] sm:$0xf] %vm1178_vm2, %v5802_v13 }
 0x23f   : > { %3074 = vst.msk [vmem:[#allocation3 + $0xe8] sm:$0xf] %vm1178_vm2, %v3041_v14  ;;  %7420 = vrot.lane.b32.xlu1 %v7385_v15, %s11510_s27 }
 0x240   : > { %7326 = vrot.lane.b32.xlu0 %v7290_v16, %s11508_s20  ;;  %v5675_v16 = vld [vmem:[#allocation2 + $0x3c] sm:$0xf] }
 0x241   : > { %v2943_v19 = vpop.permute.xlu1 %2942  ;;  %v12445_v21 = vld [vmem:[#allocation3 + $0xd8] sm:$0xff] }
 0x242   : > { %2977 = vst.msk [vmem:[#allocation3 + $0xd4] sm:$0xf] %vm1178_vm2, %v2943_v19  ;;  %v3043_v17 = vpop.permute.xlu0 %3042  ;;  %5819 = vst.msk [vmem:[#allocation3 + $0xd8] sm:$0xf] %vm1178_vm2, %v5803_v22  ;;  %v1802_v28 = vpop.f32.mrf.mxu0  ;;  %v7388_v22 = vld [vmem:[#allocation2 + $0x1c] sm:$0xf] }
 0x243   : > { %3075 = vst.msk [vmem:[#allocation3 + $0xf8] sm:$0xf] %vm1178_vm2, %v3043_v17  ;;  %7614 = vrot.lane.b32.xlu1 %v7578_v26, %s11510_s27  ;;  %10788 = vmatprep.mubr.msk.f32.mxu0 %vm1452_vm4, %v1802_v28  ;;  %v7293_v17 = vld [vmem:[#allocation2 + $0x20] sm:$0xf] }
 0x244   : > { %7520 = vrot.lane.b32.xlu0 %v7483_v27, %s11508_s20  ;;  %v10700_v38 = vpop.f32.mrf.mxu0  ;;  %v5676_v28 = vld [vmem:[#allocation2 + $0x40] sm:$0xf] }
 0x245   : > { %v3137_v29 = vpop.permute.xlu1 %3136  ;;  %v12453_v30 = vld [vmem:[#allocation3 + $0xc0] sm:$0xff] }
 0x246   : > { %3170 = vst.msk [vmem:[#allocation3 + $0xec] sm:$0xf] %vm1178_vm2, %v3137_v29  ;;  %v2849_v34 = vpop.permute.xlu0 %2848  ;;  %5689 = vst.msk [vmem:[#allocation3 + $0xc0] sm:$0xf] %vm1178_vm2, %v5673_v33  ;;  %v7581_v33 = vld [vmem:[#allocation2 + $0x24] sm:$0xf] }
 0x247   : > { %2882 = vst.msk [vmem:[#allocation3 + $0xe0] sm:$0xf] %vm1178_vm2, %v2849_v34  ;;  %7422 = vrot.lane.b32.xlu1 %v7386_v36, %s11510_s27  ;;  %v7486_v36 = vld [vmem:[#allocation2 + $0x28] sm:$0xf] }
 0x248   : > { %7328 = vrot.lane.b32.xlu0 %v7291_v40, %s11508_s20  ;;  %v12500_v40 = vld [vmem:[#allocation8 + $0x8] sm:$0xff] }
 0x249   : > { %v3139_v41 = vpop.permute.xlu1 %3138  ;;  %v12460_v42 = vld [vmem:[#allocation3 + $0xd0] sm:$0xff] }
 0x24a   : > { %3171 = vst.msk [vmem:[#allocation3 + $0xfc] sm:$0xf] %vm1178_vm2, %v3139_v41  ;;  %v2851_v47 = vpop.permute.xlu0 %2850  ;;  %5690 = vst.msk [vmem:[#allocation3 + $0xd0] sm:$0xf] %vm1178_vm2, %v5674_v45 }
 0x24b   : > { %2883 = vst.msk [vmem:[#allocation3 + $0xf0] sm:$0xf] %vm1178_vm2, %v2851_v47  ;;  %7616 = vrot.lane.b32.xlu1 %v7579_v48, %s11510_s27  ;;  %v7389_v47 = vld [vmem:[#allocation2 + $0x20] sm:$0xf]  ;;  %v7487_v48 = vld [vmem:[#allocation2 + $0x2c] sm:$0xf] }
 0x24c   : > { %7522 = vrot.lane.b32.xlu0 %v7484_v50, %s11508_s20 }
 0x24d   : > { %v1872_v51 = vpop.f32.mrf.mxu1  ;;  %v2945_v52 = vpop.permute.xlu1 %2944  ;;  %v12468_v56 = vld [vmem:[#allocation3 + $0xe8] sm:$0xff] }
 0x24e   : > { %10789 = vmatmul.mubr.msk.f32.gmra.mxu0 %vm1452_vm4, %v1872_v51  ;;  %2978 = vst.msk [vmem:[#allocation3 + $0xe4] sm:$0xf] %vm1178_vm2, %v2945_v52  ;;  %v5855_v58 = vpop.permute.xlu0 %5854  ;;  %5820 = vst.msk [vmem:[#allocation3 + $0xe8] sm:$0xf] %vm1178_vm2, %v5804_v57  ;;  %v7582_v52 = vld [vmem:[#allocation2 + $0x28] sm:$0xf] }
 0x24f   : > { %v10707_v60 = vpop.f32.mrf.mxu1  ;;  %7424 = vrot.lane.b32.xlu1 %v7387_v59, %s11510_s27  ;;  %5902 = vst.msk [vmem:[#allocation3 + $0xc] sm:$0xf] %vm1178_vm2, %v5855_v58  ;;  %v7294_v57 = vld [vmem:[#allocation2 + $0x24] sm:$0xf] }
 0x250   : > { %7330 = vrot.lane.b32.xlu0 %v7292_v62, %s11508_s20  ;;  %v7583_v60 = vld [vmem:[#allocation2 + $0x2c] sm:$0xf]  ;;  %v7295_v62 = vld [vmem:[#allocation2 + $0x28] sm:$0xf] }
 0x251   : > { %v2947_v1 = vpop.permute.xlu1 %2946  ;;  %v12475_v2 = vld [vmem:[#allocation3 + $0xf8] sm:$0xff] }
 0x252   : > { %2979 = vst.msk [vmem:[#allocation3 + $0xf4] sm:$0xf] %vm1178_vm2, %v2947_v1  ;;  %v5857_v7 = vpop.permute.xlu0 %5856  ;;  %5821 = vst.msk [vmem:[#allocation3 + $0xf8] sm:$0xf] %vm1178_vm2, %v5805_v63  ;;  %v1942_v11 = vpop.f32.mrf.mxu0  ;;  %v7390_v1 = vld [vmem:[#allocation2 + $0x24] sm:$0xf] }
 0x253   : > { %7618 = vrot.lane.b32.xlu1 %v7580_v8, %s11510_s27  ;;  %5903 = vst.msk [vmem:[#allocation3 + $0x1c] sm:$0xf] %vm1178_vm2, %v5857_v7  ;;  %10791 = vmatprep.mubr.msk.f32.mxu0 %vm1452_vm4, %v1942_v11  ;;  %v7488_v7 = vld [vmem:[#allocation2 + $0x30] sm:$0xf]  ;;  %v7391_v11 = vld [vmem:[#allocation2 + $0x28] sm:$0xf] }
 0x254   : > { %7524 = vrot.lane.b32.xlu0 %v7485_v9, %s11508_s20  ;;  %v10714_v14 = vpop.f32.mrf.mxu0 }
 0x255   : > { %v5726_v13 = vpop.permute.xlu1 %5725  ;;  %v12483_v15 = vld [vmem:[#allocation3 + $0xe0] sm:$0xff] }
 0x256   : > { %v5859_v19 = vpop.permute.xlu0 %5858  ;;  %5691 = vst.msk [vmem:[#allocation3 + $0xe0] sm:$0xf] %vm1178_vm2, %v5675_v16  ;;  %5773 = vst.msk [vmem:[#allocation3 + $0x4] sm:$0xf] %vm1178_vm2, %v5726_v13  ;;  %v7489_v13 = vld [vmem:[#allocation2 + $0x34] sm:$0xf] }
 0x257   : > { %7426 = vrot.lane.b32.xlu1 %v7388_v22, %s11510_s27  ;;  %5904 = vst.msk [vmem:[#allocation3 + $0x2c] sm:$0xf] %vm1178_vm2, %v5859_v19  ;;  %v7296_v16 = vld [vmem:[#allocation2 + $0x2c] sm:$0xf] }
 0x258   : > { %7332 = vrot.lane.b32.xlu0 %v7293_v17, %s11508_s20  ;;  %v7585_v17 = vld [vmem:[#allocation2 + $0x34] sm:$0xf] }
 0x259   : > { %v5728_v26 = vpop.permute.xlu1 %5727  ;;  %v12490_v27 = vld [vmem:[#allocation3 + $0xf0] sm:$0xff] }
 0x25a   : > { %v5861_v29 = vpop.permute.xlu0 %5860  ;;  %5774 = vst.msk [vmem:[#allocation3 + $0x14] sm:$0xf] %vm1178_vm2, %v5728_v26  ;;  %5692 = vst.msk [vmem:[#allocation3 + $0xf0] sm:$0xf] %vm1178_vm2, %v5676_v28  ;;  %v7297_v28 = vld [vmem:[#allocation2 + $0x30] sm:$0xf] }
 0x25b   : > { %7620 = vrot.lane.b32.xlu1 %v7581_v33, %s11510_s27  ;;  %5905 = vst.msk [vmem:[#allocation3 + $0x3c] sm:$0xf] %vm1178_vm2, %v5861_v29 }
 0x25c   : > { %v2012_v34 = vpop.f32.mrf.mxu1  ;;  %7526 = vrot.lane.b32.xlu0 %v7486_v36, %s11508_s20  ;;  %v7490_v36 = vld [vmem:[#allocation2 + $0x38] sm:$0xf] }
 0x25d   : > { %10792 = vmatmul.mubr.msk.f32.gmra.mxu0 %vm1452_vm4, %v2012_v34  ;;  %v5730_v38 = vpop.permute.xlu1 %5729  ;;  %v7392_v34 = vld [vmem:[#allocation2 + $0x2c] sm:$0xf] }
 0x25e   : > { %10866 = vmatprep.mubr.msk.f32.mxu0 %vm11509_vm3, %v11506_v4  ;;  %v10721_v41 = vpop.f32.mrf.mxu1  ;;  %v5863_v45 = vpop.permute.xlu0 %5862  ;;  %5775 = vst.msk [vmem:[#allocation3 + $0x24] sm:$0xf] %vm1178_vm2, %v5730_v38 }
 0x25f   : > { %7428 = vrot.lane.b32.xlu1 %v7389_v47, %s11510_s27  ;;  %5906 = vst.msk [vmem:[#allocation3 + $0x4c] sm:$0xf] %vm1178_vm2, %v5863_v45  ;;  %v7393_v47 = vld [vmem:[#allocation2 + $0x30] sm:$0xf] }
 0x260   : > { %7528 = vrot.lane.b32.xlu0 %v7487_v48, %s11508_s20 }
 0x261   : > { %10867 = vmatmul.mubr.msk.f32.vlgmr.msra.gmra.mxu0 %vm1452_vm4, %v12500_v40  ;;  %v5732_v50 = vpop.permute.xlu1 %5731 }
 0x262   : > { %10877 = vmatpush3.msra.mxu0 %v12407_v35  ;;  %10880 = vmatprep.mubr.msk.f32.mxu0 %vm11509_vm3, %v11506_v4  ;;  %v5865_v51 = vpop.permute.xlu0 %5864  ;;  %5776 = vst.msk [vmem:[#allocation3 + $0x34] sm:$0xf] %vm1178_vm2, %v5732_v50  ;;  %v2082_v58 = vpop.f32.mrf.mxu0  ;;  %v7491_v50 = vld [vmem:[#allocation2 + $0x3c] sm:$0xf] }
 0x263   : > { %10878 = vmatprep.subr.mxu0 %v11506_v4  ;;  %7622 = vrot.lane.b32.xlu1 %v7582_v52, %s11510_s27  ;;  %5907 = vst.msk [vmem:[#allocation3 + $0x5c] sm:$0xf] %vm1178_vm2, %v5865_v51 }
 0x264   : > { %10879 = vmatpush3.msra.mxu0 %v12422_v53  ;;  %7334 = vrot.lane.b32.xlu0 %v7294_v57, %s11508_s20  ;;  %v10728_v59 = vpop.f32.mrf.mxu0  ;;  %v7586_v57 = vld [vmem:[#allocation2 + $0x38] sm:$0xf] }
 0x265   : > { %10890 = vmatprep.subr.mxu0 %v11506_v4  ;;  %10881 = vmatmul.mubr.msk.f32.vlgmr.msra.gmra.mxu0 %vm1452_vm4, %v12500_v40  ;;  %v5734_v35 = vpop.permute.xlu1 %5733 }
 0x266   : > { %10794 = vmatprep.mubr.msk.f32.mxu1 %vm1452_vm4, %v2082_v58  ;;  %10891 = vmatpush3.msra.mxu0 %v12438_v10  ;;  %v5867_v53 = vpop.permute.xlu0 %5866  ;;  %5777 = vst.msk [vmem:[#allocation3 + $0x44] sm:$0xf] %vm1178_vm2, %v5734_v35  ;;  %v7298_v58 = vld [vmem:[#allocation2 + $0x34] sm:$0xf] }
 0x267   : > { %10894 = vmatprep.mubr.msk.f32.mxu0 %vm11509_vm3, %v11506_v4  ;;  %10892 = vmatprep.subr.mxu0 %v11506_v4  ;;  %5908 = vst.msk [vmem:[#allocation3 + $0x6c] sm:$0xf] %vm1178_vm2, %v5867_v53 }
 0x268   : > { %7624 = vrot.lane.b32.xlu1 %v7583_v60, %s11510_s27  ;;  %10893 = vmatpush3.msra.mxu0 %v12453_v30  ;;  %v7587_v60 = vld [vmem:[#allocation2 + $0x3c] sm:$0xf] }
 0x269   : > { %7336 = vrot.lane.b32.xlu0 %v7295_v62, %s11508_s20  ;;  %10904 = vmatprep.subr.mxu0 %v11506_v4  ;;  %v5736_v10 = vpop.permute.xlu1 %5735 }
 0x26a   : > { %10895 = vmatmul.mubr.msk.f32.vlgmr.msra.gmra.mxu0 %vm1452_vm4, %v12500_v40  ;;  %v5869_v63 = vpop.permute.xlu0 %5868  ;;  %5778 = vst.msk [vmem:[#allocation3 + $0x54] sm:$0xf] %vm1178_vm2, %v5736_v10  ;;  %v7299_v10 = vld [vmem:[#allocation2 + $0x38] sm:$0xf] }
 0x26b   : > { %10905 = vmatpush3.msra.mxu0 %v12468_v56  ;;  %10908 = vmatprep.mubr.msk.f32.mxu0 %vm11509_vm3, %v11506_v4  ;;  %5909 = vst.msk [vmem:[#allocation3 + $0x7c] sm:$0xf] %vm1178_vm2, %v5869_v63 }
 0x26c   : > { %10906 = vmatprep.subr.mxu0 %v11506_v4  ;;  %v2152_v30 = vpop.f32.mrf.mxu1  ;;  %7430 = vrot.lane.b32.xlu1 %v7390_v1, %s11510_s27 }
 0x26d   : > { %10907 = vmatpush3.msra.mxu0 %v12483_v15  ;;  %7530 = vrot.lane.b32.xlu0 %v7488_v7, %s11508_s20  ;;  %v5738_v56 = vpop.permute.xlu1 %5737  ;;  %v7492_v7 = vld [vmem:[#allocation2 + $0x40] sm:$0xf] }
 0x26e   : > { %10795 = vmatmul.mubr.msk.f32.vlgmr.msra.gmra.mxu1 %vm1452_vm4, %v2152_v30  ;;  %v10735_v8 = vpop.f32.mrf.mxu1  ;;  %10909 = vmatmul.mubr.msk.f32.vlgmr.msra.gmra.mxu0 %vm1452_vm4, %v12500_v40  ;;  %v5871_v9 = vpop.permute.xlu0 %5870  ;;  %5779 = vst.msk [vmem:[#allocation3 + $0x64] sm:$0xf] %vm1178_vm2, %v5738_v56  ;;  %v7394_v30 = vld [vmem:[#allocation2 + $0x34] sm:$0xf] }
 0x26f   : > { %10807 = vmatpush3.msra.mxu1 %v12267_v20  ;;  %5910 = vst.msk [vmem:[#allocation3 + $0x8c] sm:$0xf] %vm1178_vm2, %v5871_v9  ;;  %v7584_v20 = vld [vmem:[#allocation2 + $0x30] sm:$0xf]  ;;  %v7493_v9 = vld [vmem:[#allocation2 + $0x44] sm:$0xf] }
 0x270   : > { %10808 = vmatprep.subr.mxu1 %v11506_v4  ;;  %7432 = vrot.lane.b32.xlu1 %v7391_v11, %s11510_s27 }
 0x271   : > { %10809 = vmatpush3.msra.mxu1 %v12275_v25  ;;  %7532 = vrot.lane.b32.xlu0 %v7489_v13, %s11508_s20  ;;  %v5740_v14 = vpop.permute.xlu1 %5739  ;;  %v7395_v13 = vld [vmem:[#allocation2 + $0x38] sm:$0xf] }
 0x272   : > { %10813 = vmatprep.subr.mxu1 %v11506_v4  ;;  %v5742_v15 = vpop.permute.xlu0 %5741  ;;  %5780 = vst.msk [vmem:[#allocation3 + $0x74] sm:$0xf] %vm1178_vm2, %v5740_v14  ;;  %v2222_v19 = vpop.f32.mrf.mxu0 }
 0x273   : > { %5781 = vst.msk [vmem:[#allocation3 + $0x84] sm:$0xf] %vm1178_vm2, %v5742_v15  ;;  %10797 = vmatprep.mubr.msk.f32.mxu1 %vm1452_vm4, %v2222_v19  ;;  %v12586_v15 = vld [vmem:[#allocation3 + $0x8] sm:$0xff]  ;;  %v7588_v19 = vld [vmem:[#allocation2 + $0x40] sm:$0xf] }
 0x274   : > { %7626 = vrot.lane.b32.xlu1 %v7584_v20, %s11510_s27  ;;  %v10742_v26 = vpop.f32.mrf.mxu0 }
 0x275   : > { %7338 = vrot.lane.b32.xlu0 %v7296_v16, %s11508_s20  ;;  %v5873_v22 = vpop.permute.xlu1 %5872  ;;  %v7589_v26 = vld [vmem:[#allocation2 + $0x44] sm:$0xf] }
 0x276   : > { %v5875_v25 = vpop.permute.xlu0 %5874  ;;  %5911 = vst.msk [vmem:[#allocation3 + $0x9c] sm:$0xf] %vm1178_vm2, %v5873_v22  ;;  %v12592_v22 = vld [vmem:[#allocation3] sm:$0xff] }
 0x277   : > { %5912 = vst.msk [vmem:[#allocation3 + $0xac] sm:$0xf] %vm1178_vm2, %v5875_v25  ;;  %v7300_v25 = vld [vmem:[#allocation2 + $0x3c] sm:$0xf] }
 0x278   : > { %7628 = vrot.lane.b32.xlu1 %v7585_v17, %s11510_s27 }
 0x279   : > { %7340 = vrot.lane.b32.xlu0 %v7297_v28, %s11508_s20  ;;  %v5744_v29 = vpop.permute.xlu1 %5743 }
 0x27a   : > { %v5746_v33 = vpop.permute.xlu0 %5745  ;;  %5782 = vst.msk [vmem:[#allocation3 + $0x94] sm:$0xf] %vm1178_vm2, %v5744_v29 }
 0x27b   : > { %5783 = vst.msk [vmem:[#allocation3 + $0xa4] sm:$0xf] %vm1178_vm2, %v5746_v33 }
 0x27c   : > { %7434 = vrot.lane.b32.xlu1 %v7392_v34, %s11510_s27  ;;  %v12599_v34 = vld [vmem:[#allocation3 + $0x18] sm:$0xff] }
 0x27d   : > { %7534 = vrot.lane.b32.xlu0 %v7490_v36, %s11508_s20  ;;  %v2292_v38 = vpop.f32.mrf.mxu1  ;;  %v5877_v41 = vpop.permute.xlu1 %5876  ;;  %v7301_v36 = vld [vmem:[#allocation2 + $0x40] sm:$0xf] }
 0x27e   : > { %10798 = vmatmul.mubr.msk.f32.gmra.mxu1 %vm1452_vm4, %v2292_v38  ;;  %v5879_v45 = vpop.permute.xlu0 %5878  ;;  %5913 = vst.msk [vmem:[#allocation3 + $0xbc] sm:$0xf] %vm1178_vm2, %v5877_v41 }
 0x27f   : > { %v10749_v48 = vpop.f32.mrf.mxu1  ;;  %5914 = vst.msk [vmem:[#allocation3 + $0xcc] sm:$0xf] %vm1178_vm2, %v5879_v45  ;;  %v7396_v45 = vld [vmem:[#allocation2 + $0x3c] sm:$0xf] }
 0x280   : > { %7436 = vrot.lane.b32.xlu1 %v7393_v47, %s11510_s27  ;;  %v12605_v47 = vld [vmem:[#allocation3 + $0x10] sm:$0xff] }
 0x281   : > { %7536 = vrot.lane.b32.xlu0 %v7491_v50, %s11508_s20  ;;  %v5748_v51 = vpop.permute.xlu1 %5747 }
 0x282   : > { %v5750_v52 = vpop.permute.xlu0 %5749  ;;  %5784 = vst.msk [vmem:[#allocation3 + $0xb4] sm:$0xf] %vm1178_vm2, %v5748_v51  ;;  %v2362_v35 = vpop.f32.mrf.mxu0 }
 0x283   : > { %5785 = vst.msk [vmem:[#allocation3 + $0xc4] sm:$0xf] %vm1178_vm2, %v5750_v52  ;;  %10800 = vmatprep.mubr.msk.f32.mxu1 %vm1452_vm4, %v2362_v35 }
 0x284   : > { %7630 = vrot.lane.b32.xlu1 %v7586_v57, %s11510_s27  ;;  %v10756_v62 = vpop.f32.mrf.mxu0  ;;  %v7397_v57 = vld [vmem:[#allocation2 + $0x40] sm:$0xf] }
 0x285   : > { %7342 = vrot.lane.b32.xlu0 %v7298_v58, %s11508_s20  ;;  %v5881_v59 = vpop.permute.xlu1 %5880  ;;  %v12613_v58 = vld [vmem:[#allocation3 + $0x28] sm:$0xff]  ;;  %v12636_v62 = vld [vmem:[#allocation3 + $0x38] sm:$0xff] }
 0x286   : > { %v5883_v53 = vpop.permute.xlu0 %5882  ;;  %5915 = vst.msk [vmem:[#allocation3 + $0xdc] sm:$0xf] %vm1178_vm2, %v5881_v59 }
 0x287   : > { %5916 = vst.msk [vmem:[#allocation3 + $0xec] sm:$0xf] %vm1178_vm2, %v5883_v53  ;;  %v12624_v53 = vld [vmem:[#allocation3 + $0x20] sm:$0xff] }
 0x288   : > { %7632 = vrot.lane.b32.xlu1 %v7587_v60, %s11510_s27 }
 0x289   : > { %7344 = vrot.lane.b32.xlu0 %v7299_v10, %s11508_s20  ;;  %v5752_v63 = vpop.permute.xlu1 %5751  ;;  %v12648_v10 = vld [vmem:[#allocation3 + $0x30] sm:$0xff] }
 0x28a   : > { %v5754_v1 = vpop.permute.xlu0 %5753  ;;  %5786 = vst.msk [vmem:[#allocation3 + $0xd4] sm:$0xf] %vm1178_vm2, %v5752_v63  ;;  %v12660_v63 = vld [vmem:[#allocation3 + $0x48] sm:$0xff] }
 0x28b   : > { %5787 = vst.msk [vmem:[#allocation3 + $0xe4] sm:$0xf] %vm1178_vm2, %v5754_v1  ;;  %v12672_v1 = vld [vmem:[#allocation3 + $0x40] sm:$0xff] }
 0x28c   : > { %7438 = vrot.lane.b32.xlu1 %v7394_v30, %s11510_s27  ;;  %v12684_v30 = vld [vmem:[#allocation3 + $0x58] sm:$0xff] }
 0x28d   : > { %7538 = vrot.lane.b32.xlu0 %v7492_v7, %s11508_s20  ;;  %v2432_v56 = vpop.f32.mrf.mxu1  ;;  %v5885_v8 = vpop.permute.xlu1 %5884  ;;  %v12696_v7 = vld [vmem:[#allocation3 + $0x50] sm:$0xff] }
 0x28e   : > { %10801 = vmatmul.mubr.msk.f32.gmra.mxu1 %vm1452_vm4, %v2432_v56  ;;  %v7511_v11 = vpop.permute.xlu0 %7510  ;;  %5917 = vst.msk [vmem:[#allocation3 + $0xfc] sm:$0xf] %vm1178_vm2, %v5885_v8  ;;  %v12708_v56 = vld [vmem:[#allocation3 + $0x68] sm:$0xff]  ;;  %v12720_v8 = vld [vmem:[#allocation3 + $0x60] sm:$0xff] }
 0x28f   : > { %v10763_v14 = vpop.f32.mrf.mxu1  ;;  %7558 = vst.msk [vmem:[#allocation3 + $0x8] sm:$0xf] %vm1178_vm2, %v7511_v11  ;;  %v12744_v11 = vld [vmem:[#allocation3 + $0x70] sm:$0xff] }
 0x290   : > { %7440 = vrot.lane.b32.xlu1 %v7395_v13, %s11510_s27 }
 0x291   : > { %7540 = vrot.lane.b32.xlu0 %v7493_v9, %s11508_s20  ;;  %v5756_v20 = vpop.permute.xlu1 %5755  ;;  %v12732_v9 = vld [vmem:[#allocation3 + $0x78] sm:$0xff] }
 0x292   : > { %v7319_v16 = vpop.permute.xlu0 %7318  ;;  %5788 = vst.msk [vmem:[#allocation3 + $0xf4] sm:$0xf] %vm1178_vm2, %v5756_v20  ;;  %v2502_v17 = vpop.f32.mrf.mxu0 }
 0x293   : > { %7366 = vst.msk [vmem:[#allocation3] sm:$0xf] %vm1178_vm2, %v7319_v16  ;;  %10803 = vmatprep.mubr.msk.f32.mxu1 %vm1452_vm4, %v2502_v17  ;;  %v12794_v17 = vld [vmem:[#allocation3 + $0x90] sm:$0xff] }
 0x294   : > { %7634 = vrot.lane.b32.xlu1 %v7588_v19, %s11510_s27  ;;  %v10770_v29 = vpop.f32.mrf.mxu0  ;;  %v12782_v19 = vld [vmem:[#allocation3 + $0x80] sm:$0xff] }
 0x295   : > { %7346 = vrot.lane.b32.xlu0 %v7300_v25, %s11508_s20  ;;  %v7607_v28 = vpop.permute.xlu1 %7606  ;;  %v12806_v29 = vld [vmem:[#allocation3 + $0xa8] sm:$0xff] }
 0x296   : > { %v7513_v33 = vpop.permute.xlu0 %7512  ;;  %7654 = vst.msk [vmem:[#allocation3 + $0xc] sm:$0xf] %vm1178_vm2, %v7607_v28 }
 0x297   : > { %7559 = vst.msk [vmem:[#allocation3 + $0x18] sm:$0xf] %vm1178_vm2, %v7513_v33  ;;  %v4331_v33 = vld [vmem:[#allocation10 + $0x18] sm:$0xff] }
 0x298   : > { %7636 = vrot.lane.b32.xlu1 %v7589_v26, %s11510_s27  ;;  %10918 = vmatprep.subr.mxu0 %v4331_v33 }
 0x299   : > { %7348 = vrot.lane.b32.xlu0 %v7301_v36, %s11508_s20  ;;  %v7415_v38 = vpop.permute.xlu1 %7414  ;;  %10919 = vmatpush3.msra.mxu0 %v4331_v33 }
 0x29a   : > { %v7321_v41 = vpop.permute.xlu0 %7320  ;;  %7462 = vst.msk [vmem:[#allocation3 + $0x4] sm:$0xf] %vm1178_vm2, %v7415_v38  ;;  %v5943_v38 = vld [vmem:[#allocation3 + $0xb8] sm:$0xff] }
 0x29b   : > { %v2572_v48 = vpop.f32.mrf.mxu1  ;;  %7367 = vst.msk [vmem:[#allocation3 + $0x10] sm:$0xf] %vm1178_vm2, %v7321_v41  ;;  %v4330_v41 = vld [vmem:[#allocation10 + $0x10] sm:$0xff] }
 0x29c   : > { %7442 = vrot.lane.b32.xlu1 %v7396_v45, %s11510_s27  ;;  %10804 = vmatmul.mubr.msk.f32.gmra.mxu1 %vm1452_vm4, %v2572_v48  ;;  %v12828_v48 = vld [vmem:[#allocation3 + $0xa0] sm:$0xff] }
 0x29d   : > { %v10777_v50 = vpop.f32.mrf.mxu1  ;;  %v7609_v51 = vpop.permute.xlu1 %7608  ;;  %10810 = vmatprep.mubr.msk.f32.mxu1 %vm11509_vm3, %v11506_v4  ;;  %10920 = vmatprep.subr.mxu0 %v4330_v41 }
 0x29e   : > { %v7515_v52 = vpop.permute.xlu0 %7514  ;;  %7655 = vst.msk [vmem:[#allocation3 + $0x1c] sm:$0xf] %vm1178_vm2, %v7609_v51  ;;  %10921 = vmatpush3.msra.mxu0 %v4330_v41 }
 0x29f   : > { %7560 = vst.msk [vmem:[#allocation3 + $0x28] sm:$0xf] %vm1178_vm2, %v7515_v52  ;;  %v5942_v52 = vld [vmem:[#allocation3 + $0xb0] sm:$0xff]  ;;  %11002 = vmatprep.subr.mxu0 %v11506_v4 }
 0x2a0   : > { %7444 = vrot.lane.b32.xlu1 %v7397_v57, %s11510_s27  ;;  %10811 = vmatmul.mubr.msk.f32.vlgmr.msra.gmra.mxu1 %vm1452_vm4, %v12500_v40 }
 0x2a1   : > { %10814 = vmatpush3.msra.mxu1 %v12282_v31  ;;  %v7417_v35 = vpop.permute.xlu1 %7416  ;;  %10817 = vmatprep.mubr.msk.f32.mxu1 %vm11509_vm3, %v11506_v4 }
 0x2a2   : > { %v7323_v59 = vpop.permute.xlu0 %7322  ;;  %10815 = vmatprep.subr.mxu1 %v11506_v4  ;;  %7463 = vst.msk [vmem:[#allocation3 + $0x14] sm:$0xf] %vm1178_vm2, %v7417_v35 }
 0x2a3   : > { %10816 = vmatpush3.msra.mxu1 %v12289_v37  ;;  %7368 = vst.msk [vmem:[#allocation3 + $0x20] sm:$0xf] %vm1178_vm2, %v7323_v59 }
 0x2a4   : > { %10820 = vmatprep.subr.mxu1 %v11506_v4  ;;  %10818 = vmatmul.mubr.msk.f32.vlgmr.msra.gmra.mxu1 %vm1452_vm4, %v12500_v40 }
 0x2a5   : > { %10821 = vmatpush3.msra.mxu1 %v12296_v43  ;;  %v7611_v31 = vpop.permute.xlu1 %7610  ;;  %10824 = vmatprep.mubr.msk.f32.mxu1 %vm11509_vm3, %v11506_v4 }
 0x2a6   : > { %v7517_v60 = vpop.permute.xlu0 %7516  ;;  %10822 = vmatprep.subr.mxu1 %v11506_v4  ;;  %7656 = vst.msk [vmem:[#allocation3 + $0x2c] sm:$0xf] %vm1178_vm2, %v7611_v31 }
 0x2a7   : > { %10823 = vmatpush3.msra.mxu1 %v12303_v49  ;;  %7561 = vst.msk [vmem:[#allocation3 + $0x38] sm:$0xf] %vm1178_vm2, %v7517_v60 }
 0x2a8   : > { %10827 = vmatprep.subr.mxu1 %v11506_v4  ;;  %10825 = vmatmul.mubr.msk.f32.vlgmr.msra.gmra.mxu1 %vm1452_vm4, %v12500_v40 }
 0x2a9   : > { %10828 = vmatpush3.msra.mxu1 %v12310_v55  ;;  %v7419_v37 = vpop.permute.xlu1 %7418  ;;  %10831 = vmatprep.mubr.msk.f32.mxu1 %vm11509_vm3, %v11506_v4 }
 0x2aa   : > { %v7325_v43 = vpop.permute.xlu0 %7324  ;;  %10829 = vmatprep.subr.mxu1 %v11506_v4  ;;  %7464 = vst.msk [vmem:[#allocation3 + $0x24] sm:$0xf] %vm1178_vm2, %v7419_v37 }
 0x2ab   : > { %10830 = vmatpush3.msra.mxu1 %v12317_v61  ;;  %7369 = vst.msk [vmem:[#allocation3 + $0x30] sm:$0xf] %vm1178_vm2, %v7325_v43 }
 0x2ac   : > { %10834 = vmatprep.subr.mxu1 %v11506_v4  ;;  %10832 = vmatmul.mubr.msk.f32.vlgmr.msra.gmra.mxu1 %vm1452_vm4, %v12500_v40 }
 0x2ad   : > { %10835 = vmatpush3.msra.mxu1 %v12324_v3  ;;  %v7613_v49 = vpop.permute.xlu1 %7612  ;;  %10838 = vmatprep.mubr.msk.f32.mxu1 %vm11509_vm3, %v11506_v4 }
 0x2ae   : > { %v7519_v55 = vpop.permute.xlu0 %7518  ;;  %10836 = vmatprep.subr.mxu1 %v11506_v4  ;;  %7657 = vst.msk [vmem:[#allocation3 + $0x3c] sm:$0xf] %vm1178_vm2, %v7613_v49  ;;  %v5951_v49 = vld [vmem:[#allocation3 + $0xf8] sm:$0xff] }
 0x2af   : > { %10837 = vmatpush3.msra.mxu1 %v12331_v12  ;;  %7562 = vst.msk [vmem:[#allocation3 + $0x48] sm:$0xf] %vm1178_vm2, %v7519_v55  ;;  %v12872_v55 = vld [vmem:[#allocation3 + $0xc0] sm:$0xff] }
 0x2b0   : > { %10841 = vmatprep.subr.mxu1 %v11506_v4  ;;  %10839 = vmatmul.mubr.msk.f32.vlgmr.msra.gmra.mxu1 %vm1452_vm4, %v12500_v40 }
 0x2b1   : > { %10842 = vmatpush3.msra.mxu1 %v12338_v18  ;;  %v7421_v61 = vpop.permute.xlu1 %7420  ;;  %10845 = vmatprep.mubr.msk.f32.mxu1 %vm11509_vm3, %v11506_v4 }
 0x2b2   : > { %v7327_v3 = vpop.permute.xlu0 %7326  ;;  %10843 = vmatprep.subr.mxu1 %v11506_v4  ;;  %7465 = vst.msk [vmem:[#allocation3 + $0x34] sm:$0xf] %vm1178_vm2, %v7421_v61 }
 0x2b3   : > { %10844 = vmatpush3.msra.mxu1 %v12345_v24  ;;  %7370 = vst.msk [vmem:[#allocation3 + $0x40] sm:$0xf] %vm1178_vm2, %v7327_v3  ;;  %v5950_v3 = vld [vmem:[#allocation3 + $0xf0] sm:$0xff] }
 0x2b4   : > { %10848 = vmatprep.subr.mxu1 %v11506_v4  ;;  %10846 = vmatmul.mubr.msk.f32.vlgmr.msra.gmra.mxu1 %vm1452_vm4, %v12500_v40 }
 0x2b5   : > { %10849 = vmatpush3.msra.mxu1 %v12352_v32  ;;  %v7615_v12 = vpop.permute.xlu1 %7614  ;;  %10852 = vmatprep.mubr.msk.f32.mxu1 %vm11509_vm3, %v11506_v4 }
 0x2b6   : > { %v7521_v18 = vpop.permute.xlu0 %7520  ;;  %10850 = vmatprep.subr.mxu1 %v11506_v4  ;;  %7658 = vst.msk [vmem:[#allocation3 + $0x4c] sm:$0xf] %vm1178_vm2, %v7615_v12  ;;  %v7673_v12 = vld [vmem:[#allocation3 + $0x8] sm:$0xff] }
 0x2b7   : > { %10851 = vmatpush3.msra.mxu1 %v12359_v39  ;;  %7563 = vst.msk [vmem:[#allocation3 + $0x58] sm:$0xf] %vm1178_vm2, %v7521_v18 }
 0x2b8   : > { %10855 = vmatprep.subr.mxu1 %v11506_v4  ;;  %10853 = vmatmul.mubr.msk.f32.vlgmr.msra.gmra.mxu1 %vm1452_vm4, %v12500_v40 }
 0x2b9   : > { %10856 = vmatpush3.msra.mxu1 %v12366_v46  ;;  %v7423_v24 = vpop.permute.xlu1 %7422  ;;  %10859 = vmatprep.mubr.msk.f32.mxu1 %vm11509_vm3, %v11506_v4 }
 0x2ba   : > { %v7329_v32 = vpop.permute.xlu0 %7328  ;;  %10857 = vmatprep.subr.mxu1 %v11506_v4  ;;  %7466 = vst.msk [vmem:[#allocation3 + $0x44] sm:$0xf] %vm1178_vm2, %v7423_v24  ;;  %v12889_v24 = vld [vmem:[#allocation8 + $0x18] sm:$0xff] }
 0x2bb   : > { %10858 = vmatpush3.msra.mxu1 %v12373_v54  ;;  %7371 = vst.msk [vmem:[#allocation3 + $0x50] sm:$0xf] %vm1178_vm2, %v7329_v32 }
 0x2bc   : > { %10869 = vmatprep.subr.mxu1 %v11506_v4  ;;  %10860 = vmatmul.mubr.msk.f32.vlgmr.msra.gmra.mxu1 %vm1452_vm4, %v12500_v40 }
 0x2bd   : > { %10870 = vmatpush3.msra.mxu1 %v12385_v5  ;;  %v7617_v39 = vpop.permute.xlu1 %7616  ;;  %10873 = vmatprep.mubr.msk.f32.mxu1 %vm11509_vm3, %v11506_v4 }
 0x2be   : > { %v7523_v46 = vpop.permute.xlu0 %7522  ;;  %10871 = vmatprep.subr.mxu1 %v11506_v4  ;;  %7659 = vst.msk [vmem:[#allocation3 + $0x5c] sm:$0xf] %vm1178_vm2, %v7617_v39  ;;  %v12894_v39 = vld [vmem:[#allocation3 + $0xe8] sm:$0xff] }
 0x2bf   : > { %10872 = vmatpush3.msra.mxu1 %v12398_v23  ;;  %7564 = vst.msk [vmem:[#allocation3 + $0x68] sm:$0xf] %vm1178_vm2, %v7523_v46  ;;  %v7675_v46 = vld [vmem:[#allocation3 + $0x18] sm:$0xff] }
 0x2c0   : > { %10883 = vmatprep.subr.mxu1 %v11506_v4  ;;  %10874 = vmatmul.mubr.msk.f32.vlgmr.msra.gmra.mxu1 %vm1452_vm4, %v12500_v40 }
 0x2c1   : > { %10884 = vmatpush3.msra.mxu1 %v12415_v44  ;;  %v7425_v54 = vpop.permute.xlu1 %7424  ;;  %10887 = vmatprep.mubr.msk.f32.mxu1 %vm11509_vm3, %v11506_v4 }
 0x2c2   : > { %v7331_v5 = vpop.permute.xlu0 %7330  ;;  %10885 = vmatprep.subr.mxu1 %v11506_v4  ;;  %7467 = vst.msk [vmem:[#allocation3 + $0x54] sm:$0xf] %vm1178_vm2, %v7425_v54 }
 0x2c3   : > { %10886 = vmatpush3.msra.mxu1 %v12430_v0  ;;  %7372 = vst.msk [vmem:[#allocation3 + $0x60] sm:$0xf] %vm1178_vm2, %v7331_v5  ;;  %v7674_v5 = vld [vmem:[#allocation3 + $0x10] sm:$0xff] }
 0x2c4   : > { %10897 = vmatprep.subr.mxu1 %v11506_v4  ;;  %10888 = vmatmul.mubr.msk.f32.vlgmr.msra.gmra.mxu1 %vm1452_vm4, %v12500_v40 }
 0x2c5   : > { %10898 = vmatpush3.msra.mxu1 %v12445_v21  ;;  %v7619_v23 = vpop.permute.xlu1 %7618  ;;  %10901 = vmatprep.mubr.msk.f32.mxu1 %vm11509_vm3, %v11506_v4 }
 0x2c6   : > { %v7525_v44 = vpop.permute.xlu0 %7524  ;;  %10899 = vmatprep.subr.mxu1 %v11506_v4  ;;  %7660 = vst.msk [vmem:[#allocation3 + $0x6c] sm:$0xf] %vm1178_vm2, %v7619_v23 }
 0x2c7   : > { %10900 = vmatpush3.msra.mxu1 %v12460_v42  ;;  %7565 = vst.msk [vmem:[#allocation3 + $0x78] sm:$0xf] %vm1178_vm2, %v7525_v44 }
 0x2c8   : > { %10911 = vmatprep.subr.mxu1 %v11506_v4  ;;  %10902 = vmatmul.mubr.msk.f32.vlgmr.msra.gmra.mxu1 %vm1452_vm4, %v12500_v40 }
 0x2c9   : > { %10912 = vmatpush3.msra.mxu1 %v12475_v2  ;;  %v7427_v0 = vpop.permute.xlu1 %7426  ;;  %10915 = vmatprep.mubr.msk.f32.mxu1 %vm11509_vm3, %v11506_v4  ;;  %v12754_v2 = vld [vmem:[#allocation8 + $0x10] sm:$0xff] }
 0x2ca   : > { %v7333_v21 = vpop.permute.xlu0 %7332  ;;  %10913 = vmatprep.subr.mxu1 %v11506_v4  ;;  %7468 = vst.msk [vmem:[#allocation3 + $0x64] sm:$0xf] %vm1178_vm2, %v7427_v0  ;;  %v12912_v0 = vld [vmem:[#allocation3 + $0xe0] sm:$0xff] }
 0x2cb   : > { %10914 = vmatpush3.msra.mxu1 %v12490_v27  ;;  %7373 = vst.msk [vmem:[#allocation3 + $0x70] sm:$0xf] %vm1178_vm2, %v7333_v21  ;;  %v12758_v27 = vld [vmem:[#allocation3 + $0x88] sm:$0xff]  ;;  %v7679_v21 = vld [vmem:[#allocation3 + $0x38] sm:$0xff] }
 0x2cc   : > { %10946 = vmatprep.subr.mxu1 %v11506_v4  ;;  %10916 = vmatmul.mubr.msk.f32.vlgmr.msra.gmra.mxu1 %vm1452_vm4, %v12500_v40 }
 0x2cd   : > { %10947 = vmatpush3.msra.mxu1 %v12586_v15  ;;  %v7621_v42 = vpop.permute.xlu1 %7620  ;;  %10950 = vmatprep.mubr.msk.f32.mxu1 %vm11509_vm3, %v11506_v4  ;;  %v12770_v15 = vld [vmem:[#allocation3 + $0x98] sm:$0xff] }
 0x2ce   : > { %v7527_v13 = vpop.permute.xlu0 %7526  ;;  %10948 = vmatprep.subr.mxu1 %v11506_v4  ;;  %7661 = vst.msk [vmem:[#allocation3 + $0x7c] sm:$0xf] %vm1178_vm2, %v7621_v42 }
 0x2cf   : > { %10949 = vmatpush3.msra.mxu1 %v12592_v22  ;;  %7566 = vst.msk [vmem:[#allocation3 + $0x88] sm:$0xf] %vm1178_vm2, %v7527_v13  ;;  %v7678_v13 = vld [vmem:[#allocation3 + $0x30] sm:$0xff] }
 0x2d0   : > { %10953 = vmatprep.subr.mxu1 %v11506_v4  ;;  %10951 = vmatmul.mubr.msk.f32.vlgmr.msra.gmra.mxu1 %vm1452_vm4, %v12754_v2 }
 0x2d1   : > { %10954 = vmatpush3.msra.mxu1 %v12599_v34  ;;  %v7429_v40 = vpop.permute.xlu1 %7428  ;;  %10957 = vmatprep.mubr.msk.f32.mxu1 %vm11509_vm3, %v11506_v4 }
 0x2d2   : > { %v7529_v14 = vpop.permute.xlu0 %7528  ;;  %10955 = vmatprep.subr.mxu1 %v11506_v4  ;;  %7469 = vst.msk [vmem:[#allocation3 + $0x74] sm:$0xf] %vm1178_vm2, %v7429_v40  ;;  %v7681_v40 = vld [vmem:[#allocation3 + $0x48] sm:$0xff] }
 0x2d3   : > { %10956 = vmatpush3.msra.mxu1 %v12605_v47  ;;  %7567 = vst.msk [vmem:[#allocation3 + $0x98] sm:$0xf] %vm1178_vm2, %v7529_v14 }
 0x2d4   : > { %10960 = vmatprep.subr.mxu1 %v11506_v4  ;;  %10958 = vmatmul.mubr.msk.f32.vlgmr.msra.gmra.mxu1 %vm1452_vm4, %v12754_v2 }
 0x2d5   : > { %10961 = vmatpush3.msra.mxu1 %v12613_v58  ;;  %v7623_v20 = vpop.permute.xlu1 %7622  ;;  %10964 = vmatprep.mubr.msk.f32.mxu1 %vm11509_vm3, %v11506_v4  ;;  %v7687_v33 = vld [vmem:[#allocation3 + $0x78] sm:$0xff] }
 0x2d6   : > { %v7335_v16 = vpop.permute.xlu0 %7334  ;;  %10962 = vmatprep.subr.mxu1 %v11506_v4  ;;  %7662 = vst.msk [vmem:[#allocation3 + $0x8c] sm:$0xf] %vm1178_vm2, %v7623_v20  ;;  %v7680_v20 = vld [vmem:[#allocation3 + $0x40] sm:$0xff] }
 0x2d7   : > { %10963 = vmatpush3.msra.mxu1 %v12624_v53  ;;  %7374 = vst.msk [vmem:[#allocation3 + $0x80] sm:$0xf] %vm1178_vm2, %v7335_v16  ;;  %v12853_v53 = vld [vmem:[#allocation3 + $0xc8] sm:$0xff] }
 0x2d8   : > { %10967 = vmatprep.subr.mxu1 %v11506_v4  ;;  %10965 = vmatmul.mubr.msk.f32.vlgmr.msra.gmra.mxu1 %vm1452_vm4, %v12754_v2 }
 0x2d9   : > { %10968 = vmatpush3.msra.mxu1 %v12636_v62  ;;  %10971 = vmatprep.mubr.msk.f32.mxu1 %vm11509_vm3, %v11506_v4  ;;  %v5947_v62 = vld [vmem:[#allocation3 + $0xd8] sm:$0xff] }
 0x2da   : > { %v7625_v22 = vpop.permute.xlu1 %7624  ;;  %10969 = vmatprep.subr.mxu1 %v11506_v4 }
 0x2db   : > { %v7337_v25 = vpop.permute.xlu0 %7336  ;;  %7663 = vst.msk [vmem:[#allocation3 + $0x9c] sm:$0xf] %vm1178_vm2, %v7625_v22  ;;  %10970 = vmatpush3.msra.mxu1 %v12648_v10  ;;  %v5946_v10 = vld [vmem:[#allocation3 + $0xd0] sm:$0xff]  ;;  %v7683_v22 = vld [vmem:[#allocation3 + $0x58] sm:$0xff] }
 0x2dc   : > { %7375 = vst.msk [vmem:[#allocation3 + $0x90] sm:$0xf] %vm1178_vm2, %v7337_v25  ;;  %10974 = vmatprep.subr.mxu1 %v11506_v4  ;;  %10972 = vmatmul.mubr.msk.f32.vlgmr.msra.gmra.mxu1 %vm1452_vm4, %v12754_v2 }
 0x2dd   : > { %10975 = vmatpush3.msra.mxu1 %v12660_v63  ;;  %10978 = vmatprep.mubr.msk.f32.mxu1 %vm11509_vm3, %v11506_v4 }
 0x2de   : > { %v7431_v26 = vpop.permute.xlu1 %7430  ;;  %10976 = vmatprep.subr.mxu1 %v11506_v4 }
 0x2df   : > { %v7531_v28 = vpop.permute.xlu0 %7530  ;;  %7470 = vst.msk [vmem:[#allocation3 + $0x84] sm:$0xf] %vm1178_vm2, %v7431_v26  ;;  %10977 = vmatpush3.msra.mxu1 %v12672_v1  ;;  %v7685_v26 = vld [vmem:[#allocation3 + $0x68] sm:$0xff] }
 0x2e0   : > { %7568 = vst.msk [vmem:[#allocation3 + $0xa8] sm:$0xf] %vm1178_vm2, %v7531_v28  ;;  %10981 = vmatprep.subr.mxu1 %v11506_v4  ;;  %10979 = vmatmul.mubr.msk.f32.vlgmr.msra.gmra.mxu1 %vm1452_vm4, %v12754_v2  ;;  %v7684_v28 = vld [vmem:[#allocation3 + $0x60] sm:$0xff] }
 0x2e1   : > { %10982 = vmatpush3.msra.mxu1 %v12684_v30  ;;  %10985 = vmatprep.mubr.msk.f32.mxu1 %vm11509_vm3, %v11506_v4 }
 0x2e2   : > { %v7433_v34 = vpop.permute.xlu1 %7432  ;;  %10983 = vmatprep.subr.mxu1 %v11506_v4 }
 0x2e3   : > { %v7533_v36 = vpop.permute.xlu0 %7532  ;;  %7471 = vst.msk [vmem:[#allocation3 + $0x94] sm:$0xf] %vm1178_vm2, %v7433_v34  ;;  %10984 = vmatpush3.msra.mxu1 %v12696_v7  ;;  %v7672_v7 = vld [vmem:[#allocation3] sm:$0xff]  ;;  %v7686_v34 = vld [vmem:[#allocation3 + $0x70] sm:$0xff] }
 0x2e4   : > { %7569 = vst.msk [vmem:[#allocation3 + $0xb8] sm:$0xf] %vm1178_vm2, %v7533_v36  ;;  %10988 = vmatprep.subr.mxu1 %v11506_v4  ;;  %10986 = vmatmul.mubr.msk.f32.vlgmr.msra.gmra.mxu1 %vm1452_vm4, %v12754_v2  ;;  %v7691_v36 = vld [vmem:[#allocation3 + $0x98] sm:$0xff] }
 0x2e5   : > { %10989 = vmatpush3.msra.mxu1 %v12708_v56  ;;  %10992 = vmatprep.mubr.msk.f32.mxu1 %vm11509_vm3, %v11506_v4 }
 0x2e6   : > { %v7627_v45 = vpop.permute.xlu1 %7626  ;;  %10990 = vmatprep.subr.mxu1 %v11506_v4 }
 0x2e7   : > { %v7339_v47 = vpop.permute.xlu0 %7338  ;;  %7664 = vst.msk [vmem:[#allocation3 + $0xac] sm:$0xf] %vm1178_vm2, %v7627_v45  ;;  %10991 = vmatpush3.msra.mxu1 %v12720_v8  ;;  %v7677_v8 = vld [vmem:[#allocation3 + $0x28] sm:$0xff] }
 0x2e8   : > { %7376 = vst.msk [vmem:[#allocation3 + $0xa0] sm:$0xf] %vm1178_vm2, %v7339_v47  ;;  %10995 = vmatprep.subr.mxu1 %v11506_v4  ;;  %10993 = vmatmul.mubr.msk.f32.vlgmr.msra.gmra.mxu1 %vm1452_vm4, %v12754_v2 }
 0x2e9   : > { %10996 = vmatpush3.msra.mxu1 %v12732_v9  ;;  %10999 = vmatprep.mubr.msk.f32.mxu1 %vm11509_vm3, %v11506_v4  ;;  %v7676_v9 = vld [vmem:[#allocation3 + $0x20] sm:$0xff] }
 0x2ea   : > { %v7629_v50 = vpop.permute.xlu1 %7628  ;;  %10997 = vmatprep.subr.mxu1 %v11506_v4  ;;  %v7690_v41 = vld [vmem:[#allocation3 + $0x90] sm:$0xff] }
 0x2eb   : > { %v7341_v51 = vpop.permute.xlu0 %7340  ;;  %7665 = vst.msk [vmem:[#allocation3 + $0xbc] sm:$0xf] %vm1178_vm2, %v7629_v50  ;;  %10998 = vmatpush3.msra.mxu1 %v12744_v11  ;;  %v10784_v57 = vpop.f32.mrf.mxu0 }
 0x2ec   : > { %7377 = vst.msk [vmem:[#allocation3 + $0xb0] sm:$0xf] %vm1178_vm2, %v7341_v51  ;;  %11009 = vmatprep.subr.mxu1 %v11506_v4  ;;  %11000 = vmatmul.mubr.msk.f32.vlgmr.msra.gmra.mxu1 %vm1452_vm4, %v12754_v2 }
 0x2ed   : > { %2773 = vst.msk [vmem:[#allocation4 + $0x8] sm:$0xff] %vm2771_vm5, %v10784_v57  ;;  %11010 = vmatpush3.msra.mxu1 %v12770_v15  ;;  %11013 = vmatprep.mubr.msk.f32.mxu1 %vm11509_vm3, %v11506_v4  ;;  %v2692_v35 = vpop.f32.mrf.mxu0 }
 0x2ee   : > { %v7435_v58 = vpop.permute.xlu1 %7434  ;;  %11011 = vmatprep.subr.mxu1 %v11506_v4  ;;  %2772 = vst.msk [vmem:[#allocation4] sm:$0xff] %vm2771_vm5, %v2692_v35 }
 0x2ef   : > { %v7535_v59 = vpop.permute.xlu0 %7534  ;;  %7472 = vst.msk [vmem:[#allocation3 + $0xa4] sm:$0xf] %vm1178_vm2, %v7435_v58  ;;  %11012 = vmatpush3.msra.mxu1 %v12794_v17  ;;  %v7682_v17 = vld [vmem:[#allocation3 + $0x50] sm:$0xff] }
 0x2f0   : > { %7570 = vst.msk [vmem:[#allocation3 + $0xc8] sm:$0xf] %vm1178_vm2, %v7535_v59  ;;  %11023 = vmatprep.subr.mxu1 %v11506_v4  ;;  %11014 = vmatmul.mubr.msk.f32.vlgmr.msra.gmra.mxu1 %vm1452_vm4, %v12754_v2 }
 0x2f1   : > { %11024 = vmatpush3.msra.mxu1 %v5943_v38  ;;  %11027 = vmatprep.mubr.msk.f32.mxu1 %vm11509_vm3, %v11506_v4 }
 0x2f2   : > { %v7437_v31 = vpop.permute.xlu1 %7436  ;;  %11025 = vmatprep.subr.mxu1 %v11506_v4  ;;  %v7695_v47 = vld [vmem:[#allocation3 + $0xb8] sm:$0xff] }
 0x2f3   : > { %v7537_v60 = vpop.permute.xlu0 %7536  ;;  %7473 = vst.msk [vmem:[#allocation3 + $0xb4] sm:$0xf] %vm1178_vm2, %v7437_v31  ;;  %11026 = vmatpush3.msra.mxu1 %v5942_v52 }
 0x2f4   : > { %7571 = vst.msk [vmem:[#allocation3 + $0xd8] sm:$0xf] %vm1178_vm2, %v7537_v60  ;;  %11037 = vmatprep.subr.mxu1 %v11506_v4  ;;  %11028 = vmatmul.mubr.msk.f32.vlgmr.msra.gmra.mxu1 %vm1452_vm4, %v12754_v2 }
 0x2f5   : > { %11038 = vmatpush3.msra.mxu1 %v5947_v62  ;;  %11041 = vmatprep.mubr.msk.f32.mxu1 %vm11509_vm3, %v11506_v4 }
 0x2f6   : > { %v7631_v37 = vpop.permute.xlu1 %7630  ;;  %11039 = vmatprep.subr.mxu1 %v11506_v4 }
 0x2f7   : > { %v7343_v43 = vpop.permute.xlu0 %7342  ;;  %7666 = vst.msk [vmem:[#allocation3 + $0xcc] sm:$0xf] %vm1178_vm2, %v7631_v37  ;;  %11040 = vmatpush3.msra.mxu1 %v5946_v10 }
 0x2f8   : > { %7378 = vst.msk [vmem:[#allocation3 + $0xc0] sm:$0xf] %vm1178_vm2, %v7343_v43  ;;  %11051 = vmatprep.subr.mxu1 %v11506_v4  ;;  %11042 = vmatmul.mubr.msk.f32.vlgmr.msra.gmra.mxu1 %vm1452_vm4, %v12754_v2 }
 0x2f9   : > { %11052 = vmatpush3.msra.mxu1 %v5951_v49  ;;  %11055 = vmatprep.mubr.msk.f32.mxu1 %vm11509_vm3, %v11506_v4 }
 0x2fa   : > { %v7633_v63 = vpop.permute.xlu1 %7632  ;;  %11053 = vmatprep.subr.mxu1 %v11506_v4  ;;  %v7694_v51 = vld [vmem:[#allocation3 + $0xb0] sm:$0xff] }
 0x2fb   : > { %7667 = vst.msk [vmem:[#allocation3 + $0xdc] sm:$0xf] %vm1178_vm2, %v7633_v63  ;;  %v7345_v61 = vpop.permute.xlu0 %7344  ;;  %v10787_v1 = vpop.f32.mrf.mxu0  ;;  %11054 = vmatpush3.msra.mxu1 %v5950_v3 }
 0x2fc   : > { %7379 = vst.msk [vmem:[#allocation3 + $0xd0] sm:$0xf] %vm1178_vm2, %v7345_v61  ;;  %11086 = vmatprep.subr.mxu1 %v11506_v4  ;;  %11056 = vmatmul.mubr.msk.f32.vlgmr.msra.gmra.mxu1 %vm1452_vm4, %v12754_v2 }
 0x2fd   : > { %2775 = vst.msk [vmem:[#allocation4 + $0x18] sm:$0xff] %vm2771_vm5, %v10787_v1  ;;  %v2702_v18 = vpop.f32.mrf.mxu0  ;;  %11087 = vmatpush3.msra.mxu1 %v7673_v12  ;;  %11090 = vmatprep.mubr.msk.f32.mxu1 %vm11509_vm3, %v11506_v4 }
 0x2fe   : > { %v7439_v30 = vpop.permute.xlu1 %7438  ;;  %2774 = vst.msk [vmem:[#allocation4 + $0x10] sm:$0xff] %vm2771_vm5, %v2702_v18  ;;  %11088 = vmatprep.subr.mxu1 %v11506_v4 }
 0x2ff   : > { %v7539_v32 = vpop.permute.xlu0 %7538  ;;  %7474 = vst.msk [vmem:[#allocation3 + $0xc4] sm:$0xf] %vm1178_vm2, %v7439_v30  ;;  %11089 = vmatpush3.msra.mxu1 %v7672_v7 }
 0x300   : > { %7572 = vst.msk [vmem:[#allocation3 + $0xe8] sm:$0xf] %vm1178_vm2, %v7539_v32  ;;  %11093 = vmatprep.subr.mxu1 %v11506_v4  ;;  %11091 = vmatmul.mubr.msk.f32.vlgmr.msra.gmra.mxu1 %vm1452_vm4, %v12889_v24 }
 0x301   : > { %11094 = vmatpush3.msra.mxu1 %v7675_v46  ;;  %11097 = vmatprep.mubr.msk.f32.mxu1 %vm11509_vm3, %v11506_v4 }
 0x302   : > { %v7441_v56 = vpop.permute.xlu1 %7440  ;;  %11095 = vmatprep.subr.mxu1 %v11506_v4  ;;  %v7699_v57 = vld [vmem:[#allocation3 + $0xd8] sm:$0xff] }
 0x303   : > { %7475 = vst.msk [vmem:[#allocation3 + $0xd4] sm:$0xf] %vm1178_vm2, %v7441_v56  ;;  %v7541_v54 = vpop.permute.xlu0 %7540  ;;  %11096 = vmatpush3.msra.mxu1 %v7674_v5 }
 0x304   : > { %7573 = vst.msk [vmem:[#allocation3 + $0xf8] sm:$0xf] %vm1178_vm2, %v7541_v54  ;;  %11100 = vmatprep.subr.mxu1 %v11506_v4  ;;  %11098 = vmatmul.mubr.msk.f32.vlgmr.msra.gmra.mxu1 %vm1452_vm4, %v12889_v24 }
 0x305   : > { %11101 = vmatpush3.msra.mxu1 %v7677_v8  ;;  %11104 = vmatprep.mubr.msk.f32.mxu1 %vm11509_vm3, %v11506_v4 }
 0x306   : > { %v7635_v23 = vpop.permute.xlu1 %7634  ;;  %11102 = vmatprep.subr.mxu1 %v11506_v4 }
 0x307   : > { %v7347_v44 = vpop.permute.xlu0 %7346  ;;  %7668 = vst.msk [vmem:[#allocation3 + $0xec] sm:$0xf] %vm1178_vm2, %v7635_v23  ;;  %11103 = vmatpush3.msra.mxu1 %v7676_v9 }
 0x308   : > { %7380 = vst.msk [vmem:[#allocation3 + $0xe0] sm:$0xf] %vm1178_vm2, %v7347_v44  ;;  %11107 = vmatprep.subr.mxu1 %v11506_v4  ;;  %11105 = vmatmul.mubr.msk.f32.vlgmr.msra.gmra.mxu1 %vm1452_vm4, %v12889_v24 }
 0x309   : > { %11108 = vmatpush3.msra.mxu1 %v7679_v21  ;;  %11111 = vmatprep.mubr.msk.f32.mxu1 %vm11509_vm3, %v11506_v4 }
 0x30a   : > { %v7637_v11 = vpop.permute.xlu1 %7636  ;;  %11109 = vmatprep.subr.mxu1 %v11506_v4  ;;  %v7698_v35 = vld [vmem:[#allocation3 + $0xd0] sm:$0xff] }
 0x30b   : > { %7669 = vst.msk [vmem:[#allocation3 + $0xfc] sm:$0xf] %vm1178_vm2, %v7637_v11  ;;  %v7349_v42 = vpop.permute.xlu0 %7348  ;;  %11110 = vmatpush3.msra.mxu1 %v7678_v13 }
 0x30c   : > { %7381 = vst.msk [vmem:[#allocation3 + $0xf0] sm:$0xf] %vm1178_vm2, %v7349_v42  ;;  %11114 = vmatprep.subr.mxu1 %v11506_v4  ;;  %11112 = vmatmul.mubr.msk.f32.vlgmr.msra.gmra.mxu1 %vm1452_vm4, %v12889_v24 }
 0x30d   : > { %11115 = vmatpush3.msra.mxu1 %v7681_v40  ;;  %11118 = vmatprep.mubr.msk.f32.mxu1 %vm11509_vm3, %v11506_v4 }
 0x30e   : > { %v7443_v14 = vpop.permute.xlu1 %7442  ;;  %v10790_v15 = vpop.f32.mrf.mxu0  ;;  %11116 = vmatprep.subr.mxu1 %v11506_v4 }
 0x30f   : > { %2777 = vst.msk [vmem:[#allocation4 + $0x28] sm:$0xff] %vm2771_vm5, %v10790_v15  ;;  %11117 = vmatpush3.msra.mxu1 %v7680_v20 }
 0x310   : > { %7476 = vst.msk [vmem:[#allocation3 + $0xe4] sm:$0xf] %vm1178_vm2, %v7443_v14  ;;  %v2712_v16 = vpop.f32.mrf.mxu0  ;;  %11121 = vmatprep.subr.mxu1 %v11506_v4  ;;  %11119 = vmatmul.mubr.msk.f32.vlgmr.msra.gmra.mxu1 %vm1452_vm4, %v12889_v24 }
 0x311   : > { %2776 = vst.msk [vmem:[#allocation4 + $0x20] sm:$0xff] %vm2771_vm5, %v2712_v16  ;;  %11122 = vmatpush3.msra.mxu1 %v7683_v22  ;;  %11125 = vmatprep.mubr.msk.f32.mxu1 %vm11509_vm3, %v11506_v4 }
 0x312   : > { %v7445_v25 = vpop.permute.xlu1 %7444  ;;  %11123 = vmatprep.subr.mxu1 %v11506_v4  ;;  %v7703_v59 = vld [vmem:[#allocation3 + $0xf8] sm:$0xff] }
 0x313   : > { %7477 = vst.msk [vmem:[#allocation3 + $0xf4] sm:$0xf] %vm1178_vm2, %v7445_v25  ;;  %11124 = vmatpush3.msra.mxu1 %v7682_v17 }
 0x314   : > { %11128 = vmatprep.subr.mxu1 %v11506_v4  ;;  %11126 = vmatmul.mubr.msk.f32.vlgmr.msra.gmra.mxu1 %vm1452_vm4, %v12889_v24 }
 0x315   : > { %11129 = vmatpush3.msra.mxu1 %v7685_v26  ;;  %11132 = vmatprep.mubr.msk.f32.mxu1 %vm11509_vm3, %v11506_v4 }
 0x316   : > { %11130 = vmatprep.subr.mxu1 %v11506_v4 }
 0x317   : > { %11131 = vmatpush3.msra.mxu1 %v7684_v28 }
 0x318   : > { %11135 = vmatprep.subr.mxu1 %v11506_v4  ;;  %11133 = vmatmul.mubr.msk.f32.vlgmr.msra.gmra.mxu1 %vm1452_vm4, %v12889_v24 }
 0x319   : > { %11136 = vmatpush3.msra.mxu1 %v7687_v33  ;;  %11139 = vmatprep.mubr.msk.f32.mxu1 %vm11509_vm3, %v11506_v4 }
 0x31a   : > { %11137 = vmatprep.subr.mxu1 %v11506_v4  ;;  %v7702_v62 = vld [vmem:[#allocation3 + $0xf0] sm:$0xff] }
 0x31b   : > { %11138 = vmatpush3.msra.mxu1 %v7686_v34 }
 0x31c   : > { %11149 = vmatprep.subr.mxu1 %v11506_v4  ;;  %11140 = vmatmul.mubr.msk.f32.vlgmr.msra.gmra.mxu1 %vm1452_vm4, %v12889_v24 }
 0x31d   : > { %v10793_v38 = vpop.f32.mrf.mxu0  ;;  %11150 = vmatpush3.msra.mxu1 %v7691_v36  ;;  %11153 = vmatprep.mubr.msk.f32.mxu1 %vm11509_vm3, %v11506_v4 }
 0x31e   : > { %2779 = vst.msk [vmem:[#allocation4 + $0x38] sm:$0xff] %vm2771_vm5, %v10793_v38  ;;  %11151 = vmatprep.subr.mxu1 %v11506_v4 }
 0x31f   : > { %v2722_v45 = vpop.f32.mrf.mxu0  ;;  %11152 = vmatpush3.msra.mxu1 %v7690_v41 }
 0x320   : > { %2778 = vst.msk [vmem:[#allocation4 + $0x30] sm:$0xff] %vm2771_vm5, %v2722_v45  ;;  %11163 = vmatprep.subr.mxu1 %v11506_v4  ;;  %11154 = vmatmul.mubr.msk.f32.vlgmr.msra.gmra.mxu1 %vm1452_vm4, %v12889_v24 }
 0x321   : > { %v12962_v50 = vpop.f32.mrf.mxu0  ;;  %11164 = vmatpush3.msra.mxu1 %v7695_v47  ;;  %11167 = vmatprep.mubr.msk.f32.mxu1 %vm11509_vm3, %v11506_v4 }
 0x322   : > { %11165 = vmatprep.subr.mxu1 %v11506_v4 }
 0x323   : > { %v10868_v52 = vpop.f32.mrf.mxu0  ;;  %11166 = vmatpush3.msra.mxu1 %v7694_v51 }
 0x324   : > { %11177 = vmatprep.subr.mxu1 %v11506_v4  ;;  %11168 = vmatmul.mubr.msk.f32.vlgmr.msra.gmra.mxu1 %vm1452_vm4, %v12889_v24 }
 0x325   : > { %11178 = vmatpush3.msra.mxu1 %v7699_v57  ;;  %11181 = vmatprep.mubr.msk.f32.mxu1 %vm11509_vm3, %v11506_v4  ;;  %v12972_v58 = vpop.f32.mrf.mxu0 }
 0x326   : > { %11179 = vmatprep.subr.mxu1 %v11506_v4 }
 0x327   : > { %11180 = vmatpush3.msra.mxu1 %v7698_v35  ;;  %v10882_v31 = vpop.f32.mrf.mxu0 }
 0x328   : > { %11191 = vmatprep.subr.mxu1 %v11506_v4  ;;  %11182 = vmatmul.mubr.msk.f32.vlgmr.msra.gmra.mxu1 %vm1452_vm4, %v12889_v24 }
 0x329   : > { %11192 = vmatpush3.msra.mxu1 %v7703_v59  ;;  %11195 = vmatprep.mubr.msk.f32.mxu1 %vm11509_vm3, %v11506_v4 }
 0x32a   : > { %v4115_v60 = vpop.f32.mrf.mxu0  ;;  %11193 = vmatprep.subr.mxu1 %v11506_v4 }
 0x32b   : > { %11194 = vmatpush3.msra.mxu1 %v7702_v62 }
 0x32c   : > { %v10896_v37 = vpop.f32.mrf.mxu0  ;;  %11196 = vmatmul.mubr.msk.f32.vlgmr.msra.gmra.mxu1 %vm1452_vm4, %v12889_v24 }
 0x32e   : > { %v10796_v43 = vpop.f32.mrf.mxu1  ;;  %v4255_v10 = vpop.f32.mrf.mxu0 }
 0x32f   : > { %2781 = vst.msk [vmem:[#allocation4 + $0x48] sm:$0xff] %vm2771_vm5, %v10796_v43 }
 0x330   : > { %v2732_v49 = vpop.f32.mrf.mxu1  ;;  %v10910_v63 = vpop.f32.mrf.mxu0 }
 0x331   : > { %2780 = vst.msk [vmem:[#allocation4 + $0x40] sm:$0xff] %vm2771_vm5, %v2732_v49 }
 0x33e   : > { %v10799_v61 = vpop.f32.mrf.mxu1 }
 0x33f   : > { %2783 = vst.msk [vmem:[#allocation4 + $0x58] sm:$0xff] %vm2771_vm5, %v10799_v61 }
 0x340   : > { %v2742_v3 = vpop.f32.mrf.mxu1 }
 0x341   : > { %2782 = vst.msk [vmem:[#allocation4 + $0x50] sm:$0xff] %vm2771_vm5, %v2742_v3 }
 0x34e   : > { %v10802_v1 = vpop.f32.mrf.mxu1 }
 0x34f   : > { %2785 = vst.msk [vmem:[#allocation4 + $0x68] sm:$0xff] %vm2771_vm5, %v10802_v1 }
 0x350   : > { %v2752_v12 = vpop.f32.mrf.mxu1 }
 0x351   : > { %2784 = vst.msk [vmem:[#allocation4 + $0x60] sm:$0xff] %vm2771_vm5, %v2752_v12 }
 0x35c   : > { %v10805_v18 = vpop.f32.mrf.mxu1 }
 0x35d   : > { %2787 = vst.msk [vmem:[#allocation4 + $0x78] sm:$0xff] %vm2771_vm5, %v10805_v18 }
 0x35e   : > { %v2762_v30 = vpop.f32.mrf.mxu1 }
 0x35f   : > { %2786 = vst.msk [vmem:[#allocation4 + $0x70] sm:$0xff] %vm2771_vm5, %v2762_v30 }
 0x360   : > { %v3275_v24 = vpop.f32.mrf.mxu1 }
 0x361   : > { %10922 = vmatprep.mubr.msk.f32.mxu0 %vm1452_vm4, %v3275_v24 }
 0x362   : > { %v10812_v32 = vpop.f32.mrf.mxu1 }
 0x364   : > { %v3345_v7 = vpop.f32.mrf.mxu1 }
 0x365   : > { %10923 = vmatmul.mubr.msk.f32.vlgmr.msra.gmra.mxu0 %vm1452_vm4, %v3345_v7 }
 0x366   : > { %11003 = vmatpush3.msra.mxu0 %v12758_v27  ;;  %v10819_v46 = vpop.f32.mrf.mxu1 }
 0x367   : > { %11004 = vmatprep.subr.mxu0 %v11506_v4 }
 0x368   : > { %11005 = vmatpush3.msra.mxu0 %v12782_v19  ;;  %v3415_v56 = vpop.f32.mrf.mxu1 }
 0x369   : > { %10925 = vmatprep.mubr.msk.f32.mxu0 %vm1452_vm4, %v3415_v56  ;;  %11016 = vmatprep.subr.mxu0 %v11506_v4 }
 0x36a   : > { %v10826_v54 = vpop.f32.mrf.mxu1 }
 0x36c   : > { %v3485_v5 = vpop.f32.mrf.mxu1 }
 0x36d   : > { %10926 = vmatmul.mubr.msk.f32.gmra.mxu0 %vm1452_vm4, %v3485_v5 }
 0x36e   : > { %v10833_v8 = vpop.f32.mrf.mxu1 }
 0x36f   : > { %v4526_v8 = vld [vmem:[#allocation4 + $0x8] sm:$0xff] }
 0x370   : > { %v3555_v23 = vpop.f32.mrf.mxu1 }
 0x371   : > { %10928 = vmatprep.mubr.msk.f32.mxu0 %vm1452_vm4, %v3555_v23 }
 0x372   : > { %v10840_v44 = vpop.f32.mrf.mxu1 }
 0x374   : > { %v3625_v27 = vpop.f32.mrf.mxu1 }
 0x375   : > { %10929 = vmatmul.mubr.msk.f32.gmra.mxu0 %vm1452_vm4, %v3625_v27  ;;  %v4525_v27 = vld [vmem:[#allocation4] sm:$0xff] }
 0x376   : > { %v10847_v9 = vpop.f32.mrf.mxu1 }
 0x378   : > { %v3695_v21 = vpop.f32.mrf.mxu1 }
 0x379   : > { %10931 = vmatprep.mubr.msk.f32.mxu0 %vm1452_vm4, %v3695_v21 }
 0x37a   : > { %v10854_v19 = vpop.f32.mrf.mxu1 }
 0x37b   : > { %v4528_v19 = vld [vmem:[#allocation4 + $0x18] sm:$0xff] }
 0x37c   : > { %v3765_v11 = vpop.f32.mrf.mxu1 }
 0x37d   : > { %10932 = vmatmul.mubr.msk.f32.gmra.mxu0 %vm1452_vm4, %v3765_v11 }
 0x37e   : > { %v10861_v42 = vpop.f32.mrf.mxu1  ;;  %10934 = vmatprep.mubr.msk.f32.mxu0 %vm1452_vm4, %v12962_v50 }
 0x380   : > { %v3905_v13 = vpop.f32.mrf.mxu1 }
 0x381   : > { %10935 = vmatmul.mubr.msk.f32.gmra.mxu0 %vm1452_vm4, %v3905_v13  ;;  %v4527_v13 = vld [vmem:[#allocation4 + $0x10] sm:$0xff] }
 0x382   : > { %v10875_v40 = vpop.f32.mrf.mxu1  ;;  %10937 = vmatprep.mubr.msk.f32.mxu0 %vm1452_vm4, %v12972_v58 }
 0x384   : > { %v4045_v14 = vpop.f32.mrf.mxu1 }
 0x385   : > { %10938 = vmatmul.mubr.msk.f32.gmra.mxu0 %vm1452_vm4, %v4045_v14 }
 0x386   : > { %v10889_v15 = vpop.f32.mrf.mxu1  ;;  %10940 = vmatprep.mubr.msk.f32.mxu0 %vm1452_vm4, %v4115_v60 }
 0x388   : > { %v4185_v20 = vpop.f32.mrf.mxu1 }
 0x389   : > { %10941 = vmatmul.mubr.msk.f32.gmra.mxu0 %vm1452_vm4, %v4185_v20 }
 0x38a   : > { %v10903_v16 = vpop.f32.mrf.mxu1  ;;  %10943 = vmatprep.mubr.msk.f32.mxu0 %vm1452_vm4, %v4255_v10 }
 0x38c   : > { %v4325_v22 = vpop.f32.mrf.mxu1 }
 0x38d   : > { %10944 = vmatmul.mubr.msk.f32.gmra.mxu0 %vm1452_vm4, %v4325_v22 }
 0x38e   : > { %v10917_v25 = vpop.f32.mrf.mxu1  ;;  %11006 = vmatprep.mubr.msk.f32.mxu0 %vm11509_vm3, %v11506_v4 }
 0x390   : > { %v6021_v17 = vpop.f32.mrf.mxu1 }
 0x391   : > { %11007 = vmatmul.mubr.msk.f32.vlgmr.msra.gmra.mxu0 %vm1452_vm4, %v12754_v2 }
 0x392   : > { %11017 = vmatpush3.msra.mxu0 %v12806_v29  ;;  %11020 = vmatprep.mubr.msk.f32.mxu0 %vm11509_vm3, %v11506_v4  ;;  %v10952_v26 = vpop.f32.mrf.mxu1 }
 0x393   : > { %11018 = vmatprep.subr.mxu0 %v11506_v4 }
 0x394   : > { %11019 = vmatpush3.msra.mxu0 %v12828_v48  ;;  %v6091_v28 = vpop.f32.mrf.mxu1  ;;  %v7076_v48 = vld [vmem:[#allocation10 + $0x8] sm:$0xff] }
 0x395   : > { %11030 = vmatprep.subr.mxu0 %v11506_v4  ;;  %11021 = vmatmul.mubr.msk.f32.vlgmr.msra.gmra.mxu0 %vm1452_vm4, %v12754_v2 }
 0x396   : > { %11031 = vmatpush3.msra.mxu0 %v12853_v53  ;;  %11034 = vmatprep.mubr.msk.f32.mxu0 %vm11509_vm3, %v11506_v4  ;;  %v10959_v29 = vpop.f32.mrf.mxu1  ;;  %v7075_v53 = vld [vmem:[#allocation10] sm:$0xff] }
 0x397   : > { %11032 = vmatprep.subr.mxu0 %v11506_v4 }
 0x398   : > { %11033 = vmatpush3.msra.mxu0 %v12872_v55  ;;  %v7689_v55 = vld [vmem:[#allocation3 + $0x88] sm:$0xff] }
 0x399   : > { %11044 = vmatprep.subr.mxu0 %v11506_v4  ;;  %11035 = vmatmul.mubr.msk.f32.vlgmr.msra.gmra.mxu0 %vm1452_vm4, %v12754_v2 }
 0x39a   : > { %11045 = vmatpush3.msra.mxu0 %v12894_v39  ;;  %11048 = vmatprep.mubr.msk.f32.mxu0 %vm11509_vm3, %v11506_v4  ;;  %v7688_v39 = vld [vmem:[#allocation3 + $0x80] sm:$0xff] }
 0x39b   : > { %11046 = vmatprep.subr.mxu0 %v11506_v4 }
 0x39c   : > { %11047 = vmatpush3.msra.mxu0 %v12912_v0  ;;  %v6161_v0 = vpop.f32.mrf.mxu1 }
 0x39d   : > { %11058 = vmatprep.subr.mxu0 %v7076_v48  ;;  %11049 = vmatmul.mubr.msk.f32.vlgmr.msra.gmra.mxu0 %vm1452_vm4, %v12754_v2 }
 0x39e   : > { %11059 = vmatpush3.msra.mxu0 %v7076_v48  ;;  %11062 = vmatprep.mubr.msk.f32.mxu0 %vm1452_vm4, %v6021_v17  ;;  %v10966_v2 = vpop.f32.mrf.mxu1 }
 0x39f   : > { %11060 = vmatprep.subr.mxu0 %v7075_v53 }
 0x3a0   : > { %11061 = vmatpush3.msra.mxu0 %v7075_v53  ;;  %v6231_v33 = vpop.f32.mrf.mxu1 }
 0x3a1   : > { %11142 = vmatprep.subr.mxu0 %v11506_v4  ;;  %11063 = vmatmul.mubr.msk.f32.vlgmr.msra.gmra.mxu0 %vm1452_vm4, %v6091_v28 }
 0x3a2   : > { %11143 = vmatpush3.msra.mxu0 %v7689_v55  ;;  %11065 = vmatprep.mubr.msk.f32.mxu0 %vm1452_vm4, %v6161_v0  ;;  %v10973_v34 = vpop.f32.mrf.mxu1  ;;  %v4530_v0 = vld [vmem:[#allocation4 + $0x28] sm:$0xff] }
 0x3a3   : > { %11144 = vmatprep.subr.mxu0 %v11506_v4 }
 0x3a4   : > { %11145 = vmatpush3.msra.mxu0 %v7688_v39  ;;  %v6301_v36 = vpop.f32.mrf.mxu1 }
 0x3a5   : > { %11156 = vmatprep.subr.mxu0 %v11506_v4  ;;  %11066 = vmatmul.mubr.msk.f32.gmra.mxu0 %vm1452_vm4, %v6231_v33 }
 0x3a6   : > { %11068 = vmatprep.mubr.msk.f32.mxu0 %vm1452_vm4, %v6301_v36  ;;  %v10980_v38 = vpop.f32.mrf.mxu1 }
 0x3a8   : > { %v6371_v41 = vpop.f32.mrf.mxu1 }
 0x3a9   : > { %11069 = vmatmul.mubr.msk.f32.gmra.mxu0 %vm1452_vm4, %v6371_v41 }
 0x3aa   : > { %v10987_v45 = vpop.f32.mrf.mxu1 }
 0x3ac   : > { %v6441_v47 = vpop.f32.mrf.mxu1 }
 0x3ad   : > { %11071 = vmatprep.mubr.msk.f32.mxu0 %vm1452_vm4, %v6441_v47 }
 0x3ae   : > { %v10994_v50 = vpop.f32.mrf.mxu1 }
 0x3af   : > { %v4529_v50 = vld [vmem:[#allocation4 + $0x20] sm:$0xff] }
 0x3b0   : > { %v6511_v51 = vpop.f32.mrf.mxu1 }
 0x3b1   : > { %11072 = vmatmul.mubr.msk.f32.gmra.mxu0 %vm1452_vm4, %v6511_v51 }
 0x3b2   : > { %v11001_v52 = vpop.f32.mrf.mxu1 }
 0x3b4   : > { %v13051_v57 = vpop.f32.mrf.mxu1 }
 0x3b6   : > { %v11015_v58 = vpop.f32.mrf.mxu1 }
 0x3b8   : > { %v13053_v35 = vpop.f32.mrf.mxu1 }
 0x3ba   : > { %v11029_v59 = vpop.f32.mrf.mxu1 }
 0x3bc   : > { %v13055_v31 = vpop.f32.mrf.mxu1 }
 0x3be   : > { %v11043_v60 = vpop.f32.mrf.mxu1 }
 0x3c0   : > { %v13057_v62 = vpop.f32.mrf.mxu1 }
 0x3c2   : > { %v11057_v37 = vpop.f32.mrf.mxu1 }
 0x3c4   : > { %v13059_v43 = vpop.f32.mrf.mxu1 }
 0x3c6   : > { %v11092_v10 = vpop.f32.mrf.mxu1 }
 0x3c8   : > { %v13061_v49 = vpop.f32.mrf.mxu1 }
 0x3ca   : > { %v11099_v63 = vpop.f32.mrf.mxu1 }
 0x3cc   : > { %v13063_v61 = vpop.f32.mrf.mxu1 }
 0x3ce   : > { %v11106_v3 = vpop.f32.mrf.mxu1 }
 0x3d0   : > { %v13065_v1 = vpop.f32.mrf.mxu1 }
 0x3d2   : > { %v11113_v12 = vpop.f32.mrf.mxu1 }
 0x3d4   : > { %v13067_v18 = vpop.f32.mrf.mxu1 }
 0x3d6   : > { %v11120_v30 = vpop.f32.mrf.mxu1 }
 0x3d8   : > { %v13069_v24 = vpop.f32.mrf.mxu1 }
 0x3da   : > { %v11127_v32 = vpop.f32.mrf.mxu1 }
 0x3dc   : > { %v13071_v7 = vpop.f32.mrf.mxu1 }
 0x3de   : > { %v11134_v46 = vpop.f32.mrf.mxu1 }
 0x3e0   : > { %v13073_v56 = vpop.f32.mrf.mxu1 }
 0x3e2   : > { %v11141_v54 = vpop.f32.mrf.mxu1 }
 0x425   : > { %v10924_v5 = vpop.f32.mrf.mxu0 }
 0x426   : > { %v4542_v23 = vadd.f32 %v10924_v5, %v4526_v8 }
 0x427   : > { %v4446_v44 = vpop.f32.mrf.mxu0 }
 0x428   : > { %4558 = vst.msk [vmem:[#allocation4 + $0x8] sm:$0xff] %vm2771_vm5, %v4542_v23  ;;  %v4541_v9 = vadd.f32 %v4525_v27, %v4446_v44 }
 0x42a   : > { %4557 = vst.msk [vmem:[#allocation4] sm:$0xff] %vm2771_vm5, %v4541_v9 }
 0x42d   : > { %v10927_v21 = vpop.f32.mrf.mxu0 }
 0x42e   : > { %v4544_v11 = vadd.f32 %v10927_v21, %v4528_v19 }
 0x42f   : > { %v4456_v42 = vpop.f32.mrf.mxu0  ;;  %v4642_v40 = vld [vmem:[#allocation4 + $0x8] sm:$0xff] }
 0x430   : > { %4560 = vst.msk [vmem:[#allocation4 + $0x18] sm:$0xff] %vm2771_vm5, %v4544_v11  ;;  %v4543_v14 = vadd.f32 %v4527_v13, %v4456_v42  ;;  %v4644_v15 = vcombine.high %v4642_v40, %v4642_v40  ;;  %v4651_v20 = vrot.slane %v4642_v40, %v11722_v6  ;;  %v4532_v13 = vld [vmem:[#allocation4 + $0x38] sm:$0xff] }
 0x431   : > { %v4573_v16 = vld [vmem:[#allocation4] sm:$0xff] }
 0x432   : > { %4559 = vst.msk [vmem:[#allocation4 + $0x10] sm:$0xff] %vm2771_vm5, %v4543_v14  ;;  %v4658_v22 = vrot.slane %v4644_v15, %v11722_v6  ;;  %v4659_v25 = vcombine.high %v4651_v20, %v4651_v20  ;;  %v4667_v17 = vrot.slane %v4651_v20, %v11722_v6  ;;  %v4575_v26 = vcombine.high %v4573_v16, %v4573_v16 }
 0x433   : > { %v4582_v28 = vrot.slane %v4573_v16, %v11722_v6 }
 0x434   : > { %v4660_v29 = vcombine.high %v4658_v22, %v4658_v22  ;;  %v4674_v48 = vrot.slane %v4658_v22, %v11722_v6  ;;  %v4681_v53 = vrot.slane %v4659_v25, %v11722_v6  ;;  %v4689_v55 = vcombine.high %v4667_v17, %v4667_v17  ;;  %4701 = vst.msk [vmem:[%s13086_s25 + $0x2] sm:$0x1] %vm4632_vm6, %v4667_v17 }
 0x435   : > { %v10930_v39 = vpop.f32.mrf.mxu0  ;;  %v4589_v2 = vrot.slane %v4575_v26, %v11722_v6  ;;  %v4590_v33 = vcombine.high %v4582_v28, %v4582_v28  ;;  %v4598_v34 = vrot.slane %v4582_v28, %v11722_v6  ;;  %v4531_v26 = vld [vmem:[#allocation4 + $0x30] sm:$0xff] }
 0x436   : > { %v4546_v36 = vadd.f32 %v10930_v39, %v4530_v0  ;;  %v4688_v38 = vrot.slane %v4660_v29, %v11722_v6  ;;  %v4690_v41 = vcombine.high %v4674_v48, %v4674_v48  ;;  %v4691_v45 = vcombine.high %v4681_v53, %v4681_v53  ;;  %4702 = vst.msk [vmem:[%s13086_s25 + $0x22] sm:$0x1] %vm4632_vm6, %v4681_v53 }
 0x437   : > { %4703 = vst.msk [vmem:[%s13086_s25 + $0x42] sm:$0x1] %vm4632_vm6, %v4689_v55  ;;  %4705 = vst.msk [vmem:[%s13086_s25 + $0x82] sm:$0x1] %vm4632_vm6, %v4674_v48  ;;  %v4466_v47 = vpop.f32.mrf.mxu0  ;;  %v4591_v51 = vcombine.high %v4589_v2, %v4589_v2  ;;  %v4605_v52 = vrot.slane %v4589_v2, %v11722_v6  ;;  %v4612_v58 = vrot.slane %v4590_v33, %v11722_v6  ;;  %v4778_v60 = vld [vmem:[#allocation4 + $0x18] sm:$0xff] }
 0x438   : > { %v4620_v59 = vcombine.high %v4598_v34, %v4598_v34  ;;  %4633 = vst.msk [vmem:[%s13086_s25] sm:$0x1] %vm4632_vm6, %v4598_v34  ;;  %v4545_v37 = vadd.f32 %v4529_v50, %v4466_v47  ;;  %v4692_v10 = vcombine.high %v4688_v38, %v4688_v38  ;;  %4704 = vst.msk [vmem:[%s13086_s25 + $0x62] sm:$0x1] %vm4632_vm6, %v4691_v45 }
 0x439   : > { %4562 = vst.msk [vmem:[#allocation4 + $0x28] sm:$0xff] %vm2771_vm5, %v4546_v36  ;;  %v4780_v63 = vcombine.high %v4778_v60, %v4778_v60  ;;  %v4787_v3 = vrot.slane %v4778_v60, %v11722_v6  ;;  %v4619_v12 = vrot.slane %v4591_v51, %v11722_v6  ;;  %v4621_v30 = vcombine.high %v4605_v52, %v4605_v52  ;;  %v4710_v46 = vld [vmem:[#allocation4 + $0x10] sm:$0xff]  ;;  %v4534_v36 = vld [vmem:[#allocation4 + $0x48] sm:$0xff]  ;;  %v4533_v60 = vld [vmem:[#allocation4 + $0x40] sm:$0xff] }
 0x43a   : > { %4706 = vst.msk [vmem:[%s13086_s25 + $0xa2] sm:$0x1] %vm4632_vm6, %v4688_v38  ;;  %4707 = vst.msk [vmem:[%s13086_s25 + $0xc2] sm:$0x1] %vm4632_vm6, %v4690_v41  ;;  %v4622_v32 = vcombine.high %v4612_v58, %v4612_v58  ;;  %v4712_v23 = vcombine.high %v4710_v46, %v4710_v46  ;;  %v4719_v27 = vrot.slane %v4710_v46, %v11722_v6 }
 0x43b   : > { %4634 = vst.msk [vmem:[%s13086_s25 + $0x20] sm:$0x1] %vm4632_vm6, %v4612_v58  ;;  %4635 = vst.msk [vmem:[%s13086_s25 + $0x40] sm:$0x1] %vm4632_vm6, %v4620_v59  ;;  %v4794_v54 = vrot.slane %v4780_v63, %v11722_v6  ;;  %v4795_v5 = vcombine.high %v4787_v3, %v4787_v3  ;;  %v4803_v8 = vrot.slane %v4787_v3, %v11722_v6 }
 0x43c   : > { %4637 = vst.msk [vmem:[%s13086_s25 + $0x80] sm:$0x1] %vm4632_vm6, %v4605_v52  ;;  %4708 = vst.msk [vmem:[%s13086_s25 + $0xe2] sm:$0x1] %vm4632_vm6, %v4692_v10  ;;  %v4623_v44 = vcombine.high %v4619_v12, %v4619_v12  ;;  %v4726_v40 = vrot.slane %v4712_v23, %v11722_v6  ;;  %v4727_v14 = vcombine.high %v4719_v27, %v4719_v27 }
 0x43d   : > { %4561 = vst.msk [vmem:[#allocation4 + $0x20] sm:$0xff] %vm2771_vm5, %v4545_v37  ;;  %v4796_v9 = vcombine.high %v4794_v54, %v4794_v54  ;;  %v4810_v21 = vrot.slane %v4794_v54, %v11722_v6  ;;  %v4817_v19 = vrot.slane %v4795_v5, %v11722_v6  ;;  %v4825_v11 = vcombine.high %v4803_v8, %v4803_v8  ;;  %v10933_v42 = vpop.f32.mrf.mxu0  ;;  %v4536_v54 = vld [vmem:[#allocation4 + $0x58] sm:$0xff] }
 0x43e   : > { %4636 = vst.msk [vmem:[%s13086_s25 + $0x60] sm:$0x1] %vm4632_vm6, %v4622_v32  ;;  %4638 = vst.msk [vmem:[%s13086_s25 + $0xa0] sm:$0x1] %vm4632_vm6, %v4619_v12  ;;  %v4735_v15 = vrot.slane %v4719_v27, %v11722_v6  ;;  %v4548_v20 = vadd.f32 %v10933_v42, %v4532_v13  ;;  %v4728_v28 = vcombine.high %v4726_v40, %v4726_v40  ;;  %v4535_v42 = vld [vmem:[#allocation4 + $0x50] sm:$0xff] }
 0x43f   : > { %4639 = vst.msk [vmem:[%s13086_s25 + $0xc0] sm:$0x1] %vm4632_vm6, %v4621_v30  ;;  %4837 = vst.msk [vmem:[%s13086_s25 + $0x6] sm:$0x1] %vm4632_vm6, %v4803_v8  ;;  %v4824_v16 = vrot.slane %v4796_v9, %v11722_v6  ;;  %v4826_v22 = vcombine.high %v4810_v21, %v4810_v21  ;;  %v4827_v25 = vcombine.high %v4817_v19, %v4817_v19  ;;  %v4476_v17 = vpop.f32.mrf.mxu0 }
 0x440   : > { %4640 = vst.msk [vmem:[%s13086_s25 + $0xe0] sm:$0x1] %vm4632_vm6, %v4623_v44  ;;  %4838 = vst.msk [vmem:[%s13086_s25 + $0x26] sm:$0x1] %vm4632_vm6, %v4817_v19  ;;  %v4742_v29 = vrot.slane %v4726_v40, %v11722_v6  ;;  %v4749_v48 = vrot.slane %v4727_v14, %v11722_v6  ;;  %v4757_v53 = vcombine.high %v4735_v15, %v4735_v15  ;;  %v4914_v55 = vld [vmem:[#allocation4 + $0x28] sm:$0xff] }
 0x441   : > { %4839 = vst.msk [vmem:[%s13086_s25 + $0x46] sm:$0x1] %vm4632_vm6, %v4825_v11  ;;  %4841 = vst.msk [vmem:[%s13086_s25 + $0x86] sm:$0x1] %vm4632_vm6, %v4810_v21  ;;  %v4547_v39 = vadd.f32 %v4531_v26, %v4476_v17  ;;  %v4828_v0 = vcombine.high %v4824_v16, %v4824_v16  ;;  %v4916_v2 = vcombine.high %v4914_v55, %v4914_v55  ;;  %v10936_v34 = vpop.f32.mrf.mxu0 }
 0x442   : > { %4769 = vst.msk [vmem:[%s13086_s25 + $0x4] sm:$0x1] %vm4632_vm6, %v4735_v15  ;;  %4840 = vst.msk [vmem:[%s13086_s25 + $0x66] sm:$0x1] %vm4632_vm6, %v4827_v25  ;;  %v4923_v33 = vrot.slane %v4914_v55, %v11722_v6  ;;  %v4756_v38 = vrot.slane %v4728_v28, %v11722_v6  ;;  %v4758_v41 = vcombine.high %v4742_v29, %v4742_v29  ;;  %v4538_v28 = vld [vmem:[#allocation4 + $0x68] sm:$0xff] }
 0x443   : > { %4564 = vst.msk [vmem:[#allocation4 + $0x38] sm:$0xff] %vm2771_vm5, %v4548_v20  ;;  %v4759_v45 = vcombine.high %v4749_v48, %v4749_v48  ;;  %4563 = vst.msk [vmem:[#allocation4 + $0x30] sm:$0xff] %vm2771_vm5, %v4547_v39  ;;  %v4550_v50 = vadd.f32 %v10936_v34, %v4534_v36  ;;  %v4930_v51 = vrot.slane %v4916_v2, %v11722_v6  ;;  %v4486_v59 = vpop.f32.mrf.mxu0  ;;  %v4537_v36 = vld [vmem:[#allocation4 + $0x60] sm:$0xff] }
 0x444   : > { %4842 = vst.msk [vmem:[%s13086_s25 + $0xa6] sm:$0x1] %vm4632_vm6, %v4824_v16  ;;  %4843 = vst.msk [vmem:[%s13086_s25 + $0xc6] sm:$0x1] %vm4632_vm6, %v4826_v22  ;;  %v4846_v47 = vld [vmem:[#allocation4 + $0x20] sm:$0xff]  ;;  %v4931_v52 = vcombine.high %v4923_v33, %v4923_v33  ;;  %v4939_v58 = vrot.slane %v4923_v33, %v11722_v6  ;;  %v4760_v37 = vcombine.high %v4756_v38, %v4756_v38 }
 0x445   : > { %4770 = vst.msk [vmem:[%s13086_s25 + $0x24] sm:$0x1] %vm4632_vm6, %v4749_v48  ;;  %4771 = vst.msk [vmem:[%s13086_s25 + $0x44] sm:$0x1] %vm4632_vm6, %v4757_v53  ;;  %v4848_v10 = vcombine.high %v4846_v47, %v4846_v47  ;;  %v4855_v63 = vrot.slane %v4846_v47, %v11722_v6  ;;  %v4549_v3 = vadd.f32 %v4533_v60, %v4486_v59  ;;  %v10939_v46 = vpop.f32.mrf.mxu0  ;;  %v4540_v59 = vld [vmem:[#allocation4 + $0x78] sm:$0xff] }
 0x446   : > { %4773 = vst.msk [vmem:[%s13086_s25 + $0x84] sm:$0x1] %vm4632_vm6, %v4742_v29  ;;  %4844 = vst.msk [vmem:[%s13086_s25 + $0xe6] sm:$0x1] %vm4632_vm6, %v4828_v0  ;;  %v4932_v12 = vcombine.high %v4930_v51, %v4930_v51  ;;  %v4946_v30 = vrot.slane %v4930_v51, %v11722_v6  ;;  %v4953_v32 = vrot.slane %v4931_v52, %v11722_v6 }
 0x447   : > { %4772 = vst.msk [vmem:[%s13086_s25 + $0x64] sm:$0x1] %vm4632_vm6, %v4759_v45  ;;  %4774 = vst.msk [vmem:[%s13086_s25 + $0xa4] sm:$0x1] %vm4632_vm6, %v4756_v38  ;;  %v4961_v5 = vcombine.high %v4939_v58, %v4939_v58  ;;  %v4862_v8 = vrot.slane %v4848_v10, %v11722_v6  ;;  %v4863_v23 = vcombine.high %v4855_v63, %v4855_v63  ;;  %v4496_v11 = vpop.f32.mrf.mxu0 }
 0x448   : > { %4775 = vst.msk [vmem:[%s13086_s25 + $0xc4] sm:$0x1] %vm4632_vm6, %v4758_v41  ;;  %4973 = vst.msk [vmem:[%s13086_s25 + $0xa] sm:$0x1] %vm4632_vm6, %v4939_v58  ;;  %v4871_v44 = vrot.slane %v4855_v63, %v11722_v6  ;;  %v4552_v27 = vadd.f32 %v10939_v46, %v4536_v54  ;;  %v4960_v9 = vrot.slane %v4932_v12, %v11722_v6 }
 0x449   : > { %4566 = vst.msk [vmem:[#allocation4 + $0x48] sm:$0xff] %vm2771_vm5, %v4550_v50  ;;  %4565 = vst.msk [vmem:[#allocation4 + $0x40] sm:$0xff] %vm2771_vm5, %v4549_v3  ;;  %v4962_v21 = vcombine.high %v4946_v30, %v4946_v30  ;;  %v4963_v19 = vcombine.high %v4953_v32, %v4953_v32  ;;  %v4864_v13 = vcombine.high %v4862_v8, %v4862_v8  ;;  %v10942_v26 = vpop.f32.mrf.mxu0 }
 0x44a   : > { %4776 = vst.msk [vmem:[%s13086_s25 + $0xe4] sm:$0x1] %vm4632_vm6, %v4760_v37  ;;  %4974 = vst.msk [vmem:[%s13086_s25 + $0x2a] sm:$0x1] %vm4632_vm6, %v4953_v32  ;;  %v4878_v40 = vrot.slane %v4862_v8, %v11722_v6  ;;  %v4885_v14 = vrot.slane %v4863_v23, %v11722_v6  ;;  %v4893_v15 = vcombine.high %v4871_v44, %v4871_v44  ;;  %v5050_v20 = vld [vmem:[#allocation4 + $0x38] sm:$0xff]  ;;  %v4982_v55 = vld [vmem:[#allocation4 + $0x30] sm:$0xff] }
 0x44b   : > { %4977 = vst.msk [vmem:[%s13086_s25 + $0x8a] sm:$0x1] %vm4632_vm6, %v4946_v30  ;;  %4975 = vst.msk [vmem:[%s13086_s25 + $0x4a] sm:$0x1] %vm4632_vm6, %v4961_v5  ;;  %v4551_v16 = vadd.f32 %v4535_v42, %v4496_v11  ;;  %v4964_v22 = vcombine.high %v4960_v9, %v4960_v9  ;;  %v5052_v25 = vcombine.high %v5050_v20, %v5050_v20  ;;  %v4506_v34 = vpop.f32.mrf.mxu0  ;;  %v4539_v8 = vld [vmem:[#allocation4 + $0x70] sm:$0xff] }
 0x44c   : > { %4905 = vst.msk [vmem:[%s13086_s25 + $0x8] sm:$0x1] %vm4632_vm6, %v4871_v44  ;;  %4976 = vst.msk [vmem:[%s13086_s25 + $0x6a] sm:$0x1] %vm4632_vm6, %v4963_v19  ;;  %v5059_v17 = vrot.slane %v5050_v20, %v11722_v6  ;;  %v4892_v29 = vrot.slane %v4864_v13, %v11722_v6  ;;  %v4894_v48 = vcombine.high %v4878_v40, %v4878_v40 }
 0x44d   : > { %4568 = vst.msk [vmem:[#allocation4 + $0x58] sm:$0xff] %vm2771_vm5, %v4552_v27  ;;  %v4895_v53 = vcombine.high %v4885_v14, %v4885_v14  ;;  %4567 = vst.msk [vmem:[#allocation4 + $0x50] sm:$0xff] %vm2771_vm5, %v4551_v16  ;;  %v4554_v39 = vadd.f32 %v10942_v26, %v4538_v28  ;;  %v5066_v0 = vrot.slane %v5052_v25, %v11722_v6  ;;  %v10945_v58 = vpop.f32.mrf.mxu0 }
 0x44e   : > { %4978 = vst.msk [vmem:[%s13086_s25 + $0xaa] sm:$0x1] %vm4632_vm6, %v4960_v9  ;;  %4979 = vst.msk [vmem:[%s13086_s25 + $0xca] sm:$0x1] %vm4632_vm6, %v4962_v21  ;;  %v5067_v2 = vcombine.high %v5059_v17, %v5059_v17  ;;  %v5075_v33 = vrot.slane %v5059_v17, %v11722_v6  ;;  %v4896_v38 = vcombine.high %v4892_v29, %v4892_v29 }
 0x44f   : > { %4906 = vst.msk [vmem:[%s13086_s25 + $0x28] sm:$0x1] %vm4632_vm6, %v4885_v14  ;;  %4907 = vst.msk [vmem:[%s13086_s25 + $0x48] sm:$0x1] %vm4632_vm6, %v4893_v15  ;;  %v4984_v41 = vcombine.high %v4982_v55, %v4982_v55  ;;  %v4991_v45 = vrot.slane %v4982_v55, %v11722_v6  ;;  %v4553_v47 = vadd.f32 %v4537_v36, %v4506_v34  ;;  %v4516_v5 = vpop.f32.mrf.mxu0 }
 0x450   : > { %4909 = vst.msk [vmem:[%s13086_s25 + $0x88] sm:$0x1] %vm4632_vm6, %v4878_v40  ;;  %4980 = vst.msk [vmem:[%s13086_s25 + $0xea] sm:$0x1] %vm4632_vm6, %v4964_v22  ;;  %v5068_v50 = vcombine.high %v5066_v0, %v5066_v0  ;;  %v5082_v51 = vrot.slane %v5066_v0, %v11722_v6  ;;  %v5089_v52 = vrot.slane %v5067_v2, %v11722_v6  ;;  %v5186_v3 = vld [vmem:[#allocation4 + $0x48] sm:$0xff]  ;;  %v5118_v54 = vld [vmem:[#allocation4 + $0x40] sm:$0xff] }
 0x451   : > { %4908 = vst.msk [vmem:[%s13086_s25 + $0x68] sm:$0x1] %vm4632_vm6, %v4895_v53  ;;  %4910 = vst.msk [vmem:[%s13086_s25 + $0xa8] sm:$0x1] %vm4632_vm6, %v4892_v29  ;;  %v5097_v60 = vcombine.high %v5075_v33, %v5075_v33  ;;  %v4998_v37 = vrot.slane %v4984_v41, %v11722_v6  ;;  %v4999_v10 = vcombine.high %v4991_v45, %v4991_v45  ;;  %v6581_v40 = vpop.f32.mrf.mxu0 }
 0x452   : > { %4911 = vst.msk [vmem:[%s13086_s25 + $0xc8] sm:$0x1] %vm4632_vm6, %v4894_v48  ;;  %5109 = vst.msk [vmem:[%s13086_s25 + $0xe] sm:$0x1] %vm4632_vm6, %v5075_v33  ;;  %v5007_v63 = vrot.slane %v4991_v45, %v11722_v6  ;;  %v4556_v12 = vadd.f32 %v10945_v58, %v4540_v59  ;;  %v5096_v30 = vrot.slane %v5068_v50, %v11722_v6  ;;  %11074 = vmatprep.mubr.msk.f32.mxu0 %vm1452_vm4, %v6581_v40 }
 0x453   : > { %4570 = vst.msk [vmem:[#allocation4 + $0x68] sm:$0xff] %vm2771_vm5, %v4554_v39  ;;  %4569 = vst.msk [vmem:[#allocation4 + $0x60] sm:$0xff] %vm2771_vm5, %v4553_v47  ;;  %v5098_v32 = vcombine.high %v5082_v51, %v5082_v51  ;;  %v5099_v46 = vcombine.high %v5089_v52, %v5089_v52  ;;  %v5000_v23 = vcombine.high %v4998_v37, %v4998_v37  ;;  %v11008_v28 = vpop.f32.mrf.mxu0  ;;  %11075 = vmatmul.mubr.msk.f32.gmra.mxu0 %vm1452_vm4, %v13051_v57 }
 0x454   : > { %4912 = vst.msk [vmem:[%s13086_s25 + $0xe8] sm:$0x1] %vm4632_vm6, %v4896_v38  ;;  %5110 = vst.msk [vmem:[%s13086_s25 + $0x2e] sm:$0x1] %vm4632_vm6, %v5089_v52  ;;  %v5014_v44 = vrot.slane %v4998_v37, %v11722_v6  ;;  %v5021_v27 = vrot.slane %v4999_v10, %v11722_v6  ;;  %v5029_v9 = vcombine.high %v5007_v63, %v5007_v63  ;;  %v5322_v13 = vld [vmem:[#allocation4 + $0x58] sm:$0xff]  ;;  %v5254_v52 = vld [vmem:[#allocation4 + $0x50] sm:$0xff] }
 0x455   : > { %5113 = vst.msk [vmem:[%s13086_s25 + $0x8e] sm:$0x1] %vm4632_vm6, %v5082_v51  ;;  %5111 = vst.msk [vmem:[%s13086_s25 + $0x4e] sm:$0x1] %vm4632_vm6, %v5097_v60  ;;  %v4555_v21 = vadd.f32 %v4539_v8, %v4516_v5  ;;  %v5100_v19 = vcombine.high %v5096_v30, %v5096_v30  ;;  %v5188_v11 = vcombine.high %v5186_v3, %v5186_v3  ;;  %v6721_v33 = vpop.f32.mrf.mxu0 }
 0x456   : > { %5041 = vst.msk [vmem:[%s13086_s25 + $0xc] sm:$0x1] %vm4632_vm6, %v5007_v63  ;;  %5112 = vst.msk [vmem:[%s13086_s25 + $0x6e] sm:$0x1] %vm4632_vm6, %v5099_v46  ;;  %v5195_v42 = vrot.slane %v5186_v3, %v11722_v6  ;;  %v5028_v14 = vrot.slane %v5000_v23, %v11722_v6  ;;  %v5030_v15 = vcombine.high %v5014_v44, %v5014_v44  ;;  %11077 = vmatprep.mubr.msk.f32.mxu0 %vm1452_vm4, %v6721_v33 }
 0x457   : > { %4572 = vst.msk [vmem:[#allocation4 + $0x78] sm:$0xff] %vm2771_vm5, %v4556_v12  ;;  %v5031_v20 = vcombine.high %v5021_v27, %v5021_v27  ;;  %v5120_v16 = vcombine.high %v5118_v54, %v5118_v54  ;;  %4571 = vst.msk [vmem:[#allocation4 + $0x70] sm:$0xff] %vm2771_vm5, %v4555_v21  ;;  %v5202_v22 = vrot.slane %v5188_v11, %v11722_v6  ;;  %v11022_v58 = vpop.f32.mrf.mxu0  ;;  %11078 = vmatmul.mubr.msk.f32.gmra.mxu0 %vm1452_vm4, %v13053_v35 }
 0x458   : > { %5114 = vst.msk [vmem:[%s13086_s25 + $0xae] sm:$0x1] %vm4632_vm6, %v5096_v30  ;;  %5115 = vst.msk [vmem:[%s13086_s25 + $0xce] sm:$0x1] %vm4632_vm6, %v5098_v32  ;;  %v5203_v25 = vcombine.high %v5195_v42, %v5195_v42  ;;  %v5211_v17 = vrot.slane %v5195_v42, %v11722_v6  ;;  %v5127_v26 = vrot.slane %v5118_v54, %v11722_v6 }
 0x459   : > { %5042 = vst.msk [vmem:[%s13086_s25 + $0x2c] sm:$0x1] %vm4632_vm6, %v5021_v27  ;;  %5043 = vst.msk [vmem:[%s13086_s25 + $0x4c] sm:$0x1] %vm4632_vm6, %v5029_v9  ;;  %v5032_v29 = vcombine.high %v5028_v14, %v5028_v14  ;;  %v5134_v48 = vrot.slane %v5120_v16, %v11722_v6  ;;  %v5324_v53 = vcombine.high %v5322_v13, %v5322_v13  ;;  %v6861_v32 = vpop.f32.mrf.mxu0 }
 0x45a   : > { %5045 = vst.msk [vmem:[%s13086_s25 + $0x8c] sm:$0x1] %vm4632_vm6, %v5014_v44  ;;  %5116 = vst.msk [vmem:[%s13086_s25 + $0xee] sm:$0x1] %vm4632_vm6, %v5100_v19  ;;  %v5331_v55 = vrot.slane %v5322_v13, %v11722_v6  ;;  %v5204_v39 = vcombine.high %v5202_v22, %v5202_v22  ;;  %v5218_v0 = vrot.slane %v5202_v22, %v11722_v6  ;;  %v5458_v30 = vld [vmem:[#allocation4 + $0x68] sm:$0xff]  ;;  %11080 = vmatprep.mubr.msk.f32.mxu0 %vm1452_vm4, %v6861_v32  ;;  %v5390_v40 = vld [vmem:[#allocation4 + $0x60] sm:$0xff] }
 0x45b   : > { %5044 = vst.msk [vmem:[%s13086_s25 + $0x6c] sm:$0x1] %vm4632_vm6, %v5031_v20  ;;  %5046 = vst.msk [vmem:[%s13086_s25 + $0xac] sm:$0x1] %vm4632_vm6, %v5028_v14  ;;  %v5225_v57 = vrot.slane %v5203_v25, %v11722_v6  ;;  %v5233_v2 = vcombine.high %v5211_v17, %v5211_v17  ;;  %v5135_v34 = vcombine.high %v5127_v26, %v5127_v26  ;;  %v11036_v21 = vpop.f32.mrf.mxu0  ;;  %11081 = vmatmul.mubr.msk.f32.gmra.mxu0 %vm1452_vm4, %v13055_v31 }
 0x45c   : > { %5047 = vst.msk [vmem:[%s13086_s25 + $0xcc] sm:$0x1] %vm4632_vm6, %v5030_v15  ;;  %5245 = vst.msk [vmem:[%s13086_s25 + $0x12] sm:$0x1] %vm4632_vm6, %v5211_v17  ;;  %v5136_v36 = vcombine.high %v5134_v48, %v5134_v48  ;;  %v5143_v38 = vrot.slane %v5127_v26, %v11722_v6  ;;  %v5150_v41 = vrot.slane %v5134_v48, %v11722_v6 }
 0x45d   : > { %5048 = vst.msk [vmem:[%s13086_s25 + $0xec] sm:$0x1] %vm4632_vm6, %v5032_v29  ;;  %v5232_v45 = vrot.slane %v5204_v39, %v11722_v6  ;;  %v5234_v47 = vcombine.high %v5218_v0, %v5218_v0  ;;  %v5235_v50 = vcombine.high %v5225_v57, %v5225_v57  ;;  %5246 = vst.msk [vmem:[%s13086_s25 + $0x32] sm:$0x1] %vm4632_vm6, %v5225_v57  ;;  %v7001_v16 = vpop.f32.mrf.mxu0 }
 0x45e   : > { %5247 = vst.msk [vmem:[%s13086_s25 + $0x52] sm:$0x1] %vm4632_vm6, %v5233_v2  ;;  %5249 = vst.msk [vmem:[%s13086_s25 + $0x92] sm:$0x1] %vm4632_vm6, %v5218_v0  ;;  %v5338_v51 = vrot.slane %v5324_v53, %v11722_v6  ;;  %v5157_v59 = vrot.slane %v5135_v34, %v11722_v6  ;;  %v5164_v60 = vrot.slane %v5136_v36, %v11722_v6  ;;  %11083 = vmatprep.mubr.msk.f32.mxu0 %vm1452_vm4, %v7001_v16  ;;  %v5594_v33 = vld [vmem:[#allocation4 + $0x78] sm:$0xff]  ;;  %v5526_v32 = vld [vmem:[#allocation4 + $0x70] sm:$0xff] }
 0x45f   : > { %v5165_v37 = vcombine.high %v5143_v38, %v5143_v38  ;;  %v5166_v10 = vcombine.high %v5150_v41, %v5150_v41  ;;  %5177 = vst.msk [vmem:[%s13086_s25 + $0x10] sm:$0x1] %vm4632_vm6, %v5143_v38  ;;  %5181 = vst.msk [vmem:[%s13086_s25 + $0x90] sm:$0x1] %vm4632_vm6, %v5150_v41  ;;  %v5236_v63 = vcombine.high %v5232_v45, %v5232_v45  ;;  %11084 = vmatmul.mubr.msk.f32.gmra.mxu0 %vm1452_vm4, %v13057_v62 }
 0x460   : > { %5248 = vst.msk [vmem:[%s13086_s25 + $0x72] sm:$0x1] %vm4632_vm6, %v5235_v50  ;;  %5250 = vst.msk [vmem:[%s13086_s25 + $0xb2] sm:$0x1] %vm4632_vm6, %v5232_v45  ;;  %v5339_v35 = vcombine.high %v5331_v55, %v5331_v55  ;;  %v5340_v3 = vcombine.high %v5338_v51, %v5338_v51  ;;  %v5347_v12 = vrot.slane %v5331_v55, %v11722_v6  ;;  %v11050_v55 = vpop.f32.mrf.mxu0  ;;  %11146 = vmatprep.mubr.msk.f32.mxu0 %vm11509_vm3, %v11506_v4 }
 0x461   : > { %5251 = vst.msk [vmem:[%s13086_s25 + $0xd2] sm:$0x1] %vm4632_vm6, %v5234_v47  ;;  %v5167_v46 = vcombine.high %v5157_v59, %v5157_v59  ;;  %v5168_v54 = vcombine.high %v5164_v60, %v5164_v60  ;;  %5178 = vst.msk [vmem:[%s13086_s25 + $0x30] sm:$0x1] %vm4632_vm6, %v5157_v59  ;;  %v5354_v5 = vrot.slane %v5338_v51, %v11722_v6 }
 0x462   : > { %5179 = vst.msk [vmem:[%s13086_s25 + $0x50] sm:$0x1] %vm4632_vm6, %v5165_v37  ;;  %5182 = vst.msk [vmem:[%s13086_s25 + $0xb0] sm:$0x1] %vm4632_vm6, %v5164_v60  ;;  %v5256_v8 = vcombine.high %v5254_v52, %v5254_v52  ;;  %v5361_v23 = vrot.slane %v5339_v35, %v11722_v6  ;;  %v5368_v44 = vrot.slane %v5340_v3, %v11722_v6  ;;  %v11064_v41 = vpop.f32.mrf.mxu0  ;;  %v13388_v37 = vld [vmem:[#allocation8 + $0x18] sm:$0xff] }
 0x463   : > { %5183 = vst.msk [vmem:[%s13086_s25 + $0xd0] sm:$0x1] %vm4632_vm6, %v5166_v10  ;;  %5252 = vst.msk [vmem:[%s13086_s25 + $0xf2] sm:$0x1] %vm4632_vm6, %v5236_v63  ;;  %v5369_v27 = vcombine.high %v5347_v12, %v5347_v12  ;;  %v5263_v9 = vrot.slane %v5254_v52, %v11722_v6  ;;  %v5370_v19 = vcombine.high %v5354_v5, %v5354_v5  ;;  %11147 = vmatmul.mubr.msk.f32.vlgmr.msra.gmra.mxu0 %vm1452_vm4, %v13388_v37  ;;  %v7693_v10 = vld [vmem:[#allocation3 + $0xa8] sm:$0xff] }
 0x464   : > { %5381 = vst.msk [vmem:[%s13086_s25 + $0x16] sm:$0x1] %vm4632_vm6, %v5347_v12  ;;  %5180 = vst.msk [vmem:[%s13086_s25 + $0x70] sm:$0x1] %vm4632_vm6, %v5167_v46  ;;  %v5270_v11 = vrot.slane %v5256_v8, %v11722_v6  ;;  %v5460_v42 = vcombine.high %v5458_v30, %v5458_v30  ;;  %v5467_v13 = vrot.slane %v5458_v30, %v11722_v6  ;;  %v7191_v63 = vpop.f32.mrf.mxu0  ;;  %11157 = vmatpush3.msra.mxu0 %v7693_v10  ;;  %v7692_v8 = vld [vmem:[#allocation3 + $0xa0] sm:$0xff] }
 0x465   : > { %5184 = vst.msk [vmem:[%s13086_s25 + $0xf0] sm:$0x1] %vm4632_vm6, %v5168_v54  ;;  %5385 = vst.msk [vmem:[%s13086_s25 + $0x96] sm:$0x1] %vm4632_vm6, %v5354_v5  ;;  %v5371_v14 = vcombine.high %v5361_v23, %v5361_v23  ;;  %v5372_v15 = vcombine.high %v5368_v44, %v5368_v44  ;;  %v5271_v31 = vcombine.high %v5263_v9, %v5263_v9  ;;  %11160 = vmatprep.mubr.msk.f32.mxu0 %vm11509_vm3, %v11506_v4 }
 0x466   : > { %5382 = vst.msk [vmem:[%s13086_s25 + $0x36] sm:$0x1] %vm4632_vm6, %v5361_v23  ;;  %5383 = vst.msk [vmem:[%s13086_s25 + $0x56] sm:$0x1] %vm4632_vm6, %v5369_v27  ;;  %v5279_v20 = vrot.slane %v5263_v9, %v11722_v6  ;;  %v5272_v22 = vcombine.high %v5270_v11, %v5270_v11  ;;  %v5286_v25 = vrot.slane %v5270_v11, %v11722_v6  ;;  %11158 = vmatprep.subr.mxu0 %v11506_v4 }
 0x467   : > { %5386 = vst.msk [vmem:[%s13086_s25 + $0xb6] sm:$0x1] %vm4632_vm6, %v5368_v44  ;;  %5387 = vst.msk [vmem:[%s13086_s25 + $0xd6] sm:$0x1] %vm4632_vm6, %v5370_v19  ;;  %v5474_v17 = vrot.slane %v5460_v42, %v11722_v6  ;;  %v5475_v26 = vcombine.high %v5467_v13, %v5467_v13  ;;  %v5293_v28 = vrot.slane %v5271_v31, %v11722_v6  ;;  %11159 = vmatpush3.msra.mxu0 %v7692_v8 }
 0x468   : > { %5384 = vst.msk [vmem:[%s13086_s25 + $0x76] sm:$0x1] %vm4632_vm6, %v5371_v14  ;;  %5388 = vst.msk [vmem:[%s13086_s25 + $0xf6] sm:$0x1] %vm4632_vm6, %v5372_v15  ;;  %v5301_v29 = vcombine.high %v5279_v20, %v5279_v20  ;;  %v5483_v48 = vrot.slane %v5467_v13, %v11722_v6  ;;  %v5392_v53 = vcombine.high %v5390_v40, %v5390_v40  ;;  %11170 = vmatprep.subr.mxu0 %v11506_v4  ;;  %v7697_v13 = vld [vmem:[#allocation3 + $0xc8] sm:$0xff] }
 0x469   : > { %5313 = vst.msk [vmem:[%s13086_s25 + $0x14] sm:$0x1] %vm4632_vm6, %v5279_v20  ;;  %v5300_v39 = vrot.slane %v5272_v22, %v11722_v6  ;;  %v5302_v0 = vcombine.high %v5286_v25, %v5286_v25  ;;  %5317 = vst.msk [vmem:[%s13086_s25 + $0x94] sm:$0x1] %vm4632_vm6, %v5286_v25  ;;  %v5476_v57 = vcombine.high %v5474_v17, %v5474_v17  ;;  %11161 = vmatmul.mubr.msk.f32.vlgmr.msra.gmra.mxu0 %vm1452_vm4, %v13388_v37  ;;  %v7696_v22 = vld [vmem:[#allocation3 + $0xc0] sm:$0xff] }
 0x46a   : > { %v5490_v2 = vrot.slane %v5474_v17, %v11722_v6  ;;  %v5303_v34 = vcombine.high %v5293_v28, %v5293_v28  ;;  %5314 = vst.msk [vmem:[%s13086_s25 + $0x34] sm:$0x1] %vm4632_vm6, %v5293_v28  ;;  %5315 = vst.msk [vmem:[%s13086_s25 + $0x54] sm:$0x1] %vm4632_vm6, %v5301_v29  ;;  %v5497_v62 = vrot.slane %v5475_v26, %v11722_v6  ;;  %11171 = vmatpush3.msra.mxu0 %v7697_v13 }
 0x46b   : > { %v5505_v36 = vcombine.high %v5483_v48, %v5483_v48  ;;  %5517 = vst.msk [vmem:[%s13086_s25 + $0x1a] sm:$0x1] %vm4632_vm6, %v5483_v48  ;;  %v5399_v38 = vrot.slane %v5390_v40, %v11722_v6  ;;  %v5304_v45 = vcombine.high %v5300_v39, %v5300_v39  ;;  %5318 = vst.msk [vmem:[%s13086_s25 + $0xb4] sm:$0x1] %vm4632_vm6, %v5300_v39  ;;  %11174 = vmatprep.mubr.msk.f32.mxu0 %vm11509_vm3, %v11506_v4  ;;  %v7701_v48 = vld [vmem:[#allocation3 + $0xe8] sm:$0xff] }
 0x46c   : > { %5319 = vst.msk [vmem:[%s13086_s25 + $0xd4] sm:$0x1] %vm4632_vm6, %v5302_v0  ;;  %v5504_v47 = vrot.slane %v5476_v57, %v11722_v6  ;;  %v5506_v50 = vcombine.high %v5490_v2, %v5490_v2  ;;  %5521 = vst.msk [vmem:[%s13086_s25 + $0x9a] sm:$0x1] %vm4632_vm6, %v5490_v2  ;;  %v5406_v51 = vrot.slane %v5392_v53, %v11722_v6  ;;  %11172 = vmatprep.subr.mxu0 %v11506_v4  ;;  %v7700_v57 = vld [vmem:[#allocation3 + $0xe0] sm:$0xff] }
 0x46d   : > { %7271 = vst.msk [vmem:[#allocation4 + $0x8] sm:$0xff] %vm2771_vm5, %v11064_v41  ;;  %v5507_v52 = vcombine.high %v5497_v62, %v5497_v62  ;;  %v5407_v58 = vcombine.high %v5399_v38, %v5399_v38  ;;  %v5415_v59 = vrot.slane %v5399_v38, %v11722_v6  ;;  %v5596_v60 = vcombine.high %v5594_v33, %v5594_v33 }
 0x46e   : > { %5316 = vst.msk [vmem:[%s13086_s25 + $0x74] sm:$0x1] %vm4632_vm6, %v5303_v34  ;;  %5518 = vst.msk [vmem:[%s13086_s25 + $0x3a] sm:$0x1] %vm4632_vm6, %v5497_v62  ;;  %v5508_v35 = vcombine.high %v5504_v47, %v5504_v47  ;;  %v5408_v3 = vcombine.high %v5406_v51, %v5406_v51  ;;  %v5422_v12 = vrot.slane %v5406_v51, %v11722_v6  ;;  %11173 = vmatpush3.msra.mxu0 %v7696_v22  ;;  %v11348_v62 = vld [vmem:[#allocation10 + $0x18] sm:$0xff] }
 0x46f   : > { %5519 = vst.msk [vmem:[%s13086_s25 + $0x5a] sm:$0x1] %vm4632_vm6, %v5505_v36  ;;  %5320 = vst.msk [vmem:[%s13086_s25 + $0xf4] sm:$0x1] %vm4632_vm6, %v5304_v45  ;;  %v5603_v30 = vrot.slane %v5594_v33, %v11722_v6  ;;  %v5429_v46 = vrot.slane %v5407_v58, %v11722_v6  ;;  %v5437_v54 = vcombine.high %v5415_v59, %v5415_v59  ;;  %11184 = vmatprep.subr.mxu0 %v11506_v4  ;;  %v11349_v36 = vld [vmem:[#allocation10 + $0x10] sm:$0xff] }
 0x470   : > { %5522 = vst.msk [vmem:[%s13086_s25 + $0xba] sm:$0x1] %vm4632_vm6, %v5504_v47  ;;  %5523 = vst.msk [vmem:[%s13086_s25 + $0xda] sm:$0x1] %vm4632_vm6, %v5506_v50  ;;  %v5610_v5 = vrot.slane %v5596_v60, %v11722_v6  ;;  %v5436_v23 = vrot.slane %v5408_v3, %v11722_v6  ;;  %v5438_v44 = vcombine.high %v5422_v12, %v5422_v12  ;;  %11175 = vmatmul.mubr.msk.f32.vlgmr.msra.gmra.mxu0 %vm1452_vm4, %v13388_v37 }
 0x471   : > { %7270 = vst.msk [vmem:[#allocation4] sm:$0xff] %vm2771_vm5, %v7191_v63  ;;  %v5611_v27 = vcombine.high %v5603_v30, %v5603_v30  ;;  %v5619_v9 = vrot.slane %v5603_v30, %v11722_v6  ;;  %v5439_v21 = vcombine.high %v5429_v46, %v5429_v46  ;;  %v5528_v42 = vcombine.high %v5526_v32, %v5526_v32 }
 0x472   : > { %5520 = vst.msk [vmem:[%s13086_s25 + $0x7a] sm:$0x1] %vm4632_vm6, %v5507_v52  ;;  %5449 = vst.msk [vmem:[%s13086_s25 + $0x18] sm:$0x1] %vm4632_vm6, %v5415_v59  ;;  %v5612_v19 = vcombine.high %v5610_v5, %v5610_v5  ;;  %v5626_v11 = vrot.slane %v5610_v5, %v11722_v6  ;;  %v5440_v40 = vcombine.high %v5436_v23, %v5436_v23  ;;  %11185 = vmatpush3.msra.mxu0 %v7701_v48 }
 0x473   : > { %5524 = vst.msk [vmem:[%s13086_s25 + $0xfa] sm:$0x1] %vm4632_vm6, %v5508_v35  ;;  %5453 = vst.msk [vmem:[%s13086_s25 + $0x98] sm:$0x1] %vm4632_vm6, %v5422_v12  ;;  %v5633_v14 = vrot.slane %v5611_v27, %v11722_v6  ;;  %v5641_v15 = vcombine.high %v5619_v9, %v5619_v9  ;;  %v5535_v16 = vrot.slane %v5526_v32, %v11722_v6  ;;  %11188 = vmatprep.mubr.msk.f32.mxu0 %vm11509_vm3, %v11506_v4 }
 0x474   : > { %5450 = vst.msk [vmem:[%s13086_s25 + $0x38] sm:$0x1] %vm4632_vm6, %v5429_v46  ;;  %5451 = vst.msk [vmem:[%s13086_s25 + $0x58] sm:$0x1] %vm4632_vm6, %v5437_v54  ;;  %v5640_v31 = vrot.slane %v5612_v19, %v11722_v6  ;;  %v5642_v20 = vcombine.high %v5626_v11, %v5626_v11  ;;  %v5542_v17 = vrot.slane %v5528_v42, %v11722_v6  ;;  %11186 = vmatprep.subr.mxu0 %v11506_v4 }
 0x475   : > { %5454 = vst.msk [vmem:[%s13086_s25 + $0xb8] sm:$0x1] %vm4632_vm6, %v5436_v23  ;;  %5455 = vst.msk [vmem:[%s13086_s25 + $0xd8] sm:$0x1] %vm4632_vm6, %v5438_v44  ;;  %v5643_v25 = vcombine.high %v5633_v14, %v5633_v14  ;;  %v5543_v28 = vcombine.high %v5535_v16, %v5535_v16  ;;  %v5551_v29 = vrot.slane %v5535_v16, %v11722_v6  ;;  %11187 = vmatpush3.msra.mxu0 %v7700_v57  ;;  %v9023_v44 = vld [vmem:[#allocation4 + $0x8] sm:$0xff] }
 0x476   : > { %5653 = vst.msk [vmem:[%s13086_s25 + $0x1e] sm:$0x1] %vm4632_vm6, %v5619_v9  ;;  %5452 = vst.msk [vmem:[%s13086_s25 + $0x78] sm:$0x1] %vm4632_vm6, %v5439_v21  ;;  %v5644_v26 = vcombine.high %v5640_v31, %v5640_v31  ;;  %v5544_v53 = vcombine.high %v5542_v17, %v5542_v17  ;;  %v5558_v55 = vrot.slane %v5542_v17, %v11722_v6  ;;  %11189 = vmatmul.mubr.msk.f32.vlgmr.msra.gmra.mxu0 %vm1452_vm4, %v13388_v37 }
 0x477   : > { %5657 = vst.msk [vmem:[%s13086_s25 + $0x9e] sm:$0x1] %vm4632_vm6, %v5626_v11  ;;  %5456 = vst.msk [vmem:[%s13086_s25 + $0xf8] sm:$0x1] %vm4632_vm6, %v5440_v40  ;;  %v5565_v39 = vrot.slane %v5543_v28, %v11722_v6  ;;  %v5573_v0 = vcombine.high %v5551_v29, %v5551_v29  ;;  %11198 = vmatprep.subr.mxu0 %v11348_v62  ;;  %11202 = vmatprep.mubr.msk.f32.mxu0 %vm1452_vm4, %v13059_v43  ;;  %v11067_v43 = vpop.f32.mrf.mxu0 }
 0x478   : > { %5654 = vst.msk [vmem:[%s13086_s25 + $0x3e] sm:$0x1] %vm4632_vm6, %v5633_v14  ;;  %5655 = vst.msk [vmem:[%s13086_s25 + $0x5e] sm:$0x1] %vm4632_vm6, %v5641_v15  ;;  %v5572_v2 = vrot.slane %v5544_v53, %v11722_v6  ;;  %v5574_v33 = vcombine.high %v5558_v55, %v5558_v55  ;;  %11199 = vmatpush3.msra.mxu0 %v11348_v62  ;;  %v9022_v21 = vld [vmem:[#allocation4] sm:$0xff] }
 0x479   : > { %5658 = vst.msk [vmem:[%s13086_s25 + $0xbe] sm:$0x1] %vm4632_vm6, %v5640_v31  ;;  %5659 = vst.msk [vmem:[%s13086_s25 + $0xde] sm:$0x1] %vm4632_vm6, %v5642_v20  ;;  %v5575_v34 = vcombine.high %v5565_v39, %v5565_v39  ;;  %11200 = vmatprep.subr.mxu0 %v11349_v36 }
 0x47a   : > { %5656 = vst.msk [vmem:[%s13086_s25 + $0x7e] sm:$0x1] %vm4632_vm6, %v5643_v25  ;;  %5660 = vst.msk [vmem:[%s13086_s25 + $0xfe] sm:$0x1] %vm4632_vm6, %v5644_v26  ;;  %v5576_v4 = vcombine.high %v5572_v2, %v5572_v2  ;;  %11201 = vmatpush3.msra.mxu0 %v11349_v36 }
 0x47b   : > { %5585 = vst.msk [vmem:[%s13086_s25 + $0x1c] sm:$0x1] %vm4632_vm6, %v5551_v29  ;;  %5589 = vst.msk [vmem:[%s13086_s25 + $0x9c] sm:$0x1] %vm4632_vm6, %v5558_v55  ;;  %11203 = vmatmul.mubr.msk.f32.vlgmr.msra.gmra.mxu0 %vm1452_vm4, %v13061_v49  ;;  %v7201_v49 = vpop.f32.mrf.mxu0 }
 0x47c   : > { %5586 = vst.msk [vmem:[%s13086_s25 + $0x3c] sm:$0x1] %vm4632_vm6, %v5565_v39  ;;  %5587 = vst.msk [vmem:[%s13086_s25 + $0x5c] sm:$0x1] %vm4632_vm6, %v5573_v0  ;;  %11205 = vmatprep.mubr.msk.f32.mxu0 %vm1452_vm4, %v13063_v61 }
 0x47d   : > { %5590 = vst.msk [vmem:[%s13086_s25 + $0xbc] sm:$0x1] %vm4632_vm6, %v5572_v2  ;;  %5591 = vst.msk [vmem:[%s13086_s25 + $0xdc] sm:$0x1] %vm4632_vm6, %v5574_v33  ;;  %v11070_v61 = vpop.f32.mrf.mxu0 }
 0x47e   : > { %5588 = vst.msk [vmem:[%s13086_s25 + $0x7c] sm:$0x1] %vm4632_vm6, %v5575_v34  ;;  %5592 = vst.msk [vmem:[%s13086_s25 + $0xfc] sm:$0x1] %vm4632_vm6, %v5576_v4 }
 0x47f   : > { %11206 = vmatmul.mubr.msk.f32.gmra.mxu0 %vm1452_vm4, %v13065_v1  ;;  %7273 = vst.msk [vmem:[#allocation4 + $0x18] sm:$0xff] %vm2771_vm5, %v11067_v43  ;;  %7272 = vst.msk [vmem:[#allocation4 + $0x10] sm:$0xff] %vm2771_vm5, %v7201_v49  ;;  %v7211_v1 = vpop.f32.mrf.mxu0 }
 0x480   : > { %11208 = vmatprep.mubr.msk.f32.mxu0 %vm1452_vm4, %v13067_v18  ;;  %7275 = vst.msk [vmem:[#allocation4 + $0x28] sm:$0xff] %vm2771_vm5, %v11070_v61  ;;  %7274 = vst.msk [vmem:[#allocation4 + $0x20] sm:$0xff] %vm2771_vm5, %v7211_v1 }
 0x481   : > { %v11073_v18 = vpop.f32.mrf.mxu0 }
 0x482   : > { %7277 = vst.msk [vmem:[#allocation4 + $0x38] sm:$0xff] %vm2771_vm5, %v11073_v18 }
 0x483   : > { %11209 = vmatmul.mubr.msk.f32.gmra.mxu0 %vm1452_vm4, %v13069_v24  ;;  %v7221_v24 = vpop.f32.mrf.mxu0 }
 0x484   : > { %11211 = vmatprep.mubr.msk.f32.mxu0 %vm1452_vm4, %v13071_v7  ;;  %7276 = vst.msk [vmem:[#allocation4 + $0x30] sm:$0xff] %vm2771_vm5, %v7221_v24  ;;  %v8403_v7 = vpop.f32.mrf.mxu1 }
 0x486   : > { %v9025_v42 = vld [vmem:[#allocation4 + $0x18] sm:$0xff]  ;;  %v9024_v14 = vld [vmem:[#allocation4 + $0x10] sm:$0xff] }
 0x487   : > { %11212 = vmatmul.mubr.msk.f32.gmra.mxu0 %vm1452_vm4, %v13073_v56  ;;  %v11155_v56 = vpop.f32.mrf.mxu1  ;;  %v9027_v20 = vld [vmem:[#allocation4 + $0x28] sm:$0xff]  ;;  %v9026_v17 = vld [vmem:[#allocation4 + $0x20] sm:$0xff] }
 0x489   : > { %v8543_v38 = vpop.f32.mrf.mxu1  ;;  %v9029_v2 = vld [vmem:[#allocation4 + $0x38] sm:$0xff] }
 0x48b   : > { %v11169_v41 = vpop.f32.mrf.mxu1 }
 0x48d   : > { %v8683_v45 = vpop.f32.mrf.mxu1 }
 0x48f   : > { %v11183_v47 = vpop.f32.mrf.mxu1 }
 0x491   : > { %v8823_v50 = vpop.f32.mrf.mxu1 }
 0x493   : > { %v11197_v51 = vpop.f32.mrf.mxu1 }
 0x513   : > { %v11076_v52 = vpop.f32.mrf.mxu0 }
 0x514   : > { %7279 = vst.msk [vmem:[#allocation4 + $0x48] sm:$0xff] %vm2771_vm5, %v11076_v52 }
 0x515   : > { %v7231_v58 = vpop.f32.mrf.mxu0 }
 0x516   : > { %7278 = vst.msk [vmem:[#allocation4 + $0x40] sm:$0xff] %vm2771_vm5, %v7231_v58 }
 0x517   : > { %v11079_v59 = vpop.f32.mrf.mxu0 }
 0x518   : > { %7281 = vst.msk [vmem:[#allocation4 + $0x58] sm:$0xff] %vm2771_vm5, %v11079_v59 }
 0x519   : > { %v7241_v60 = vpop.f32.mrf.mxu0 }
 0x51a   : > { %7280 = vst.msk [vmem:[#allocation4 + $0x50] sm:$0xff] %vm2771_vm5, %v7241_v60 }
 0x51b   : > { %v11082_v37 = vpop.f32.mrf.mxu0 }
 0x51c   : > { %7283 = vst.msk [vmem:[#allocation4 + $0x68] sm:$0xff] %vm2771_vm5, %v11082_v37 }
 0x51d   : > { %v7251_v10 = vpop.f32.mrf.mxu0 }
 0x51e   : > { %7282 = vst.msk [vmem:[#allocation4 + $0x60] sm:$0xff] %vm2771_vm5, %v7251_v10 }
 0x51f   : > { %v11085_v63 = vpop.f32.mrf.mxu0 }
 0x520   : > { %7285 = vst.msk [vmem:[#allocation4 + $0x78] sm:$0xff] %vm2771_vm5, %v11085_v63 }
 0x521   : > { %v7261_v35 = vpop.f32.mrf.mxu0 }
 0x522   : > { %7284 = vst.msk [vmem:[#allocation4 + $0x70] sm:$0xff] %vm2771_vm5, %v7261_v35 }
 0x523   : > { %v8333_v3 = vpop.f32.mrf.mxu0 }
 0x524   : > { %11214 = vmatprep.mubr.msk.f32.mxu0 %vm1452_vm4, %v8333_v3 }
 0x525   : > { %v11148_v12 = vpop.f32.mrf.mxu0  ;;  %11215 = vmatmul.mubr.msk.f32.gmra.mxu0 %vm1452_vm4, %v8403_v7 }
 0x529   : > { %v8473_v30 = vpop.f32.mrf.mxu0 }
 0x52a   : > { %11217 = vmatprep.mubr.msk.f32.mxu0 %vm1452_vm4, %v8473_v30 }
 0x52b   : > { %v11162_v32 = vpop.f32.mrf.mxu0  ;;  %11218 = vmatmul.mubr.msk.f32.gmra.mxu0 %vm1452_vm4, %v8543_v38 }
 0x530   : > { %v8613_v46 = vpop.f32.mrf.mxu0 }
 0x531   : > { %11220 = vmatprep.mubr.msk.f32.mxu0 %vm1452_vm4, %v8613_v46 }
 0x532   : > { %v11176_v54 = vpop.f32.mrf.mxu0  ;;  %11221 = vmatmul.mubr.msk.f32.gmra.mxu0 %vm1452_vm4, %v8683_v45 }
 0x536   : > { %v8753_v5 = vpop.f32.mrf.mxu0 }
 0x537   : > { %11223 = vmatprep.mubr.msk.f32.mxu0 %vm1452_vm4, %v8753_v5 }
 0x538   : > { %v11190_v8 = vpop.f32.mrf.mxu0  ;;  %11224 = vmatmul.mubr.msk.f32.gmra.mxu0 %vm1452_vm4, %v8823_v50 }
 0x53b   : > { %v11204_v23 = vpop.f32.mrf.mxu0 }
 0x53c   : > { %v9039_v27 = vadd.f32 %v11204_v23, %v9023_v44 }
 0x53d   : > { %v8943_v9 = vpop.f32.mrf.mxu0 }
 0x53e   : > { %9055 = vst.msk [vmem:[#allocation4 + $0x8] sm:$0xff] %vm2771_vm5, %v9039_v27  ;;  %v9038_v19 = vadd.f32 %v9022_v21, %v8943_v9 }
 0x53f   : > { %v11207_v11 = vpop.f32.mrf.mxu0 }
 0x540   : > { %9054 = vst.msk [vmem:[#allocation4] sm:$0xff] %vm2771_vm5, %v9038_v19  ;;  %v9041_v13 = vadd.f32 %v11207_v11, %v9025_v42 }
 0x541   : > { %v8953_v40 = vpop.f32.mrf.mxu0 }
 0x542   : > { %9057 = vst.msk [vmem:[#allocation4 + $0x18] sm:$0xff] %vm2771_vm5, %v9041_v13  ;;  %v9040_v15 = vadd.f32 %v9024_v14, %v8953_v40 }
 0x543   : > { %v11210_v31 = vpop.f32.mrf.mxu0 }
 0x544   : > { %9056 = vst.msk [vmem:[#allocation4 + $0x10] sm:$0xff] %vm2771_vm5, %v9040_v15  ;;  %v9043_v16 = vadd.f32 %v11210_v31, %v9027_v20 }
 0x545   : > { %v9137_v22 = vld [vmem:[#allocation4 + $0x8] sm:$0xff]  ;;  %v8963_v25 = vpop.f32.mrf.mxu0 }
 0x546   : > { %v9139_v26 = vcombine.high %v9137_v22, %v9137_v22  ;;  %v9146_v28 = vrot.slane %v9137_v22, %v11722_v6  ;;  %9059 = vst.msk [vmem:[#allocation4 + $0x28] sm:$0xff] %vm2771_vm5, %v9043_v16  ;;  %v9042_v29 = vadd.f32 %v9026_v17, %v8963_v25 }
 0x547   : > { %v9070_v48 = vld [vmem:[#allocation4] sm:$0xff]  ;;  %v11213_v53 = vpop.f32.mrf.mxu0 }
 0x548   : > { %v9153_v55 = vrot.slane %v9139_v26, %v11722_v6  ;;  %v9154_v39 = vcombine.high %v9146_v28, %v9146_v28  ;;  %v9162_v0 = vrot.slane %v9146_v28, %v11722_v6  ;;  %v9072_v57 = vcombine.high %v9070_v48, %v9070_v48  ;;  %9058 = vst.msk [vmem:[#allocation4 + $0x20] sm:$0xff] %vm2771_vm5, %v9042_v29 }
 0x549   : > { %v9079_v33 = vrot.slane %v9070_v48, %v11722_v6  ;;  %v9271_v34 = vld [vmem:[#allocation4 + $0x18] sm:$0xff]  ;;  %v9045_v62 = vadd.f32 %v11213_v53, %v9029_v2 }
 0x54a   : > { %v9155_v4 = vcombine.high %v9153_v55, %v9153_v55  ;;  %v9169_v36 = vrot.slane %v9153_v55, %v11722_v6  ;;  %v9176_v43 = vrot.slane %v9154_v39, %v11722_v6  ;;  %v9184_v49 = vcombine.high %v9162_v0, %v9162_v0  ;;  %9196 = vst.msk [vmem:[%s13086_s25 + $0x3] sm:$0x1] %vm4632_vm6, %v9162_v0 }
 0x54b   : > { %v9086_v61 = vrot.slane %v9072_v57, %v11722_v6  ;;  %v9087_v1 = vcombine.high %v9079_v33, %v9079_v33  ;;  %v9095_v18 = vrot.slane %v9079_v33, %v11722_v6  ;;  %v9273_v24 = vcombine.high %v9271_v34, %v9271_v34  ;;  %9061 = vst.msk [vmem:[#allocation4 + $0x38] sm:$0xff] %vm2771_vm5, %v9045_v62  ;;  %v9204_v45 = vld [vmem:[#allocation4 + $0x10] sm:$0xff]  ;;  %v8973_v33 = vpop.f32.mrf.mxu0 }
 0x54c   : > { %v9183_v7 = vrot.slane %v9155_v4, %v11722_v6  ;;  %v9185_v56 = vcombine.high %v9169_v36, %v9169_v36  ;;  %v9186_v38 = vcombine.high %v9176_v43, %v9176_v43  ;;  %9197 = vst.msk [vmem:[%s13086_s25 + $0x23] sm:$0x1] %vm4632_vm6, %v9176_v43  ;;  %9198 = vst.msk [vmem:[%s13086_s25 + $0x43] sm:$0x1] %vm4632_vm6, %v9184_v49 }
 0x54d   : > { %9200 = vst.msk [vmem:[%s13086_s25 + $0x83] sm:$0x1] %vm4632_vm6, %v9169_v36  ;;  %v9280_v41 = vrot.slane %v9271_v34, %v11722_v6  ;;  %v9088_v47 = vcombine.high %v9086_v61, %v9086_v61  ;;  %v9102_v50 = vrot.slane %v9086_v61, %v11722_v6  ;;  %v9109_v51 = vrot.slane %v9087_v1, %v11722_v6  ;;  %v9405_v10 = vld [vmem:[#allocation4 + $0x28] sm:$0xff] }
 0x54e   : > { %v9117_v52 = vcombine.high %v9095_v18, %v9095_v18  ;;  %9129 = vst.msk [vmem:[%s13086_s25 + $0x1] sm:$0x1] %vm4632_vm6, %v9095_v18  ;;  %v9187_v58 = vcombine.high %v9183_v7, %v9183_v7  ;;  %9199 = vst.msk [vmem:[%s13086_s25 + $0x63] sm:$0x1] %vm4632_vm6, %v9186_v38  ;;  %v9287_v59 = vrot.slane %v9273_v24, %v11722_v6  ;;  %v9028_v18 = vld [vmem:[#allocation4 + $0x30] sm:$0xff] }
 0x54f   : > { %9201 = vst.msk [vmem:[%s13086_s25 + $0xa3] sm:$0x1] %vm4632_vm6, %v9183_v7  ;;  %9202 = vst.msk [vmem:[%s13086_s25 + $0xc3] sm:$0x1] %vm4632_vm6, %v9185_v56  ;;  %v9288_v60 = vcombine.high %v9280_v41, %v9280_v41  ;;  %v9296_v37 = vrot.slane %v9280_v41, %v11722_v6  ;;  %v9116_v63 = vrot.slane %v9088_v47, %v11722_v6  ;;  %v9338_v16 = vld [vmem:[#allocation4 + $0x20] sm:$0xff] }
 0x550   : > { %v9118_v35 = vcombine.high %v9102_v50, %v9102_v50  ;;  %v9119_v3 = vcombine.high %v9109_v51, %v9109_v51  ;;  %9130 = vst.msk [vmem:[%s13086_s25 + $0x21] sm:$0x1] %vm4632_vm6, %v9109_v51  ;;  %9131 = vst.msk [vmem:[%s13086_s25 + $0x41] sm:$0x1] %vm4632_vm6, %v9117_v52  ;;  %v9206_v12 = vcombine.high %v9204_v45, %v9204_v45 }
 0x551   : > { %9133 = vst.msk [vmem:[%s13086_s25 + $0x81] sm:$0x1] %vm4632_vm6, %v9102_v50  ;;  %9203 = vst.msk [vmem:[%s13086_s25 + $0xe3] sm:$0x1] %vm4632_vm6, %v9187_v58  ;;  %v9289_v30 = vcombine.high %v9287_v59, %v9287_v59  ;;  %v9303_v32 = vrot.slane %v9287_v59, %v11722_v6  ;;  %v9310_v46 = vrot.slane %v9288_v60, %v11722_v6 }
 0x552   : > { %v9318_v54 = vcombine.high %v9296_v37, %v9296_v37  ;;  %9330 = vst.msk [vmem:[%s13086_s25 + $0x7] sm:$0x1] %vm4632_vm6, %v9296_v37  ;;  %v9120_v5 = vcombine.high %v9116_v63, %v9116_v63  ;;  %9132 = vst.msk [vmem:[%s13086_s25 + $0x61] sm:$0x1] %vm4632_vm6, %v9119_v3  ;;  %v9213_v8 = vrot.slane %v9204_v45, %v11722_v6  ;;  %v9539_v28 = vld [vmem:[#allocation4 + $0x38] sm:$0xff] }
 0x553   : > { %9134 = vst.msk [vmem:[%s13086_s25 + $0xa1] sm:$0x1] %vm4632_vm6, %v9116_v63  ;;  %9135 = vst.msk [vmem:[%s13086_s25 + $0xc1] sm:$0x1] %vm4632_vm6, %v9118_v35  ;;  %v9220_v23 = vrot.slane %v9206_v12, %v11722_v6  ;;  %v9407_v44 = vcombine.high %v9405_v10, %v9405_v10  ;;  %v9317_v27 = vrot.slane %v9289_v30, %v11722_v6 }
 0x554   : > { %v9319_v9 = vcombine.high %v9303_v32, %v9303_v32  ;;  %v9320_v21 = vcombine.high %v9310_v46, %v9310_v46  ;;  %9331 = vst.msk [vmem:[%s13086_s25 + $0x27] sm:$0x1] %vm4632_vm6, %v9310_v46  ;;  %9332 = vst.msk [vmem:[%s13086_s25 + $0x47] sm:$0x1] %vm4632_vm6, %v9318_v54  ;;  %v9414_v19 = vrot.slane %v9405_v10, %v11722_v6 }
 0x555   : > { %9334 = vst.msk [vmem:[%s13086_s25 + $0x87] sm:$0x1] %vm4632_vm6, %v9303_v32  ;;  %9136 = vst.msk [vmem:[%s13086_s25 + $0xe1] sm:$0x1] %vm4632_vm6, %v9120_v5  ;;  %v9221_v11 = vcombine.high %v9213_v8, %v9213_v8  ;;  %v9222_v42 = vcombine.high %v9220_v23, %v9220_v23  ;;  %v9229_v13 = vrot.slane %v9213_v8, %v11722_v6 }
 0x556   : > { %v9236_v40 = vrot.slane %v9220_v23, %v11722_v6  ;;  %v9321_v14 = vcombine.high %v9317_v27, %v9317_v27  ;;  %9333 = vst.msk [vmem:[%s13086_s25 + $0x67] sm:$0x1] %vm4632_vm6, %v9320_v21  ;;  %9335 = vst.msk [vmem:[%s13086_s25 + $0xa7] sm:$0x1] %vm4632_vm6, %v9317_v27  ;;  %v9421_v15 = vrot.slane %v9407_v44, %v11722_v6 }
 0x557   : > { %9336 = vst.msk [vmem:[%s13086_s25 + $0xc7] sm:$0x1] %vm4632_vm6, %v9319_v9  ;;  %v9422_v31 = vcombine.high %v9414_v19, %v9414_v19  ;;  %v9430_v20 = vrot.slane %v9414_v19, %v11722_v6  ;;  %v9243_v22 = vrot.slane %v9221_v11, %v11722_v6  ;;  %v9250_v25 = vrot.slane %v9222_v42, %v11722_v6 }
 0x558   : > { %v9251_v17 = vcombine.high %v9229_v13, %v9229_v13  ;;  %v9252_v26 = vcombine.high %v9236_v40, %v9236_v40  ;;  %9263 = vst.msk [vmem:[%s13086_s25 + $0x5] sm:$0x1] %vm4632_vm6, %v9229_v13  ;;  %9267 = vst.msk [vmem:[%s13086_s25 + $0x85] sm:$0x1] %vm4632_vm6, %v9236_v40  ;;  %v9423_v29 = vcombine.high %v9421_v15, %v9421_v15 }
 0x559   : > { %9337 = vst.msk [vmem:[%s13086_s25 + $0xe7] sm:$0x1] %vm4632_vm6, %v9321_v14  ;;  %v9437_v48 = vrot.slane %v9421_v15, %v11722_v6  ;;  %v9444_v53 = vrot.slane %v9422_v31, %v11722_v6  ;;  %v9452_v55 = vcombine.high %v9430_v20, %v9430_v20  ;;  %9464 = vst.msk [vmem:[%s13086_s25 + $0xb] sm:$0x1] %vm4632_vm6, %v9430_v20  ;;  %v9031_v15 = vld [vmem:[#allocation4 + $0x48] sm:$0xff] }
 0x55a   : > { %v9253_v39 = vcombine.high %v9243_v22, %v9243_v22  ;;  %v9254_v0 = vcombine.high %v9250_v25, %v9250_v25  ;;  %9264 = vst.msk [vmem:[%s13086_s25 + $0x25] sm:$0x1] %vm4632_vm6, %v9243_v22  ;;  %9265 = vst.msk [vmem:[%s13086_s25 + $0x45] sm:$0x1] %vm4632_vm6, %v9251_v17  ;;  %v9340_v57 = vcombine.high %v9338_v16, %v9338_v16  ;;  %v9033_v17 = vld [vmem:[#allocation4 + $0x58] sm:$0xff] }
 0x55b   : > { %9268 = vst.msk [vmem:[%s13086_s25 + $0xa5] sm:$0x1] %vm4632_vm6, %v9250_v25  ;;  %9269 = vst.msk [vmem:[%s13086_s25 + $0xc5] sm:$0x1] %vm4632_vm6, %v9252_v26  ;;  %v9347_v2 = vrot.slane %v9338_v16, %v11722_v6  ;;  %v9451_v34 = vrot.slane %v9423_v29, %v11722_v6  ;;  %v9453_v62 = vcombine.high %v9437_v48, %v9437_v48  ;;  %v9030_v16 = vld [vmem:[#allocation4 + $0x40] sm:$0xff]  ;;  %v9032_v29 = vld [vmem:[#allocation4 + $0x50] sm:$0xff] }
 0x55c   : > { %v9454_v4 = vcombine.high %v9444_v53, %v9444_v53  ;;  %9465 = vst.msk [vmem:[%s13086_s25 + $0x2b] sm:$0x1] %vm4632_vm6, %v9444_v53  ;;  %9466 = vst.msk [vmem:[%s13086_s25 + $0x4b] sm:$0x1] %vm4632_vm6, %v9452_v55  ;;  %v9541_v36 = vcombine.high %v9539_v28, %v9539_v28  ;;  %v9354_v43 = vrot.slane %v9340_v57, %v11722_v6  ;;  %v9035_v55 = vld [vmem:[#allocation4 + $0x68] sm:$0xff] }
 0x55d   : > { %9468 = vst.msk [vmem:[%s13086_s25 + $0x8b] sm:$0x1] %vm4632_vm6, %v9437_v48  ;;  %9266 = vst.msk [vmem:[%s13086_s25 + $0x65] sm:$0x1] %vm4632_vm6, %v9253_v39  ;;  %v9355_v49 = vcombine.high %v9347_v2, %v9347_v2  ;;  %v9363_v61 = vrot.slane %v9347_v2, %v11722_v6  ;;  %v9548_v1 = vrot.slane %v9539_v28, %v11722_v6  ;;  %v9034_v2 = vld [vmem:[#allocation4 + $0x60] sm:$0xff] }
 0x55e   : > { %9270 = vst.msk [vmem:[%s13086_s25 + $0xe5] sm:$0x1] %vm4632_vm6, %v9254_v0  ;;  %v9455_v24 = vcombine.high %v9451_v34, %v9451_v34  ;;  %9467 = vst.msk [vmem:[%s13086_s25 + $0x6b] sm:$0x1] %vm4632_vm6, %v9454_v4  ;;  %v9555_v7 = vrot.slane %v9541_v36, %v11722_v6  ;;  %v9044_v56 = vadd.f32 %v9028_v18, %v8973_v33  ;;  %v9037_v18 = vld [vmem:[#allocation4 + $0x78] sm:$0xff] }
 0x55f   : > { %9469 = vst.msk [vmem:[%s13086_s25 + $0xab] sm:$0x1] %vm4632_vm6, %v9451_v34  ;;  %9470 = vst.msk [vmem:[%s13086_s25 + $0xcb] sm:$0x1] %vm4632_vm6, %v9453_v62  ;;  %v9356_v38 = vcombine.high %v9354_v43, %v9354_v43  ;;  %v9370_v41 = vrot.slane %v9354_v43, %v11722_v6  ;;  %v9377_v45 = vrot.slane %v9355_v49, %v11722_v6 }
 0x560   : > { %v9385_v47 = vcombine.high %v9363_v61, %v9363_v61  ;;  %9397 = vst.msk [vmem:[%s13086_s25 + $0x9] sm:$0x1] %vm4632_vm6, %v9363_v61  ;;  %9471 = vst.msk [vmem:[%s13086_s25 + $0xeb] sm:$0x1] %vm4632_vm6, %v9455_v24  ;;  %v9556_v50 = vcombine.high %v9548_v1, %v9548_v1  ;;  %v9557_v51 = vcombine.high %v9555_v7, %v9555_v7 }
 0x561   : > { %v9564_v52 = vrot.slane %v9548_v1, %v11722_v6  ;;  %v9571_v58 = vrot.slane %v9555_v7, %v11722_v6  ;;  %9060 = vst.msk [vmem:[#allocation4 + $0x30] sm:$0xff] %vm2771_vm5, %v9044_v56  ;;  %v9384_v59 = vrot.slane %v9356_v38, %v11722_v6  ;;  %v9386_v60 = vcombine.high %v9370_v41, %v9370_v41 }
 0x562   : > { %v9387_v37 = vcombine.high %v9377_v45, %v9377_v45  ;;  %9398 = vst.msk [vmem:[%s13086_s25 + $0x29] sm:$0x1] %vm4632_vm6, %v9377_v45  ;;  %9399 = vst.msk [vmem:[%s13086_s25 + $0x49] sm:$0x1] %vm4632_vm6, %v9385_v47  ;;  %v9578_v10 = vrot.slane %v9556_v50, %v11722_v6  ;;  %v9585_v63 = vrot.slane %v9557_v51, %v11722_v6 }
 0x563   : > { %9401 = vst.msk [vmem:[%s13086_s25 + $0x89] sm:$0x1] %vm4632_vm6, %v9370_v41  ;;  %v9586_v35 = vcombine.high %v9564_v52, %v9564_v52  ;;  %v9587_v3 = vcombine.high %v9571_v58, %v9571_v58  ;;  %9598 = vst.msk [vmem:[%s13086_s25 + $0xf] sm:$0x1] %vm4632_vm6, %v9564_v52  ;;  %v9388_v12 = vcombine.high %v9384_v59, %v9384_v59 }
 0x564   : > { %9602 = vst.msk [vmem:[%s13086_s25 + $0x8f] sm:$0x1] %vm4632_vm6, %v9571_v58  ;;  %9400 = vst.msk [vmem:[%s13086_s25 + $0x69] sm:$0x1] %vm4632_vm6, %v9387_v37  ;;  %v9588_v30 = vcombine.high %v9578_v10, %v9578_v10  ;;  %v9589_v32 = vcombine.high %v9585_v63, %v9585_v63 }
 0x565   : > { %9402 = vst.msk [vmem:[%s13086_s25 + $0xa9] sm:$0x1] %vm4632_vm6, %v9384_v59  ;;  %9403 = vst.msk [vmem:[%s13086_s25 + $0xc9] sm:$0x1] %vm4632_vm6, %v9386_v60 }
 0x566   : > { %9599 = vst.msk [vmem:[%s13086_s25 + $0x2f] sm:$0x1] %vm4632_vm6, %v9578_v10  ;;  %9600 = vst.msk [vmem:[%s13086_s25 + $0x4f] sm:$0x1] %vm4632_vm6, %v9586_v35 }
 0x567   : > { %9603 = vst.msk [vmem:[%s13086_s25 + $0xaf] sm:$0x1] %vm4632_vm6, %v9585_v63  ;;  %9604 = vst.msk [vmem:[%s13086_s25 + $0xcf] sm:$0x1] %vm4632_vm6, %v9587_v3 }
 0x568   : > { %9404 = vst.msk [vmem:[%s13086_s25 + $0xe9] sm:$0x1] %vm4632_vm6, %v9388_v12  ;;  %9601 = vst.msk [vmem:[%s13086_s25 + $0x6f] sm:$0x1] %vm4632_vm6, %v9588_v30  ;;  %v9472_v46 = vld [vmem:[#allocation4 + $0x30] sm:$0xff] }
 0x569   : > { %9605 = vst.msk [vmem:[%s13086_s25 + $0xef] sm:$0x1] %vm4632_vm6, %v9589_v32  ;;  %v9474_v54 = vcombine.high %v9472_v46, %v9472_v46  ;;  %v9481_v5 = vrot.slane %v9472_v46, %v11722_v6 }
 0x56b   : > { %v9488_v8 = vrot.slane %v9474_v54, %v11722_v6  ;;  %v9489_v23 = vcombine.high %v9481_v5, %v9481_v5  ;;  %v9497_v44 = vrot.slane %v9481_v5, %v11722_v6 }
 0x56d   : > { %v9490_v27 = vcombine.high %v9488_v8, %v9488_v8  ;;  %v9504_v9 = vrot.slane %v9488_v8, %v11722_v6  ;;  %v9511_v21 = vrot.slane %v9489_v23, %v11722_v6  ;;  %v9519_v19 = vcombine.high %v9497_v44, %v9497_v44  ;;  %9531 = vst.msk [vmem:[%s13086_s25 + $0xd] sm:$0x1] %vm4632_vm6, %v9497_v44 }
 0x56f   : > { %v9518_v11 = vrot.slane %v9490_v27, %v11722_v6  ;;  %v9520_v42 = vcombine.high %v9504_v9, %v9504_v9  ;;  %v9521_v13 = vcombine.high %v9511_v21, %v9511_v21  ;;  %9532 = vst.msk [vmem:[%s13086_s25 + $0x2d] sm:$0x1] %vm4632_vm6, %v9511_v21  ;;  %9533 = vst.msk [vmem:[%s13086_s25 + $0x4d] sm:$0x1] %vm4632_vm6, %v9519_v19 }
 0x570   : > { %9535 = vst.msk [vmem:[%s13086_s25 + $0x8d] sm:$0x1] %vm4632_vm6, %v9504_v9 }
 0x571   : > { %v9522_v40 = vcombine.high %v9518_v11, %v9518_v11  ;;  %9534 = vst.msk [vmem:[%s13086_s25 + $0x6d] sm:$0x1] %vm4632_vm6, %v9521_v13  ;;  %9536 = vst.msk [vmem:[%s13086_s25 + $0xad] sm:$0x1] %vm4632_vm6, %v9518_v11 }
 0x572   : > { %9537 = vst.msk [vmem:[%s13086_s25 + $0xcd] sm:$0x1] %vm4632_vm6, %v9520_v42 }
 0x573   : > { %9538 = vst.msk [vmem:[%s13086_s25 + $0xed] sm:$0x1] %vm4632_vm6, %v9522_v40 }
 0x5e5   : > { %v11216_v14 = vpop.f32.mrf.mxu0 }
 0x5e6   : > { %v9047_v31 = vadd.f32 %v11216_v14, %v9031_v15 }
 0x5e7   : > { %v8983_v20 = vpop.f32.mrf.mxu0 }
 0x5e8   : > { %9063 = vst.msk [vmem:[#allocation4 + $0x48] sm:$0xff] %vm2771_vm5, %v9047_v31  ;;  %v9046_v22 = vadd.f32 %v9030_v16, %v8983_v20 }
 0x5ea   : > { %9062 = vst.msk [vmem:[#allocation4 + $0x40] sm:$0xff] %vm2771_vm5, %v9046_v22 }
 0x5eb   : > { %v11219_v25 = vpop.f32.mrf.mxu0 }
 0x5ec   : > { %v9049_v26 = vadd.f32 %v11219_v25, %v9033_v17 }
 0x5ed   : > { %v8993_v28 = vpop.f32.mrf.mxu0 }
 0x5ee   : > { %9065 = vst.msk [vmem:[#allocation4 + $0x58] sm:$0xff] %vm2771_vm5, %v9049_v26  ;;  %v9048_v48 = vadd.f32 %v9032_v29, %v8993_v28 }
 0x5ef   : > { %v9673_v0 = vld [vmem:[#allocation4 + $0x48] sm:$0xff] }
 0x5f0   : > { %9064 = vst.msk [vmem:[#allocation4 + $0x50] sm:$0xff] %vm2771_vm5, %v9048_v48  ;;  %v9675_v33 = vcombine.high %v9673_v0, %v9673_v0  ;;  %v9682_v34 = vrot.slane %v9673_v0, %v11722_v6 }
 0x5f1   : > { %v9606_v4 = vld [vmem:[#allocation4 + $0x40] sm:$0xff] }
 0x5f2   : > { %v11222_v53 = vpop.f32.mrf.mxu0  ;;  %v9689_v43 = vrot.slane %v9675_v33, %v11722_v6  ;;  %v9690_v49 = vcombine.high %v9682_v34, %v9682_v34  ;;  %v9698_v61 = vrot.slane %v9682_v34, %v11722_v6  ;;  %v9608_v1 = vcombine.high %v9606_v4, %v9606_v4 }
 0x5f3   : > { %v9051_v39 = vadd.f32 %v11222_v53, %v9035_v55  ;;  %v9615_v24 = vrot.slane %v9606_v4, %v11722_v6 }
 0x5f4   : > { %v9003_v57 = vpop.f32.mrf.mxu0  ;;  %v9691_v38 = vcombine.high %v9689_v43, %v9689_v43  ;;  %v9705_v41 = vrot.slane %v9689_v43, %v11722_v6  ;;  %v9712_v45 = vrot.slane %v9690_v49, %v11722_v6  ;;  %v9720_v47 = vcombine.high %v9698_v61, %v9698_v61  ;;  %9732 = vst.msk [vmem:[%s13086_s25 + $0x13] sm:$0x1] %vm4632_vm6, %v9698_v61 }
 0x5f5   : > { %9067 = vst.msk [vmem:[#allocation4 + $0x68] sm:$0xff] %vm2771_vm5, %v9051_v39  ;;  %v9050_v62 = vadd.f32 %v9034_v2, %v9003_v57  ;;  %v9807_v7 = vld [vmem:[#allocation4 + $0x58] sm:$0xff]  ;;  %v9622_v50 = vrot.slane %v9608_v1, %v11722_v6  ;;  %v9623_v51 = vcombine.high %v9615_v24, %v9615_v24  ;;  %v9631_v52 = vrot.slane %v9615_v24, %v11722_v6 }
 0x5f6   : > { %v9809_v58 = vcombine.high %v9807_v7, %v9807_v7  ;;  %v9719_v59 = vrot.slane %v9691_v38, %v11722_v6  ;;  %v9721_v60 = vcombine.high %v9705_v41, %v9705_v41  ;;  %v9722_v37 = vcombine.high %v9712_v45, %v9712_v45  ;;  %9733 = vst.msk [vmem:[%s13086_s25 + $0x33] sm:$0x1] %vm4632_vm6, %v9712_v45 }
 0x5f7   : > { %9066 = vst.msk [vmem:[#allocation4 + $0x60] sm:$0xff] %vm2771_vm5, %v9050_v62  ;;  %v9816_v10 = vrot.slane %v9807_v7, %v11722_v6  ;;  %v9740_v63 = vld [vmem:[#allocation4 + $0x50] sm:$0xff]  ;;  %v9624_v35 = vcombine.high %v9622_v50, %v9622_v50  ;;  %v9638_v3 = vrot.slane %v9622_v50, %v11722_v6  ;;  %v9645_v12 = vrot.slane %v9623_v51, %v11722_v6 }
 0x5f8   : > { %v11225_v36 = vpop.f32.mrf.mxu0  ;;  %9734 = vst.msk [vmem:[%s13086_s25 + $0x53] sm:$0x1] %vm4632_vm6, %v9720_v47  ;;  %9736 = vst.msk [vmem:[%s13086_s25 + $0x93] sm:$0x1] %vm4632_vm6, %v9705_v41  ;;  %v9653_v30 = vcombine.high %v9631_v52, %v9631_v52  ;;  %v9723_v32 = vcombine.high %v9719_v59, %v9719_v59  ;;  %v9823_v46 = vrot.slane %v9809_v58, %v11722_v6 }
 0x5f9   : > { %v9053_v56 = vadd.f32 %v11225_v36, %v9037_v18  ;;  %9665 = vst.msk [vmem:[%s13086_s25 + $0x11] sm:$0x1] %vm4632_vm6, %v9631_v52  ;;  %9735 = vst.msk [vmem:[%s13086_s25 + $0x73] sm:$0x1] %vm4632_vm6, %v9722_v37  ;;  %v9824_v54 = vcombine.high %v9816_v10, %v9816_v10  ;;  %v9832_v5 = vrot.slane %v9816_v10, %v11722_v6  ;;  %v9036_v52 = vld [vmem:[#allocation4 + $0x70] sm:$0xff] }
 0x5fa   : > { %9737 = vst.msk [vmem:[%s13086_s25 + $0xb3] sm:$0x1] %vm4632_vm6, %v9719_v59  ;;  %9738 = vst.msk [vmem:[%s13086_s25 + $0xd3] sm:$0x1] %vm4632_vm6, %v9721_v60  ;;  %v9652_v23 = vrot.slane %v9624_v35, %v11722_v6  ;;  %v9654_v44 = vcombine.high %v9638_v3, %v9638_v3  ;;  %v9655_v27 = vcombine.high %v9645_v12, %v9645_v12  ;;  %v9013_v24 = vpop.f32.mrf.mxu0 }
 0x5fb   : > { %9069 = vst.msk [vmem:[#allocation4 + $0x78] sm:$0xff] %vm2771_vm5, %v9053_v56  ;;  %v9742_v9 = vcombine.high %v9740_v63, %v9740_v63  ;;  %v9825_v21 = vcombine.high %v9823_v46, %v9823_v46  ;;  %v9839_v19 = vrot.slane %v9823_v46, %v11722_v6  ;;  %v9846_v11 = vrot.slane %v9824_v54, %v11722_v6 }
 0x5fc   : > { %v9941_v8 = vld [vmem:[#allocation4 + $0x68] sm:$0xff]  ;;  %9666 = vst.msk [vmem:[%s13086_s25 + $0x31] sm:$0x1] %vm4632_vm6, %v9645_v12  ;;  %9667 = vst.msk [vmem:[%s13086_s25 + $0x51] sm:$0x1] %vm4632_vm6, %v9653_v30  ;;  %v9854_v42 = vcombine.high %v9832_v5, %v9832_v5  ;;  %v9656_v13 = vcombine.high %v9652_v23, %v9652_v23  ;;  %v9749_v40 = vrot.slane %v9740_v63, %v11722_v6 }
 0x5fd   : > { %9669 = vst.msk [vmem:[%s13086_s25 + $0x91] sm:$0x1] %vm4632_vm6, %v9638_v3  ;;  %9739 = vst.msk [vmem:[%s13086_s25 + $0xf3] sm:$0x1] %vm4632_vm6, %v9723_v32  ;;  %v9756_v14 = vrot.slane %v9742_v9, %v11722_v6  ;;  %v9943_v15 = vcombine.high %v9941_v8, %v9941_v8  ;;  %v9853_v31 = vrot.slane %v9825_v21, %v11722_v6 }
 0x5fe   : > { %9866 = vst.msk [vmem:[%s13086_s25 + $0x17] sm:$0x1] %vm4632_vm6, %v9832_v5  ;;  %9668 = vst.msk [vmem:[%s13086_s25 + $0x71] sm:$0x1] %vm4632_vm6, %v9655_v27  ;;  %v9855_v20 = vcombine.high %v9839_v19, %v9839_v19  ;;  %v9856_v16 = vcombine.high %v9846_v11, %v9846_v11  ;;  %v9950_v22 = vrot.slane %v9941_v8, %v11722_v6  ;;  %v9874_v39 = vld [vmem:[#allocation4 + $0x60] sm:$0xff] }
 0x5ff   : > { %9670 = vst.msk [vmem:[%s13086_s25 + $0xb1] sm:$0x1] %vm4632_vm6, %v9652_v23  ;;  %9671 = vst.msk [vmem:[%s13086_s25 + $0xd1] sm:$0x1] %vm4632_vm6, %v9654_v44  ;;  %v9757_v25 = vcombine.high %v9749_v40, %v9749_v40  ;;  %v9758_v17 = vcombine.high %v9756_v14, %v9756_v14  ;;  %v9765_v26 = vrot.slane %v9749_v40, %v11722_v6 }
 0x600   : > { %9867 = vst.msk [vmem:[%s13086_s25 + $0x37] sm:$0x1] %vm4632_vm6, %v9846_v11  ;;  %9868 = vst.msk [vmem:[%s13086_s25 + $0x57] sm:$0x1] %vm4632_vm6, %v9854_v42  ;;  %v9772_v28 = vrot.slane %v9756_v14, %v11722_v6  ;;  %v9857_v29 = vcombine.high %v9853_v31, %v9853_v31  ;;  %v9957_v48 = vrot.slane %v9943_v15, %v11722_v6 }
 0x601   : > { %9870 = vst.msk [vmem:[%s13086_s25 + $0x97] sm:$0x1] %vm4632_vm6, %v9839_v19  ;;  %9672 = vst.msk [vmem:[%s13086_s25 + $0xf1] sm:$0x1] %vm4632_vm6, %v9656_v13  ;;  %v9958_v53 = vcombine.high %v9950_v22, %v9950_v22  ;;  %v9966_v55 = vrot.slane %v9950_v22, %v11722_v6  ;;  %v9779_v0 = vrot.slane %v9757_v25, %v11722_v6 }
 0x602   : > { %9869 = vst.msk [vmem:[%s13086_s25 + $0x77] sm:$0x1] %vm4632_vm6, %v9856_v16  ;;  %9871 = vst.msk [vmem:[%s13086_s25 + $0xb7] sm:$0x1] %vm4632_vm6, %v9853_v31  ;;  %v9786_v57 = vrot.slane %v9758_v17, %v11722_v6  ;;  %v9787_v2 = vcombine.high %v9765_v26, %v9765_v26  ;;  %v9788_v33 = vcombine.high %v9772_v28, %v9772_v28  ;;  %v10075_v34 = vld [vmem:[#allocation4 + $0x78] sm:$0xff] }
 0x603   : > { %9872 = vst.msk [vmem:[%s13086_s25 + $0xd7] sm:$0x1] %vm4632_vm6, %v9855_v20  ;;  %9799 = vst.msk [vmem:[%s13086_s25 + $0x15] sm:$0x1] %vm4632_vm6, %v9765_v26  ;;  %v9959_v62 = vcombine.high %v9957_v48, %v9957_v48  ;;  %v9973_v4 = vrot.slane %v9957_v48, %v11722_v6  ;;  %v9980_v36 = vrot.slane %v9958_v53, %v11722_v6 }
 0x604   : > { %9803 = vst.msk [vmem:[%s13086_s25 + $0x95] sm:$0x1] %vm4632_vm6, %v9772_v28  ;;  %9873 = vst.msk [vmem:[%s13086_s25 + $0xf7] sm:$0x1] %vm4632_vm6, %v9857_v29  ;;  %v9988_v43 = vcombine.high %v9966_v55, %v9966_v55  ;;  %v9789_v49 = vcombine.high %v9779_v0, %v9779_v0  ;;  %v9790_v61 = vcombine.high %v9786_v57, %v9786_v57 }
 0x605   : > { %10000 = vst.msk [vmem:[%s13086_s25 + $0x1b] sm:$0x1] %vm4632_vm6, %v9966_v55  ;;  %9800 = vst.msk [vmem:[%s13086_s25 + $0x35] sm:$0x1] %vm4632_vm6, %v9779_v0  ;;  %v9876_v1 = vcombine.high %v9874_v39, %v9874_v39  ;;  %v9883_v18 = vrot.slane %v9874_v39, %v11722_v6  ;;  %v9987_v7 = vrot.slane %v9959_v62, %v11722_v6 }
 0x606   : > { %9801 = vst.msk [vmem:[%s13086_s25 + $0x55] sm:$0x1] %vm4632_vm6, %v9787_v2  ;;  %9804 = vst.msk [vmem:[%s13086_s25 + $0xb5] sm:$0x1] %vm4632_vm6, %v9786_v57  ;;  %v9989_v56 = vcombine.high %v9973_v4, %v9973_v4  ;;  %v9990_v38 = vcombine.high %v9980_v36, %v9980_v36  ;;  %v10077_v41 = vcombine.high %v10075_v34, %v10075_v34 }
 0x607   : > { %9805 = vst.msk [vmem:[%s13086_s25 + $0xd5] sm:$0x1] %vm4632_vm6, %v9788_v33  ;;  %10001 = vst.msk [vmem:[%s13086_s25 + $0x3b] sm:$0x1] %vm4632_vm6, %v9980_v36  ;;  %v9890_v45 = vrot.slane %v9876_v1, %v11722_v6  ;;  %v9891_v47 = vcombine.high %v9883_v18, %v9883_v18  ;;  %v9899_v50 = vrot.slane %v9883_v18, %v11722_v6 }
 0x608   : > { %10002 = vst.msk [vmem:[%s13086_s25 + $0x5b] sm:$0x1] %vm4632_vm6, %v9988_v43  ;;  %10004 = vst.msk [vmem:[%s13086_s25 + $0x9b] sm:$0x1] %vm4632_vm6, %v9973_v4  ;;  %v10084_v51 = vrot.slane %v10075_v34, %v11722_v6  ;;  %v9991_v58 = vcombine.high %v9987_v7, %v9987_v7  ;;  %v10091_v59 = vrot.slane %v10077_v41, %v11722_v6 }
 0x609   : > { %9802 = vst.msk [vmem:[%s13086_s25 + $0x75] sm:$0x1] %vm4632_vm6, %v9789_v49  ;;  %9806 = vst.msk [vmem:[%s13086_s25 + $0xf5] sm:$0x1] %vm4632_vm6, %v9790_v61  ;;  %v9052_v60 = vadd.f32 %v9036_v52, %v9013_v24  ;;  %v9892_v37 = vcombine.high %v9890_v45, %v9890_v45  ;;  %v9906_v10 = vrot.slane %v9890_v45, %v11722_v6 }
 0x60a   : > { %10003 = vst.msk [vmem:[%s13086_s25 + $0x7b] sm:$0x1] %vm4632_vm6, %v9990_v38  ;;  %10005 = vst.msk [vmem:[%s13086_s25 + $0xbb] sm:$0x1] %vm4632_vm6, %v9987_v7  ;;  %v9913_v63 = vrot.slane %v9891_v47, %v11722_v6  ;;  %v9921_v35 = vcombine.high %v9899_v50, %v9899_v50  ;;  %v10092_v3 = vcombine.high %v10084_v51, %v10084_v51 }
 0x60b   : > { %10006 = vst.msk [vmem:[%s13086_s25 + $0xdb] sm:$0x1] %vm4632_vm6, %v9989_v56  ;;  %9933 = vst.msk [vmem:[%s13086_s25 + $0x19] sm:$0x1] %vm4632_vm6, %v9899_v50  ;;  %v10093_v12 = vcombine.high %v10091_v59, %v10091_v59  ;;  %v10100_v30 = vrot.slane %v10084_v51, %v11722_v6  ;;  %v10107_v32 = vrot.slane %v10091_v59, %v11722_v6 }
 0x60c   : > { %10007 = vst.msk [vmem:[%s13086_s25 + $0xfb] sm:$0x1] %vm4632_vm6, %v9991_v58  ;;  %v9920_v46 = vrot.slane %v9892_v37, %v11722_v6  ;;  %v9922_v54 = vcombine.high %v9906_v10, %v9906_v10  ;;  %v9923_v5 = vcombine.high %v9913_v63, %v9913_v63  ;;  %9934 = vst.msk [vmem:[%s13086_s25 + $0x39] sm:$0x1] %vm4632_vm6, %v9913_v63 }
 0x60d   : > { %9068 = vst.msk [vmem:[#allocation4 + $0x70] sm:$0xff] %vm2771_vm5, %v9052_v60  ;;  %v10114_v8 = vrot.slane %v10092_v3, %v11722_v6  ;;  %v10121_v23 = vrot.slane %v10093_v12, %v11722_v6  ;;  %v10122_v44 = vcombine.high %v10100_v30, %v10100_v30  ;;  %v10123_v27 = vcombine.high %v10107_v32, %v10107_v32 }
 0x60e   : > { %9935 = vst.msk [vmem:[%s13086_s25 + $0x59] sm:$0x1] %vm4632_vm6, %v9921_v35  ;;  %9937 = vst.msk [vmem:[%s13086_s25 + $0x99] sm:$0x1] %vm4632_vm6, %v9906_v10  ;;  %v9924_v9 = vcombine.high %v9920_v46, %v9920_v46 }
 0x60f   : > { %10134 = vst.msk [vmem:[%s13086_s25 + $0x1f] sm:$0x1] %vm4632_vm6, %v10100_v30  ;;  %10138 = vst.msk [vmem:[%s13086_s25 + $0x9f] sm:$0x1] %vm4632_vm6, %v10107_v32  ;;  %v10124_v21 = vcombine.high %v10114_v8, %v10114_v8  ;;  %v10125_v19 = vcombine.high %v10121_v23, %v10121_v23 }
 0x610   : > { %9936 = vst.msk [vmem:[%s13086_s25 + $0x79] sm:$0x1] %vm4632_vm6, %v9923_v5  ;;  %9938 = vst.msk [vmem:[%s13086_s25 + $0xb9] sm:$0x1] %vm4632_vm6, %v9920_v46 }
 0x611   : > { %9939 = vst.msk [vmem:[%s13086_s25 + $0xd9] sm:$0x1] %vm4632_vm6, %v9922_v54  ;;  %10135 = vst.msk [vmem:[%s13086_s25 + $0x3f] sm:$0x1] %vm4632_vm6, %v10114_v8 }
 0x612   : > { %10136 = vst.msk [vmem:[%s13086_s25 + $0x5f] sm:$0x1] %vm4632_vm6, %v10122_v44  ;;  %10139 = vst.msk [vmem:[%s13086_s25 + $0xbf] sm:$0x1] %vm4632_vm6, %v10121_v23 }
 0x613   : > { %10140 = vst.msk [vmem:[%s13086_s25 + $0xdf] sm:$0x1] %vm4632_vm6, %v10123_v27  ;;  %9940 = vst.msk [vmem:[%s13086_s25 + $0xf9] sm:$0x1] %vm4632_vm6, %v9924_v9 }
 0x614   : > { %10137 = vst.msk [vmem:[%s13086_s25 + $0x7f] sm:$0x1] %vm4632_vm6, %v10124_v21  ;;  %10141 = vst.msk [vmem:[%s13086_s25 + $0xff] sm:$0x1] %vm4632_vm6, %v10125_v19  ;;  %v10008_v11 = vld [vmem:[#allocation4 + $0x70] sm:$0xff] }
 0x615   : > { %v10010_v42 = vcombine.high %v10008_v11, %v10008_v11  ;;  %v10017_v13 = vrot.slane %v10008_v11, %v11722_v6 }
 0x617   : > { %v10024_v40 = vrot.slane %v10010_v42, %v11722_v6  ;;  %v10025_v14 = vcombine.high %v10017_v13, %v10017_v13  ;;  %v10033_v15 = vrot.slane %v10017_v13, %v11722_v6 }
 0x619   : > { %v10026_v31 = vcombine.high %v10024_v40, %v10024_v40  ;;  %v10040_v20 = vrot.slane %v10024_v40, %v11722_v6  ;;  %v10047_v16 = vrot.slane %v10025_v14, %v11722_v6  ;;  %v10055_v22 = vcombine.high %v10033_v15, %v10033_v15  ;;  %10067 = vst.msk [vmem:[%s13086_s25 + $0x1d] sm:$0x1] %vm4632_vm6, %v10033_v15 }
 0x61b   : > { %v10054_v25 = vrot.slane %v10026_v31, %v11722_v6  ;;  %v10056_v17 = vcombine.high %v10040_v20, %v10040_v20  ;;  %v10057_v26 = vcombine.high %v10047_v16, %v10047_v16  ;;  %10068 = vst.msk [vmem:[%s13086_s25 + $0x3d] sm:$0x1] %vm4632_vm6, %v10047_v16  ;;  %10069 = vst.msk [vmem:[%s13086_s25 + $0x5d] sm:$0x1] %vm4632_vm6, %v10055_v22 }
 0x61c   : > { %10071 = vst.msk [vmem:[%s13086_s25 + $0x9d] sm:$0x1] %vm4632_vm6, %v10040_v20 }
 0x61d   : > { %v10058_v6 = vcombine.high %v10054_v25, %v10054_v25  ;;  %10070 = vst.msk [vmem:[%s13086_s25 + $0x7d] sm:$0x1] %vm4632_vm6, %v10057_v26  ;;  %10072 = vst.msk [vmem:[%s13086_s25 + $0xbd] sm:$0x1] %vm4632_vm6, %v10054_v25 }
 0x61e   : > { %10073 = vst.msk [vmem:[%s13086_s25 + $0xdd] sm:$0x1] %vm4632_vm6, %v10056_v17 }
 0x61f   : > { %10074 = vst.msk [vmem:[%s13086_s25 + $0xfd] sm:$0x1] %vm4632_vm6, %v10058_v6 }
 0x620   : > { %11443 = shalt.err (!%p11440_p3)
}
 0x621   : > { %s11444_s6 = scalar_lea.hbm %s13886_s22, 4096  ;;  %s11448_s18 = scalar_lea.hbm %s13942_s3, 8192 }
 0x622   : > { %p11445_p11 = scmp.ne.s32.totalorder %s13886_s22, %s11444_s6  ;;  %p11449_p4 = scmp.lt.s32.totalorder %s13886_s22, %s13942_s3 }
 0x623   : > { %p11450_p6 = scmp.lt.s32.totalorder %s11448_s18, %s11444_s6 }
 0x624   : > { %p11446_p9 = pnand %p11445_p11, %p13957_p2 }
 0x625   : > { %p11451_p8 = por %p11450_p6, %p11449_p4 }
 0x626   : > { %p11447_p1 = pneg %p11446_p9 }
 0x628   : > { %p11452_p5 = pnand %p11451_p8, %p11447_p1 }
 0x62a   : > { %11455 = shalt.err (!%p11452_p5)
}
 0x62b   : > { %s11512_s28 = smov 128   ;;  %s11513_s25 = smov 8  }
 0x62c   : > { %11240 = dma.vmem_to_hbm [thread:$0]  (%p13957_p2), %s13888_s30, 4096, %s13886_s22, %s10143_s16, %s11512_s28, %s11512_s28, %s11513_s25  }
 0x62d PF: > { %s10171_s29 = sand.u32 1, %s11486_s12   ;;  %p13958_p7 = scmp.ne.s32.totalorder %s13948_s19, 0 }
 0x62e   : > { %p13959_p12 = scmp.ge.s32.totalorder %s11498_s15, 2  ;;  %s10172_s4 = scalar_lea.sflag [#allocation7], %s10171_s29 }
 0x630   : > { %p11254_p13 = pnand %p13959_p12, %p13958_p7 }
 0x632   : > { %p11255_p0 = pneg %p11254_p13 }
 0x634   : > { %11481 = dma.done.wait (%p11255_p0), %s10172_s4, 4096  }
 0x635   : > { %11483 = vsyncadd (%p11255_p0), %s10172_s4, 4294963200  ;;  %p17_p10 = scmp.ge.s32.totalorder %s11612_s7, 4   ;;  %s13960_s12 = smov %s11490_s13 }
 0x636   : > { %s13961_s13 = smov %s11494_s14  ;;  %s13962_s14 = smov %s11628_s11 }
 0x637   : > { %s13963_s15 = smov %s11612_s7  ;;  %19 = sbr.rel (!%p17_p10) target bundleno = 6 (0x6), region = 109 }
 0x63c   :  { %10177 = vsyncpa [#allocation6], 1 }
 0x63d   :  { %10179 = vsyncpa [#allocation6 + $0x1], 1 }
 0x63e   :  { %10180 = vsyncpa [#allocation9], 1 }
 0x63f   :  { %10181 = vsyncpa [#allocation7], 1 }
 0x640   :  { %10183 = vsyncpa [#allocation7 + $0x1], 1 }

</bundles_post_ra>
